<compile_context>
chip_gen: v6e
topology: v6e:2x2x1
jax: 0.10.0
libtpu: 0.0.40
codegen_flags: <defaults>
</compile_context>

<pallas_src>
import numpy as np

import jax
import jax.numpy as jnp
from jax.experimental import pallas as pl
from jax.experimental.pallas import tpu as pltpu


# ---------------------------------------------------------------------------
# Fixed geometry (the module's Unflatten((8, 2, 2, 7)) pins the spatial sizes).
# Activations: rows = (d, w) frame, lanes = (h, c); h is folded into weights.
# ---------------------------------------------------------------------------
D0, H0, W0 = 6, 6, 25
D1, H1, W1 = 3, 3, 13            # after enc1 (k3, s2, p1)
D2, H2, W2 = 2, 2, 7             # after enc2
D3, H3, W3 = 3, 3, 13            # after dec1 (ConvTranspose k3, s2, p1)
D4, H4, W4 = 6, 6, 25            # after dec2 (output_padding (1, 1, 0))

WP1 = W0 + 2                     # 27  enc1 input frame width (pad 1)
WP2 = W1 + 2                     # 15  enc2 input frame width (pad 1)
WP3 = 2 * W2 - 1 + 2             # 15  dec1 input frame width (stuffed + pad 1)
WP4 = 2 * W3 - 1 + 2             # 27  dec2 input frame width (stuffed + pad 1)

FR1 = (D0 + 2) * WP1             # 216 rows
FR2 = (D1 + 2) * WP2             # 75
FR3 = (2 * D2 - 1 + 2) * WP3     # 75
FR4 = (2 * D3 - 1 + 1 + 2) * WP4  # 216 (d gets +1 output_padding on the right)

F1 = 2 * (D1 - 1) * WP1 + 2 * (W1 - 1) + 1   # 133 tap-window rows, enc1
F2 = 2 * (D2 - 1) * WP2 + 2 * (W2 - 1) + 1   # 43
F3 = (D3 - 1) * WP3 + (W3 - 1) + 1           # 43
F4 = (D4 - 1) * WP4 + (W4 - 1) + 1           # 160


# ---------------------------------------------------------------------------
# Host-side helpers: fold the kh taps / h-stride / h-stuffing / h-padding of
# each 3x3x3 (de)conv into a banded matrix
#     BigW[(kd, kw)][(h_in, c_in), (h_out, c_out)]
# ---------------------------------------------------------------------------
def _band_conv(hin, hout, stride, pad):
    """0/1 map for an ordinary conv over h:  h_in = stride*h_out + kh - pad."""
    p = np.zeros((3, hin, hout), np.float32)
    for kh in range(3):
        for ho in range(hout):
            hi = stride * ho + kh - pad
            if 0 <= hi < hin:
                p[kh, hi, ho] = 1.0
    return p


def _band_deconv(hin, hout):
    """0/1 map for a stride-2, pad-1 ConvTranspose over h, expressed as an
    ordinary conv with the flipped kernel over the zero-stuffed + padded h
    axis (any output_padding is encoded by hout)."""
    p = np.zeros((3, hin, hout), np.float32)
    for kh in range(3):
        for ho in range(hout):
            num = ho + kh - 1
            if num >= 0 and num % 2 == 0 and num // 2 < hin:
                p[kh, num // 2, ho] = 1.0
    return p


def _build_bigw(w_conv, p):
    """w_conv: (OC, IC, kd, kh, kw) ordinary-conv weight; p: (3, Hin, Hout).
    Returns (9, Hin*IC, Hout*OC) bf16; tap index t = kd*3 + kw."""
    big = jnp.einsum("kab,ocdkw->dwacbo", jnp.asarray(p), w_conv)
    kd, kw, hin, ic, hout, oc = big.shape
    return big.reshape(kd * kw, hin * ic, hout * oc).astype(jnp.bfloat16)


def _selection_matrices():
    """0/1 placement matrices: next_frame = S @ relu(conv_out + bias).
    They implement the stride-2 output subsampling (encoders) and the
    zero-stuffing + padding of the deconv input frames in one matmul each."""
    s1 = np.zeros((FR2, F1), np.float32)
    for od in range(D1):
        for ow in range(W1):
            s1[(od + 1) * WP2 + (ow + 1), (2 * od) * WP1 + 2 * ow] = 1.0
    s2 = np.zeros((FR3, F2), np.float32)
    for od in range(D2):
        for ow in range(W2):
            s2[(1 + 2 * od) * WP3 + (1 + 2 * ow), (2 * od) * WP2 + 2 * ow] = 1.0
    s3 = np.zeros((FR4, F3), np.float32)
    for od in range(D3):
        for ow in range(W3):
            s3[(1 + 2 * od) * WP4 + (1 + 2 * ow), od * WP3 + ow] = 1.0
    return (jnp.asarray(s1, jnp.bfloat16),
            jnp.asarray(s2, jnp.bfloat16),
            jnp.asarray(s3, jnp.bfloat16))


# ---------------------------------------------------------------------------
# The fused Pallas kernel (one batch element per grid step; everything VMEM).
# ---------------------------------------------------------------------------
def _fused_kernel(x_ref, bw1_ref, bw2_ref, bw3_ref, bw4_ref,
                  b1_ref, b2_ref, b3_ref, b4_ref,
                  s1_ref, s2_ref, s3_ref,
                  out_ref,
                  buf2, buf3, buf4):
    f32, bf16 = jnp.float32, jnp.bfloat16

    def conv_layer(frame_ref, bw_ref, b_ref, wp, f, relu):
        # One (de)conv layer = 9 contiguous row-window MXU matmuls, one per
        # (kd, kw) tap; the kh taps / h-stride / h-stuffing / h-padding live
        # in bw_ref.  Partials accumulate in registers (no scratch RMW).
        acc = None
        for t in range(9):
            kd, kw = divmod(t, 3)
            off = kd * wp + kw
            a = frame_ref[off:off + f, :].astype(bf16)
            part = jnp.dot(a, bw_ref[t], preferred_element_type=f32)
            acc = part if acc is None else acc + part
        y = acc + b_ref[...]                       # f32 bias (VPU)
        if relu:
            y = jnp.maximum(y, 0.0)                # f32 ReLU (VPU)
        return y

    def place(s_ref, y):
        # Scatter the layer output into the next layer's padded / zero-stuffed
        # frame with a 0/1 selection matmul; halo & stuffed rows become 0.
        return jnp.dot(s_ref[...], y.astype(bf16), preferred_element_type=f32)

    y1 = conv_layer(x_ref, bw1_ref, b1_ref, WP1, F1, relu=True)      # enc1
    buf2[...] = place(s1_ref, y1)
    y2 = conv_layer(buf2, bw2_ref, b2_ref, WP2, F2, relu=True)       # enc2
    # (nn.Flatten / nn.Unflatten are pure layout no-ops.)
    buf3[...] = place(s2_ref, y2)
    y3 = conv_layer(buf3, bw3_ref, b3_ref, WP3, F3, relu=True)       # dec1
    buf4[...] = place(s3_ref, y3)
    y4 = conv_layer(buf4, bw4_ref, b4_ref, WP4, F4, relu=False)      # dec2
    out_ref[...] = y4                              # lane-dense, 8-aligned store


# ---------------------------------------------------------------------------
# Forward pass: host-side packing (params + boundary transpose of x / out)
# and a single pallas_call.
# ---------------------------------------------------------------------------
def conv_autoencoder_forward(params, x):
    N, C0, d0, h0, w0 = x.shape
    assert (d0, h0, w0) == (D0, H0, W0), "Unflatten((8,2,2,7)) fixes the spatial dims"

    oc1 = params["enc1_w"].shape[0]        # 16
    oc2 = params["enc2_w"].shape[0]        # 8
    oc3 = params["dec1_w"].shape[1]        # 16
    oc4 = params["dec2_w"].shape[1]        # 25

    # -- input: NCDHW -> rows = padded (d, w) frame, lanes = (h, c) -----------
    xr = x.transpose(0, 2, 4, 3, 1).reshape(N, D0, W0, H0 * C0)
    xr = jnp.pad(xr, ((0, 0), (1, 1), (1, 1), (0, 0)))
    xr = xr.reshape(N * FR1, H0 * C0)

    # -- banded weights (kh taps / h-stride / h-stuffing / h-padding folded) --
    bw1 = _build_bigw(params["enc1_w"], _band_conv(H0, H1, 2, 1))    # (9, 150, 48)
    bw2 = _build_bigw(params["enc2_w"], _band_conv(H1, H2, 2, 1))    # (9, 48, 16)
    w3 = jnp.flip(params["dec1_w"], (2, 3, 4)).transpose(1, 0, 2, 3, 4)
    bw3 = _build_bigw(w3, _band_deconv(H2, H3))                      # (9, 16, 48)
    w4 = jnp.flip(params["dec2_w"], (2, 3, 4)).transpose(1, 0, 2, 3, 4)
    bw4 = _build_bigw(w4, _band_deconv(H3, H4))                      # (9, 48, 150)

    b1 = jnp.tile(params["enc1_b"], H1).reshape(1, H1 * oc1).astype(jnp.float32)
    b2 = jnp.tile(params["enc2_b"], H2).reshape(1, H2 * oc2).astype(jnp.float32)
    b3 = jnp.tile(params["dec1_b"], H3).reshape(1, H3 * oc3).astype(jnp.float32)
    b4 = jnp.tile(params["dec2_b"], H4).reshape(1, H4 * oc4).astype(jnp.float32)

    s1, s2, s3 = _selection_matrices()

    def full(arr):
        zeros = (0,) * arr.ndim
        return pl.BlockSpec(arr.shape, lambda n, z=zeros: z)

    out = pl.pallas_call(
        _fused_kernel,
        out_shape=jax.ShapeDtypeStruct((N * F4, H4 * oc4), jnp.float32),
        grid_spec=pltpu.PrefetchScalarGridSpec(
            num_scalar_prefetch=0,
            grid=(N,),
            in_specs=[
                pl.BlockSpec((FR1, H0 * C0), lambda n: (n, 0)),   # per-batch input frame
                full(bw1), full(bw2), full(bw3), full(bw4),
                full(b1), full(b2), full(b3), full(b4),
                full(s1), full(s2), full(s3),
            ],
            out_specs=pl.BlockSpec((F4, H4 * oc4), lambda n: (n, 0)),
            scratch_shapes=[
                pltpu.VMEM((FR2, H1 * oc1), jnp.float32),   # enc2 input frame
                pltpu.VMEM((FR3, H2 * oc2), jnp.float32),   # dec1 input frame (stuffed)
                pltpu.VMEM((FR4, H3 * oc3), jnp.float32),   # dec2 input frame (stuffed)
            ],
        ),
        compiler_params=pltpu.CompilerParams(
            dimension_semantics=("parallel",),
        ),
    )(xr, bw1, bw2, bw3, bw4, b1, b2, b3, b4, s1, s2, s3)

    # dec2 window rows: r = od*WP4 + ow  ->  gather + reshape back to NCDHW.
    out = out.reshape(N, F4, H4 * oc4)
    ridx = jnp.asarray((np.arange(D4)[:, None] * WP4 + np.arange(W4)[None, :]).reshape(-1))
    out = out[:, ridx, :]                                    # (N, D4*W4, H4*oc4)
    out = out.reshape(N, D4, W4, H4, oc4).transpose(0, 4, 1, 3, 2)
    return out


# ---------------------------------------------------------------------------
# Parameters (PyTorch layouts) and a pure-XLA reference for sanity checking.
# ---------------------------------------------------------------------------
def init_params(key, input_size=25):
    ks = jax.random.split(key, 8)
    s = 0.05
    return {
        "enc1_w": s * jax.random.normal(ks[0], (16, input_size, 3, 3, 3), jnp.float32),
        "enc1_b": s * jax.random.normal(ks[1], (16,), jnp.float32),
        "enc2_w": s * jax.random.normal(ks[2], (8, 16, 3, 3, 3), jnp.float32),
        "enc2_b": s * jax.random.normal(ks[3], (8,), jnp.float32),
        "dec1_w": s * jax.random.normal(ks[4], (8, 16, 3, 3, 3), jnp.float32),   # ConvT (IC, OC, ...)
        "dec1_b": s * jax.random.normal(ks[5], (16,), jnp.float32),
        "dec2_w": s * jax.random.normal(ks[6], (16, input_size, 3, 3, 3), jnp.float32),
        "dec2_b": s * jax.random.normal(ks[7], (input_size,), jnp.float32),
    }


def _ref_forward(params, x):
    dn = ("NCDHW", "OIDHW", "NCDHW")
    h = jax.lax.conv_general_dilated(x, params["enc1_w"], (2, 2, 2),
                                     [(1, 1)] * 3, dimension_numbers=dn)
    h = jax.nn.relu(h + params["enc1_b"].reshape(1, -1, 1, 1, 1))
    h = jax.lax.conv_general_dilated(h, params["enc2_w"], (2, 2, 2),
                                     [(1, 1)] * 3, dimension_numbers=dn)
    h = jax.nn.relu(h + params["enc2_b"].reshape(1, -1, 1, 1, 1))
    w3 = jnp.flip(params["dec1_w"], (2, 3, 4)).transpose(1, 0, 2, 3, 4)
    h = jax.lax.conv_general_dilated(h, w3, (1, 1, 1), [(1, 1)] * 3,
                                     lhs_dilation=(2, 2, 2), dimension_numbers=dn)
    h = jax.nn.relu(h + params["dec1_b"].reshape(1, -1, 1, 1, 1))
    w4 = jnp.flip(params["dec2_w"], (2, 3, 4)).transpose(1, 0, 2, 3, 4)
    h = jax.lax.conv_general_dilated(h, w4, (1, 1, 1), [(1, 2), (1, 2), (1, 1)],
                                     lhs_dilation=(2, 2, 2), dimension_numbers=dn)
    return h + params["dec2_b"].reshape(1, -1, 1, 1, 1)


if __name__ == "__main__":
    key = jax.random.PRNGKey(0)
    k_param, k_x = jax.random.split(key)

    params = init_params(k_param, input_size=25)
    # nn.Unflatten((8, 2, 2, 7)) implies input spatial dims (6, 6, 25).
    x = jax.random.normal(k_x, (2, 25, 6, 6, 25), jnp.float32)

    fwd = jax.jit(conv_autoencoder_forward)
    y = fwd(params, x)
    jax.block_until_ready(y)
    assert y.shape == (2, 25, 6, 6, 25), y.shape

    # Tightened vs. v1 (1e-1): matmul inputs are bf16 with f32 accumulation,
    # so ~1e-2-level agreement with the f32 reference is expected.
    y_ref = _ref_forward(params, x)
    np.testing.assert_allclose(np.asarray(y), np.asarray(y_ref), rtol=2e-2, atol=2e-2)

    print("KERNEL_OK")
</pallas_src>

<mosaic_0001>
module attributes {stable_mosaic.version = 11 : i64} {
  func.func @_fused_kernel(%arg0: i32, %arg1: memref<216x150xf32, #tpu.memory_space<vmem>>, %arg2: memref<9x150x48xbf16, #tpu.memory_space<vmem>>, %arg3: memref<9x48x16xbf16, #tpu.memory_space<vmem>>, %arg4: memref<9x16x48xbf16, #tpu.memory_space<vmem>>, %arg5: memref<9x48x150xbf16, #tpu.memory_space<vmem>>, %arg6: memref<1x48xf32, #tpu.memory_space<vmem>>, %arg7: memref<1x16xf32, #tpu.memory_space<vmem>>, %arg8: memref<1x48xf32, #tpu.memory_space<vmem>>, %arg9: memref<1x150xf32, #tpu.memory_space<vmem>>, %arg10: memref<75x133xbf16, #tpu.memory_space<vmem>>, %arg11: memref<75x43xbf16, #tpu.memory_space<vmem>>, %arg12: memref<216x43xbf16, #tpu.memory_space<vmem>>, %arg13: memref<160x150xf32, #tpu.memory_space<vmem>>, %arg14: memref<75x48xf32, #tpu.memory_space<vmem>>, %arg15: memref<75x16xf32, #tpu.memory_space<vmem>>, %arg16: memref<216x48xf32, #tpu.memory_space<vmem>>) attributes {dimension_semantics = [#tpu.dimension_semantics<parallel>], iteration_bounds = array<i64: 2>, scalar_prefetch = 0 : i64, scratch_operands = 3 : i64, tpu.core_type = #tpu.core_type<tc>, window_params = [{transform_indices = @transform_0, window_bounds = array<i64: 216, 150>}, {pipeline_mode = #tpu.pipeline_mode<synchronous>, transform_indices = @transform_1, window_bounds = array<i64: 9, 150, 48>}, {pipeline_mode = #tpu.pipeline_mode<synchronous>, transform_indices = @transform_2, window_bounds = array<i64: 9, 48, 16>}, {pipeline_mode = #tpu.pipeline_mode<synchronous>, transform_indices = @transform_3, window_bounds = array<i64: 9, 16, 48>}, {pipeline_mode = #tpu.pipeline_mode<synchronous>, transform_indices = @transform_4, window_bounds = array<i64: 9, 48, 150>}, {pipeline_mode = #tpu.pipeline_mode<synchronous>, transform_indices = @transform_5, window_bounds = array<i64: 1, 48>}, {pipeline_mode = #tpu.pipeline_mode<synchronous>, transform_indices = @transform_6, window_bounds = array<i64: 1, 16>}, {pipeline_mode = #tpu.pipeline_mode<synchronous>, transform_indices = @transform_7, window_bounds = array<i64: 1, 48>}, {pipeline_mode = #tpu.pipeline_mode<synchronous>, transform_indices = @transform_8, window_bounds = array<i64: 1, 150>}, {pipeline_mode = #tpu.pipeline_mode<synchronous>, transform_indices = @transform_9, window_bounds = array<i64: 75, 133>}, {pipeline_mode = #tpu.pipeline_mode<synchronous>, transform_indices = @transform_10, window_bounds = array<i64: 75, 43>}, {pipeline_mode = #tpu.pipeline_mode<synchronous>, transform_indices = @transform_11, window_bounds = array<i64: 216, 43>}, {transform_indices = @transform_12, window_bounds = array<i64: 160, 150>}]} {
    %c0 = arith.constant 0 : index
    %c0_0 = arith.constant 0 : index
    %0 = vector.load %arg1[%c0, %c0_0] : memref<216x150xf32, #tpu.memory_space<vmem>>, vector<133x150xf32>
    %1 = arith.truncf %0 : vector<133x150xf32> to vector<133x150xbf16>
    %c0_1 = arith.constant 0 : index
    %c0_2 = arith.constant 0 : index
    %c0_3 = arith.constant 0 : index
    %2 = vector.load %arg2[%c0_1, %c0_2, %c0_3] : memref<9x150x48xbf16, #tpu.memory_space<vmem>>, vector<1x150x48xbf16>
    %3 = vector.shape_cast %2 : vector<1x150x48xbf16> to vector<150x48xbf16>
    %cst = arith.constant dense<0.000000e+00> : vector<133x48xf32>
    %4 = tpu.matmul %1, %3, %cst {dimension_numbers = #tpu.dot_dimension_numbers<[1], [0], [0], [1], [0, 0, 1, 1], [], []>} : vector<133x150xbf16>, vector<150x48xbf16>, vector<133x48xf32> -> vector<133x48xf32>
    %c1 = arith.constant 1 : index
    %c0_4 = arith.constant 0 : index
    %5 = vector.load %arg1[%c1, %c0_4] : memref<216x150xf32, #tpu.memory_space<vmem>>, vector<133x150xf32>
    %6 = arith.truncf %5 : vector<133x150xf32> to vector<133x150xbf16>
    %c1_5 = arith.constant 1 : index
    %c0_6 = arith.constant 0 : index
    %c0_7 = arith.constant 0 : index
    %7 = vector.load %arg2[%c1_5, %c0_6, %c0_7] : memref<9x150x48xbf16, #tpu.memory_space<vmem>>, vector<1x150x48xbf16>
    %8 = vector.shape_cast %7 : vector<1x150x48xbf16> to vector<150x48xbf16>
    %cst_8 = arith.constant dense<0.000000e+00> : vector<133x48xf32>
    %9 = tpu.matmul %6, %8, %cst_8 {dimension_numbers = #tpu.dot_dimension_numbers<[1], [0], [0], [1], [0, 0, 1, 1], [], []>} : vector<133x150xbf16>, vector<150x48xbf16>, vector<133x48xf32> -> vector<133x48xf32>
    %10 = arith.addf %4, %9 : vector<133x48xf32>
    %c2 = arith.constant 2 : index
    %c0_9 = arith.constant 0 : index
    %11 = vector.load %arg1[%c2, %c0_9] : memref<216x150xf32, #tpu.memory_space<vmem>>, vector<133x150xf32>
    %12 = arith.truncf %11 : vector<133x150xf32> to vector<133x150xbf16>
    %c2_10 = arith.constant 2 : index
    %c0_11 = arith.constant 0 : index
    %c0_12 = arith.constant 0 : index
    %13 = vector.load %arg2[%c2_10, %c0_11, %c0_12] : memref<9x150x48xbf16, #tpu.memory_space<vmem>>, vector<1x150x48xbf16>
    %14 = vector.shape_cast %13 : vector<1x150x48xbf16> to vector<150x48xbf16>
    %cst_13 = arith.constant dense<0.000000e+00> : vector<133x48xf32>
    %15 = tpu.matmul %12, %14, %cst_13 {dimension_numbers = #tpu.dot_dimension_numbers<[1], [0], [0], [1], [0, 0, 1, 1], [], []>} : vector<133x150xbf16>, vector<150x48xbf16>, vector<133x48xf32> -> vector<133x48xf32>
    %16 = arith.addf %10, %15 : vector<133x48xf32>
    %c27 = arith.constant 27 : index
    %c0_14 = arith.constant 0 : index
    %17 = vector.load %arg1[%c27, %c0_14] : memref<216x150xf32, #tpu.memory_space<vmem>>, vector<133x150xf32>
    %18 = arith.truncf %17 : vector<133x150xf32> to vector<133x150xbf16>
    %c3 = arith.constant 3 : index
    %c0_15 = arith.constant 0 : index
    %c0_16 = arith.constant 0 : index
    %19 = vector.load %arg2[%c3, %c0_15, %c0_16] : memref<9x150x48xbf16, #tpu.memory_space<vmem>>, vector<1x150x48xbf16>
    %20 = vector.shape_cast %19 : vector<1x150x48xbf16> to vector<150x48xbf16>
    %cst_17 = arith.constant dense<0.000000e+00> : vector<133x48xf32>
    %21 = tpu.matmul %18, %20, %cst_17 {dimension_numbers = #tpu.dot_dimension_numbers<[1], [0], [0], [1], [0, 0, 1, 1], [], []>} : vector<133x150xbf16>, vector<150x48xbf16>, vector<133x48xf32> -> vector<133x48xf32>
    %22 = arith.addf %16, %21 : vector<133x48xf32>
    %c28 = arith.constant 28 : index
    %c0_18 = arith.constant 0 : index
    %23 = vector.load %arg1[%c28, %c0_18] : memref<216x150xf32, #tpu.memory_space<vmem>>, vector<133x150xf32>
    %24 = arith.truncf %23 : vector<133x150xf32> to vector<133x150xbf16>
    %c4 = arith.constant 4 : index
    %c0_19 = arith.constant 0 : index
    %c0_20 = arith.constant 0 : index
    %25 = vector.load %arg2[%c4, %c0_19, %c0_20] : memref<9x150x48xbf16, #tpu.memory_space<vmem>>, vector<1x150x48xbf16>
    %26 = vector.shape_cast %25 : vector<1x150x48xbf16> to vector<150x48xbf16>
    %cst_21 = arith.constant dense<0.000000e+00> : vector<133x48xf32>
    %27 = tpu.matmul %24, %26, %cst_21 {dimension_numbers = #tpu.dot_dimension_numbers<[1], [0], [0], [1], [0, 0, 1, 1], [], []>} : vector<133x150xbf16>, vector<150x48xbf16>, vector<133x48xf32> -> vector<133x48xf32>
    %28 = arith.addf %22, %27 : vector<133x48xf32>
    %c29 = arith.constant 29 : index
    %c0_22 = arith.constant 0 : index
    %29 = vector.load %arg1[%c29, %c0_22] : memref<216x150xf32, #tpu.memory_space<vmem>>, vector<133x150xf32>
    %30 = arith.truncf %29 : vector<133x150xf32> to vector<133x150xbf16>
    %c5 = arith.constant 5 : index
    %c0_23 = arith.constant 0 : index
    %c0_24 = arith.constant 0 : index
    %31 = vector.load %arg2[%c5, %c0_23, %c0_24] : memref<9x150x48xbf16, #tpu.memory_space<vmem>>, vector<1x150x48xbf16>
    %32 = vector.shape_cast %31 : vector<1x150x48xbf16> to vector<150x48xbf16>
    %cst_25 = arith.constant dense<0.000000e+00> : vector<133x48xf32>
    %33 = tpu.matmul %30, %32, %cst_25 {dimension_numbers = #tpu.dot_dimension_numbers<[1], [0], [0], [1], [0, 0, 1, 1], [], []>} : vector<133x150xbf16>, vector<150x48xbf16>, vector<133x48xf32> -> vector<133x48xf32>
    %34 = arith.addf %28, %33 : vector<133x48xf32>
    %c54 = arith.constant 54 : index
    %c0_26 = arith.constant 0 : index
    %35 = vector.load %arg1[%c54, %c0_26] : memref<216x150xf32, #tpu.memory_space<vmem>>, vector<133x150xf32>
    %36 = arith.truncf %35 : vector<133x150xf32> to vector<133x150xbf16>
    %c6 = arith.constant 6 : index
    %c0_27 = arith.constant 0 : index
    %c0_28 = arith.constant 0 : index
    %37 = vector.load %arg2[%c6, %c0_27, %c0_28] : memref<9x150x48xbf16, #tpu.memory_space<vmem>>, vector<1x150x48xbf16>
    %38 = vector.shape_cast %37 : vector<1x150x48xbf16> to vector<150x48xbf16>
    %cst_29 = arith.constant dense<0.000000e+00> : vector<133x48xf32>
    %39 = tpu.matmul %36, %38, %cst_29 {dimension_numbers = #tpu.dot_dimension_numbers<[1], [0], [0], [1], [0, 0, 1, 1], [], []>} : vector<133x150xbf16>, vector<150x48xbf16>, vector<133x48xf32> -> vector<133x48xf32>
    %40 = arith.addf %34, %39 : vector<133x48xf32>
    %c55 = arith.constant 55 : index
    %c0_30 = arith.constant 0 : index
    %41 = vector.load %arg1[%c55, %c0_30] : memref<216x150xf32, #tpu.memory_space<vmem>>, vector<133x150xf32>
    %42 = arith.truncf %41 : vector<133x150xf32> to vector<133x150xbf16>
    %c7 = arith.constant 7 : index
    %c0_31 = arith.constant 0 : index
    %c0_32 = arith.constant 0 : index
    %43 = vector.load %arg2[%c7, %c0_31, %c0_32] : memref<9x150x48xbf16, #tpu.memory_space<vmem>>, vector<1x150x48xbf16>
    %44 = vector.shape_cast %43 : vector<1x150x48xbf16> to vector<150x48xbf16>
    %cst_33 = arith.constant dense<0.000000e+00> : vector<133x48xf32>
    %45 = tpu.matmul %42, %44, %cst_33 {dimension_numbers = #tpu.dot_dimension_numbers<[1], [0], [0], [1], [0, 0, 1, 1], [], []>} : vector<133x150xbf16>, vector<150x48xbf16>, vector<133x48xf32> -> vector<133x48xf32>
    %46 = arith.addf %40, %45 : vector<133x48xf32>
    %c56 = arith.constant 56 : index
    %c0_34 = arith.constant 0 : index
    %47 = vector.load %arg1[%c56, %c0_34] : memref<216x150xf32, #tpu.memory_space<vmem>>, vector<133x150xf32>
    %48 = arith.truncf %47 : vector<133x150xf32> to vector<133x150xbf16>
    %c8 = arith.constant 8 : index
    %c0_35 = arith.constant 0 : index
    %c0_36 = arith.constant 0 : index
    %49 = vector.load %arg2[%c8, %c0_35, %c0_36] : memref<9x150x48xbf16, #tpu.memory_space<vmem>>, vector<1x150x48xbf16>
    %50 = vector.shape_cast %49 : vector<1x150x48xbf16> to vector<150x48xbf16>
    %cst_37 = arith.constant dense<0.000000e+00> : vector<133x48xf32>
    %51 = tpu.matmul %48, %50, %cst_37 {dimension_numbers = #tpu.dot_dimension_numbers<[1], [0], [0], [1], [0, 0, 1, 1], [], []>} : vector<133x150xbf16>, vector<150x48xbf16>, vector<133x48xf32> -> vector<133x48xf32>
    %52 = arith.addf %46, %51 : vector<133x48xf32>
    %c0_38 = arith.constant 0 : index
    %c0_39 = arith.constant 0 : index
    %53 = vector.load %arg6[%c0_38, %c0_39] : memref<1x48xf32, #tpu.memory_space<vmem>>, vector<1x48xf32>
    %54 = vector.broadcast %53 : vector<1x48xf32> to vector<133x48xf32>
    %55 = arith.addf %52, %54 : vector<133x48xf32>
    %cst_40 = arith.constant 0.000000e+00 : f32
    %56 = vector.broadcast %cst_40 : f32 to vector<133x48xf32>
    %57 = arith.maximumf %55, %56 : vector<133x48xf32>
    %c0_41 = arith.constant 0 : index
    %c0_42 = arith.constant 0 : index
    %58 = vector.load %arg10[%c0_41, %c0_42] : memref<75x133xbf16, #tpu.memory_space<vmem>>, vector<75x133xbf16>
    %59 = arith.truncf %57 : vector<133x48xf32> to vector<133x48xbf16>
    %cst_43 = arith.constant dense<0.000000e+00> : vector<75x48xf32>
    %60 = tpu.matmul %58, %59, %cst_43 {dimension_numbers = #tpu.dot_dimension_numbers<[1], [0], [0], [1], [0, 0, 1, 1], [], []>} : vector<75x133xbf16>, vector<133x48xbf16>, vector<75x48xf32> -> vector<75x48xf32>
    %c0_44 = arith.constant 0 : index
    %c0_45 = arith.constant 0 : index
    %61 = vector.load %arg14[%c0_44, %c0_45] : memref<75x48xf32, #tpu.memory_space<vmem>>, vector<75x48xf32>
    tpu.vector_store %arg14[%c0_44, %c0_45], %60 {strides = array<i32>} : memref<75x48xf32, #tpu.memory_space<vmem>>, vector<75x48xf32>,
    %c0_46 = arith.constant 0 : index
    %c0_47 = arith.constant 0 : index
    %62 = vector.load %arg14[%c0_46, %c0_47] : memref<75x48xf32, #tpu.memory_space<vmem>>, vector<43x48xf32>
    %63 = arith.truncf %62 : vector<43x48xf32> to vector<43x48xbf16>
    %c0_48 = arith.constant 0 : index
    %c0_49 = arith.constant 0 : index
    %c0_50 = arith.constant 0 : index
    %64 = vector.load %arg3[%c0_48, %c0_49, %c0_50] : memref<9x48x16xbf16, #tpu.memory_space<vmem>>, vector<1x48x16xbf16>
    %65 = vector.shape_cast %64 : vector<1x48x16xbf16> to vector<48x16xbf16>
    %cst_51 = arith.constant dense<0.000000e+00> : vector<43x16xf32>
    %66 = tpu.matmul %63, %65, %cst_51 {dimension_numbers = #tpu.dot_dimension_numbers<[1], [0], [0], [1], [0, 0, 1, 1], [], []>} : vector<43x48xbf16>, vector<48x16xbf16>, vector<43x16xf32> -> vector<43x16xf32>
    %c1_52 = arith.constant 1 : index
    %c0_53 = arith.constant 0 : index
    %67 = vector.load %arg14[%c1_52, %c0_53] : memref<75x48xf32, #tpu.memory_space<vmem>>, vector<43x48xf32>
    %68 = arith.truncf %67 : vector<43x48xf32> to vector<43x48xbf16>
    %c1_54 = arith.constant 1 : index
    %c0_55 = arith.constant 0 : index
    %c0_56 = arith.constant 0 : index
    %69 = vector.load %arg3[%c1_54, %c0_55, %c0_56] : memref<9x48x16xbf16, #tpu.memory_space<vmem>>, vector<1x48x16xbf16>
    %70 = vector.shape_cast %69 : vector<1x48x16xbf16> to vector<48x16xbf16>
    %cst_57 = arith.constant dense<0.000000e+00> : vector<43x16xf32>
    %71 = tpu.matmul %68, %70, %cst_57 {dimension_numbers = #tpu.dot_dimension_numbers<[1], [0], [0], [1], [0, 0, 1, 1], [], []>} : vector<43x48xbf16>, vector<48x16xbf16>, vector<43x16xf32> -> vector<43x16xf32>
    %72 = arith.addf %66, %71 : vector<43x16xf32>
    %c2_58 = arith.constant 2 : index
    %c0_59 = arith.constant 0 : index
    %73 = vector.load %arg14[%c2_58, %c0_59] : memref<75x48xf32, #tpu.memory_space<vmem>>, vector<43x48xf32>
    %74 = arith.truncf %73 : vector<43x48xf32> to vector<43x48xbf16>
    %c2_60 = arith.constant 2 : index
    %c0_61 = arith.constant 0 : index
    %c0_62 = arith.constant 0 : index
    %75 = vector.load %arg3[%c2_60, %c0_61, %c0_62] : memref<9x48x16xbf16, #tpu.memory_space<vmem>>, vector<1x48x16xbf16>
    %76 = vector.shape_cast %75 : vector<1x48x16xbf16> to vector<48x16xbf16>
    %cst_63 = arith.constant dense<0.000000e+00> : vector<43x16xf32>
    %77 = tpu.matmul %74, %76, %cst_63 {dimension_numbers = #tpu.dot_dimension_numbers<[1], [0], [0], [1], [0, 0, 1, 1], [], []>} : vector<43x48xbf16>, vector<48x16xbf16>, vector<43x16xf32> -> vector<43x16xf32>
    %78 = arith.addf %72, %77 : vector<43x16xf32>
    %c15 = arith.constant 15 : index
    %c0_64 = arith.constant 0 : index
    %79 = vector.load %arg14[%c15, %c0_64] : memref<75x48xf32, #tpu.memory_space<vmem>>, vector<43x48xf32>
    %80 = arith.truncf %79 : vector<43x48xf32> to vector<43x48xbf16>
    %c3_65 = arith.constant 3 : index
    %c0_66 = arith.constant 0 : index
    %c0_67 = arith.constant 0 : index
    %81 = vector.load %arg3[%c3_65, %c0_66, %c0_67] : memref<9x48x16xbf16, #tpu.memory_space<vmem>>, vector<1x48x16xbf16>
    %82 = vector.shape_cast %81 : vector<1x48x16xbf16> to vector<48x16xbf16>
    %cst_68 = arith.constant dense<0.000000e+00> : vector<43x16xf32>
    %83 = tpu.matmul %80, %82, %cst_68 {dimension_numbers = #tpu.dot_dimension_numbers<[1], [0], [0], [1], [0, 0, 1, 1], [], []>} : vector<43x48xbf16>, vector<48x16xbf16>, vector<43x16xf32> -> vector<43x16xf32>
    %84 = arith.addf %78, %83 : vector<43x16xf32>
    %c16 = arith.constant 16 : index
    %c0_69 = arith.constant 0 : index
    %85 = vector.load %arg14[%c16, %c0_69] : memref<75x48xf32, #tpu.memory_space<vmem>>, vector<43x48xf32>
    %86 = arith.truncf %85 : vector<43x48xf32> to vector<43x48xbf16>
    %c4_70 = arith.constant 4 : index
    %c0_71 = arith.constant 0 : index
    %c0_72 = arith.constant 0 : index
    %87 = vector.load %arg3[%c4_70, %c0_71, %c0_72] : memref<9x48x16xbf16, #tpu.memory_space<vmem>>, vector<1x48x16xbf16>
    %88 = vector.shape_cast %87 : vector<1x48x16xbf16> to vector<48x16xbf16>
    %cst_73 = arith.constant dense<0.000000e+00> : vector<43x16xf32>
    %89 = tpu.matmul %86, %88, %cst_73 {dimension_numbers = #tpu.dot_dimension_numbers<[1], [0], [0], [1], [0, 0, 1, 1], [], []>} : vector<43x48xbf16>, vector<48x16xbf16>, vector<43x16xf32> -> vector<43x16xf32>
    %90 = arith.addf %84, %89 : vector<43x16xf32>
    %c17 = arith.constant 17 : index
    %c0_74 = arith.constant 0 : index
    %91 = vector.load %arg14[%c17, %c0_74] : memref<75x48xf32, #tpu.memory_space<vmem>>, vector<43x48xf32>
    %92 = arith.truncf %91 : vector<43x48xf32> to vector<43x48xbf16>
    %c5_75 = arith.constant 5 : index
    %c0_76 = arith.constant 0 : index
    %c0_77 = arith.constant 0 : index
    %93 = vector.load %arg3[%c5_75, %c0_76, %c0_77] : memref<9x48x16xbf16, #tpu.memory_space<vmem>>, vector<1x48x16xbf16>
    %94 = vector.shape_cast %93 : vector<1x48x16xbf16> to vector<48x16xbf16>
    %cst_78 = arith.constant dense<0.000000e+00> : vector<43x16xf32>
    %95 = tpu.matmul %92, %94, %cst_78 {dimension_numbers = #tpu.dot_dimension_numbers<[1], [0], [0], [1], [0, 0, 1, 1], [], []>} : vector<43x48xbf16>, vector<48x16xbf16>, vector<43x16xf32> -> vector<43x16xf32>
    %96 = arith.addf %90, %95 : vector<43x16xf32>
    %c30 = arith.constant 30 : index
    %c0_79 = arith.constant 0 : index
    %97 = vector.load %arg14[%c30, %c0_79] : memref<75x48xf32, #tpu.memory_space<vmem>>, vector<43x48xf32>
    %98 = arith.truncf %97 : vector<43x48xf32> to vector<43x48xbf16>
    %c6_80 = arith.constant 6 : index
    %c0_81 = arith.constant 0 : index
    %c0_82 = arith.constant 0 : index
    %99 = vector.load %arg3[%c6_80, %c0_81, %c0_82] : memref<9x48x16xbf16, #tpu.memory_space<vmem>>, vector<1x48x16xbf16>
    %100 = vector.shape_cast %99 : vector<1x48x16xbf16> to vector<48x16xbf16>
    %cst_83 = arith.constant dense<0.000000e+00> : vector<43x16xf32>
    %101 = tpu.matmul %98, %100, %cst_83 {dimension_numbers = #tpu.dot_dimension_numbers<[1], [0], [0], [1], [0, 0, 1, 1], [], []>} : vector<43x48xbf16>, vector<48x16xbf16>, vector<43x16xf32> -> vector<43x16xf32>
    %102 = arith.addf %96, %101 : vector<43x16xf32>
    %c31 = arith.constant 31 : index
    %c0_84 = arith.constant 0 : index
    %103 = vector.load %arg14[%c31, %c0_84] : memref<75x48xf32, #tpu.memory_space<vmem>>, vector<43x48xf32>
    %104 = arith.truncf %103 : vector<43x48xf32> to vector<43x48xbf16>
    %c7_85 = arith.constant 7 : index
    %c0_86 = arith.constant 0 : index
    %c0_87 = arith.constant 0 : index
    %105 = vector.load %arg3[%c7_85, %c0_86, %c0_87] : memref<9x48x16xbf16, #tpu.memory_space<vmem>>, vector<1x48x16xbf16>
    %106 = vector.shape_cast %105 : vector<1x48x16xbf16> to vector<48x16xbf16>
    %cst_88 = arith.constant dense<0.000000e+00> : vector<43x16xf32>
    %107 = tpu.matmul %104, %106, %cst_88 {dimension_numbers = #tpu.dot_dimension_numbers<[1], [0], [0], [1], [0, 0, 1, 1], [], []>} : vector<43x48xbf16>, vector<48x16xbf16>, vector<43x16xf32> -> vector<43x16xf32>
    %108 = arith.addf %102, %107 : vector<43x16xf32>
    %c32 = arith.constant 32 : index
    %c0_89 = arith.constant 0 : index
    %109 = vector.load %arg14[%c32, %c0_89] : memref<75x48xf32, #tpu.memory_space<vmem>>, vector<43x48xf32>
    %110 = arith.truncf %109 : vector<43x48xf32> to vector<43x48xbf16>
    %c8_90 = arith.constant 8 : index
    %c0_91 = arith.constant 0 : index
    %c0_92 = arith.constant 0 : index
    %111 = vector.load %arg3[%c8_90, %c0_91, %c0_92] : memref<9x48x16xbf16, #tpu.memory_space<vmem>>, vector<1x48x16xbf16>
    %112 = vector.shape_cast %111 : vector<1x48x16xbf16> to vector<48x16xbf16>
    %cst_93 = arith.constant dense<0.000000e+00> : vector<43x16xf32>
    %113 = tpu.matmul %110, %112, %cst_93 {dimension_numbers = #tpu.dot_dimension_numbers<[1], [0], [0], [1], [0, 0, 1, 1], [], []>} : vector<43x48xbf16>, vector<48x16xbf16>, vector<43x16xf32> -> vector<43x16xf32>
    %114 = arith.addf %108, %113 : vector<43x16xf32>
    %c0_94 = arith.constant 0 : index
    %c0_95 = arith.constant 0 : index
    %115 = vector.load %arg7[%c0_94, %c0_95] : memref<1x16xf32, #tpu.memory_space<vmem>>, vector<1x16xf32>
    %116 = vector.broadcast %115 : vector<1x16xf32> to vector<43x16xf32>
    %117 = arith.addf %114, %116 : vector<43x16xf32>
    %cst_96 = arith.constant 0.000000e+00 : f32
    %118 = vector.broadcast %cst_96 : f32 to vector<43x16xf32>
    %119 = arith.maximumf %117, %118 : vector<43x16xf32>
    %c0_97 = arith.constant 0 : index
    %c0_98 = arith.constant 0 : index
    %120 = vector.load %arg11[%c0_97, %c0_98] : memref<75x43xbf16, #tpu.memory_space<vmem>>, vector<75x43xbf16>
    %121 = arith.truncf %119 : vector<43x16xf32> to vector<43x16xbf16>
    %cst_99 = arith.constant dense<0.000000e+00> : vector<75x16xf32>
    %122 = tpu.matmul %120, %121, %cst_99 {dimension_numbers = #tpu.dot_dimension_numbers<[1], [0], [0], [1], [0, 0, 1, 1], [], []>} : vector<75x43xbf16>, vector<43x16xbf16>, vector<75x16xf32> -> vector<75x16xf32>
    %c0_100 = arith.constant 0 : index
    %c0_101 = arith.constant 0 : index
    %123 = vector.load %arg15[%c0_100, %c0_101] : memref<75x16xf32, #tpu.memory_space<vmem>>, vector<75x16xf32>
    tpu.vector_store %arg15[%c0_100, %c0_101], %122 {strides = array<i32>} : memref<75x16xf32, #tpu.memory_space<vmem>>, vector<75x16xf32>,
    %c0_102 = arith.constant 0 : index
    %c0_103 = arith.constant 0 : index
    %124 = vector.load %arg15[%c0_102, %c0_103] : memref<75x16xf32, #tpu.memory_space<vmem>>, vector<43x16xf32>
    %125 = arith.truncf %124 : vector<43x16xf32> to vector<43x16xbf16>
    %c0_104 = arith.constant 0 : index
    %c0_105 = arith.constant 0 : index
    %c0_106 = arith.constant 0 : index
    %126 = vector.load %arg4[%c0_104, %c0_105, %c0_106] : memref<9x16x48xbf16, #tpu.memory_space<vmem>>, vector<1x16x48xbf16>
    %127 = vector.shape_cast %126 : vector<1x16x48xbf16> to vector<16x48xbf16>
    %cst_107 = arith.constant dense<0.000000e+00> : vector<43x48xf32>
    %128 = tpu.matmul %125, %127, %cst_107 {dimension_numbers = #tpu.dot_dimension_numbers<[1], [0], [0], [1], [0, 0, 1, 1], [], []>} : vector<43x16xbf16>, vector<16x48xbf16>, vector<43x48xf32> -> vector<43x48xf32>
    %c1_108 = arith.constant 1 : index
    %c0_109 = arith.constant 0 : index
    %129 = vector.load %arg15[%c1_108, %c0_109] : memref<75x16xf32, #tpu.memory_space<vmem>>, vector<43x16xf32>
    %130 = arith.truncf %129 : vector<43x16xf32> to vector<43x16xbf16>
    %c1_110 = arith.constant 1 : index
    %c0_111 = arith.constant 0 : index
    %c0_112 = arith.constant 0 : index
    %131 = vector.load %arg4[%c1_110, %c0_111, %c0_112] : memref<9x16x48xbf16, #tpu.memory_space<vmem>>, vector<1x16x48xbf16>
    %132 = vector.shape_cast %131 : vector<1x16x48xbf16> to vector<16x48xbf16>
    %cst_113 = arith.constant dense<0.000000e+00> : vector<43x48xf32>
    %133 = tpu.matmul %130, %132, %cst_113 {dimension_numbers = #tpu.dot_dimension_numbers<[1], [0], [0], [1], [0, 0, 1, 1], [], []>} : vector<43x16xbf16>, vector<16x48xbf16>, vector<43x48xf32> -> vector<43x48xf32>
    %134 = arith.addf %128, %133 : vector<43x48xf32>
    %c2_114 = arith.constant 2 : index
    %c0_115 = arith.constant 0 : index
    %135 = vector.load %arg15[%c2_114, %c0_115] : memref<75x16xf32, #tpu.memory_space<vmem>>, vector<43x16xf32>
    %136 = arith.truncf %135 : vector<43x16xf32> to vector<43x16xbf16>
    %c2_116 = arith.constant 2 : index
    %c0_117 = arith.constant 0 : index
    %c0_118 = arith.constant 0 : index
    %137 = vector.load %arg4[%c2_116, %c0_117, %c0_118] : memref<9x16x48xbf16, #tpu.memory_space<vmem>>, vector<1x16x48xbf16>
    %138 = vector.shape_cast %137 : vector<1x16x48xbf16> to vector<16x48xbf16>
    %cst_119 = arith.constant dense<0.000000e+00> : vector<43x48xf32>
    %139 = tpu.matmul %136, %138, %cst_119 {dimension_numbers = #tpu.dot_dimension_numbers<[1], [0], [0], [1], [0, 0, 1, 1], [], []>} : vector<43x16xbf16>, vector<16x48xbf16>, vector<43x48xf32> -> vector<43x48xf32>
    %140 = arith.addf %134, %139 : vector<43x48xf32>
    %c15_120 = arith.constant 15 : index
    %c0_121 = arith.constant 0 : index
    %141 = vector.load %arg15[%c15_120, %c0_121] : memref<75x16xf32, #tpu.memory_space<vmem>>, vector<43x16xf32>
    %142 = arith.truncf %141 : vector<43x16xf32> to vector<43x16xbf16>
    %c3_122 = arith.constant 3 : index
    %c0_123 = arith.constant 0 : index
    %c0_124 = arith.constant 0 : index
    %143 = vector.load %arg4[%c3_122, %c0_123, %c0_124] : memref<9x16x48xbf16, #tpu.memory_space<vmem>>, vector<1x16x48xbf16>
    %144 = vector.shape_cast %143 : vector<1x16x48xbf16> to vector<16x48xbf16>
    %cst_125 = arith.constant dense<0.000000e+00> : vector<43x48xf32>
    %145 = tpu.matmul %142, %144, %cst_125 {dimension_numbers = #tpu.dot_dimension_numbers<[1], [0], [0], [1], [0, 0, 1, 1], [], []>} : vector<43x16xbf16>, vector<16x48xbf16>, vector<43x48xf32> -> vector<43x48xf32>
    %146 = arith.addf %140, %145 : vector<43x48xf32>
    %c16_126 = arith.constant 16 : index
    %c0_127 = arith.constant 0 : index
    %147 = vector.load %arg15[%c16_126, %c0_127] : memref<75x16xf32, #tpu.memory_space<vmem>>, vector<43x16xf32>
    %148 = arith.truncf %147 : vector<43x16xf32> to vector<43x16xbf16>
    %c4_128 = arith.constant 4 : index
    %c0_129 = arith.constant 0 : index
    %c0_130 = arith.constant 0 : index
    %149 = vector.load %arg4[%c4_128, %c0_129, %c0_130] : memref<9x16x48xbf16, #tpu.memory_space<vmem>>, vector<1x16x48xbf16>
    %150 = vector.shape_cast %149 : vector<1x16x48xbf16> to vector<16x48xbf16>
    %cst_131 = arith.constant dense<0.000000e+00> : vector<43x48xf32>
    %151 = tpu.matmul %148, %150, %cst_131 {dimension_numbers = #tpu.dot_dimension_numbers<[1], [0], [0], [1], [0, 0, 1, 1], [], []>} : vector<43x16xbf16>, vector<16x48xbf16>, vector<43x48xf32> -> vector<43x48xf32>
    %152 = arith.addf %146, %151 : vector<43x48xf32>
    %c17_132 = arith.constant 17 : index
    %c0_133 = arith.constant 0 : index
    %153 = vector.load %arg15[%c17_132, %c0_133] : memref<75x16xf32, #tpu.memory_space<vmem>>, vector<43x16xf32>
    %154 = arith.truncf %153 : vector<43x16xf32> to vector<43x16xbf16>
    %c5_134 = arith.constant 5 : index
    %c0_135 = arith.constant 0 : index
    %c0_136 = arith.constant 0 : index
    %155 = vector.load %arg4[%c5_134, %c0_135, %c0_136] : memref<9x16x48xbf16, #tpu.memory_space<vmem>>, vector<1x16x48xbf16>
    %156 = vector.shape_cast %155 : vector<1x16x48xbf16> to vector<16x48xbf16>
    %cst_137 = arith.constant dense<0.000000e+00> : vector<43x48xf32>
    %157 = tpu.matmul %154, %156, %cst_137 {dimension_numbers = #tpu.dot_dimension_numbers<[1], [0], [0], [1], [0, 0, 1, 1], [], []>} : vector<43x16xbf16>, vector<16x48xbf16>, vector<43x48xf32> -> vector<43x48xf32>
    %158 = arith.addf %152, %157 : vector<43x48xf32>
    %c30_138 = arith.constant 30 : index
    %c0_139 = arith.constant 0 : index
    %159 = vector.load %arg15[%c30_138, %c0_139] : memref<75x16xf32, #tpu.memory_space<vmem>>, vector<43x16xf32>
    %160 = arith.truncf %159 : vector<43x16xf32> to vector<43x16xbf16>
    %c6_140 = arith.constant 6 : index
    %c0_141 = arith.constant 0 : index
    %c0_142 = arith.constant 0 : index
    %161 = vector.load %arg4[%c6_140, %c0_141, %c0_142] : memref<9x16x48xbf16, #tpu.memory_space<vmem>>, vector<1x16x48xbf16>
    %162 = vector.shape_cast %161 : vector<1x16x48xbf16> to vector<16x48xbf16>
    %cst_143 = arith.constant dense<0.000000e+00> : vector<43x48xf32>
    %163 = tpu.matmul %160, %162, %cst_143 {dimension_numbers = #tpu.dot_dimension_numbers<[1], [0], [0], [1], [0, 0, 1, 1], [], []>} : vector<43x16xbf16>, vector<16x48xbf16>, vector<43x48xf32> -> vector<43x48xf32>
    %164 = arith.addf %158, %163 : vector<43x48xf32>
    %c31_144 = arith.constant 31 : index
    %c0_145 = arith.constant 0 : index
    %165 = vector.load %arg15[%c31_144, %c0_145] : memref<75x16xf32, #tpu.memory_space<vmem>>, vector<43x16xf32>
    %166 = arith.truncf %165 : vector<43x16xf32> to vector<43x16xbf16>
    %c7_146 = arith.constant 7 : index
    %c0_147 = arith.constant 0 : index
    %c0_148 = arith.constant 0 : index
    %167 = vector.load %arg4[%c7_146, %c0_147, %c0_148] : memref<9x16x48xbf16, #tpu.memory_space<vmem>>, vector<1x16x48xbf16>
    %168 = vector.shape_cast %167 : vector<1x16x48xbf16> to vector<16x48xbf16>
    %cst_149 = arith.constant dense<0.000000e+00> : vector<43x48xf32>
    %169 = tpu.matmul %166, %168, %cst_149 {dimension_numbers = #tpu.dot_dimension_numbers<[1], [0], [0], [1], [0, 0, 1, 1], [], []>} : vector<43x16xbf16>, vector<16x48xbf16>, vector<43x48xf32> -> vector<43x48xf32>
    %170 = arith.addf %164, %169 : vector<43x48xf32>
    %c32_150 = arith.constant 32 : index
    %c0_151 = arith.constant 0 : index
    %171 = vector.load %arg15[%c32_150, %c0_151] : memref<75x16xf32, #tpu.memory_space<vmem>>, vector<43x16xf32>
    %172 = arith.truncf %171 : vector<43x16xf32> to vector<43x16xbf16>
    %c8_152 = arith.constant 8 : index
    %c0_153 = arith.constant 0 : index
    %c0_154 = arith.constant 0 : index
    %173 = vector.load %arg4[%c8_152, %c0_153, %c0_154] : memref<9x16x48xbf16, #tpu.memory_space<vmem>>, vector<1x16x48xbf16>
    %174 = vector.shape_cast %173 : vector<1x16x48xbf16> to vector<16x48xbf16>
    %cst_155 = arith.constant dense<0.000000e+00> : vector<43x48xf32>
    %175 = tpu.matmul %172, %174, %cst_155 {dimension_numbers = #tpu.dot_dimension_numbers<[1], [0], [0], [1], [0, 0, 1, 1], [], []>} : vector<43x16xbf16>, vector<16x48xbf16>, vector<43x48xf32> -> vector<43x48xf32>
    %176 = arith.addf %170, %175 : vector<43x48xf32>
    %c0_156 = arith.constant 0 : index
    %c0_157 = arith.constant 0 : index
    %177 = vector.load %arg8[%c0_156, %c0_157] : memref<1x48xf32, #tpu.memory_space<vmem>>, vector<1x48xf32>
    %178 = vector.broadcast %177 : vector<1x48xf32> to vector<43x48xf32>
    %179 = arith.addf %176, %178 : vector<43x48xf32>
    %cst_158 = arith.constant 0.000000e+00 : f32
    %180 = vector.broadcast %cst_158 : f32 to vector<43x48xf32>
    %181 = arith.maximumf %179, %180 : vector<43x48xf32>
    %c0_159 = arith.constant 0 : index
    %c0_160 = arith.constant 0 : index
    %182 = vector.load %arg12[%c0_159, %c0_160] : memref<216x43xbf16, #tpu.memory_space<vmem>>, vector<216x43xbf16>
    %183 = arith.truncf %181 : vector<43x48xf32> to vector<43x48xbf16>
    %cst_161 = arith.constant dense<0.000000e+00> : vector<216x48xf32>
    %184 = tpu.matmul %182, %183, %cst_161 {dimension_numbers = #tpu.dot_dimension_numbers<[1], [0], [0], [1], [0, 0, 1, 1], [], []>} : vector<216x43xbf16>, vector<43x48xbf16>, vector<216x48xf32> -> vector<216x48xf32>
    %c0_162 = arith.constant 0 : index
    %c0_163 = arith.constant 0 : index
    %185 = vector.load %arg16[%c0_162, %c0_163] : memref<216x48xf32, #tpu.memory_space<vmem>>, vector<216x48xf32>
    tpu.vector_store %arg16[%c0_162, %c0_163], %184 {strides = array<i32>} : memref<216x48xf32, #tpu.memory_space<vmem>>, vector<216x48xf32>,
    %c0_164 = arith.constant 0 : index
    %c0_165 = arith.constant 0 : index
    %186 = vector.load %arg16[%c0_164, %c0_165] : memref<216x48xf32, #tpu.memory_space<vmem>>, vector<160x48xf32>
    %187 = arith.truncf %186 : vector<160x48xf32> to vector<160x48xbf16>
    %c0_166 = arith.constant 0 : index
    %c0_167 = arith.constant 0 : index
    %c0_168 = arith.constant 0 : index
    %188 = vector.load %arg5[%c0_166, %c0_167, %c0_168] : memref<9x48x150xbf16, #tpu.memory_space<vmem>>, vector<1x48x150xbf16>
    %189 = vector.shape_cast %188 : vector<1x48x150xbf16> to vector<48x150xbf16>
    %cst_169 = arith.constant dense<0.000000e+00> : vector<160x150xf32>
    %190 = tpu.matmul %187, %189, %cst_169 {dimension_numbers = #tpu.dot_dimension_numbers<[1], [0], [0], [1], [0, 0, 1, 1], [], []>} : vector<160x48xbf16>, vector<48x150xbf16>, vector<160x150xf32> -> vector<160x150xf32>
    %c1_170 = arith.constant 1 : index
    %c0_171 = arith.constant 0 : index
    %191 = vector.load %arg16[%c1_170, %c0_171] : memref<216x48xf32, #tpu.memory_space<vmem>>, vector<160x48xf32>
    %192 = arith.truncf %191 : vector<160x48xf32> to vector<160x48xbf16>
    %c1_172 = arith.constant 1 : index
    %c0_173 = arith.constant 0 : index
    %c0_174 = arith.constant 0 : index
    %193 = vector.load %arg5[%c1_172, %c0_173, %c0_174] : memref<9x48x150xbf16, #tpu.memory_space<vmem>>, vector<1x48x150xbf16>
    %194 = vector.shape_cast %193 : vector<1x48x150xbf16> to vector<48x150xbf16>
    %cst_175 = arith.constant dense<0.000000e+00> : vector<160x150xf32>
    %195 = tpu.matmul %192, %194, %cst_175 {dimension_numbers = #tpu.dot_dimension_numbers<[1], [0], [0], [1], [0, 0, 1, 1], [], []>} : vector<160x48xbf16>, vector<48x150xbf16>, vector<160x150xf32> -> vector<160x150xf32>
    %196 = arith.addf %190, %195 : vector<160x150xf32>
    %c2_176 = arith.constant 2 : index
    %c0_177 = arith.constant 0 : index
    %197 = vector.load %arg16[%c2_176, %c0_177] : memref<216x48xf32, #tpu.memory_space<vmem>>, vector<160x48xf32>
    %198 = arith.truncf %197 : vector<160x48xf32> to vector<160x48xbf16>
    %c2_178 = arith.constant 2 : index
    %c0_179 = arith.constant 0 : index
    %c0_180 = arith.constant 0 : index
    %199 = vector.load %arg5[%c2_178, %c0_179, %c0_180] : memref<9x48x150xbf16, #tpu.memory_space<vmem>>, vector<1x48x150xbf16>
    %200 = vector.shape_cast %199 : vector<1x48x150xbf16> to vector<48x150xbf16>
    %cst_181 = arith.constant dense<0.000000e+00> : vector<160x150xf32>
    %201 = tpu.matmul %198, %200, %cst_181 {dimension_numbers = #tpu.dot_dimension_numbers<[1], [0], [0], [1], [0, 0, 1, 1], [], []>} : vector<160x48xbf16>, vector<48x150xbf16>, vector<160x150xf32> -> vector<160x150xf32>
    %202 = arith.addf %196, %201 : vector<160x150xf32>
    %c27_182 = arith.constant 27 : index
    %c0_183 = arith.constant 0 : index
    %203 = vector.load %arg16[%c27_182, %c0_183] : memref<216x48xf32, #tpu.memory_space<vmem>>, vector<160x48xf32>
    %204 = arith.truncf %203 : vector<160x48xf32> to vector<160x48xbf16>
    %c3_184 = arith.constant 3 : index
    %c0_185 = arith.constant 0 : index
    %c0_186 = arith.constant 0 : index
    %205 = vector.load %arg5[%c3_184, %c0_185, %c0_186] : memref<9x48x150xbf16, #tpu.memory_space<vmem>>, vector<1x48x150xbf16>
    %206 = vector.shape_cast %205 : vector<1x48x150xbf16> to vector<48x150xbf16>
    %cst_187 = arith.constant dense<0.000000e+00> : vector<160x150xf32>
    %207 = tpu.matmul %204, %206, %cst_187 {dimension_numbers = #tpu.dot_dimension_numbers<[1], [0], [0], [1], [0, 0, 1, 1], [], []>} : vector<160x48xbf16>, vector<48x150xbf16>, vector<160x150xf32> -> vector<160x150xf32>
    %208 = arith.addf %202, %207 : vector<160x150xf32>
    %c28_188 = arith.constant 28 : index
    %c0_189 = arith.constant 0 : index
    %209 = vector.load %arg16[%c28_188, %c0_189] : memref<216x48xf32, #tpu.memory_space<vmem>>, vector<160x48xf32>
    %210 = arith.truncf %209 : vector<160x48xf32> to vector<160x48xbf16>
    %c4_190 = arith.constant 4 : index
    %c0_191 = arith.constant 0 : index
    %c0_192 = arith.constant 0 : index
    %211 = vector.load %arg5[%c4_190, %c0_191, %c0_192] : memref<9x48x150xbf16, #tpu.memory_space<vmem>>, vector<1x48x150xbf16>
    %212 = vector.shape_cast %211 : vector<1x48x150xbf16> to vector<48x150xbf16>
    %cst_193 = arith.constant dense<0.000000e+00> : vector<160x150xf32>
    %213 = tpu.matmul %210, %212, %cst_193 {dimension_numbers = #tpu.dot_dimension_numbers<[1], [0], [0], [1], [0, 0, 1, 1], [], []>} : vector<160x48xbf16>, vector<48x150xbf16>, vector<160x150xf32> -> vector<160x150xf32>
    %214 = arith.addf %208, %213 : vector<160x150xf32>
    %c29_194 = arith.constant 29 : index
    %c0_195 = arith.constant 0 : index
    %215 = vector.load %arg16[%c29_194, %c0_195] : memref<216x48xf32, #tpu.memory_space<vmem>>, vector<160x48xf32>
    %216 = arith.truncf %215 : vector<160x48xf32> to vector<160x48xbf16>
    %c5_196 = arith.constant 5 : index
    %c0_197 = arith.constant 0 : index
    %c0_198 = arith.constant 0 : index
    %217 = vector.load %arg5[%c5_196, %c0_197, %c0_198] : memref<9x48x150xbf16, #tpu.memory_space<vmem>>, vector<1x48x150xbf16>
    %218 = vector.shape_cast %217 : vector<1x48x150xbf16> to vector<48x150xbf16>
    %cst_199 = arith.constant dense<0.000000e+00> : vector<160x150xf32>
    %219 = tpu.matmul %216, %218, %cst_199 {dimension_numbers = #tpu.dot_dimension_numbers<[1], [0], [0], [1], [0, 0, 1, 1], [], []>} : vector<160x48xbf16>, vector<48x150xbf16>, vector<160x150xf32> -> vector<160x150xf32>
    %220 = arith.addf %214, %219 : vector<160x150xf32>
    %c54_200 = arith.constant 54 : index
    %c0_201 = arith.constant 0 : index
    %221 = vector.load %arg16[%c54_200, %c0_201] : memref<216x48xf32, #tpu.memory_space<vmem>>, vector<160x48xf32>
    %222 = arith.truncf %221 : vector<160x48xf32> to vector<160x48xbf16>
    %c6_202 = arith.constant 6 : index
    %c0_203 = arith.constant 0 : index
    %c0_204 = arith.constant 0 : index
    %223 = vector.load %arg5[%c6_202, %c0_203, %c0_204] : memref<9x48x150xbf16, #tpu.memory_space<vmem>>, vector<1x48x150xbf16>
    %224 = vector.shape_cast %223 : vector<1x48x150xbf16> to vector<48x150xbf16>
    %cst_205 = arith.constant dense<0.000000e+00> : vector<160x150xf32>
    %225 = tpu.matmul %222, %224, %cst_205 {dimension_numbers = #tpu.dot_dimension_numbers<[1], [0], [0], [1], [0, 0, 1, 1], [], []>} : vector<160x48xbf16>, vector<48x150xbf16>, vector<160x150xf32> -> vector<160x150xf32>
    %226 = arith.addf %220, %225 : vector<160x150xf32>
    %c55_206 = arith.constant 55 : index
    %c0_207 = arith.constant 0 : index
    %227 = vector.load %arg16[%c55_206, %c0_207] : memref<216x48xf32, #tpu.memory_space<vmem>>, vector<160x48xf32>
    %228 = arith.truncf %227 : vector<160x48xf32> to vector<160x48xbf16>
    %c7_208 = arith.constant 7 : index
    %c0_209 = arith.constant 0 : index
    %c0_210 = arith.constant 0 : index
    %229 = vector.load %arg5[%c7_208, %c0_209, %c0_210] : memref<9x48x150xbf16, #tpu.memory_space<vmem>>, vector<1x48x150xbf16>
    %230 = vector.shape_cast %229 : vector<1x48x150xbf16> to vector<48x150xbf16>
    %cst_211 = arith.constant dense<0.000000e+00> : vector<160x150xf32>
    %231 = tpu.matmul %228, %230, %cst_211 {dimension_numbers = #tpu.dot_dimension_numbers<[1], [0], [0], [1], [0, 0, 1, 1], [], []>} : vector<160x48xbf16>, vector<48x150xbf16>, vector<160x150xf32> -> vector<160x150xf32>
    %232 = arith.addf %226, %231 : vector<160x150xf32>
    %c56_212 = arith.constant 56 : index
    %c0_213 = arith.constant 0 : index
    %233 = vector.load %arg16[%c56_212, %c0_213] : memref<216x48xf32, #tpu.memory_space<vmem>>, vector<160x48xf32>
    %234 = arith.truncf %233 : vector<160x48xf32> to vector<160x48xbf16>
    %c8_214 = arith.constant 8 : index
    %c0_215 = arith.constant 0 : index
    %c0_216 = arith.constant 0 : index
    %235 = vector.load %arg5[%c8_214, %c0_215, %c0_216] : memref<9x48x150xbf16, #tpu.memory_space<vmem>>, vector<1x48x150xbf16>
    %236 = vector.shape_cast %235 : vector<1x48x150xbf16> to vector<48x150xbf16>
    %cst_217 = arith.constant dense<0.000000e+00> : vector<160x150xf32>
    %237 = tpu.matmul %234, %236, %cst_217 {dimension_numbers = #tpu.dot_dimension_numbers<[1], [0], [0], [1], [0, 0, 1, 1], [], []>} : vector<160x48xbf16>, vector<48x150xbf16>, vector<160x150xf32> -> vector<160x150xf32>
    %238 = arith.addf %232, %237 : vector<160x150xf32>
    %c0_218 = arith.constant 0 : index
    %c0_219 = arith.constant 0 : index
    %239 = vector.load %arg9[%c0_218, %c0_219] : memref<1x150xf32, #tpu.memory_space<vmem>>, vector<1x150xf32>
    %240 = vector.broadcast %239 : vector<1x150xf32> to vector<160x150xf32>
    %241 = arith.addf %238, %240 : vector<160x150xf32>
    %c0_220 = arith.constant 0 : index
    %c0_221 = arith.constant 0 : index
    %242 = vector.load %arg13[%c0_220, %c0_221] : memref<160x150xf32, #tpu.memory_space<vmem>>, vector<160x150xf32>
    tpu.vector_store %arg13[%c0_220, %c0_221], %241 {strides = array<i32>} : memref<160x150xf32, #tpu.memory_space<vmem>>, vector<160x150xf32>,
    return
  }
  func.func @transform_0(%arg0: i32) -> (i32, i32) {
    %c0_i32 = arith.constant 0 : i32
    %c0_i32_0 = arith.constant 0 : i32
    return %arg0, %c0_i32 : i32, i32
  }
  func.func @transform_1(%arg0: i32) -> (i32, i32, i32) {
    %c0_i32 = arith.constant 0 : i32
    %c0_i32_0 = arith.constant 0 : i32
    %c0_i32_1 = arith.constant 0 : i32
    %c0_i32_2 = arith.constant 0 : i32
    return %c0_i32, %c0_i32_0, %c0_i32_1 : i32, i32, i32
  }
  func.func @transform_2(%arg0: i32) -> (i32, i32, i32) {
    %c0_i32 = arith.constant 0 : i32
    %c0_i32_0 = arith.constant 0 : i32
    %c0_i32_1 = arith.constant 0 : i32
    %c0_i32_2 = arith.constant 0 : i32
    return %c0_i32, %c0_i32_0, %c0_i32_1 : i32, i32, i32
  }
  func.func @transform_3(%arg0: i32) -> (i32, i32, i32) {
    %c0_i32 = arith.constant 0 : i32
    %c0_i32_0 = arith.constant 0 : i32
    %c0_i32_1 = arith.constant 0 : i32
    %c0_i32_2 = arith.constant 0 : i32
    return %c0_i32, %c0_i32_0, %c0_i32_1 : i32, i32, i32
  }
  func.func @transform_4(%arg0: i32) -> (i32, i32, i32) {
    %c0_i32 = arith.constant 0 : i32
    %c0_i32_0 = arith.constant 0 : i32
    %c0_i32_1 = arith.constant 0 : i32
    %c0_i32_2 = arith.constant 0 : i32
    return %c0_i32, %c0_i32_0, %c0_i32_1 : i32, i32, i32
  }
  func.func @transform_5(%arg0: i32) -> (i32, i32) {
    %c0_i32 = arith.constant 0 : i32
    %c0_i32_0 = arith.constant 0 : i32
    %c0_i32_1 = arith.constant 0 : i32
    return %c0_i32, %c0_i32_0 : i32, i32
  }
  func.func @transform_6(%arg0: i32) -> (i32, i32) {
    %c0_i32 = arith.constant 0 : i32
    %c0_i32_0 = arith.constant 0 : i32
    %c0_i32_1 = arith.constant 0 : i32
    return %c0_i32, %c0_i32_0 : i32, i32
  }
  func.func @transform_7(%arg0: i32) -> (i32, i32) {
    %c0_i32 = arith.constant 0 : i32
    %c0_i32_0 = arith.constant 0 : i32
    %c0_i32_1 = arith.constant 0 : i32
    return %c0_i32, %c0_i32_0 : i32, i32
  }
  func.func @transform_8(%arg0: i32) -> (i32, i32) {
    %c0_i32 = arith.constant 0 : i32
    %c0_i32_0 = arith.constant 0 : i32
    %c0_i32_1 = arith.constant 0 : i32
    return %c0_i32, %c0_i32_0 : i32, i32
  }
  func.func @transform_9(%arg0: i32) -> (i32, i32) {
    %c0_i32 = arith.constant 0 : i32
    %c0_i32_0 = arith.constant 0 : i32
    %c0_i32_1 = arith.constant 0 : i32
    return %c0_i32, %c0_i32_0 : i32, i32
  }
  func.func @transform_10(%arg0: i32) -> (i32, i32) {
    %c0_i32 = arith.constant 0 : i32
    %c0_i32_0 = arith.constant 0 : i32
    %c0_i32_1 = arith.constant 0 : i32
    return %c0_i32, %c0_i32_0 : i32, i32
  }
  func.func @transform_11(%arg0: i32) -> (i32, i32) {
    %c0_i32 = arith.constant 0 : i32
    %c0_i32_0 = arith.constant 0 : i32
    %c0_i32_1 = arith.constant 0 : i32
    return %c0_i32, %c0_i32_0 : i32, i32
  }
  func.func @transform_12(%arg0: i32) -> (i32, i32) {
    %c0_i32 = arith.constant 0 : i32
    %c0_i32_0 = arith.constant 0 : i32
    return %arg0, %c0_i32 : i32, i32
  }
}

</mosaic_0001>

<bundles_post_ra>
// kernel: tile.38
= control target key start
LH: loop header
LB: loop body
LE: loop exit
PB: predicated region body
PF: predicated region fallthrough
CT: control target
= control target key end

     0   :  { %s22_s0 = inlined_call_operand.vmem [shape: f32[25], index: 0, kind: input, shape index: {}]   ;;  %s23_s1 = inlined_call_operand.vmem [shape: f32[6,25], index: 1, kind: output, shape index: {}]  }
   0x1   :  { %v4_v0 = vld [vmem:[%s22_s0] ss:$0 sm:$0xff] }
   0x2   :  { %5 = vst [vmem:[%s23_s1] sm:$0xff] %v4_v0 }

// kernel: tile.39
= control target key start
LH: loop header
LB: loop body
LE: loop exit
PB: predicated region body
PF: predicated region fallthrough
CT: control target
= control target key end

     0   :  { %vm9_vm0 = vcmask 23552   ;;  %s68_s12 = smov 125   ;;  %s69_s13 = smov 75   ;;  %vm3_vm1 = vcmask 203776   ;;  %vm13_vm2 = vcmask 179200   ;;  %vm16_vm3 = vcmask 1048552   ;;  %s110_s0 = inlined_call_operand.vmem [shape: f32[6,25], index: 0, kind: input, shape index: {}]   ;;  %s111_s1 = inlined_call_operand.vmem [shape: f32[1,150], index: 1, kind: output, shape index: {}]  }
   0x1   :  { %v56_v0 = vld [vmem:[%s110_s0 + $0x5] sm:$0x1]   ;;  %v59_v3 = vld [vmem:[%s110_s0 + $0x3] sm:$0x1]   ;;  %v58_v4 = vld [vmem:[%s110_s0 + $0x4] sm:$0x1]  }
   0x2   :  { %v57_v1 = vld [vmem:[%s110_s0 + $0x5] sm:$0x1]   ;;  %26 = vrot.lane.b32.xlu1 %v59_v3, %s69_s13  ;;  %v60_v5 = vld [vmem:[%s110_s0 + $0x2] sm:$0x1]   ;;  %v2_v6 = vld [vmem:[%s110_s0] sm:$0x1]  }
   0x3   :  { %v10_v2 = vsel %vm9_vm0, %v57_v1, %v56_v0  ;;  %4 = vst.msk [vmem:[#allocation0] sm:$0x1] %vm3_vm1, %v2_v6   ;;  %s70_s20 = smov 100   ;;  %s71_s21 = smov 50   ;;  %v61_v7 = vld [vmem:[%s110_s0 + $0x1] sm:$0x1]  }
   0x4   :  { %11 = vrot.lane.b32.xlu0 %v10_v2, %s68_s12  ;;  %s72_s0 = smov 25   ;;  %vm22_vm4 = vcmask 1023776   ;;  %vm28_vm5 = vcmask 818776   ;;  %vm34_vm6 = vcmask 613776   ;;  %vm40_vm7 = vcmask 408776  }
   0x6   :  { %32 = vrot.lane.b32.xlu1 %v60_v5, %s71_s21 }
   0x8   :  { %20 = vrot.lane.b32.xlu0 %v58_v4, %s70_s20 }
   0xc   :  { %38 = vrot.lane.b32.xlu0 %v61_v7, %s72_s0 }
  0x74   :  { %v27_v9 = vpop.permute.xlu1 %26  }
  0x76   :  { %v12_v8 = vpop.permute.xlu0 %11  }
  0x77   :  { %15 = vst.msk [vmem:[#allocation0 + $0x8] sm:$0x1] %vm13_vm2, %v12_v8  }
  0x78   :  { %17 = vst.msk [vmem:[#allocation0] sm:$0x1] %vm16_vm3, %v12_v8   ;;  %v33_v11 = vpop.permute.xlu1 %32  }
  0x7a   :  { %v21_v10 = vpop.permute.xlu0 %20  }
  0x7b   :  { %23 = vst.msk [vmem:[#allocation0] sm:$0x1] %vm22_vm4, %v21_v10  }
  0x7c   :  { %29 = vst.msk [vmem:[#allocation0] sm:$0x1] %vm28_vm5, %v27_v9  }
  0x7d   :  { %35 = vst.msk [vmem:[#allocation0] sm:$0x1] %vm34_vm6, %v33_v11  }
  0x7e   :  { %v51_v12 = vld [vmem:[#allocation0 + $0x8] sm:$0x1]  ;;  %v39_v13 = vpop.permute.xlu0 %38  }
  0x7f   :  { %62 = vst [vmem:[%s111_s1 + $0x1] sm:$0x1] %v51_v12  ;;  %41 = vst.msk [vmem:[#allocation0] sm:$0x1] %vm40_vm7, %v39_v13  }
  0x86   :  { %v46_v14 = vld [vmem:[#allocation0] sm:$0x1] }
  0x87   :  { %49 = vst [vmem:[%s111_s1] sm:$0x1] %v46_v14 }

// kernel: tile.23
= control target key start
LH: loop header
LB: loop body
LE: loop exit
PB: predicated region body
PF: predicated region fallthrough
CT: control target
= control target key end

     0   :  { %s22_s0 = inlined_call_operand.vmem [shape: f32[16], index: 0, kind: input, shape index: {}]   ;;  %s23_s1 = inlined_call_operand.vmem [shape: f32[3,16], index: 1, kind: output, shape index: {}]  }
   0x1   :  { %v4_v0 = vld [vmem:[%s22_s0] ss:$0 sm:$0xff] }
   0x2   :  { %5 = vst [vmem:[%s23_s1] sm:$0xf] %v4_v0 }

// kernel: tile.24
= control target key start
LH: loop header
LB: loop body
LE: loop exit
PB: predicated region body
PF: predicated region fallthrough
CT: control target
= control target key end

     0   :  { %vm8_vm0 = vcmask 130048   ;;  %s33_s8 = smov 16   ;;  %vm14_vm1 = vcmask 392448   ;;  %vm20_vm2 = vcmask 261248   ;;  %s50_s0 = inlined_call_operand.vmem [shape: f32[3,16], index: 0, kind: input, shape index: {}]   ;;  %s51_s1 = inlined_call_operand.vmem [shape: f32[1,48], index: 1, kind: output, shape index: {}]  }
   0x1   :  { %v5_v0 = vld [vmem:[%s50_s0] sm:$0xf]  ;;  %s32_s0 = smov 32  }
   0x2   :  { %6 = vst [vmem:[#allocation1] sm:$0xf] %v5_v0 }
   0x9   :  { %v11_v1 = vld [vmem:[#allocation1 + $0x2] sm:$0x1]   ;;  %v7_v2 = vld [vmem:[#allocation1] sm:$0x1]   ;;  %v17_v3 = vld [vmem:[#allocation1 + $0x1] sm:$0x1]  }
   0xa   :  { %12 = vrot.lane.b32.xlu0 %v11_v1, %s32_s0  ;;  %9 = vst.msk [vmem:[#allocation0] sm:$0x1] %vm8_vm0, %v7_v2  }
   0xe   :  { %18 = vrot.lane.b32.xlu0 %v17_v3, %s33_s8 }
  0x7c   :  { %v13_v4 = vpop.permute.xlu0 %12  }
  0x7d   :  { %15 = vst.msk [vmem:[#allocation0] sm:$0x1] %vm14_vm1, %v13_v4  }
  0x80   :  { %v19_v5 = vpop.permute.xlu0 %18  }
  0x81   :  { %21 = vst.msk [vmem:[#allocation0] sm:$0x1] %vm20_vm2, %v19_v5  }
  0x88   :  { %v26_v6 = vld [vmem:[#allocation0] sm:$0x1] }
  0x89   :  { %29 = vst [vmem:[%s51_s1] sm:$0x1] %v26_v6 }

// kernel: tile.28
= control target key start
LH: loop header
LB: loop body
LE: loop exit
PB: predicated region body
PF: predicated region fallthrough
CT: control target
= control target key end

     0   :  { %s22_s0 = inlined_call_operand.vmem [shape: f32[8], index: 0, kind: input, shape index: {}]   ;;  %s23_s1 = inlined_call_operand.vmem [shape: f32[2,8], index: 1, kind: output, shape index: {}]  }
   0x1   :  { %v4_v0 = vld [vmem:[%s22_s0] ss:$0 sm:$0xff] }
   0x2   :  { %5 = vst [vmem:[%s23_s1] sm:$0x3] %v4_v0 }

// kernel: tile.29
= control target key start
LH: loop header
LB: loop body
LE: loop exit
PB: predicated region body
PF: predicated region fallthrough
CT: control target
= control target key end

     0   :  { %vm8_vm0 = vcmask 64512   ;;  %vm14_vm1 = vcmask 130112   ;;  %s42_s0 = inlined_call_operand.vmem [shape: f32[2,8], index: 0, kind: input, shape index: {}]   ;;  %s43_s1 = inlined_call_operand.vmem [shape: f32[1,16], index: 1, kind: output, shape index: {}]  }
   0x1   :  { %v5_v0 = vld [vmem:[%s42_s0] sm:$0x3]  ;;  %s25_s0 = smov 8  }
   0x2   :  { %6 = vst [vmem:[#allocation1] sm:$0x3] %v5_v0 }
   0x9   :  { %v11_v1 = vld [vmem:[#allocation1 + $0x1] sm:$0x1]   ;;  %v7_v2 = vld [vmem:[#allocation1] sm:$0x1]  }
   0xa   :  { %12 = vrot.lane.b32.xlu0 %v11_v1, %s25_s0  ;;  %9 = vst.msk [vmem:[#allocation0] sm:$0x1] %vm8_vm0, %v7_v2  }
  0x7c   :  { %v13_v3 = vpop.permute.xlu0 %12  }
  0x7d   :  { %15 = vst.msk [vmem:[#allocation0] sm:$0x1] %vm14_vm1, %v13_v3  }
  0x84   :  { %v20_v4 = vld [vmem:[#allocation0] sm:$0x1] }
  0x85   :  { %23 = vst [vmem:[%s43_s1] sm:$0x1] %v20_v4 }

// kernel: conv_autoencoder_forward.1
= control target key start
LH: loop header
LB: loop body
LE: loop exit
PB: predicated region body
PF: predicated region fallthrough
CT: control target
= control target key end

     0   :  { %s10059_s21 = smov 0   ;;  %s13290_s0 = inlined_call_operand.vmem [shape: f32[432,150], index: 0, kind: input, shape index: {}]   ;;  %s13291_s1 = inlined_call_operand.vmem [shape: bf16[9,150,48], index: 1, kind: input, shape index: {}]   ;;  %s13292_s2 = inlined_call_operand.vmem [shape: bf16[9,48,16], index: 2, kind: input, shape index: {}]   ;;  %s13293_s3 = inlined_call_operand.vmem [shape: bf16[9,16,48], index: 3, kind: input, shape index: {}]   ;;  %s13294_s4 = inlined_call_operand.vmem [shape: bf16[9,48,150], index: 4, kind: input, shape index: {}]   ;;  %s13295_s5 = inlined_call_operand.vmem [shape: f32[1,48], index: 5, kind: input, shape index: {}]   ;;  %s13296_s6 = inlined_call_operand.vmem [shape: f32[1,16], index: 6, kind: input, shape index: {}]   ;;  %s13297_s7 = inlined_call_operand.vmem [shape: f32[1,48], index: 7, kind: input, shape index: {}]   ;;  %s13298_s8 = inlined_call_operand.vmem [shape: f32[1,150], index: 8, kind: input, shape index: {}]   ;;  %s13299_s9 = inlined_call_operand.vmem [shape: bf16[75,133], index: 9, kind: input, shape index: {}]   ;;  %s13300_s10 = inlined_call_operand.vmem [shape: bf16[75,43], index: 10, kind: input, shape index: {}]   ;;  %s13301_s11 = inlined_call_operand.vmem [shape: bf16[216,43], index: 11, kind: input, shape index: {}]   ;;  %s13302_s12 = inlined_call_operand.vmem [shape: f32[320,150], index: 12, kind: output, shape index: {}]  }
   0x1 LB: > { %s8494_s22 = sadd.s32 4294967295, %s9988_s21   ;;  %p8498_p0 = scmp.ge.s32.totalorder %s9988_s21, 1  ;;  %s9988_s21 = sphi %s10059_s21, %s22_s21  }
   0x2   : > { %p364_p1 = scmp.lt.s32.totalorder %s9988_s21, 3 }
   0x4   : > { %p365_p2 = pnand %p8498_p0, %p364_p1 }
   0x6   : > { %368 = sbr.rel (%p365_p2) target bundleno = 2528 (0x9e0), region = 68 }
   0xb   : > { %v9725_v0 = vld [vmem:[%s13291_s1 + $0x84] sm:$0xff]   ;;  %v9990_v1 = vmov 0   ;;  %v9726_v2 = vld [vmem:[%s13291_s1 + $0x38] sm:$0xff]   ;;  %s408_s29 = smul.u32 27, %s8494_s22  ;;  %v9728_v4 = vld [vmem:[%s13291_s1 + $0x30] sm:$0xff]   ;;  %vm731_vm0 = vcmask 179200  }
   0xc   : > { %763 = vmatprep.subr.bf16.mxu0 %v9990_v1  ;;  %947 = vmatprep.subr.bf16.mxu1 %v9990_v1  ;;  %v9727_v3 = vld [vmem:[%s13291_s1 + $0x7c] sm:$0xff]   ;;  %v9729_v5 = vld [vmem:[%s13291_s1 + $0x74] sm:$0xff]   ;;  %v9730_v6 = vld [vmem:[%s13291_s1 + $0x28] sm:$0xff]   ;;  %vm759_vm1 = vcmask 1042432   ;;  %vm522_vm2 = vsmask.f32 7424 }
   0xd   : > { %764 = vmatpush1.bf16.msra.mxu0 %v9725_v0  ;;  %948 = vmatpush1.bf16.msra.mxu1 %v9726_v2  ;;  %p409_p3 = scmp.lt.s32.totalorder %s408_s29, 53  ;;  %v9731_v7 = vld [vmem:[%s13291_s1 + $0x6c] sm:$0xff]   ;;  %v9732_v8 = vld [vmem:[%s13291_s1 + $0x20] sm:$0xff]   ;;  %v9734_v10 = vld [vmem:[%s13291_s1 + $0x18] sm:$0xff]   ;;  %vm1097_vm3 = vcmask 1046528   ;;  %vm1891_vm5 = vcmask 1045504  }
   0xe   : > { %765 = vmatprep.subr.bf16.mxu0 %v9990_v1  ;;  %949 = vmatprep.subr.bf16.mxu1 %v9990_v1  ;;  %v9733_v9 = vld [vmem:[%s13291_s1 + $0x64] sm:$0xff]   ;;  %v9735_v11 = vld [vmem:[%s13291_s1 + $0x5c] sm:$0xff]   ;;  %v9736_v12 = vld [vmem:[%s13291_s1 + $0x10] sm:$0xff]   ;;  %vm1421_vm4 = vsmask.f32 6400  ;;  %vm2641_vm7 = vcmask 1044480  }
   0xf   : > { %s13338_s29 = smov (!%p409_p3, %s408_s29), 53  ;;  %v9737_v18 = vld [vmem:[%s13291_s1 + $0x54] sm:$0xff]   ;;  %v9738_v26 = vld [vmem:[%s13291_s1 + $0x8] sm:$0xff]   ;;  %v9740_v39 = vld [vmem:[%s13291_s1] sm:$0xff]   ;;  %vm2171_vm6 = vsmask.f32 5376 }
  0x10   : > { %s9230_s24 = sshll.u32 %s13338_s29, 4  ;;  %v9741_v30 = vld [vmem:[%s13291_s1 + $0x94] ss:$0 sps:$4 sm:$0x77]   ;;  %v9739_v37 = vld [vmem:[%s13291_s1 + $0x4c] sm:$0xff]   ;;  %v9744_v56 = vld [vmem:[%s13291_s1 + $0x40] sm:$0xff]  }
  0x11   : > { %766 = vmatpush1.bf16.msra.mxu0 %v9727_v3  ;;  %950 = vmatpush1.bf16.msra.mxu1 %v9728_v4  ;;  %s10111_s14 = scalar_lea.vmem %s13290_s0, %s9230_s24  ;;  %v761_v42 = vsel %vm759_vm1, %v9741_v30, 0  ;;  %v9742_v43 = vld [vmem:[%s13291_s1 + $0x48] ss:$0 sps:$4 sm:$0x77]   ;;  %v9743_v55 = vld [vmem:[%s13291_s1 + $0x8c] sm:$0xff]   ;;  %vm3652_vm9 = vcmask 39936  }
  0x12   : > { %767 = vmatprep.subr.bf16.mxu0 %v9990_v1  ;;  %951 = vmatprep.subr.bf16.mxu1 %v9990_v1  ;;  %v10121_v13 = vld [vmem:[%s10111_s14 + $0x18] sm:$0xff]  ;;  %v428_v14 = vld [vmem:[%s10111_s14 + $0x28] sm:$0xff]  ;;  %v10137_v22 = vld [vmem:[%s10111_s14 + $0x10] sm:$0xff]  ;;  %v945_v52 = vsel %vm759_vm1, %v9742_v43, 0  ;;  %vm2921_vm8 = vsmask.f32 4352 }
  0x13   : > { %v430_v15 = vld [vmem:[%s10111_s14 + $0x38] sm:$0xff]  ;;  %v495_v16 = vld [vmem:[%s10111_s14 + $0x8] sm:$0xfe]  ;;  %v427_v23 = vld [vmem:[%s10111_s14 + $0x20] sm:$0xff]  ;;  %vm3668_vm10 = vcmask 1041408   ;;  %vm9993_vm11 = vmmov 0  }
  0x14   : > { %v424_v17 = vld [vmem:[%s10111_s14 + $0x8] sm:$0xff]  ;;  %v10132_v19 = vpack.c.bf16 %v430_v15, %v428_v14  ;;  %v499_v20 = vpack.c.bf16 %v10121_v13, %v495_v16  ;;  %v429_v24 = vld [vmem:[%s10111_s14 + $0x30] sm:$0xff]  ;;  %v494_v25 = vld [vmem:[%s10111_s14] sm:$0xfe]  ;;  %vm3747_vm12 = vcmask 392192   ;;  %vm3757_vm13 = vcmask 387072  }
  0x15   : > { %768 = vmatpush1.bf16.msra.mxu0 %v9729_v5  ;;  %952 = vmatpush1.bf16.msra.mxu1 %v9730_v6  ;;  %v458_v21 = vpack.c.bf16 %v10121_v13, %v424_v17  ;;  %v498_v31 = vpack.c.bf16 %v10137_v22, %v494_v25  ;;  %v10154_v32 = vld [vmem:[%s10111_s14 + $0x48] sm:$0xff]  ;;  %v10157_v33 = vld [vmem:[%s10111_s14 + $0x58] sm:$0xff]  ;;  %v10159_v36 = vpack.c.bf16 %v429_v24, %v427_v23  ;;  %v10181_v47 = vld [vmem:[%s10111_s14 + $0x40] sm:$0xff]  ;;  %vm4757_vm14 = vcmask 351232   ;;  %s415_s30 = smul.u32 20, %s8494_s22 }
  0x16   : > { %769 = vmatprep.subr.bf16.mxu0 %v9990_v1  ;;  %953 = vmatprep.subr.bf16.mxu1 %v9990_v1  ;;  %v536_v27 = vshrl.u32 %v499_v20, 16  ;;  %v538_v28 = vshll.u32 %v499_v20, 16  ;;  %v543_v29 = vshll.u32 %v10132_v19, 16  ;;  %v10170_v41 = vpack.c.bf16 %v10157_v33, %v10154_v32  ;;  %v10187_v51 = vld [vmem:[%s10111_s14 + $0x50] sm:$0xff]  ;;  %v10192_v53 = vld [vmem:[%s10111_s14 + $0x68] sm:$0xff]  ;;  %v10195_v54 = vld [vmem:[%s10111_s14 + $0x78] sm:$0xff] }
  0x17   : > { %8551 = vmatprep.mubr.msk.bf16.mxu1 %vm731_vm0, %v458_v21  ;;  %v526_v38 = vshll.u32 %v498_v31, 16  ;;  %v555_v44 = vshrl.u32 %v10132_v19, 16  ;;  %v531_v46 = vshll.u32 %v10159_v36, 16  ;;  %v524_v48 = vshrl.u32 %v498_v31, 16  ;;  %v423_v61 = vld [vmem:[%s10111_s14] sm:$0xff]  ;;  %v10222_v6 = vld [vmem:[%s10111_s14 + $0x70] sm:$0xff] }
  0x18   : > { %v540_v34 = vrot.slane %v538_v28, 1  ;;  %v545_v35 = vrot.slane %v543_v29, 1  ;;  %v559_v50 = vshll.u32 %v10170_v41, 16  ;;  %v10205_v59 = vpack.c.bf16 %v10187_v51, %v10181_v47  ;;  %v10219_v5 = vld [vmem:[%s10111_s14 + $0x60] sm:$0xff]  ;;  %v9747_v23 = vld [vmem:[%s13291_s1 + $0xc8] sm:$0xff]   ;;  %v10259_v25 = vld [vmem:[%s10111_s14 + $0x90] sm:$0xff] }
  0x19   : > { %770 = vmatpush1.bf16.msra.mxu0 %v9731_v7  ;;  %954 = vmatpush1.bf16.msra.mxu1 %v9732_v8  ;;  %v528_v49 = vrot.slane %v526_v38, 1  ;;  %v533_v58 = vrot.slane %v531_v46, 1  ;;  %v10211_v63 = vpack.c.bf16 %v10195_v54, %v10192_v53  ;;  %v457_v2 = vpack.c.bf16 %v10137_v22, %v423_v61  ;;  %v9746_v14 = vld [vmem:[%s13291_s1 + $0x11c] sm:$0xff]   ;;  %p416_p4 = scmp.lt.s32.totalorder %s415_s30, 39 }
  0x1a   : > { %771 = vmatprep.subr.bf16.mxu0 %v9990_v1  ;;  %955 = vmatprep.subr.bf16.mxu1 %v9990_v1  ;;  %v541_v40 = vor.u32 %v540_v34, %v536_v27  ;;  %v557_v60 = vor.u32 %v555_v44, %v545_v35  ;;  %v561_v62 = vrot.slane %v559_v50, 1  ;;  %v547_v3 = vshrl.u32 %v10159_v36, 16  ;;  %v10256_v24 = vld [vmem:[%s10111_s14 + $0x80] sm:$0xff]  ;;  %v10266_v27 = vld [vmem:[%s10111_s14 + $0xa8] sm:$0xff]  ;;  %v10274_v34 = vld [vmem:[%s10111_s14 + $0xb8] sm:$0xff] }
  0x1b   : > { %v529_v57 = vor.u32 %v528_v49, %v524_v48  ;;  %v551_v4 = vshll.u32 %v10205_v59, 16  ;;  %v571_v8 = vshrl.u32 %v10170_v41, 16  ;;  %v10244_v17 = vpack.c.bf16 %v10222_v6, %v10219_v5  ;;  %v9749_v38 = vld [vmem:[%s13291_s1 + $0xc0] sm:$0xff]   ;;  %v9751_v49 = vld [vmem:[%s13291_s1 + $0xb8] sm:$0xff]   ;;  %v10305_v50 = vld [vmem:[%s10111_s14 + $0xb0] sm:$0xff]  ;;  %s13340_s30 = smov (!%p416_p4, %s415_s30), 39 }
  0x1c   : > { %v546_v45 = vsel %vm522_vm2, %v541_v40, %v545_v35  ;;  %v562_v7 = vsel %vm522_vm2, %v557_v60, %v561_v62  ;;  %v549_v15 = vor.u32 %v547_v3, %v533_v58  ;;  %v563_v29 = vshrl.u32 %v10205_v59, 16  ;;  %v10299_v48 = vld [vmem:[%s10111_s14 + $0xa0] sm:$0xff]  ;;  %v9753_v3 = vld [vmem:[%s13291_s1 + $0xb0] sm:$0xff]   ;;  %s9231_s29 = sshll.u32 %s13340_s30, 4 }
  0x1d   : > { %772 = vmatpush1.bf16.msra.mxu0 %v9733_v9  ;;  %956 = vmatpush1.bf16.msra.mxu1 %v9734_v10  ;;  %v534_v0 = vsel %vm522_vm2, %v529_v57, %v533_v58  ;;  %v575_v9 = vshll.u32 %v10211_v63, 16  ;;  %v10228_v10 = vld [vmem:[%s10111_s14 + $0x88] sm:$0xff]  ;;  %v553_v16 = vrot.slane %v551_v4, 1  ;;  %v567_v30 = vshll.u32 %v10244_v17, 16  ;;  %v10317_v58 = vld [vmem:[%s10111_s14 + $0xd8] sm:$0xff]  ;;  %s13107_s17 = scalar_lea.vmem %s13302_s12, %s9231_s29 }
  0x1e   : > { %773 = vmatprep.subr.bf16.mxu0 %v9990_v1  ;;  %957 = vmatprep.subr.bf16.mxu1 %v9990_v1  ;;  %v587_v31 = vshrl.u32 %v10211_v63, 16  ;;  %v10287_v40 = vpack.c.bf16 %v10259_v25, %v10256_v24  ;;  %v10294_v44 = vpack.c.bf16 %v10274_v34, %v10266_v27  ;;  %v10314_v57 = vld [vmem:[%s10111_s14 + $0xc8] sm:$0xff]  ;;  %vm4853_vm15 = vcmask 130048  }
  0x1f   : > { %8532 = vmatprep.mubr.msk.bf16.mxu0 %vm731_vm0, %v546_v45  ;;  %v577_v20 = vrot.slane %v575_v9, 1  ;;  %v554_v28 = vsel %vm522_vm2, %v549_v15, %v553_v16  ;;  %v569_v43 = vrot.slane %v567_v30, 1  ;;  %v9754_v9 = vld [vmem:[%s13291_s1 + $0xfc] sm:$0xff]   ;;  %v1099_v15 = vrot.slane %v10159_v36, 1 }
  0x21   : > { %774 = vmatpush1.bf16.msra.mxu0 %v9735_v11  ;;  %958 = vmatpush1.bf16.msra.mxu1 %v9736_v12  ;;  %v9745_v11 = vld [vmem:[%s13291_s1 + $0xd0] sm:$0xff]   ;;  %v10235_v12 = vld [vmem:[%s10111_s14 + $0x98] sm:$0xff]  ;;  %v589_v45 = vor.u32 %v587_v31, %v577_v20 }
  0x22   : > { %775 = vmatprep.subr.bf16.mxu0 %v9990_v1  ;;  %959 = vmatprep.subr.bf16.mxu1 %v9990_v1  ;;  %v10250_v21 = vpack.c.bf16 %v10235_v12, %v10228_v10 }
  0x24   : > { %v603_v61 = vshrl.u32 %v10250_v21, 16 }
  0x25   : > { %776 = vmatpush1.bf16.msra.mxu0 %v9737_v18  ;;  %960 = vmatpush1.bf16.msra.mxu1 %v9738_v26  ;;  %v573_v18 = vor.u32 %v571_v8, %v561_v62  ;;  %v9748_v26 = vld [vmem:[%s13291_s1 + $0x114] sm:$0xff]   ;;  %v607_v62 = vshll.u32 %v10294_v44, 16  ;;  %v10332_v8 = vpack.c.bf16 %v10305_v50, %v10299_v48 }
  0x26   : > { %777 = vmatprep.subr.bf16.mxu0 %v9990_v1  ;;  %961 = vmatprep.subr.bf16.mxu1 %v9990_v1 }
  0x27   : > { %v578_v35 = vsel %vm522_vm2, %v573_v18, %v577_v20  ;;  %v599_v30 = vshll.u32 %v10332_v8, 16 }
  0x29   : > { %778 = vmatpush1.bf16.msra.mxu0 %v9739_v37  ;;  %962 = vmatpush1.bf16.msra.mxu1 %v9740_v39  ;;  %v591_v37 = vshll.u32 %v10250_v21, 16  ;;  %v9750_v39 = vld [vmem:[%s13291_s1 + $0x10c] sm:$0xff]  }
  0x2a   : > { %791 = vmatprep.subr.bf16.mxu0 %v9990_v1  ;;  %975 = vmatprep.subr.bf16.mxu1 %v9990_v1 }
  0x2b   : > { %v593_v46 = vrot.slane %v591_v37, 1  ;;  %v10367_v37 = vld [vmem:[%s10111_s14 + $0xd0] sm:$0xff] }
  0x2d   : > { %792 = vmatpush2.bf16.msra.mxu0 %v761_v42  ;;  %976 = vmatpush2.bf16.msra.mxu1 %v945_v52  ;;  %v565_v42 = vor.u32 %v563_v29, %v553_v16  ;;  %v9752_v52 = vld [vmem:[%s13291_s1 + $0x104] sm:$0xff]   ;;  %v605_v20 = vor.u32 %v603_v61, %v593_v46  ;;  %v595_v29 = vshrl.u32 %v10287_v40, 16  ;;  %v601_v61 = vrot.slane %v599_v30, 1  ;;  %v10444_v30 = vld [vmem:[%s10111_s14 + $0xf0] sm:$0xff] }
  0x2e   : > { %793 = vmatprep.subr.bf16.mxu0 %v9990_v1  ;;  %977 = vmatprep.subr.bf16.mxu1 %v9990_v1 }
  0x2f   : > { %v570_v60 = vsel %vm522_vm2, %v565_v42, %v569_v43  ;;  %v10375_v42 = vld [vmem:[%s10111_s14 + $0xe8] sm:$0xff] }
  0x31   : > { %794 = vmatpush2.bf16.msra.mxu0 %v9743_v55  ;;  %978 = vmatpush2.bf16.msra.mxu1 %v9744_v56  ;;  %v579_v55 = vshrl.u32 %v10244_v17, 16  ;;  %v583_v56 = vshll.u32 %v10287_v40, 16 }
  0x32   : > { %1228 = vmatprep.subr.bf16.mxu0 %v9990_v1  ;;  %1678 = vmatprep.subr.bf16.mxu1 %v9990_v1 }
  0x33   : > { %v581_v16 = vor.u32 %v579_v55, %v569_v43  ;;  %v585_v18 = vrot.slane %v583_v56, 1  ;;  %v10378_v43 = vld [vmem:[%s10111_s14 + $0xf8] sm:$0xff]  ;;  %v9757_v55 = vld [vmem:[%s13291_s1 + $0xa0] sm:$0xff]   ;;  %v9758_v56 = vld [vmem:[%s13291_s1 + $0xec] sm:$0xff]  }
  0x34   : > { %796 = vmatmul.mubr.bf16.vlgmr.msra.gmra.mxu0 %v534_v0  ;;  %980 = vmatmul.mubr.bf16.vlgmr.msra.gmra.mxu1 %v457_v2  ;;  %v1052_v0 = vld [vmem:[%s10111_s14 + $0x8] sm:$0xfc]  ;;  %v594_v2 = vsel %vm522_vm2, %v589_v45, %v593_v46  ;;  %v1106_v45 = vrot.slane %v10170_v41, 1  ;;  %v1104_v46 = vrot.slane %v10205_v59, 1 }
  0x35   : > { %8533 = vmatprep.mubr.msk.bf16.mxu0 %vm731_vm0, %v562_v7  ;;  %8552 = vmatprep.mubr.msk.bf16.mxu1 %vm731_vm0, %v10132_v19  ;;  %v1056_v4 = vpack.c.bf16 %v10121_v13, %v1052_v0  ;;  %v1102_v7 = vrot.slane %v10132_v19, 1 }
  0x36   : > { %1229 = vmatpush1.bf16.msra.mxu0 %v9745_v11  ;;  %1679 = vmatpush1.bf16.msra.mxu1 %v9746_v14  ;;  %v1051_v11 = vld [vmem:[%s10111_s14] sm:$0xfc]  ;;  %v10341_v14 = vpack.c.bf16 %v10317_v58, %v10314_v57 }
  0x37   : > { %1230 = vmatprep.subr.bf16.mxu0 %v9990_v1  ;;  %1680 = vmatprep.subr.bf16.mxu1 %v9990_v1  ;;  %v1101_v13 = vrot.slane %v1056_v4, 1  ;;  %v1055_v19 = vpack.c.bf16 %v10137_v22, %v1051_v11  ;;  %v9755_v22 = vld [vmem:[%s13291_s1 + $0xa8] sm:$0xff]   ;;  %v1108_v4 = vrot.slane %v10244_v17, 1  ;;  %v9759_v11 = vld [vmem:[%s13291_s1 + $0x98] sm:$0xff]  }
  0x38   : > { %v623_v31 = vshll.u32 %v10341_v14, 16 }
  0x3a   : > { %1231 = vmatpush1.bf16.msra.mxu0 %v9747_v23  ;;  %1681 = vmatpush1.bf16.msra.mxu1 %v9748_v26  ;;  %v609_v23 = vrot.slane %v607_v62, 1  ;;  %v1098_v26 = vrot.slane %v1055_v19, 1  ;;  %v625_v62 = vrot.slane %v623_v31, 1  ;;  %v10429_v19 = vsel %vm1097_vm3, %v1104_v46, %v1108_v4  ;;  %v497_v31 = vld [vmem:[%s10111_s14 + $0x108] sm:$0x3f] }
  0x3b   : > { %1232 = vmatprep.subr.bf16.mxu0 %v9990_v1  ;;  %1682 = vmatprep.subr.bf16.mxu1 %v9990_v1 }
  0x3c   : > { %804 = vmatmul.mubr.bf16.gmra.mxu0 %v554_v28  ;;  %988 = vmatmul.mubr.bf16.gmra.mxu1 %v10159_v36  ;;  %v10354_v36 = vsel %vm1097_vm3, %v1101_v13, %v1102_v7  ;;  %v9756_v28 = vld [vmem:[%s13291_s1 + $0xf4] sm:$0xff]  }
  0x3d   : > { %8534 = vmatprep.mubr.msk.bf16.mxu0 %vm731_vm0, %v578_v35  ;;  %8553 = vmatprep.mubr.msk.bf16.mxu1 %vm731_vm0, %v10170_v41  ;;  %v10364_v35 = vld [vmem:[%s10111_s14 + $0xc0] sm:$0xff]  ;;  %v10392_v41 = vsel %vm1097_vm3, %v1102_v7, %v1106_v45 }
  0x3e   : > { %1233 = vmatpush1.bf16.msra.mxu0 %v9749_v38  ;;  %1683 = vmatpush1.bf16.msra.mxu1 %v9750_v39  ;;  %v10371_v38 = vsel %vm1097_vm3, %v1098_v26, %v1099_v15  ;;  %v586_v39 = vsel %vm522_vm2, %v581_v16, %v585_v18  ;;  %v10402_v0 = vpack.c.bf16 %v10367_v37, %v10364_v35  ;;  %v635_v16 = vshrl.u32 %v10341_v14, 16 }
  0x3f   : > { %1234 = vmatprep.subr.bf16.mxu0 %v9990_v1  ;;  %1684 = vmatprep.subr.bf16.mxu1 %v9990_v1  ;;  %v1112_v26 = vrot.slane %v10287_v40, 1 }
  0x42   : > { %1235 = vmatpush1.bf16.msra.mxu0 %v9751_v49  ;;  %1685 = vmatpush1.bf16.msra.mxu1 %v9752_v52  ;;  %v610_v49 = vsel %vm522_vm2, %v605_v20, %v609_v23  ;;  %v619_v52 = vshrl.u32 %v10294_v44, 16  ;;  %v615_v20 = vshll.u32 %v10402_v0, 16 }
  0x43   : > { %1236 = vmatprep.subr.bf16.mxu0 %v9990_v1  ;;  %1686 = vmatprep.subr.bf16.mxu1 %v9990_v1 }
  0x44   : > { %812 = vmatmul.mubr.bf16.gmra.mxu0 %v570_v60  ;;  %996 = vmatmul.mubr.bf16.gmra.mxu1 %v10205_v59  ;;  %v10395_v59 = vsel %vm1097_vm3, %v1099_v15, %v1104_v46  ;;  %v597_v60 = vor.u32 %v595_v29, %v585_v18  ;;  %v621_v7 = vor.u32 %v619_v52, %v609_v23  ;;  %v611_v15 = vshrl.u32 %v10332_v8, 16  ;;  %v10437_v23 = vld [vmem:[%s10111_s14 + $0xe0] sm:$0xff] }
  0x45   : > { %8535 = vmatprep.mubr.msk.bf16.mxu0 %vm731_vm0, %v594_v2  ;;  %8554 = vmatprep.mubr.msk.bf16.mxu1 %vm731_vm0, %v10211_v63  ;;  %v9761_v2 = vld [vmem:[%s13291_s1 + $0xe0] ss:$0 sps:$4 sm:$0x77]   ;;  %v617_v52 = vrot.slane %v615_v20, 1 }
  0x46   : > { %1237 = vmatpush1.bf16.msra.mxu0 %v9753_v3  ;;  %1687 = vmatpush1.bf16.msra.mxu1 %v9754_v9  ;;  %v1110_v3 = vrot.slane %v10211_v63, 1  ;;  %v10413_v9 = vpack.c.bf16 %v10378_v43, %v10375_v42  ;;  %v9762_v63 = vld [vmem:[%s13291_s1 + $0x12c] ss:$0 sps:$4 sm:$0x77]   ;;  %v602_v18 = vsel %vm522_vm2, %v597_v60, %v601_v61  ;;  %v613_v46 = vor.u32 %v611_v15, %v601_v61 }
  0x47   : > { %1238 = vmatprep.subr.bf16.mxu0 %v9990_v1  ;;  %1688 = vmatprep.subr.bf16.mxu1 %v9990_v1  ;;  %v1116_v60 = vrot.slane %v10332_v8, 1  ;;  %v637_v61 = vor.u32 %v635_v16, %v625_v62  ;;  %v1122_v15 = vrot.slane %v10341_v14, 1  ;;  %v1120_v16 = vrot.slane %v10402_v0, 1 }
  0x48   : > { %v10426_v13 = vsel %vm1097_vm3, %v1106_v45, %v1110_v3  ;;  %v639_v29 = vshll.u32 %v10413_v9, 16  ;;  %v651_v20 = vshrl.u32 %v10413_v9, 16 }
  0x4a   : > { %1239 = vmatpush1.bf16.msra.mxu0 %v9755_v22  ;;  %1689 = vmatpush1.bf16.msra.mxu1 %v9756_v28  ;;  %v1114_v22 = vrot.slane %v10250_v21, 1  ;;  %v626_v28 = vsel %vm522_vm2, %v621_v7, %v625_v62  ;;  %v627_v62 = vshrl.u32 %v10402_v0, 16 }
  0x4b   : > { %1240 = vmatprep.subr.bf16.mxu0 %v9990_v1  ;;  %1690 = vmatprep.subr.bf16.mxu1 %v9990_v1 }
  0x4c   : > { %820 = vmatmul.mubr.bf16.gmra.mxu0 %v586_v39  ;;  %1004 = vmatmul.mubr.bf16.gmra.mxu1 %v10244_v17  ;;  %v9760_v17 = vld [vmem:[%s13291_s1 + $0xe4] sm:$0xff]   ;;  %v1226_v39 = vsel %vm759_vm1, %v9761_v2, 0  ;;  %v10450_v45 = vsel %vm1097_vm3, %v1110_v3, %v1114_v22  ;;  %v641_v2 = vrot.slane %v639_v29, 1  ;;  %v501_v3 = vpack.c.bf16 %v497_v31, %v497_v31 }
  0x4d   : > { %8536 = vmatprep.mubr.msk.bf16.mxu0 %vm731_vm0, %v610_v49  ;;  %8555 = vmatprep.mubr.msk.bf16.mxu1 %vm731_vm0, %v10250_v21  ;;  %v10453_v21 = vsel %vm1097_vm3, %v1108_v4, %v1112_v26  ;;  %v1676_v49 = vsel %vm759_vm1, %v9762_v63, 0  ;;  %v9764_v4 = vld [vmem:[%s13291_s1 + $0x124] sm:$0xff]   ;;  %v1126_v29 = vrot.slane %v10413_v9, 1  ;;  %v629_v31 = vor.u32 %v627_v62, %v617_v52 }
  0x4e   : > { %1241 = vmatpush1.bf16.msra.mxu0 %v9757_v55  ;;  %1691 = vmatpush1.bf16.msra.mxu1 %v9758_v56  ;;  %v10461_v55 = vpack.c.bf16 %v10444_v30, %v10437_v23  ;;  %v1118_v56 = vrot.slane %v10294_v44, 1 }
  0x4f   : > { %1242 = vmatprep.subr.bf16.mxu0 %v9990_v1  ;;  %1692 = vmatprep.subr.bf16.mxu1 %v9990_v1 }
  0x50   : > { %v10475_v7 = vsel %vm1097_vm3, %v1114_v22, %v1118_v56  ;;  %v631_v63 = vshll.u32 %v10461_v55, 16  ;;  %v655_v22 = vshll.u32 %v501_v3, 16 }
  0x52   : > { %1243 = vmatpush1.bf16.msra.mxu0 %v9759_v11  ;;  %1693 = vmatpush1.bf16.msra.mxu1 %v9760_v17  ;;  %v618_v11 = vsel %vm522_vm2, %v613_v46, %v617_v52  ;;  %v496_v17 = vld [vmem:[%s10111_s14 + $0x100] sm:$0x3f]  ;;  %v657_v52 = vrot.slane %v655_v22, 1 }
  0x53   : > { %1256 = vmatprep.subr.bf16.mxu0 %v9990_v1  ;;  %1706 = vmatprep.subr.bf16.mxu1 %v9990_v1  ;;  %v500_v46 = vpack.c.bf16 %v496_v17, %v496_v17 }
  0x54   : > { %828 = vmatmul.mubr.bf16.gmra.mxu0 %v602_v18  ;;  %1012 = vmatmul.mubr.bf16.gmra.mxu1 %v10287_v40  ;;  %v9763_v40 = vld [vmem:[%s13291_s1 + $0xd8] sm:$0xff]   ;;  %v642_v18 = vsel %vm522_vm2, %v637_v61, %v641_v2 }
  0x55   : > { %8537 = vmatprep.mubr.msk.bf16.mxu0 %vm731_vm0, %v626_v28  ;;  %8556 = vmatprep.mubr.msk.bf16.mxu1 %vm731_vm0, %v10294_v44  ;;  %v10478_v44 = vsel %vm1097_vm3, %v1112_v26, %v1116_v60  ;;  %v10491_v26 = vsel %vm1097_vm3, %v1118_v56, %v1122_v15  ;;  %v10494_v28 = vsel %vm1097_vm3, %v1116_v60, %v1120_v16  ;;  %v13305_v56 = vrot.slane %v10461_v55, 1  ;;  %v1350_v61 = vld [vmem:[%s10111_s14 + $0x38] sm:$0xf8] }
  0x56   : > { %1257 = vmatpush2.bf16.msra.mxu0 %v1226_v39  ;;  %1707 = vmatpush2.bf16.msra.mxu1 %v1676_v49  ;;  %v633_v39 = vrot.slane %v631_v63, 1  ;;  %v10503_v49 = vsel %vm1097_vm3, %v1122_v15, %v1126_v29  ;;  %v653_v60 = vor.u32 %v651_v20, %v641_v2  ;;  %v647_v62 = vshll.u32 %v500_v46, 16 }
  0x57   : > { %1258 = vmatprep.subr.bf16.mxu0 %v9990_v1  ;;  %1708 = vmatprep.subr.bf16.mxu1 %v9990_v1  ;;  %v1384_v63 = vpack.c.bf16 %v10154_v32, %v1350_v61  ;;  %v662_v15 = vshrl.u32 %v501_v3, 16  ;;  %v1349_v32 = vld [vmem:[%s10111_s14 + $0x30] sm:$0xf8]  ;;  %v1388_v3 = vpack.c.bf16 %v10228_v10, %v10195_v54 }
  0x58   : > { %v649_v17 = vrot.slane %v647_v62, 1 }
  0x59   : > { %v1443_v20 = vshll.u32 %v1384_v63, 16  ;;  %v1466_v54 = vshrl.u32 %v1388_v3, 16  ;;  %v1469_v10 = vshll.u32 %v1388_v3, 16 }
  0x5a   : > { %1259 = vmatpush2.bf16.msra.mxu0 %v9763_v40  ;;  %1709 = vmatpush2.bf16.msra.mxu1 %v9764_v4  ;;  %v634_v40 = vsel %vm522_vm2, %v629_v31, %v633_v39  ;;  %v643_v4 = vshrl.u32 %v10461_v55, 16 }
  0x5b   : > { %2022 = vmatprep.subr.bf16.mxu0 %v9990_v1  ;;  %2428 = vmatprep.subr.bf16.mxu1 %v9990_v1 }
  0x5c   : > { %836 = vmatmul.mubr.bf16.gmra.mxu0 %v618_v11  ;;  %1020 = vmatmul.mubr.bf16.gmra.mxu1 %v10332_v8  ;;  %v10511_v8 = vsel %vm1097_vm3, %v1120_v16, %v13305_v56  ;;  %v658_v11 = vsel %vm522_vm2, %v653_v60, %v657_v52  ;;  %v645_v2 = vor.u32 %v643_v4, %v633_v39  ;;  %v456_v16 = vld [vmem:[%s10111_s14 + $0x108] sm:$0x1f] }
  0x5d   : > { %8538 = vmatprep.mubr.msk.bf16.mxu0 %vm731_vm0, %v642_v18  ;;  %8557 = vmatprep.mubr.msk.bf16.mxu1 %vm731_vm0, %v10341_v14  ;;  %v1386_v14 = vpack.c.bf16 %v10192_v53, %v10157_v33  ;;  %v1440_v18 = vshrl.u32 %v1384_v63, 16  ;;  %v664_v53 = vor.u32 %v662_v15, %v657_v52  ;;  %v474_v60 = vpack.c.bf16 %v456_v16, %v456_v16  ;;  %v455_v52 = vld [vmem:[%s10111_s14 + $0x100] sm:$0x1f] }
  0x5e   : > { %v650_v33 = vsel %vm522_vm2, %v645_v2, %v649_v17  ;;  %v1385_v39 = vpack.c.bf16 %v10219_v5, %v10187_v51  ;;  %v473_v16 = vpack.c.bf16 %v455_v52, %v455_v52 }
  0x5f   : > { %v1448_v22 = vshrl.u32 %v1386_v14, 16  ;;  %v1451_v31 = vshll.u32 %v1386_v14, 16  ;;  %v1442_v61 = vrot.slane %v1440_v18, 1  ;;  %v1390_v18 = vpack.c.bf16 %v10266_v27, %v10235_v12 }
  0x60   : > { %v1431_v14 = vshrl.u32 %v1385_v39, 16  ;;  %v1434_v51 = vshll.u32 %v1385_v39, 16  ;;  %v1391_v12 = vpack.c.bf16 %v10364_v35, %v10305_v50 }
  0x61   : > { %v1450_v4 = vrot.slane %v1448_v22, 1  ;;  %v1453_v62 = vrot.slane %v1451_v31, 2  ;;  %v1392_v22 = vpack.c.bf16 %v10314_v57, %v10274_v34  ;;  %v1487_v27 = vshll.u32 %v1390_v18, 16 }
  0x63   : > { %v1454_v2 = vor.u32 %v1453_v62, %v1450_v4  ;;  %v1502_v3 = vshrl.u32 %v1392_v22, 16  ;;  %v9765_v4 = vld [vmem:[%s13291_s1 + $0x168] sm:$0xff]   ;;  %v1393_v62 = vpack.c.bf16 %v10437_v23, %v10367_v37 }
  0x64   : > { %844 = vmatmul.mubr.bf16.gmra.mxu0 %v634_v40  ;;  %1028 = vmatmul.mubr.bf16.gmra.mxu1 %v10402_v0  ;;  %v1383_v0 = vpack.c.bf16 %v10181_v47, %v1349_v32  ;;  %v1445_v40 = vrot.slane %v1443_v20, 2  ;;  %v1389_v20 = vpack.c.bf16 %v10299_v48, %v10259_v25  ;;  %v1484_v25 = vshrl.u32 %v1390_v18, 16 }
  0x65   : > { %8539 = vmatprep.mubr.msk.bf16.mxu0 %vm731_vm0, %v658_v11  ;;  %8558 = vmatprep.mubr.msk.bf16.mxu1 %vm731_vm0, %v10413_v9  ;;  %v659_v11 = vshrl.u32 %v500_v46, 16  ;;  %v1387_v46 = vpack.c.bf16 %v10256_v24, %v10222_v6  ;;  %v1504_v37 = vrot.slane %v1502_v3, 1  ;;  %v1496_v18 = vshll.u32 %v1391_v12, 16 }
  0x66   : > { %v1423_v47 = vshrl.u32 %v1383_v0, 16  ;;  %v1426_v63 = vshll.u32 %v1383_v0, 16  ;;  %v1446_v5 = vor.u32 %v1445_v40, %v1442_v61  ;;  %v1471_v0 = vrot.slane %v1469_v10, 2  ;;  %v1380_v10 = vld [vmem:[%s10111_s14 + $0x128] sm:$0xff] }
  0x67   : > { %v661_v15 = vor.u32 %v659_v11, %v649_v17  ;;  %v1457_v6 = vshrl.u32 %v1387_v46, 16  ;;  %v1460_v24 = vshll.u32 %v1387_v46, 16  ;;  %v1475_v34 = vshrl.u32 %v1389_v20, 16  ;;  %v1376_v11 = vld [vmem:[%s10111_s14 + $0x108] sm:$0xff]  ;;  %v1377_v46 = vld [vmem:[%s10111_s14 + $0x110] sm:$0xff] }
  0x68   : > { %v1425_v31 = vrot.slane %v1423_v47, 1  ;;  %v1428_v32 = vrot.slane %v1426_v63, 2  ;;  %v1455_v17 = vsel %vm1421_vm4, %v1446_v5, %v1454_v2  ;;  %v1478_v48 = vshll.u32 %v1389_v20, 16  ;;  %v1375_v5 = vld [vmem:[%s10111_s14 + $0x100] sm:$0xff] }
  0x69   : > { %v1505_v61 = vshll.u32 %v1392_v22, 16  ;;  %v1459_v50 = vrot.slane %v1457_v6, 1  ;;  %v1462_v35 = vrot.slane %v1460_v24, 2  ;;  %v1486_v52 = vrot.slane %v1484_v25, 1  ;;  %v9768_v6 = vld [vmem:[%s13291_s1 + $0x1ac] sm:$0xff]  }
  0x6a   : > { %v1429_v57 = vor.u32 %v1428_v32, %v1425_v31  ;;  %v1489_v47 = vrot.slane %v1487_v27, 2  ;;  %v1477_v63 = vrot.slane %v1475_v34, 1  ;;  %v1511_v31 = vshrl.u32 %v1393_v62, 16  ;;  %v1823_v34 = vld [vmem:[%s10111_s14 + $0xf0] sm:$0xff] }
  0x6b   : > { %v1507_v23 = vrot.slane %v1505_v61, 2  ;;  %v1514_v32 = vshll.u32 %v1393_v62, 16 }
  0x6c   : > { %852 = vmatmul.mubr.bf16.gmra.mxu0 %v650_v33  ;;  %1036 = vmatmul.mubr.bf16.gmra.mxu1 %v10461_v55  ;;  %v1433_v33 = vrot.slane %v1431_v14, 1  ;;  %v1480_v14 = vrot.slane %v1478_v48, 2 }
  0x6d   : > { %8540 = vmatprep.mubr.msk.bf16.mxu0 %vm731_vm0, %v664_v53  ;;  %8559 = vmatprep.mubr.msk.bf16.mxu1 %vm731_vm0, %v474_v60  ;;  %v1436_v53 = vrot.slane %v1434_v51, 2  ;;  %v1468_v60 = vrot.slane %v1466_v54, 1  ;;  %v9766_v51 = vld [vmem:[%s13291_s1 + $0x1b4] sm:$0xff]   ;;  %v10600_v3 = vrot.slane %v1514_v32, 2 }
  0x6e   : > { %v1378_v54 = vld [vmem:[%s10111_s14 + $0x118] sm:$0xff] }
  0x6f   : > { %v1437_v39 = vor.u32 %v1436_v53, %v1433_v33  ;;  %v1472_v40 = vor.u32 %v1471_v0, %v1468_v60  ;;  %v10572_v33 = vpack.c.bf16 %v1376_v11, %v10378_v43  ;;  %v1824_v53 = vld [vmem:[%s10111_s14 + $0xf8] sm:$0xff]  ;;  %v10580_v60 = vpack.c.bf16 %v1375_v5, %v10444_v30 }
  0x70   : > { %v10584_v0 = vor.u32 %v1507_v23, %v1504_v37  ;;  %v10590_v24 = vpack.c.bf16 %v1380_v10, %v1378_v54  ;;  %v10595_v27 = vpack.c.bf16 %v1376_v11, %v1824_v53  ;;  %v9772_v10 = vld [vmem:[%s13291_s1 + $0x19c] sm:$0xff]   ;;  %v2146_v23 = vld [vmem:[%s10111_s14 + $0x148] sm:$0x3] }
  0x71   : > { %v1538_v61 = vshrl.u32 %v10572_v33, 16  ;;  %v1541_v62 = vshll.u32 %v10572_v33, 16  ;;  %v1529_v11 = vshrl.u32 %v10580_v60, 16  ;;  %v1833_v53 = vld [vmem:[%s10111_s14 + $0x140] sm:$0x1] }
  0x73   : > { %v1531_v33 = vrot.slane %v1529_v11, 1  ;;  %v9782_v11 = vld [vmem:[%s13291_s1 + $0x1c4] ss:$0 sps:$4 sm:$0x77]  }
  0x74   : > { %860 = vmatmul.mubr.bf16.gmra.mxu0 %v661_v15  ;;  %1044 = vmatmul.mubr.bf16.gmra.mxu1 %v473_v16  ;;  %v1473_v15 = vsel %vm1421_vm4, %v1454_v2, %v1472_v40  ;;  %v1379_v16 = vld [vmem:[%s10111_s14 + $0x120] sm:$0xff]  ;;  %v1463_v2 = vor.u32 %v1462_v35, %v1459_v50  ;;  %v9769_v50 = vld [vmem:[%s13291_s1 + $0x158] sm:$0xff]  }
  0x75   : > { %8589 = vmatprep.mubr.msk.bf16.mxu0 %vm731_vm0, %v10354_v36  ;;  %8627 = vmatprep.mubr.msk.bf16.mxu1 %vm731_vm0, %v1455_v17  ;;  %v1394_v36 = vpack.c.bf16 %v10375_v42, %v10317_v58  ;;  %v1438_v58 = vsel %vm1421_vm4, %v1429_v57, %v1437_v39  ;;  %v1493_v42 = vshrl.u32 %v1391_v12, 16  ;;  %v1490_v17 = vor.u32 %v1489_v47, %v1486_v52  ;;  %v9770_v35 = vld [vmem:[%s13291_s1 + $0x1a4] sm:$0xff]  }
  0x76   : > { %v1498_v12 = vrot.slane %v1496_v18, 2  ;;  %v10593_v30 = vpack.c.bf16 %v1379_v16, %v1377_v46  ;;  %v10598_v57 = vrot.slane %v1511_v31, 1  ;;  %v1556_v47 = vshrl.u32 %v10590_v24, 16  ;;  %v10646_v46 = vld [vmem:[%s10111_s14 + $0x138] sm:$0xff] }
  0x77   : > { %v1520_v20 = vshrl.u32 %v1394_v36, 16  ;;  %v1523_v22 = vshll.u32 %v1394_v36, 16  ;;  %v1495_v43 = vrot.slane %v1493_v42, 1  ;;  %v1464_v36 = vsel %vm1421_vm4, %v1437_v39, %v1463_v2 }
  0x78   : > { %v10620_v39 = vpack.c.bf16 %v1375_v5, %v1823_v34  ;;  %v1920_v42 = vrot.slane %v10590_v24, 2  ;;  %v1834_v5 = vld [vmem:[%s10111_s14 + $0x148] sm:$0x1] }
  0x79   : > { %v1522_v25 = vrot.slane %v1520_v20, 1  ;;  %v1525_v48 = vrot.slane %v1523_v22, 2  ;;  %v10636_v54 = vor.u32 %v1498_v12, %v1495_v43  ;;  %v1550_v22 = vshll.u32 %v10593_v30, 16 }
  0x7a   : > { %v2279_v37 = vshrl.u32 %v10620_v39, 16  ;;  %v2282_v18 = vshll.u32 %v10620_v39, 16  ;;  %v2308_v43 = vrot.slane %v1556_v47, 2 }
  0x7b   : > { %v10649_v20 = vor.u32 %v1525_v48, %v1522_v25  ;;  %v2302_v34 = vrot.slane %v1550_v22, 3  ;;  %v1852_v48 = vpack.c.bf16 %v1834_v5, %v10646_v46 }
  0x7c   : > { %1261 = vmatmul.mubr.bf16.vlgmr.msra.gmra.mxu0 %v10371_v38  ;;  %1711 = vmatmul.mubr.bf16.vlgmr.msra.gmra.mxu1 %v1438_v58  ;;  %v9767_v38 = vld [vmem:[%s13291_s1 + $0x160] sm:$0xff]   ;;  %v2291_v58 = vshll.u32 %v10595_v27, 16  ;;  %v2281_v31 = vrot.slane %v2279_v37, 2 }
  0x7d   : > { %8590 = vmatprep.mubr.msk.bf16.mxu0 %vm731_vm0, %v10392_v41  ;;  %8628 = vmatprep.mubr.msk.bf16.mxu1 %vm731_vm0, %v1473_v15  ;;  %v10582_v41 = vor.u32 %v1480_v14, %v1477_v63  ;;  %v1559_v63 = vshll.u32 %v10590_v24, 16  ;;  %v1547_v14 = vshrl.u32 %v10593_v30, 16  ;;  %v13304_v15 = vrot.slane %v10595_v27, 2  ;;  %v1054_v24 = vld [vmem:[%s10111_s14 + $0x108] sm:$0x7f] }
  0x7e   : > { %2023 = vmatpush1.bf16.msra.mxu0 %v9765_v4  ;;  %2429 = vmatpush1.bf16.msra.mxu1 %v9766_v51  ;;  %v1491_v4 = vsel %vm1421_vm4, %v1472_v40, %v1490_v17  ;;  %v9771_v40 = vld [vmem:[%s13291_s1 + $0x150] sm:$0xff]   ;;  %v2288_v51 = vshrl.u32 %v10595_v27, 16  ;;  %v2293_v16 = vrot.slane %v2291_v58, 3  ;;  %v2150_v58 = vpack.c.bf16 %v2146_v23, %v10646_v46 }
  0x7f   : > { %2024 = vmatprep.subr.bf16.mxu0 %v9990_v1  ;;  %2430 = vmatprep.subr.bf16.mxu1 %v9990_v1  ;;  %v10615_v52 = vsel %vm1421_vm4, %v1463_v2, %v10582_v41  ;;  %v10656_v32 = vsel %vm1891_vm5, %v13304_v15, %v1920_v42  ;;  %v13303_v2 = vrot.slane %v10620_v39, 2  ;;  %v2311_v12 = vrot.slane %v1559_v63, 3  ;;  %v2893_v15 = vld [vmem:[%s10111_s14 + $0x60] sm:$0x80] }
  0x80   : > { %v2299_v25 = vrot.slane %v1547_v14, 2  ;;  %v1527_v56 = vsel %vm1421_vm4, %v10584_v0, %v10649_v20 }
  0x81   : > { %v2312_v5 = vor.u32 %v2311_v12, %v2308_v43  ;;  %v10724_v12 = vld [vmem:[%s10111_s14 + $0x70] sm:$0xff] }
  0x82   : > { %2025 = vmatpush1.bf16.msra.mxu0 %v9767_v38  ;;  %2431 = vmatpush1.bf16.msra.mxu1 %v9768_v6  ;;  %v1918_v38 = vrot.slane %v10593_v30, 2  ;;  %v9773_v6 = vld [vmem:[%s13291_s1 + $0x148] sm:$0xff]   ;;  %v2303_v37 = vor.u32 %v2302_v34, %v2299_v25  ;;  %v10727_v25 = vld [vmem:[%s10111_s14 + $0x80] sm:$0xff]  ;;  %v1804_v30 = vld [vmem:[%s10111_s14 + $0x58] sm:$0xff] }
  0x83   : > { %2026 = vmatprep.subr.bf16.mxu0 %v9990_v1  ;;  %2432 = vmatprep.subr.bf16.mxu1 %v9990_v1 }
  0x84   : > { %1269 = vmatmul.mubr.bf16.gmra.mxu0 %v10395_v59  ;;  %1719 = vmatmul.mubr.bf16.gmra.mxu1 %v1464_v36  ;;  %v1509_v59 = vsel %vm1421_vm4, %v1490_v17, %v10584_v0  ;;  %v2284_v17 = vrot.slane %v2282_v18, 3  ;;  %v2324_v18 = vshrl.u32 %v2150_v58, 16  ;;  %v9778_v0 = vld [vmem:[%s13291_s1 + $0x184] sm:$0xff]  }
  0x85   : > { %8591 = vmatprep.mubr.msk.bf16.mxu0 %vm731_vm0, %v10426_v13  ;;  %8629 = vmatprep.mubr.msk.bf16.mxu1 %vm731_vm0, %v1491_v4  ;;  %v2290_v13 = vrot.slane %v2288_v51, 2  ;;  %v10685_v51 = vsel %vm1891_vm5, %v13303_v2, %v1918_v38  ;;  %v1532_v2 = vshll.u32 %v10580_v60, 16  ;;  %v9779_v60 = vld [vmem:[%s13291_s1 + $0x130] sm:$0xff]  }
  0x86   : > { %2027 = vmatpush1.bf16.msra.mxu0 %v9769_v50  ;;  %2433 = vmatpush1.bf16.msra.mxu1 %v9770_v35  ;;  %v2145_v50 = vld [vmem:[%s10111_s14 + $0x140] sm:$0x3]  ;;  %v10676_v35 = vld [vmem:[%s10111_s14 + $0x130] sm:$0xff]  ;;  %v10680_v4 = vor.u32 %v2284_v17, %v2281_v31  ;;  %v2327_v31 = vshll.u32 %v2150_v58, 16  ;;  %v2326_v34 = vrot.slane %v2324_v18, 2 }
  0x87   : > { %2028 = vmatprep.subr.bf16.mxu0 %v9990_v1  ;;  %2434 = vmatprep.subr.bf16.mxu1 %v9990_v1  ;;  %v10678_v36 = vor.u32 %v2293_v16, %v2290_v13  ;;  %v10692_v13 = vrot.slane %v1852_v48, 2  ;;  %v1851_v16 = vpack.c.bf16 %v1833_v53, %v10676_v35  ;;  %v2149_v23 = vpack.c.bf16 %v2145_v50, %v10676_v35 }
  0x88   : > { %v10713_v17 = vsel %vm2171_vm6, %v10680_v4, %v2303_v37  ;;  %v2329_v48 = vrot.slane %v2327_v31, 3 }
  0x89   : > { %v10709_v53 = vsel %vm2171_vm6, %v10678_v36, %v2312_v5  ;;  %v10717_v43 = vsel %vm1891_vm5, %v1920_v42, %v10692_v13  ;;  %v2315_v50 = vshrl.u32 %v2149_v23, 16  ;;  %v2318_v58 = vshll.u32 %v2149_v23, 16  ;;  %v10732_v42 = vld [vmem:[%s10111_s14 + $0x90] sm:$0xff] }
  0x8a   : > { %2029 = vmatpush1.bf16.msra.mxu0 %v9771_v40  ;;  %2435 = vmatpush1.bf16.msra.mxu1 %v9772_v10  ;;  %v9774_v40 = vld [vmem:[%s13291_s1 + $0x194] sm:$0xff]   ;;  %v9775_v10 = vld [vmem:[%s13291_s1 + $0x140] sm:$0xff]  }
  0x8b   : > { %2030 = vmatprep.subr.bf16.mxu0 %v9990_v1  ;;  %2436 = vmatprep.subr.bf16.mxu1 %v9990_v1  ;;  %v2317_v23 = vrot.slane %v2315_v50, 2  ;;  %v2320_v18 = vrot.slane %v2318_v58, 3 }
  0x8c   : > { %1277 = vmatmul.mubr.bf16.gmra.mxu0 %v10429_v19  ;;  %1727 = vmatmul.mubr.bf16.gmra.mxu1 %v10615_v52  ;;  %v9776_v19 = vld [vmem:[%s13291_s1 + $0x18c] sm:$0xff]   ;;  %v10719_v52 = vrot.slane %v1851_v16, 2  ;;  %v10742_v16 = vor.u32 %v2329_v48, %v2326_v34 }
  0x8d   : > { %8592 = vmatprep.mubr.msk.bf16.mxu0 %vm731_vm0, %v10450_v45  ;;  %v2549_v45 = vld [vmem:[%s10111_s14 + $0x60] sm:$0xc0]  ;;  %8630 = vmatprep.mubr.msk.bf16.mxu1 %vm731_vm0, %v1509_v59  ;;  %v10760_v48 = vor.u32 %v2320_v18, %v2317_v23  ;;  %v1558_v23 = vrot.slane %v1556_v47, 1 }
  0x8e   : > { %2031 = vmatpush1.bf16.msra.mxu0 %v9773_v6  ;;  %2437 = vmatpush1.bf16.msra.mxu1 %v9774_v40  ;;  %v10736_v59 = vsel %vm1891_vm5, %v1918_v38, %v10719_v52  ;;  %v9777_v6 = vld [vmem:[%s13291_s1 + $0x138] sm:$0xff]   ;;  %v1500_v40 = vsel %vm1421_vm4, %v10582_v41, %v10636_v54  ;;  %v2585_v31 = vpack.c.bf16 %v10724_v12, %v2549_v45  ;;  %v1540_v41 = vrot.slane %v1538_v61, 1 }
  0x8f   : > { %2032 = vmatprep.subr.bf16.mxu0 %v9990_v1  ;;  %2438 = vmatprep.subr.bf16.mxu1 %v9990_v1  ;;  %v10750_v38 = vpack.c.bf16 %v10732_v42, %v10727_v25  ;;  %v10758_v34 = vsel %vm2171_vm6, %v2312_v5, %v10742_v16  ;;  %v1543_v45 = vrot.slane %v1541_v62, 2  ;;  %v10775_v61 = vsel %vm2171_vm6, %v2303_v37, %v10760_v48  ;;  %v9781_v62 = vld [vmem:[%s13291_s1 + $0x178] ss:$0 sps:$4 sm:$0x77]  }
  0x90   : > { %v1517_v37 = vor.u32 %v10600_v3, %v10598_v57  ;;  %v2020_v47 = vsel %vm759_vm1, %v9781_v62, 0 }
  0x91   : > { %v13306_v5 = vrot.slane %v10750_v38, 3  ;;  %v2931_v50 = vshrl.u32 %v10750_v38, 16  ;;  %v2934_v58 = vshll.u32 %v10750_v38, 16 }
  0x92   : > { %2033 = vmatpush1.bf16.msra.mxu0 %v9775_v10  ;;  %2439 = vmatpush1.bf16.msra.mxu1 %v9776_v19  ;;  %v2642_v10 = vrot.slane %v2585_v31, 3  ;;  %v2897_v19 = vpack.c.bf16 %v10724_v12, %v2893_v15  ;;  %v1544_v15 = vor.u32 %v1543_v45, %v1540_v41  ;;  %v1518_v31 = vsel %vm1421_vm4, %v10636_v54, %v1517_v37  ;;  %v9783_v54 = vld [vmem:[%s13291_s1 + $0x170] sm:$0xff]  }
  0x93   : > { %2034 = vmatprep.subr.bf16.mxu0 %v9990_v1  ;;  %2440 = vmatprep.subr.bf16.mxu1 %v9990_v1  ;;  %v1561_v41 = vrot.slane %v1559_v63, 2  ;;  %v2426_v63 = vsel %vm759_vm1, %v9782_v11, 0  ;;  %v1058_v11 = vpack.c.bf16 %v1054_v24, %v1054_v24  ;;  %v1801_v24 = vld [vmem:[%s10111_s14 + $0x40] sm:$0xff] }
  0x94   : > { %1285 = vmatmul.mubr.bf16.gmra.mxu0 %v10453_v21  ;;  %1735 = vmatmul.mubr.bf16.gmra.mxu1 %v1500_v40  ;;  %v10787_v21 = vsel %vm2641_vm7, %v2642_v10, %v13306_v5  ;;  %v2923_v57 = vshrl.u32 %v2897_v19, 16  ;;  %v2926_v3 = vshll.u32 %v2897_v19, 16  ;;  %v1400_v10 = vpack.c.bf16 %v10646_v46, %v10646_v46  ;;  %v10970_v5 = vld [vmem:[%s10111_s14 + $0xd8] sm:$0xff] }
  0x95   : > { %8593 = vmatprep.mubr.msk.bf16.mxu0 %vm731_vm0, %v10475_v7  ;;  %8631 = vmatprep.mubr.msk.bf16.mxu1 %vm731_vm0, %v1527_v56  ;;  %v1534_v7 = vrot.slane %v1532_v2, 2  ;;  %v9780_v56 = vld [vmem:[%s13291_s1 + $0x17c] sm:$0xff]   ;;  %v2933_v2 = vrot.slane %v2931_v50, 3 }
  0x96   : > { %2035 = vmatpush1.bf16.msra.mxu0 %v9777_v6  ;;  %2441 = vmatpush1.bf16.msra.mxu1 %v9778_v0  ;;  %v2936_v6 = vrot.slane %v2934_v58, 4  ;;  %v2925_v18 = vrot.slane %v2923_v57, 3  ;;  %v2928_v40 = vrot.slane %v2926_v3, 4  ;;  %v1545_v0 = vsel %vm1421_vm4, %v10649_v20, %v1544_v15  ;;  %v1053_v57 = vld [vmem:[%s10111_s14 + $0x100] sm:$0x7f] }
  0x97   : > { %2036 = vmatprep.subr.bf16.mxu0 %v9990_v1  ;;  %2442 = vmatprep.subr.bf16.mxu1 %v9990_v1  ;;  %v1562_v20 = vor.u32 %v1561_v41, %v1558_v23  ;;  %v1574_v62 = vshrl.u32 %v1400_v10, 16  ;;  %v1399_v58 = vpack.c.bf16 %v10676_v35, %v10676_v35  ;;  %v1806_v35 = vld [vmem:[%s10111_s14 + $0x68] sm:$0xff] }
  0x98   : > { %v10812_v45 = vor.u32 %v2936_v6, %v2933_v2  ;;  %v2929_v19 = vor.u32 %v2928_v40, %v2925_v18  ;;  %v1057_v18 = vpack.c.bf16 %v1053_v57, %v1053_v57  ;;  %v1800_v40 = vld [vmem:[%s10111_s14 + $0x38] sm:$0xf0] }
  0x99   : > { %v1576_v3 = vrot.slane %v1574_v62, 1  ;;  %v1565_v6 = vshrl.u32 %v1399_v58, 16  ;;  %v1568_v23 = vshll.u32 %v1399_v58, 16 }
  0x9a   : > { %2037 = vmatpush1.bf16.msra.mxu0 %v9779_v60  ;;  %2443 = vmatpush1.bf16.msra.mxu1 %v9780_v56  ;;  %v10831_v46 = vsel %vm2921_vm8, %v2929_v19, %v10812_v45  ;;  %v1577_v60 = vshll.u32 %v1400_v10, 16  ;;  %v1563_v56 = vsel %vm1421_vm4, %v1544_v15, %v1562_v20  ;;  %v1128_v62 = vrot.slane %v1057_v18, 1 }
  0x9b   : > { %2050 = vmatprep.subr.bf16.mxu0 %v9990_v1  ;;  %2456 = vmatprep.subr.bf16.mxu1 %v9990_v1  ;;  %v1567_v10 = vrot.slane %v1565_v6, 1 }
  0x9c   : > { %1293 = vmatmul.mubr.bf16.gmra.mxu0 %v10478_v44  ;;  %1743 = vmatmul.mubr.bf16.gmra.mxu1 %v1518_v31  ;;  %v1535_v44 = vor.u32 %v1534_v7, %v1531_v33  ;;  %v1549_v33 = vrot.slane %v1547_v14, 1  ;;  %v1552_v7 = vrot.slane %v1550_v22, 2  ;;  %v1579_v2 = vrot.slane %v1577_v60, 2  ;;  %v1802_v14 = vld [vmem:[%s10111_s14 + $0x48] sm:$0xff] }
  0x9d   : > { %8594 = vmatprep.mubr.msk.bf16.mxu0 %vm731_vm0, %v10491_v26  ;;  %8632 = vmatprep.mubr.msk.bf16.mxu1 %vm731_vm0, %v1545_v0  ;;  %v9784_v26 = vld [vmem:[%s13291_s1 + $0x1bc] sm:$0xff]   ;;  %v1130_v22 = vrot.slane %v1058_v11, 1  ;;  %v10859_v31 = vpack.c.bf16 %v1806_v35, %v1804_v30  ;;  %v1836_v60 = vpack.c.bf16 %v1802_v14, %v1800_v40 }
  0x9e   : > { %2051 = vmatpush2.bf16.msra.mxu0 %v2020_v47  ;;  %2457 = vmatpush2.bf16.msra.mxu1 %v2426_v63  ;;  %v1536_v50 = vsel %vm1421_vm4, %v1517_v37, %v1535_v44  ;;  %v2144_v37 = vld [vmem:[%s10111_s14 + $0x38] sm:$0xe0]  ;;  %v1553_v15 = vor.u32 %v1552_v7, %v1549_v33  ;;  %v1570_v47 = vrot.slane %v1568_v23, 2  ;;  %v1803_v63 = vld [vmem:[%s10111_s14 + $0x50] sm:$0xff] }
  0x9f   : > { %2052 = vmatprep.subr.bf16.mxu0 %v9990_v1  ;;  %2458 = vmatprep.subr.bf16.mxu1 %v9990_v1  ;;  %v1131_v0 = vsel %vm1097_vm3, %v1126_v29, %v1130_v22  ;;  %v10872_v11 = vld [vmem:[%s10111_s14 + $0x78] sm:$0xff]  ;;  %v1896_v18 = vrot.slane %v10859_v31, 2 }
  0xa0   : > { %v1554_v41 = vsel %vm1421_vm4, %v1535_v44, %v1553_v15  ;;  %v10875_v44 = vld [vmem:[%s10111_s14 + $0x88] sm:$0xff]  ;;  %v1571_v33 = vor.u32 %v1570_v47, %v1567_v10  ;;  %v10904_v10 = vpack.c.bf16 %v10727_v25, %v10724_v12 }
  0xa1   : > { %v10920_v25 = vld [vmem:[%s10111_s14 + $0xc8] sm:$0xff] }
  0xa2   : > { %2053 = vmatpush2.bf16.msra.mxu0 %v9783_v54  ;;  %2459 = vmatpush2.bf16.msra.mxu1 %v9784_v26  ;;  %v1805_v54 = vld [vmem:[%s10111_s14 + $0x60] sm:$0xff]  ;;  %v2143_v26 = vld [vmem:[%s10111_s14 + $0x30] sm:$0xe0]  ;;  %v1572_v30 = vsel %vm1421_vm4, %v1553_v15, %v1571_v33 }
  0xa3   : > { %2772 = vmatprep.subr.bf16.mxu0 %v9990_v1  ;;  %3178 = vmatprep.subr.bf16.mxu1 %v9990_v1  ;;  %v10882_v7 = vpack.c.bf16 %v1805_v54, %v1803_v63  ;;  %v2147_v58 = vpack.c.bf16 %v1801_v24, %v2143_v26 }
  0xa4   : > { %1301 = vmatmul.mubr.bf16.gmra.mxu0 %v10494_v28  ;;  %1751 = vmatmul.mubr.bf16.gmra.mxu1 %v1536_v50  ;;  %v1580_v28 = vor.u32 %v1579_v2, %v1576_v3  ;;  %v2201_v50 = vshll.u32 %v10859_v31, 16  ;;  %v1895_v3 = vrot.slane %v1836_v60, 2 }
  0xa5   : > { %8595 = vmatprep.mubr.msk.bf16.mxu0 %vm731_vm0, %v10503_v49  ;;  %8633 = vmatprep.mubr.msk.bf16.mxu1 %vm731_vm0, %v1563_v56  ;;  %v2148_v49 = vpack.c.bf16 %v1802_v14, %v2144_v37  ;;  %v13307_v56 = vrot.slane %v10461_v55, 1  ;;  %v10889_v14 = vpack.c.bf16 %v10875_v44, %v10872_v11  ;;  %v2173_v55 = vshrl.u32 %v2147_v58, 16 }
  0xa6   : > { %v1581_v19 = vsel %vm1421_vm4, %v1562_v20, %v1580_v28  ;;  %v2198_v20 = vshrl.u32 %v10859_v31, 16  ;;  %v2203_v6 = vrot.slane %v2201_v50, 3  ;;  %v2176_v40 = vshll.u32 %v2147_v58, 16  ;;  %v10928_v50 = vld [vmem:[%s10111_s14 + $0xb0] sm:$0xff] }
  0xa7   : > { %v2190_v9 = vshrl.u32 %v2148_v49, 16  ;;  %v2193_v29 = vshll.u32 %v2148_v49, 16  ;;  %v1129_v57 = vsel %vm1097_vm3, %v13307_v56, %v1128_v62  ;;  %v2181_v49 = vshrl.u32 %v10882_v7, 16 }
  0xa8   : > { %v2200_v37 = vrot.slane %v2198_v20, 2  ;;  %v2184_v15 = vshll.u32 %v10882_v7, 16  ;;  %v2216_v31 = vshrl.u32 %v10889_v14, 16  ;;  %v2219_v47 = vshll.u32 %v10889_v14, 16 }
  0xa9   : > { %v2192_v2 = vrot.slane %v2190_v9, 2  ;;  %v2195_v35 = vrot.slane %v2193_v29, 3  ;;  %v2175_v60 = vrot.slane %v2173_v55, 2  ;;  %v2178_v26 = vrot.slane %v2176_v40, 3 }
  0xaa   : > { %v2204_v54 = vor.u32 %v2203_v6, %v2200_v37  ;;  %v2183_v9 = vrot.slane %v2181_v49, 2  ;;  %v2186_v29 = vrot.slane %v2184_v15, 3  ;;  %v2207_v20 = vshrl.u32 %v10904_v10, 16 }
  0xab   : > { %v2196_v63 = vor.u32 %v2195_v35, %v2192_v2  ;;  %v1897_v58 = vsel %vm1891_vm5, %v1895_v3, %v1896_v18  ;;  %v2218_v56 = vrot.slane %v2216_v31, 2  ;;  %v2210_v2 = vshll.u32 %v10904_v10, 16 }
  0xac   : > { %1309 = vmatmul.mubr.bf16.gmra.mxu0 %v10511_v8  ;;  %1759 = vmatmul.mubr.bf16.gmra.mxu1 %v1554_v41  ;;  %v1799_v8 = vld [vmem:[%s10111_s14 + $0x30] sm:$0xf0]  ;;  %v10895_v41 = vld [vmem:[%s10111_s14 + $0x98] sm:$0xff]  ;;  %v1893_v35 = vrot.slane %v10882_v7, 2  ;;  %v2179_v3 = vor.u32 %v2178_v26, %v2175_v60  ;;  %v1898_v55 = vrot.slane %v10904_v10, 2  ;;  %v2187_v7 = vor.u32 %v2186_v29, %v2183_v9  ;;  %v9785_v29 = vld [vmem:[%s13291_s1 + $0x200] sm:$0xff]  }
  0xad   : > { %8596 = vmatprep.mubr.msk.bf16.mxu0 %vm731_vm0, %v1131_v0  ;;  %8634 = vmatprep.mubr.msk.bf16.mxu1 %vm731_vm0, %v1581_v19  ;;  %v1835_v23 = vpack.c.bf16 %v1801_v24, %v1799_v8  ;;  %v10898_v0 = vld [vmem:[%s10111_s14 + $0xa8] sm:$0xff]  ;;  %v10909_v19 = vld [vmem:[%s10111_s14 + $0xa0] sm:$0xff]  ;;  %v2209_v40 = vrot.slane %v2207_v20, 2  ;;  %v2212_v31 = vrot.slane %v2210_v2, 3 }
  0xae   : > { %v10917_v12 = vpack.c.bf16 %v10898_v0, %v10895_v41  ;;  %v10931_v8 = vld [vmem:[%s10111_s14 + $0xc0] sm:$0xff]  ;;  %v9786_v2 = vld [vmem:[%s13291_s1 + $0x24c] sm:$0xff]  }
  0xaf   : > { %v1892_v24 = vrot.slane %v1835_v23, 2  ;;  %v1900_v23 = vrot.slane %v10889_v14, 2  ;;  %v10951_v15 = vpack.c.bf16 %v10931_v8, %v10928_v50  ;;  %v10973_v14 = vld [vmem:[%s10111_s14 + $0xe8] sm:$0xff] }
  0xb0   : > { %v2234_v37 = vshrl.u32 %v10917_v12, 16 }
  0xb1   : > { %v1901_v20 = vsel %vm1891_vm5, %v1896_v18, %v1900_v23 }
  0xb2   : > { %v2236_v60 = vrot.slane %v2234_v37, 2 }
  0xb4   : > { %1317 = vmatmul.mubr.bf16.gmra.mxu0 %v1129_v57  ;;  %1767 = vmatmul.mubr.bf16.gmra.mxu1 %v1572_v30  ;;  %v2221_v57 = vrot.slane %v2219_v47, 3  ;;  %v2205_v30 = vsel %vm2171_vm6, %v2196_v63, %v2204_v54  ;;  %v1904_v47 = vrot.slane %v10917_v12, 2  ;;  %v1894_v63 = vsel %vm1891_vm5, %v1892_v24, %v1893_v35 }
  0xb5   : > { %8597 = vmatprep.mubr.msk.bf16.mxu0 %vm731_vm0, %v1130_v22  ;;  %8635 = vmatprep.mubr.msk.bf16.mxu1 %vm731_vm0, %v1580_v28  ;;  %v10913_v22 = vld [vmem:[%s10111_s14 + $0xb8] sm:$0xff]  ;;  %v10925_v28 = vpack.c.bf16 %v10909_v19, %v10732_v42  ;;  %v2237_v42 = vshll.u32 %v10917_v12, 16  ;;  %v2188_v24 = vsel %vm2171_vm6, %v2179_v3, %v2187_v7  ;;  %v9788_v3 = vld [vmem:[%s13291_s1 + $0x244] sm:$0xff]  }
  0xb6   : > { %v10941_v6 = vpack.c.bf16 %v10920_v25, %v10913_v22  ;;  %v9796_v12 = vld [vmem:[%s13291_s1 + $0x224] sm:$0xff]  }
  0xb7   : > { %v2228_v49 = vshll.u32 %v10925_v28, 16  ;;  %v2239_v26 = vrot.slane %v2237_v42, 3  ;;  %v2243_v42 = vshrl.u32 %v10951_v15, 16 }
  0xb8   : > { %v2252_v9 = vshrl.u32 %v10941_v6, 16  ;;  %v2255_v37 = vshll.u32 %v10941_v6, 16 }
  0xbc   : > { %1325 = vmatmul.mubr.bf16.gmra.mxu0 %v1128_v62  ;;  %1775 = vmatmul.mubr.bf16.gmra.mxu1 %v1571_v33  ;;  %v2225_v62 = vshrl.u32 %v10925_v28, 16  ;;  %v2222_v33 = vor.u32 %v2221_v57, %v2218_v56  ;;  %v2246_v57 = vshll.u32 %v10951_v15, 16  ;;  %v9787_v56 = vld [vmem:[%s13291_s1 + $0x1f8] sm:$0xff]  }
  0xbd   : > { %8665 = vmatprep.mubr.msk.bf16.mxu0 %vm731_vm0, %v1897_v58  ;;  %8703 = vmatprep.mubr.msk.bf16.mxu1 %vm731_vm0, %v2205_v30  ;;  %v2230_v30 = vrot.slane %v2228_v49, 3  ;;  %v2213_v49 = vor.u32 %v2212_v31, %v2209_v40  ;;  %v1899_v40 = vsel %vm1891_vm5, %v1893_v35, %v1898_v55  ;;  %v9790_v31 = vld [vmem:[%s13291_s1 + $0x23c] sm:$0xff]  }
  0xbe   : > { %v2227_v58 = vrot.slane %v2225_v62, 2  ;;  %v2223_v18 = vsel %vm2171_vm6, %v2204_v54, %v2222_v33  ;;  %v2254_v62 = vrot.slane %v2252_v9, 2  ;;  %v2240_v54 = vor.u32 %v2239_v26, %v2236_v60 }
  0xbf   : > { %v2257_v9 = vrot.slane %v2255_v37, 3  ;;  %v2214_v60 = vsel %vm2171_vm6, %v2187_v7, %v2213_v49  ;;  %v1905_v26 = vsel %vm1891_vm5, %v1900_v23, %v1904_v47  ;;  %v9791_v7 = vld [vmem:[%s13291_s1 + $0x1e8] sm:$0xff]  }
  0xc4   : > { %2055 = vmatmul.mubr.bf16.vlgmr.msra.gmra.mxu0 %v1894_v63  ;;  %2461 = vmatmul.mubr.bf16.vlgmr.msra.gmra.mxu1 %v2188_v24  ;;  %v10987_v63 = vpack.c.bf16 %v10973_v14, %v10970_v5  ;;  %v2245_v24 = vrot.slane %v2243_v42, 2  ;;  %v2231_v42 = vor.u32 %v2230_v30, %v2227_v58  ;;  %v9794_v58 = vld [vmem:[%s13291_s1 + $0x22c] sm:$0xff]  }
  0xc5   : > { %8666 = vmatprep.mubr.msk.bf16.mxu0 %vm731_vm0, %v1901_v20  ;;  %8704 = vmatprep.mubr.msk.bf16.mxu1 %vm731_vm0, %v2223_v18  ;;  %v9789_v20 = vld [vmem:[%s13291_s1 + $0x1f0] sm:$0xff]   ;;  %v2258_v18 = vor.u32 %v2257_v9, %v2254_v62  ;;  %v13309_v62 = vrot.slane %v10941_v6, 2 }
  0xc6   : > { %2773 = vmatpush1.bf16.msra.mxu0 %v9785_v29  ;;  %3179 = vmatpush1.bf16.msra.mxu1 %v9786_v2  ;;  %v2241_v29 = vsel %vm2171_vm6, %v2222_v33, %v2240_v54  ;;  %v2248_v2 = vrot.slane %v2246_v57, 3  ;;  %v2270_v37 = vshrl.u32 %v10987_v63, 16  ;;  %v2273_v35 = vshll.u32 %v10987_v63, 16  ;;  %v11015_v33 = vld [vmem:[%s10111_s14 + $0xd0] sm:$0xff] }
  0xc7   : > { %2774 = vmatprep.subr.bf16.mxu0 %v9990_v1  ;;  %3180 = vmatprep.subr.bf16.mxu1 %v9990_v1  ;;  %v1912_v23 = vrot.slane %v10987_v63, 2  ;;  %v9792_v57 = vld [vmem:[%s13291_s1 + $0x234] sm:$0xff]   ;;  %v2232_v30 = vsel %vm2171_vm6, %v2213_v49, %v2231_v42  ;;  %v1909_v9 = vsel %vm1891_vm5, %v1904_v47, %v13309_v62  ;;  %v13315_v63 = vrot.slane %v10620_v39, 2  ;;  %v2894_v39 = vld [vmem:[%s10111_s14 + $0x68] sm:$0x80] }
  0xc8   : > { %v2249_v47 = vor.u32 %v2248_v2, %v2245_v24  ;;  %v9798_v2 = vld [vmem:[%s13291_s1 + $0x21c] sm:$0xff]  }
  0xca   : > { %2775 = vmatpush1.bf16.msra.mxu0 %v9787_v56  ;;  %3181 = vmatpush1.bf16.msra.mxu1 %v9788_v3  ;;  %v11018_v56 = vld [vmem:[%s10111_s14 + $0xe0] sm:$0xff]  ;;  %v2272_v3 = vrot.slane %v2270_v37, 2 }
  0xcb   : > { %2776 = vmatprep.subr.bf16.mxu0 %v9990_v1  ;;  %3182 = vmatprep.subr.bf16.mxu1 %v9990_v1 }
  0xcc   : > { %2063 = vmatmul.mubr.bf16.gmra.mxu0 %v1899_v40  ;;  %2469 = vmatmul.mubr.bf16.gmra.mxu1 %v2214_v60  ;;  %v2275_v40 = vrot.slane %v2273_v35, 3  ;;  %v9793_v60 = vld [vmem:[%s13291_s1 + $0x1e0] sm:$0xff]   ;;  %v9797_v35 = vld [vmem:[%s13291_s1 + $0x1d0] sm:$0xff]  }
  0xcd   : > { %8667 = vmatprep.mubr.msk.bf16.mxu0 %vm731_vm0, %v1905_v26  ;;  %8705 = vmatprep.mubr.msk.bf16.mxu1 %vm731_vm0, %v2241_v29  ;;  %v13308_v26 = vrot.slane %v10925_v28, 2  ;;  %v9799_v28 = vld [vmem:[%s13291_s1 + $0x1c8] sm:$0xff]  }
  0xce   : > { %2777 = vmatpush1.bf16.msra.mxu0 %v9789_v20  ;;  %3183 = vmatpush1.bf16.msra.mxu1 %v9790_v31  ;;  %v11045_v20 = vpack.c.bf16 %v11018_v56, %v11015_v33  ;;  %v2259_v31 = vsel %vm2171_vm6, %v2240_v54, %v2258_v18  ;;  %v2276_v37 = vor.u32 %v2275_v40, %v2272_v3 }
  0xcf   : > { %2778 = vmatprep.subr.bf16.mxu0 %v9990_v1  ;;  %3184 = vmatprep.subr.bf16.mxu1 %v9990_v1  ;;  %v1903_v29 = vsel %vm1891_vm5, %v1898_v55, %v13308_v26  ;;  %v9795_v55 = vld [vmem:[%s13291_s1 + $0x1d8] sm:$0xff]   ;;  %v2250_v3 = vsel %vm2171_vm6, %v2231_v42, %v2249_v47  ;;  %v13312_v40 = vmov %v13309_v62 }
  0xd0   : > { %v2261_v49 = vshrl.u32 %v11045_v20, 16  ;;  %v2264_v54 = vshll.u32 %v11045_v20, 16  ;;  %v1910_v6 = vrot.slane %v11045_v20, 2  ;;  %v9800_v42 = vld [vmem:[%s13291_s1 + $0x214] sm:$0xff]  }
  0xd1   : > { %v9802_v62 = vld [vmem:[%s13291_s1 + $0x25c] ss:$0 sps:$4 sm:$0x77]  }
  0xd2   : > { %2779 = vmatpush1.bf16.msra.mxu0 %v9791_v7  ;;  %3185 = vmatpush1.bf16.msra.mxu1 %v9792_v57  ;;  %v13310_v7 = vrot.slane %v10951_v15, 2  ;;  %v13311_v57 = vmov %v13308_v26  ;;  %v2263_v26 = vrot.slane %v2261_v49, 2  ;;  %v2295_v49 = vsel %vm2171_vm6, %v2276_v37, %v10678_v36  ;;  %v9804_v36 = vld [vmem:[%s13291_s1 + $0x254] sm:$0xff]  }
  0xd3   : > { %2780 = vmatprep.subr.bf16.mxu0 %v9990_v1  ;;  %3186 = vmatprep.subr.bf16.mxu1 %v9990_v1  ;;  %v3176_v15 = vsel %vm759_vm1, %v9802_v62, 0 }
  0xd4   : > { %2071 = vmatmul.mubr.bf16.gmra.mxu0 %v1903_v29  ;;  %2477 = vmatmul.mubr.bf16.gmra.mxu1 %v2232_v30  ;;  %v1907_v24 = vsel %vm1891_vm5, %v13311_v57, %v13310_v7  ;;  %v2266_v29 = vrot.slane %v2264_v54, 3 }
  0xd5   : > { %8668 = vmatprep.mubr.msk.bf16.mxu0 %vm731_vm0, %v1909_v9  ;;  %8706 = vmatprep.mubr.msk.bf16.mxu1 %vm731_vm0, %v2259_v31  ;;  %v13313_v9 = vmov %v13310_v7 }
  0xd6   : > { %2781 = vmatpush1.bf16.msra.mxu0 %v9793_v60  ;;  %3187 = vmatpush1.bf16.msra.mxu1 %v9794_v58  ;;  %v1913_v60 = vsel %vm1891_vm5, %v13312_v40, %v1912_v23  ;;  %v2277_v58 = vsel %vm2171_vm6, %v2258_v18, %v2276_v37  ;;  %v9801_v18 = vld [vmem:[%s13291_s1 + $0x210] ss:$0 sps:$4 sm:$0x77]   ;;  %v2267_v30 = vor.u32 %v2266_v29, %v2263_v26 }
  0xd7   : > { %2782 = vmatprep.subr.bf16.mxu0 %v9990_v1  ;;  %3188 = vmatprep.subr.bf16.mxu1 %v9990_v1  ;;  %v1911_v20 = vsel %vm1891_vm5, %v13313_v9, %v1910_v6  ;;  %v2770_v54 = vsel %vm759_vm1, %v9801_v18, 0  ;;  %v11138_v37 = vpack.c.bf16 %v10895_v41, %v10875_v44  ;;  %v2550_v41 = vld [vmem:[%s10111_s14 + $0x68] sm:$0xc0] }
  0xd8   : > { %v2268_v31 = vsel %vm2171_vm6, %v2249_v47, %v2267_v30  ;;  %v2286_v47 = vsel %vm2171_vm6, %v2267_v30, %v10680_v4  ;;  %v2898_v4 = vpack.c.bf16 %v10872_v11, %v2894_v39 }
  0xd9   : > { %v2646_v9 = vrot.slane %v11138_v37, 3 }
  0xda   : > { %2783 = vmatpush1.bf16.msra.mxu0 %v9795_v55  ;;  %3189 = vmatpush1.bf16.msra.mxu1 %v9796_v12  ;;  %v13314_v55 = vrot.slane %v10595_v27, 2  ;;  %v9803_v27 = vld [vmem:[%s13291_s1 + $0x208] sm:$0xff]  }
  0xdb   : > { %2784 = vmatprep.subr.bf16.mxu0 %v9990_v1  ;;  %3190 = vmatprep.subr.bf16.mxu1 %v9990_v1 }
  0xdc   : > { %2079 = vmatmul.mubr.bf16.gmra.mxu0 %v1907_v24  ;;  %2485 = vmatmul.mubr.bf16.gmra.mxu1 %v2250_v3  ;;  %v1917_v12 = vsel %vm1891_vm5, %v1912_v23, %v13314_v55  ;;  %v1915_v23 = vsel %vm1891_vm5, %v1910_v6, %v13315_v63  ;;  %v2940_v24 = vshrl.u32 %v2898_v4, 16  ;;  %v11157_v6 = vpack.c.bf16 %v10913_v22, %v10898_v0 }
  0xdd   : > { %8669 = vmatprep.mubr.msk.bf16.mxu0 %vm731_vm0, %v1913_v60  ;;  %8707 = vmatprep.mubr.msk.bf16.mxu1 %vm731_vm0, %v2277_v58  ;;  %v11180_v63 = vpack.c.bf16 %v10970_v5, %v10920_v25 }
  0xde   : > { %2785 = vmatpush1.bf16.msra.mxu0 %v9797_v35  ;;  %3191 = vmatpush1.bf16.msra.mxu1 %v9798_v2  ;;  %v2943_v2 = vshll.u32 %v2898_v4, 16  ;;  %v2942_v58 = vrot.slane %v2940_v24, 3 }
  0xdf   : > { %2786 = vmatprep.subr.bf16.mxu0 %v9990_v1  ;;  %3192 = vmatprep.subr.bf16.mxu1 %v9990_v1 }
  0xe2   : > { %2787 = vmatpush1.bf16.msra.mxu0 %v9799_v28  ;;  %3193 = vmatpush1.bf16.msra.mxu1 %v9800_v42  ;;  %v2945_v28 = vrot.slane %v2943_v2, 4  ;;  %v11198_v2 = vpack.c.bf16 %v11015_v33, %v10931_v8 }
  0xe3   : > { %2800 = vmatprep.subr.bf16.mxu0 %v9990_v1  ;;  %3206 = vmatprep.subr.bf16.mxu1 %v9990_v1 }
  0xe4   : > { %2087 = vmatmul.mubr.bf16.gmra.mxu0 %v1911_v20  ;;  %2493 = vmatmul.mubr.bf16.gmra.mxu1 %v2268_v31  ;;  %v2946_v22 = vor.u32 %v2945_v28, %v2942_v58  ;;  %v2969_v31 = vshll.u32 %v11157_v6, 16  ;;  %v2654_v28 = vrot.slane %v11180_v63, 3 }
  0xe5   : > { %8670 = vmatprep.mubr.msk.bf16.mxu0 %vm731_vm0, %v1917_v12  ;;  %8708 = vmatprep.mubr.msk.bf16.mxu1 %vm731_vm0, %v2295_v49 }
  0xe6   : > { %2801 = vmatpush2.bf16.msra.mxu0 %v2770_v54  ;;  %3207 = vmatpush2.bf16.msra.mxu1 %v3176_v15 }
  0xe7   : > { %2802 = vmatprep.subr.bf16.mxu0 %v9990_v1  ;;  %3208 = vmatprep.subr.bf16.mxu1 %v9990_v1 }
  0xea   : > { %2803 = vmatpush2.bf16.msra.mxu0 %v9803_v27  ;;  %3209 = vmatpush2.bf16.msra.mxu1 %v9804_v36  ;;  %v2971_v36 = vrot.slane %v2969_v31, 4  ;;  %v13316_v31 = vrot.slane %v10750_v38, 3 }
  0xeb   : > { %3426 = vmatprep.subr.bf16.mxu0 %v9990_v1  ;;  %9695 = vmatprep.subr.bf16.mxu1 %v9990_v1 }
  0xec   : > { %2095 = vmatmul.mubr.bf16.gmra.mxu0 %v1915_v23  ;;  %2501 = vmatmul.mubr.bf16.gmra.mxu1 %v2286_v47 }
  0xed   : > { %8671 = vmatprep.mubr.msk.bf16.mxu0 %vm731_vm0, %v10656_v32  ;;  %8709 = vmatprep.mubr.msk.bf16.mxu1 %vm731_vm0, %v10709_v53  ;;  %v2948_v53 = vshrl.u32 %v11138_v37, 16 }
  0xef   : > { %v2950_v26 = vrot.slane %v2948_v53, 3 }
  0xf4   : > { %v797_v35 = vpop.f32.mrf.mxu0  ;;  %2103 = vmatmul.mubr.bf16.gmra.mxu0 %v10685_v51  ;;  %v981_v7 = vpop.f32.mrf.mxu1  ;;  %2509 = vmatmul.mubr.bf16.gmra.mxu1 %v10713_v17  ;;  %v2951_v51 = vshll.u32 %v11138_v37, 16 }
  0xf5   : > { %8672 = vmatprep.mubr.msk.bf16.mxu0 %vm731_vm0, %v10717_v43  ;;  %v11145_v32 = vadd.f32 %v981_v7, %v797_v35  ;;  %8710 = vmatprep.mubr.msk.bf16.mxu1 %vm731_vm0, %v10758_v34  ;;  %v2586_v43 = vpack.c.bf16 %v10872_v11, %v2550_v41 }
  0xf6   : > { %v799_v57 = vpop.f32.mrf.mxu0  ;;  %v983_v44 = vpop.f32.mrf.mxu1  ;;  %v2953_v34 = vrot.slane %v2951_v51, 4  ;;  %v9805_v51 = vld [vmem:[%s13291_s1 + $0x298] sm:$0xff]  }
  0xf7   : > { %v2645_v62 = vrot.slane %v2586_v43, 3 }
  0xf8   : > { %v800_v3 = vpop.f32.mrf.mxu0  ;;  %v984_v40 = vpop.f32.mrf.mxu1  ;;  %v2954_v20 = vor.u32 %v2953_v34, %v2950_v26  ;;  %v11205_v26 = vld [vmem:[%s10111_s14 + $0xf8] sm:$0xff] }
  0xf9   : > { %v11152_v17 = vadd.f32 %v984_v40, %v800_v3  ;;  %v2647_v49 = vsel %vm2641_vm7, %v2645_v62, %v2646_v9 }
  0xfa   : > { %v802_v60 = vpop.f32.mrf.mxu0  ;;  %v986_v29 = vpop.f32.mrf.mxu1  ;;  %v2955_v15 = vsel %vm2921_vm8, %v2946_v22, %v2954_v20  ;;  %v11232_v22 = vld [vmem:[%s10111_s14 + $0x108] sm:$0xff] }
  0xfb   : > { %v11209_v29 = vpack.c.bf16 %v11205_v26, %v10973_v14 }
  0xfc   : > { %v805_v42 = vpop.f32.mrf.mxu0  ;;  %2111 = vmatmul.mubr.bf16.gmra.mxu0 %v10736_v59  ;;  %v989_v18 = vpop.f32.mrf.mxu1  ;;  %2517 = vmatmul.mubr.bf16.gmra.mxu1 %v10775_v61  ;;  %v2966_v59 = vshrl.u32 %v11157_v6, 16 }
  0xfd   : > { %8673 = vmatprep.mubr.msk.bf16.mxu0 %vm731_vm0, %v10692_v13  ;;  %v11163_v30 = vadd.f32 %v989_v18, %v805_v42  ;;  %8711 = vmatprep.mubr.msk.bf16.mxu1 %vm731_vm0, %v10742_v16  ;;  %v11175_v16 = vpack.c.bf16 %v10928_v50, %v10909_v19  ;;  %v2650_v19 = vrot.slane %v11157_v6, 3  ;;  %v9806_v42 = vld [vmem:[%s13291_s1 + $0x290] sm:$0xff]   ;;  %v3002_v62 = vshrl.u32 %v11209_v29, 16 }
  0xfe   : > { %v807_v11 = vpop.f32.mrf.mxu0  ;;  %v991_v0 = vpop.f32.mrf.mxu1  ;;  %v2968_v27 = vrot.slane %v2966_v59, 3 }
  0xff   : > { %v2957_v37 = vshrl.u32 %v11175_v16, 16  ;;  %v2960_v5 = vshll.u32 %v11175_v16, 16  ;;  %v2651_v57 = vsel %vm2641_vm7, %v2646_v9, %v2650_v19  ;;  %v2648_v33 = vrot.slane %v11175_v16, 3 }
 0x100   : > { %v808_v61 = vpop.f32.mrf.mxu0  ;;  %v992_v55 = vpop.f32.mrf.mxu1  ;;  %v2972_v4 = vor.u32 %v2971_v36, %v2968_v27  ;;  %v3005_v9 = vshll.u32 %v11209_v29, 16 }
 0x101   : > { %v11170_v12 = vadd.f32 %v992_v55, %v808_v61  ;;  %v2959_v41 = vrot.slane %v2957_v37, 3  ;;  %v2962_v24 = vrot.slane %v2960_v5, 4  ;;  %v2649_v61 = vsel %vm2641_vm7, %v13316_v31, %v2648_v33 }
 0x102   : > { %v810_v13 = vpop.f32.mrf.mxu0  ;;  %v994_v54 = vpop.f32.mrf.mxu1  ;;  %v2973_v40 = vsel %vm2921_vm8, %v2954_v20, %v2972_v4  ;;  %v11235_v20 = vld [vmem:[%s10111_s14 + $0x118] sm:$0xff]  ;;  %v2655_v55 = vsel %vm2641_vm7, %v2650_v19, %v2654_v28 }
 0x103   : > { %v11219_v14 = vor.u32 %v2962_v24, %v2959_v41  ;;  %v11246_v13 = vld [vmem:[%s10111_s14 + $0xf0] sm:$0xff]  ;;  %v11264_v37 = vpack.c.bf16 %v11235_v20, %v11232_v22  ;;  %v9808_v24 = vld [vmem:[%s13291_s1 + $0x280] sm:$0xff]  }
 0x104   : > { %v813_v23 = vpop.f32.mrf.mxu0  ;;  %2119 = vmatmul.mubr.bf16.gmra.mxu0 %v10719_v52  ;;  %v997_v47 = vpop.f32.mrf.mxu1  ;;  %2525 = vmatmul.mubr.bf16.gmra.mxu1 %v10760_v48  ;;  %v2984_v52 = vshrl.u32 %v11180_v63, 16  ;;  %v2987_v48 = vshll.u32 %v11180_v63, 16  ;;  %v11279_v41 = vld [vmem:[%s10111_s14 + $0x110] sm:$0xff] }
 0x105   : > { %8741 = vmatprep.mubr.msk.bf16.mxu0 %vm731_vm0, %v2647_v49  ;;  %v11186_v50 = vadd.f32 %v997_v47, %v813_v23  ;;  %8779 = vmatprep.mubr.msk.bf16.mxu1 %vm731_vm0, %v2955_v15  ;;  %v11250_v49 = vpack.c.bf16 %v11246_v13, %v11018_v56  ;;  %v2964_v27 = vsel %vm2921_vm8, %v10812_v45, %v11219_v14  ;;  %v9807_v23 = vld [vmem:[%s13291_s1 + $0x288] sm:$0xff]   ;;  %v3004_v56 = vrot.slane %v3002_v62, 3 }
 0x106   : > { %v815_v39 = vpop.f32.mrf.mxu0  ;;  %v999_v25 = vpop.f32.mrf.mxu1  ;;  %v2986_v60 = vrot.slane %v2984_v52, 3  ;;  %v2989_v43 = vrot.slane %v2987_v48, 4 }
 0x107   : > { %v3007_v39 = vrot.slane %v3005_v9, 4  ;;  %v2652_v25 = vrot.slane %v11198_v2, 3  ;;  %v2996_v52 = vshll.u32 %v11250_v49, 16 }
 0x108   : > { %v816_v35 = vpop.f32.mrf.mxu0  ;;  %v1000_v7 = vpop.f32.mrf.mxu1  ;;  %v11226_v11 = vor.u32 %v2989_v43, %v2986_v60  ;;  %v11289_v60 = vld [vmem:[%s10111_s14 + $0x128] sm:$0xff]  ;;  %v11292_v43 = vld [vmem:[%s10111_s14 + $0x138] sm:$0xff] }
 0x109   : > { %v11194_v53 = vadd.f32 %v1000_v7, %v816_v35  ;;  %v11311_v16 = vpack.c.bf16 %v11292_v43, %v11289_v60 }
 0x10a   : > { %v818_v44 = vpop.f32.mrf.mxu0  ;;  %v1002_v3 = vpop.f32.mrf.mxu1  ;;  %v2991_v19 = vsel %vm2921_vm8, %v2972_v4, %v11226_v11  ;;  %v2993_v4 = vshrl.u32 %v11250_v49, 16 }
 0x10b   : > { %v11276_v44 = vld [vmem:[%s10111_s14 + $0x100] sm:$0xff]  ;;  %v3020_v3 = vshrl.u32 %v11264_v37, 16 }
 0x10c   : > { %v821_v58 = vpop.f32.mrf.mxu0  ;;  %2805 = vmatmul.mubr.bf16.vlgmr.msra.gmra.mxu0 %v10787_v21  ;;  %v1005_v8 = vpop.f32.mrf.mxu1  ;;  %3211 = vmatmul.mubr.bf16.vlgmr.msra.gmra.mxu1 %v10831_v46  ;;  %v2975_v21 = vshrl.u32 %v11198_v2, 16  ;;  %v2978_v46 = vshll.u32 %v11198_v2, 16 }
 0x10d   : > { %8742 = vmatprep.mubr.msk.bf16.mxu0 %vm731_vm0, %v2651_v57  ;;  %v11216_v34 = vadd.f32 %v1005_v8, %v821_v58  ;;  %8780 = vmatprep.mubr.msk.bf16.mxu1 %vm731_vm0, %v2973_v40  ;;  %v2658_v57 = vrot.slane %v11209_v29, 3  ;;  %v3023_v40 = vshll.u32 %v11264_v37, 16  ;;  %v2653_v8 = vsel %vm2641_vm7, %v2648_v33, %v2652_v25  ;;  %v9809_v33 = vld [vmem:[%s13291_s1 + $0x278] sm:$0xff]  }
 0x10e   : > { %v823_v6 = vpop.f32.mrf.mxu0  ;;  %3427 = vmatpush1.bf16.msra.mxu0 %v9805_v51  ;;  %v1007_v18 = vpop.f32.mrf.mxu1  ;;  %v2977_v38 = vrot.slane %v2975_v21, 3  ;;  %v2980_v36 = vrot.slane %v2978_v46, 4  ;;  %v11284_v51 = vor.u32 %v3007_v39, %v3004_v56  ;;  %v2998_v21 = vrot.slane %v2996_v52, 4  ;;  %v9810_v39 = vld [vmem:[%s13291_s1 + $0x270] sm:$0xff]  }
 0x10f   : > { %3428 = vmatprep.subr.bf16.mxu0 %v9990_v1  ;;  %v2995_v6 = vrot.slane %v2993_v4, 3  ;;  %v11300_v46 = vpack.c.bf16 %v11279_v41, %v11276_v44  ;;  %v2659_v9 = vsel %vm2641_vm7, %v2654_v28, %v2658_v57  ;;  %v3022_v31 = vrot.slane %v3020_v3, 3 }
 0x110   : > { %v824_v0 = vpop.f32.mrf.mxu0  ;;  %v1008_v59 = vpop.f32.mrf.mxu1  ;;  %v2981_v7 = vor.u32 %v2980_v36, %v2977_v38  ;;  %v2656_v28 = vrot.slane %v11250_v49, 3  ;;  %v3041_v56 = vshll.u32 %v11311_v16, 16 }
 0x111   : > { %v11252_v54 = vadd.f32 %v1008_v59, %v824_v0  ;;  %v3009_v59 = vsel %vm2921_vm8, %v11226_v11, %v11284_v51  ;;  %v3011_v11 = vshrl.u32 %v11300_v46, 16  ;;  %v3014_v36 = vshll.u32 %v11300_v46, 16 }
 0x112   : > { %v826_v15 = vpop.f32.mrf.mxu0  ;;  %3429 = vmatpush1.bf16.msra.mxu0 %v9806_v42  ;;  %v1010_v47 = vpop.f32.mrf.mxu1  ;;  %v2982_v62 = vsel %vm2921_vm8, %v11219_v14, %v2981_v7  ;;  %v3025_v14 = vrot.slane %v3023_v40, 4  ;;  %v2657_v52 = vsel %vm2641_vm7, %v2652_v25, %v2656_v28 }
 0x113   : > { %3430 = vmatprep.subr.bf16.mxu0 %v9990_v1  ;;  %v2662_v15 = vrot.slane %v11264_v37, 3  ;;  %v11334_v47 = vld [vmem:[%s10111_s14 + $0x130] sm:$0xff] }
 0x114   : > { %v829_v45 = vpop.f32.mrf.mxu0  ;;  %2813 = vmatmul.mubr.bf16.gmra.mxu0 %v2649_v61  ;;  %v1013_v5 = vpop.f32.mrf.mxu1  ;;  %3219 = vmatmul.mubr.bf16.gmra.mxu1 %v2964_v27 }
 0x115   : > { %8743 = vmatprep.mubr.msk.bf16.mxu0 %vm731_vm0, %v2655_v55  ;;  %v11271_v48 = vadd.f32 %v1013_v5, %v829_v45  ;;  %8781 = vmatprep.mubr.msk.bf16.mxu1 %vm731_vm0, %v2991_v19  ;;  %v11322_v55 = vor.u32 %v2998_v21, %v2995_v6  ;;  %v3038_v19 = vshrl.u32 %v11311_v16, 16  ;;  %v3026_v5 = vor.u32 %v3025_v14, %v3022_v31 }
 0x116   : > { %v831_v35 = vpop.f32.mrf.mxu0  ;;  %3431 = vmatpush1.bf16.msra.mxu0 %v9807_v23  ;;  %v1015_v2 = vpop.f32.mrf.mxu1  ;;  %v11331_v23 = vld [vmem:[%s10111_s14 + $0x120] sm:$0xff]  ;;  %v2663_v40 = vsel %vm2641_vm7, %v2658_v57, %v2662_v15  ;;  %v3016_v6 = vrot.slane %v3014_v36, 4 }
 0x117   : > { %3432 = vmatprep.subr.bf16.mxu0 %v9990_v1  ;;  %v11346_v35 = vld [vmem:[%s10111_s14 + $0x148] sm:$0xff]  ;;  %v3000_v3 = vsel %vm2921_vm8, %v2981_v7, %v11322_v55  ;;  %v3040_v21 = vrot.slane %v3038_v19, 3  ;;  %v3027_v57 = vsel %vm2921_vm8, %v11284_v51, %v3026_v5  ;;  %v11383_v36 = vld [vmem:[%s10111_s14 + $0x140] sm:$0xff]  ;;  %v11386_v19 = vld [vmem:[%s10111_s14 + $0x150] sm:$0xff] }
 0x118   : > { %v832_v29 = vpop.f32.mrf.mxu0  ;;  %v1016_v58 = vpop.f32.mrf.mxu1  ;;  %v9811_v7 = vld [vmem:[%s13291_s1 + $0x268] sm:$0xff]  }
 0x119   : > { %v11302_v42 = vadd.f32 %v1016_v58, %v832_v29  ;;  %v3013_v29 = vrot.slane %v3011_v11, 3  ;;  %v11358_v58 = vpack.c.bf16 %v11334_v47, %v11331_v23  ;;  %v2666_v11 = vrot.slane %v11311_v16, 3 }
 0x11a   : > { %v834_v18 = vpop.f32.mrf.mxu0  ;;  %3433 = vmatpush1.bf16.msra.mxu0 %v9808_v24  ;;  %v1018_v0 = vpop.f32.mrf.mxu1  ;;  %v11349_v24 = vld [vmem:[%s10111_s14 + $0x158] sm:$0xff] }
 0x11b   : > { %3434 = vmatprep.subr.bf16.mxu0 %v9990_v1  ;;  %v3043_v18 = vrot.slane %v3041_v56, 4  ;;  %v3029_v31 = vshrl.u32 %v11358_v58, 16  ;;  %v3032_v51 = vshll.u32 %v11358_v58, 16  ;;  %v9812_v56 = vld [vmem:[%s13291_s1 + $0x260] sm:$0xff]   ;;  %v2667_v49 = vsel %vm2641_vm7, %v2662_v15, %v2666_v11 }
 0x11c   : > { %v837_v63 = vpop.f32.mrf.mxu0  ;;  %2821 = vmatmul.mubr.bf16.gmra.mxu0 %v2653_v8  ;;  %v1021_v61 = vpop.f32.mrf.mxu1  ;;  %3227 = vmatmul.mubr.bf16.gmra.mxu1 %v2982_v62  ;;  %v2664_v37 = vrot.slane %v11358_v58, 3  ;;  %v9814_v58 = vld [vmem:[%s13291_s1 + $0x2a0] sm:$0xff]  }
 0x11d   : > { %8744 = vmatprep.mubr.msk.bf16.mxu0 %vm731_vm0, %v2659_v9  ;;  %v11326_v27 = vadd.f32 %v1021_v61, %v837_v63  ;;  %8782 = vmatprep.mubr.msk.bf16.mxu1 %vm731_vm0, %v3009_v59  ;;  %v11369_v9 = vpack.c.bf16 %v11349_v24, %v11346_v35  ;;  %v2660_v59 = vrot.slane %v11300_v46, 3  ;;  %v3017_v61 = vor.u32 %v3016_v6, %v3013_v29 }
 0x11e   : > { %v839_v38 = vpop.f32.mrf.mxu0  ;;  %3435 = vmatpush1.bf16.msra.mxu0 %v9809_v33  ;;  %v1023_v45 = vpop.f32.mrf.mxu1  ;;  %v3031_v6 = vrot.slane %v3029_v31, 3 }
 0x11f   : > { %3436 = vmatprep.subr.bf16.mxu0 %v9990_v1  ;;  %v11380_v38 = vor.u32 %v3043_v18, %v3040_v21  ;;  %v3056_v45 = vshrl.u32 %v11369_v9, 16  ;;  %v3034_v21 = vrot.slane %v3032_v51, 4  ;;  %v11408_v18 = vpack.c.bf16 %v11386_v19, %v11383_v36 }
 0x120   : > { %v840_v4 = vpop.f32.mrf.mxu0  ;;  %v1024_v2 = vpop.f32.mrf.mxu1 }
 0x121   : > { %v11360_v8 = vadd.f32 %v1024_v2, %v840_v4  ;;  %v3059_v4 = vshll.u32 %v11369_v9, 16  ;;  %v3035_v15 = vor.u32 %v3034_v21, %v3031_v6  ;;  %v2668_v16 = vrot.slane %v11408_v18, 3 }
 0x122   : > { %v842_v25 = vpop.f32.mrf.mxu0  ;;  %3437 = vmatpush1.bf16.msra.mxu0 %v9810_v39  ;;  %v1026_v62 = vpop.f32.mrf.mxu1 }
 0x123   : > { %3438 = vmatprep.subr.bf16.mxu0 %v9990_v1  ;;  %v2661_v25 = vsel %vm2641_vm7, %v2656_v28, %v2660_v59  ;;  %v3045_v28 = vsel %vm2921_vm8, %v3026_v5, %v11380_v38  ;;  %v3061_v31 = vrot.slane %v3059_v4, 4  ;;  %v3047_v5 = vshrl.u32 %v11408_v18, 16 }
 0x124   : > { %v845_v33 = vpop.f32.mrf.mxu0  ;;  %2829 = vmatmul.mubr.bf16.gmra.mxu0 %v2657_v52  ;;  %v1029_v0 = vpop.f32.mrf.mxu1  ;;  %3235 = vmatmul.mubr.bf16.gmra.mxu1 %v3000_v3  ;;  %v9813_v52 = vld [vmem:[%s13291_s1 + $0x2a8] ss:$0 sps:$4 sm:$0x77]  }
 0x125   : > { %8745 = vmatprep.mubr.msk.bf16.mxu0 %vm731_vm0, %v2663_v40  ;;  %v11376_v14 = vadd.f32 %v1029_v0, %v845_v33  ;;  %8783 = vmatprep.mubr.msk.bf16.mxu1 %vm731_vm0, %v3027_v57  ;;  %v11398_v3 = vld [vmem:[%s10111_s14 + $0x168] sm:$0xff]  ;;  %v2896_v40 = vld [vmem:[%s10111_s14 + $0x178] sm:$0xf]  ;;  %v3018_v57 = vsel %vm2921_vm8, %v11322_v55, %v3017_v61  ;;  %v3058_v0 = vrot.slane %v3056_v45, 3  ;;  %v3424_v55 = vsel %vm759_vm1, %v9813_v52, 0 }
 0x126   : > { %v847_v63 = vpop.f32.mrf.mxu0  ;;  %3439 = vmatpush1.bf16.msra.mxu0 %v9811_v7  ;;  %v1031_v39 = vpop.f32.mrf.mxu1  ;;  %v2900_v51 = vpack.c.bf16 %v2896_v40, %v11398_v3  ;;  %v2670_v52 = vrot.slane %v11369_v9, 3  ;;  %v2665_v9 = vsel %vm2641_vm7, %v2660_v59, %v2664_v37 }
 0x127   : > { %3440 = vmatprep.subr.bf16.mxu0 %v9990_v1 }
 0x128   : > { %v848_v2 = vpop.f32.mrf.mxu0  ;;  %v1032_v29 = vpop.f32.mrf.mxu1  ;;  %v3074_v6 = vshrl.u32 %v2900_v51, 16  ;;  %v3077_v21 = vshll.u32 %v2900_v51, 16 }
 0x129   : > { %v11410_v7 = vadd.f32 %v1032_v29, %v848_v2  ;;  %v11433_v2 = vld [vmem:[%s10111_s14 + $0x160] sm:$0xff]  ;;  %v3062_v29 = vor.u32 %v3061_v31, %v3058_v0  ;;  %v2671_v0 = vsel %vm2641_vm7, %v2666_v11, %v2670_v52 }
 0x12a   : > { %v850_v62 = vpop.f32.mrf.mxu0  ;;  %3441 = vmatpush1.bf16.msra.mxu0 %v9812_v56  ;;  %v1034_v33 = vpop.f32.mrf.mxu1  ;;  %v3050_v56 = vshll.u32 %v11408_v18, 16  ;;  %v3076_v59 = vrot.slane %v3074_v6, 3 }
 0x12b   : > { %3454 = vmatprep.subr.bf16.mxu0 %v9990_v1  ;;  %v2895_v62 = vld [vmem:[%s10111_s14 + $0x170] sm:$0xf]  ;;  %v3049_v33 = vrot.slane %v3047_v5, 3  ;;  %v3063_v46 = vsel %vm2921_vm8, %v11380_v38, %v3062_v29 }
 0x12c   : > { %v853_v63 = vpop.f32.mrf.mxu0  ;;  %2837 = vmatmul.mubr.bf16.gmra.mxu0 %v2661_v25  ;;  %v1037_v39 = vpop.f32.mrf.mxu1  ;;  %3243 = vmatmul.mubr.bf16.gmra.mxu1 %v3018_v57  ;;  %v2584_v25 = vld [vmem:[%s10111_s14 + $0x178] sm:$0x7]  ;;  %v2899_v51 = vpack.c.bf16 %v2895_v62, %v11433_v2  ;;  %v2583_v38 = vld [vmem:[%s10111_s14 + $0x170] sm:$0x7] }
 0x12d   : > { %8746 = vmatprep.mubr.msk.bf16.mxu0 %vm731_vm0, %v2667_v49  ;;  %v11428_v45 = vadd.f32 %v1037_v39, %v853_v63  ;;  %8784 = vmatprep.mubr.msk.bf16.mxu1 %vm731_vm0, %v3045_v28  ;;  %v3036_v28 = vsel %vm2921_vm8, %v3017_v61, %v3035_v15  ;;  %v2602_v31 = vpack.c.bf16 %v2584_v25, %v11398_v3  ;;  %v3079_v61 = vrot.slane %v3077_v21, 4 }
 0x12e   : > { %v855_v4 = vpop.f32.mrf.mxu0  ;;  %3455 = vmatpush2.bf16.msra.mxu0 %v3424_v55  ;;  %v1039_v40 = vpop.f32.mrf.mxu1  ;;  %v3052_v55 = vrot.slane %v3050_v56, 4  ;;  %v3065_v6 = vshrl.u32 %v2899_v51, 16  ;;  %v3068_v21 = vshll.u32 %v2899_v51, 16 }
 0x12f   : > { %3456 = vmatprep.subr.bf16.mxu0 %v9990_v1  ;;  %v2674_v25 = vrot.slane %v2602_v31, 3 }
 0x130   : > { %v856_v57 = vpop.f32.mrf.mxu0  ;;  %v1040_v49 = vpop.f32.mrf.mxu1  ;;  %v3053_v11 = vor.u32 %v3052_v55, %v3049_v33  ;;  %v3067_v55 = vrot.slane %v3065_v6, 3 }
 0x131   : > { %v11445_v63 = vadd.f32 %v1040_v49, %v856_v57  ;;  %v3080_v57 = vor.u32 %v3079_v61, %v3076_v59  ;;  %v2675_v33 = vsel %vm2641_vm7, %v2670_v52, %v2674_v25 }
 0x132   : > { %v858_v39 = vpop.f32.mrf.mxu0  ;;  %3457 = vmatpush2.bf16.msra.mxu0 %v9814_v58  ;;  %v1042_v4 = vpop.f32.mrf.mxu1  ;;  %v3054_v18 = vsel %vm2921_vm8, %v3035_v15, %v3053_v11 }
 0x133   : > { %3674 = vmatprep.subr.bf16.mxu0 %v9990_v1  ;;  %v2601_v39 = vpack.c.bf16 %v2583_v38, %v11433_v2  ;;  %v3070_v4 = vrot.slane %v3068_v21, 4  ;;  %v3081_v31 = vsel %vm2921_vm8, %v3062_v29, %v3080_v57 }
 0x134   : > { %v861_v5 = vpop.f32.mrf.mxu0  ;;  %2845 = vmatmul.mubr.bf16.gmra.mxu0 %v2665_v9  ;;  %v1045_v56 = vpop.f32.mrf.mxu1  ;;  %3251 = vmatmul.mubr.bf16.gmra.mxu1 %v3036_v28  ;;  %v2669_v28 = vsel %vm2641_vm7, %v2664_v37, %v2668_v16 }
 0x135   : > { %8747 = vmatprep.mubr.msk.bf16.mxu0 %vm731_vm0, %v2671_v0  ;;  %v11457_v40 = vadd.f32 %v1045_v56, %v861_v5  ;;  %8785 = vmatprep.mubr.msk.bf16.mxu1 %vm731_vm0, %v3063_v46  ;;  %v2672_v37 = vrot.slane %v2601_v39, 3  ;;  %v3071_v15 = vor.u32 %v3070_v4, %v3067_v55  ;;  %v9968_v55 = vld [vmem:[%s10111_s14 + $0x78] sm:$0xff]  ;;  %v9969_v4 = vld [vmem:[%s10111_s14 + $0x88] sm:$0xff] }
 0x136   : > { %v863_v58 = vpop.f32.mrf.mxu0  ;;  %v1047_v62 = vpop.f32.mrf.mxu1 }
 0x137   : > { %v2673_v6 = vsel %vm2641_vm7, %v2668_v16, %v2672_v37 }
 0x138   : > { %v864_v49 = vpop.f32.mrf.mxu0  ;;  %v1048_v9 = vpop.f32.mrf.mxu1 }
 0x13a   : > { %v865_v0 = vpop.f32.mrf.mxu0  ;;  %v1049_v46 = vpop.f32.mrf.mxu1 }
 0x13b   : > { %v3302_v46 = vpack.c.bf16 %v9969_v4, %v9968_v55  ;;  %v9974_v4 = vld [vmem:[%s10111_s14 + $0xb8] sm:$0xff] }
 0x13c   : > { %v1262_v5 = vpop.f32.mrf.mxu0  ;;  %2853 = vmatmul.mubr.bf16.gmra.mxu0 %v2669_v28  ;;  %v1712_v59 = vpop.f32.mrf.mxu1  ;;  %3259 = vmatmul.mubr.bf16.gmra.mxu1 %v3054_v18 }
 0x13d   : > { %v1332_v51 = vadd.f32 %v1262_v5, %v11145_v32  ;;  %8748 = vmatprep.mubr.msk.bf16.mxu0 %vm731_vm0, %v2675_v33  ;;  %8786 = vmatprep.mubr.msk.bf16.mxu1 %vm731_vm0, %v3081_v31  ;;  %v3072_v32 = vsel %vm2921_vm8, %v3053_v11, %v3071_v15 }
 0x13e   : > { %v1264_v61 = vpop.f32.mrf.mxu0  ;;  %v1714_v52 = vpop.f32.mrf.mxu1 }
 0x13f   : > { %v11469_v56 = vadd.f32 %v1712_v59, %v1332_v51 }
 0x140   : > { %v1265_v58 = vpop.f32.mrf.mxu0  ;;  %v1715_v29 = vpop.f32.mrf.mxu1 }
 0x141   : > { %v1333_v38 = vadd.f32 %v1265_v58, %v11152_v17 }
 0x142   : > { %v1267_v21 = vpop.f32.mrf.mxu0  ;;  %v1717_v49 = vpop.f32.mrf.mxu1 }
 0x143   : > { %v11474_v62 = vadd.f32 %v1715_v29, %v1333_v38  ;;  %v9970_v29 = vld [vmem:[%s10111_s14 + $0x98] sm:$0xff] }
 0x144   : > { %v1270_v9 = vpop.f32.mrf.mxu0  ;;  %2861 = vmatmul.mubr.bf16.gmra.mxu0 %v2673_v6  ;;  %v1720_v39 = vpop.f32.mrf.mxu1  ;;  %3267 = vmatmul.mubr.bf16.gmra.mxu1 %v3072_v32  ;;  %v9971_v6 = vld [vmem:[%s10111_s14 + $0xa8] sm:$0xff] }
 0x145   : > { %v1334_v28 = vadd.f32 %v1270_v9, %v11163_v30  ;;  %8749 = vmatprep.mubr.msk.bf16.mxu0 %vm731_vm0, %v2674_v25  ;;  %8787 = vmatprep.mubr.msk.bf16.mxu1 %vm731_vm0, %v3080_v57  ;;  %v3304_v21 = vpack.c.bf16 %v9971_v6, %v9970_v29 }
 0x146   : > { %v1272_v17 = vpop.f32.mrf.mxu0  ;;  %v1722_v0 = vpop.f32.mrf.mxu1 }
 0x147   : > { %v11479_v16 = vadd.f32 %v1720_v39, %v1334_v28  ;;  %v9972_v0 = vld [vmem:[%s10111_s14 + $0x90] sm:$0xff] }
 0x148   : > { %v1273_v11 = vpop.f32.mrf.mxu0  ;;  %v1723_v33 = vpop.f32.mrf.mxu1 }
 0x149   : > { %v1335_v18 = vadd.f32 %v1273_v11, %v11170_v12  ;;  %v9973_v11 = vld [vmem:[%s10111_s14 + $0xa0] sm:$0xff] }
 0x14a   : > { %v1275_v31 = vpop.f32.mrf.mxu0  ;;  %v1725_v5 = vpop.f32.mrf.mxu1 }
 0x14b   : > { %v11484_v30 = vadd.f32 %v1723_v33, %v1335_v18  ;;  %v3303_v18 = vpack.c.bf16 %v9973_v11, %v9972_v0 }
 0x14c   : > { %v1278_v25 = vpop.f32.mrf.mxu0  ;;  %2869 = vmatmul.mubr.bf16.gmra.mxu0 %v2672_v37  ;;  %v1728_v51 = vpop.f32.mrf.mxu1  ;;  %3275 = vmatmul.mubr.bf16.gmra.mxu1 %v3071_v15 }
 0x14d   : > { %v1336_v57 = vadd.f32 %v1278_v25, %v11186_v50  ;;  %8817 = vmatprep.mubr.msk.bf16.mxu0 %vm731_vm0, %v3302_v46 }
 0x14e   : > { %v1280_v59 = vpop.f32.mrf.mxu0  ;;  %v1730_v61 = vpop.f32.mrf.mxu1 }
 0x14f   : > { %v11488_v12 = vadd.f32 %v1728_v51, %v1336_v57 }
 0x150   : > { %v1281_v52 = vpop.f32.mrf.mxu0  ;;  %v1731_v38 = vpop.f32.mrf.mxu1 }
 0x151   : > { %v1337_v58 = vadd.f32 %v1281_v52, %v11194_v53 }
 0x152   : > { %v1283_v37 = vpop.f32.mrf.mxu0  ;;  %v1733_v50 = vpop.f32.mrf.mxu1 }
 0x153   : > { %v11493_v32 = vadd.f32 %v1731_v38, %v1337_v58  ;;  %v9976_v58 = vld [vmem:[%s10111_s14 + $0xb0] sm:$0xff]  ;;  %v9977_v38 = vld [vmem:[%s10111_s14 + $0xc0] sm:$0xff]  ;;  %v9978_v37 = vld [vmem:[%s10111_s14 + $0xd8] sm:$0xff] }
 0x154   : > { %v1286_v15 = vpop.f32.mrf.mxu0  ;;  %3459 = vmatmul.mubr.bf16.vlgmr.msra.gmra.mxu0 %v10904_v10  ;;  %v1736_v9 = vpop.f32.mrf.mxu1  ;;  %v9975_v10 = vld [vmem:[%s10111_s14 + $0xc8] sm:$0xff]  ;;  %v3305_v29 = vpack.c.bf16 %v9977_v38, %v9976_v58  ;;  %v3309_v38 = vpack.c.bf16 %v11276_v44, %v11246_v13 }
 0x155   : > { %v1338_v49 = vadd.f32 %v1286_v15, %v11216_v34  ;;  %8818 = vmatprep.mubr.msk.bf16.mxu0 %vm731_vm0, %v3304_v21  ;;  %v3306_v46 = vpack.c.bf16 %v9975_v10, %v9974_v4  ;;  %v9979_v50 = vld [vmem:[%s10111_s14 + $0xe8] sm:$0xff] }
 0x156   : > { %v1288_v53 = vpop.f32.mrf.mxu0  ;;  %v1738_v39 = vpop.f32.mrf.mxu1  ;;  %v3308_v15 = vpack.c.bf16 %v9979_v50, %v9978_v37 }
 0x157   : > { %v11498_v28 = vadd.f32 %v1736_v9, %v1338_v49 }
 0x158   : > { %v1289_v17 = vpop.f32.mrf.mxu0  ;;  %v1739_v55 = vpop.f32.mrf.mxu1 }
 0x159   : > { %v1339_v33 = vadd.f32 %v1289_v17, %v11252_v54 }
 0x15a   : > { %v1291_v34 = vpop.f32.mrf.mxu0  ;;  %v1741_v5 = vpop.f32.mrf.mxu1 }
 0x15b   : > { %v11505_v31 = vadd.f32 %v1739_v55, %v1339_v33  ;;  %v9980_v33 = vld [vmem:[%s10111_s14 + $0xd0] sm:$0xff]  ;;  %v9981_v55 = vld [vmem:[%s10111_s14 + $0xe0] sm:$0xff]  ;;  %v3310_v34 = vpack.c.bf16 %v11232_v22, %v11205_v26 }
 0x15c   : > { %v1294_v25 = vpop.f32.mrf.mxu0  ;;  %3467 = vmatmul.mubr.bf16.gmra.mxu0 %v3303_v18  ;;  %v1744_v51 = vpop.f32.mrf.mxu1  ;;  %v3307_v4 = vpack.c.bf16 %v9981_v55, %v9980_v33  ;;  %v3316_v55 = vpack.c.bf16 %v11398_v3, %v11349_v24 }
 0x15d   : > { %v1340_v57 = vadd.f32 %v1294_v25, %v11271_v48  ;;  %8819 = vmatprep.mubr.msk.bf16.mxu0 %vm731_vm0, %v3306_v46 }
 0x15e   : > { %v1296_v54 = vpop.f32.mrf.mxu0  ;;  %v1746_v61 = vpop.f32.mrf.mxu1 }
 0x15f   : > { %v11509_v59 = vadd.f32 %v1744_v51, %v1340_v57 }
 0x160   : > { %v1297_v52 = vpop.f32.mrf.mxu0  ;;  %v1747_v21 = vpop.f32.mrf.mxu1 }
 0x161   : > { %v1341_v6 = vadd.f32 %v1297_v52, %v11302_v42 }
 0x162   : > { %v1299_v48 = vpop.f32.mrf.mxu0  ;;  %v1749_v9 = vpop.f32.mrf.mxu1 }
 0x163   : > { %v11516_v49 = vadd.f32 %v1747_v21, %v1341_v6 }
 0x164   : > { %v1302_v53 = vpop.f32.mrf.mxu0  ;;  %3475 = vmatmul.mubr.bf16.gmra.mxu0 %v3305_v29  ;;  %v1752_v17 = vpop.f32.mrf.mxu1  ;;  %v3312_v29 = vpack.c.bf16 %v11289_v60, %v11235_v20 }
 0x165   : > { %v1342_v39 = vadd.f32 %v1302_v53, %v11326_v27  ;;  %8820 = vmatprep.mubr.msk.bf16.mxu0 %vm731_vm0, %v3308_v15  ;;  %v3314_v53 = vpack.c.bf16 %v11346_v35, %v11292_v43  ;;  %v3313_v43 = vpack.c.bf16 %v11383_v36, %v11334_v47  ;;  %v3315_v36 = vpack.c.bf16 %v11433_v2, %v11386_v19 }
 0x166   : > { %v1304_v0 = vpop.f32.mrf.mxu0  ;;  %v1754_v42 = vpop.f32.mrf.mxu1 }
 0x167   : > { %v11520_v11 = vadd.f32 %v1752_v17, %v1342_v39 }
 0x168   : > { %v1305_v18 = vpop.f32.mrf.mxu0  ;;  %v1755_v46 = vpop.f32.mrf.mxu1 }
 0x169   : > { %v1343_v10 = vadd.f32 %v1305_v18, %v11360_v8 }
 0x16a   : > { %v1307_v5 = vpop.f32.mrf.mxu0  ;;  %v1757_v27 = vpop.f32.mrf.mxu1 }
 0x16b   : > { %v11527_v25 = vadd.f32 %v1755_v46, %v1343_v10  ;;  %v3300_v27 = vld [vmem:[%s10111_s14 + $0x178] sm:$0x1f] }
 0x16c   : > { %v1310_v57 = vpop.f32.mrf.mxu0  ;;  %3483 = vmatmul.mubr.bf16.gmra.mxu0 %v3307_v4  ;;  %v1760_v54 = vpop.f32.mrf.mxu1 }
 0x16d   : > { %v1344_v51 = vadd.f32 %v1310_v57, %v11376_v14  ;;  %8821 = vmatprep.mubr.msk.bf16.mxu0 %vm731_vm0, %v3310_v34 }
 0x16e   : > { %v1312_v61 = vpop.f32.mrf.mxu0  ;;  %v1762_v58 = vpop.f32.mrf.mxu1 }
 0x16f   : > { %v11531_v52 = vadd.f32 %v1760_v54, %v1344_v51  ;;  %v3318_v54 = vpack.c.bf16 %v3300_v27, %v3300_v27 }
 0x170   : > { %v1313_v8 = vpop.f32.mrf.mxu0  ;;  %v1763_v22 = vpop.f32.mrf.mxu1 }
 0x171   : > { %v1345_v26 = vadd.f32 %v1313_v8, %v11410_v7  ;;  %v3311_v7 = vpack.c.bf16 %v11331_v23, %v11279_v41 }
 0x172   : > { %v1315_v6 = vpop.f32.mrf.mxu0  ;;  %v1765_v14 = vpop.f32.mrf.mxu1 }
 0x173   : > { %v11538_v21 = vadd.f32 %v1763_v22, %v1345_v26  ;;  %v3299_v22 = vld [vmem:[%s10111_s14 + $0x170] sm:$0x1f] }
 0x174   : > { %v1318_v37 = vpop.f32.mrf.mxu0  ;;  %3491 = vmatmul.mubr.bf16.gmra.mxu0 %v3309_v38  ;;  %v1768_v15 = vpop.f32.mrf.mxu1 }
 0x175   : > { %v1346_v50 = vadd.f32 %v1318_v37, %v11428_v45  ;;  %8822 = vmatprep.mubr.msk.bf16.mxu0 %vm731_vm0, %v3312_v29 }
 0x176   : > { %v1320_v48 = vpop.f32.mrf.mxu0  ;;  %v1770_v13 = vpop.f32.mrf.mxu1 }
 0x177   : > { %v11542_v9 = vadd.f32 %v1768_v15, %v1346_v50 }
 0x178   : > { %v1321_v44 = vpop.f32.mrf.mxu0  ;;  %v1771_v60 = vpop.f32.mrf.mxu1 }
 0x179   : > { %v1347_v20 = vadd.f32 %v1321_v44, %v11445_v63 }
 0x17a   : > { %v1323_v39 = vpop.f32.mrf.mxu0  ;;  %v1773_v45 = vpop.f32.mrf.mxu1 }
 0x17b   : > { %v11549_v17 = vadd.f32 %v1771_v60, %v1347_v20 }
 0x17c   : > { %v1326_v0 = vpop.f32.mrf.mxu0  ;;  %3499 = vmatmul.mubr.bf16.gmra.mxu0 %v3311_v7  ;;  %v1776_v18 = vpop.f32.mrf.mxu1 }
 0x17d   : > { %v1348_v42 = vadd.f32 %v1326_v0, %v11457_v40  ;;  %8823 = vmatprep.mubr.msk.bf16.mxu0 %vm731_vm0, %v3314_v53 }
 0x17e   : > { %v1328_v33 = vpop.f32.mrf.mxu0  ;;  %v1778_v23 = vpop.f32.mrf.mxu1 }
 0x17f   : > { %v11553_v41 = vadd.f32 %v1776_v18, %v1348_v42 }
 0x180   : > { %v1329_v63 = vpop.f32.mrf.mxu0  ;;  %v1779_v35 = vpop.f32.mrf.mxu1 }
 0x182   : > { %v1330_v4 = vpop.f32.mrf.mxu0  ;;  %v1780_v10 = vpop.f32.mrf.mxu1 }
 0x184   : > { %v2056_v46 = vpop.f32.mrf.mxu0  ;;  %3507 = vmatmul.mubr.bf16.gmra.mxu0 %v3313_v43  ;;  %v2462_v34 = vpop.f32.mrf.mxu1 }
 0x185   : > { %v2126_v40 = vadd.f32 %v2056_v46, %v11469_v56  ;;  %8824 = vmatprep.mubr.msk.bf16.mxu0 %vm731_vm0, %v3316_v55 }
 0x186   : > { %v2058_v5 = vpop.f32.mrf.mxu0  ;;  %v2464_v51 = vpop.f32.mrf.mxu1 }
 0x187   : > { %v11562_v57 = vadd.f32 %v2462_v34, %v2126_v40 }
 0x188   : > { %v2059_v47 = vpop.f32.mrf.mxu0  ;;  %v2465_v3 = vpop.f32.mrf.mxu1 }
 0x189   : > { %v2127_v24 = vadd.f32 %v2059_v47, %v11474_v62  ;;  %v3317_v62 = vpack.c.bf16 %v3299_v22, %v3299_v22 }
 0x18a   : > { %v2061_v61 = vpop.f32.mrf.mxu0  ;;  %v2467_v56 = vpop.f32.mrf.mxu1 }
 0x18b   : > { %v11567_v58 = vadd.f32 %v2465_v3, %v2127_v24 }
 0x18c   : > { %v2064_v8 = vpop.f32.mrf.mxu0  ;;  %3515 = vmatmul.mubr.bf16.gmra.mxu0 %v3315_v36  ;;  %v2470_v26 = vpop.f32.mrf.mxu1 }
 0x18d   : > { %v2128_v38 = vadd.f32 %v2064_v8, %v11479_v16  ;;  %8825 = vmatprep.mubr.msk.bf16.mxu0 %vm731_vm0, %v3318_v54 }
 0x18e   : > { %v2066_v29 = vpop.f32.mrf.mxu0  ;;  %v2472_v19 = vpop.f32.mrf.mxu1 }
 0x18f   : > { %v11572_v6 = vadd.f32 %v2470_v26, %v2128_v38 }
 0x190   : > { %v2067_v2 = vpop.f32.mrf.mxu0  ;;  %v2473_v37 = vpop.f32.mrf.mxu1 }
 0x191   : > { %v2129_v14 = vadd.f32 %v2067_v2, %v11484_v30 }
 0x192   : > { %v2069_v50 = vpop.f32.mrf.mxu0  ;;  %v2475_v48 = vpop.f32.mrf.mxu1 }
 0x193   : > { %v11575_v15 = vadd.f32 %v2473_v37, %v2129_v14 }
 0x194   : > { %v2072_v13 = vpop.f32.mrf.mxu0  ;;  %3523 = vmatmul.mubr.bf16.gmra.mxu0 %v3317_v62  ;;  %v2478_v44 = vpop.f32.mrf.mxu1 }
 0x195   : > { %v2130_v16 = vadd.f32 %v2072_v13, %v11488_v12 }
 0x196   : > { %v2074_v7 = vpop.f32.mrf.mxu0  ;;  %v2480_v60 = vpop.f32.mrf.mxu1 }
 0x197   : > { %v11578_v20 = vadd.f32 %v2478_v44, %v2130_v16 }
 0x198   : > { %v2075_v53 = vpop.f32.mrf.mxu0  ;;  %v2481_v45 = vpop.f32.mrf.mxu1 }
 0x199   : > { %v2131_v39 = vadd.f32 %v2075_v53, %v11493_v32 }
 0x19a   : > { %v2077_v0 = vpop.f32.mrf.mxu0  ;;  %v2483_v42 = vpop.f32.mrf.mxu1 }
 0x19b   : > { %v11581_v30 = vadd.f32 %v2481_v45, %v2131_v39 }
 0x19c   : > { %v2080_v18 = vpop.f32.mrf.mxu0  ;;  %v2486_v23 = vpop.f32.mrf.mxu1 }
 0x19d   : > { %v2132_v33 = vadd.f32 %v2080_v18, %v11498_v28 }
 0x19e   : > { %v2082_v63 = vpop.f32.mrf.mxu0  ;;  %v2488_v12 = vpop.f32.mrf.mxu1 }
 0x19f   : > { %v11584_v43 = vadd.f32 %v2486_v23, %v2132_v33 }
 0x1a0   : > { %v2083_v35 = vpop.f32.mrf.mxu0  ;;  %v2489_v4 = vpop.f32.mrf.mxu1 }
 0x1a1   : > { %v2133_v55 = vadd.f32 %v2083_v35, %v11505_v31 }
 0x1a2   : > { %v2085_v10 = vpop.f32.mrf.mxu0  ;;  %v2491_v32 = vpop.f32.mrf.mxu1 }
 0x1a3   : > { %v11587_v46 = vadd.f32 %v2489_v4, %v2133_v55 }
 0x1a4   : > { %v2088_v40 = vpop.f32.mrf.mxu0  ;;  %v2494_v5 = vpop.f32.mrf.mxu1 }
 0x1a5   : > { %v2134_v34 = vadd.f32 %v2088_v40, %v11509_v59 }
 0x1a6   : > { %v2090_v27 = vpop.f32.mrf.mxu0  ;;  %v2496_v28 = vpop.f32.mrf.mxu1 }
 0x1a7   : > { %v11590_v51 = vadd.f32 %v2494_v5, %v2134_v34 }
 0x1a8   : > { %v2091_v47 = vpop.f32.mrf.mxu0  ;;  %v2497_v24 = vpop.f32.mrf.mxu1 }
 0x1a9   : > { %v2135_v36 = vadd.f32 %v2091_v47, %v11516_v49 }
 0x1aa   : > { %v2093_v3 = vpop.f32.mrf.mxu0  ;;  %v2499_v31 = vpop.f32.mrf.mxu1 }
 0x1ab   : > { %v11593_v54 = vadd.f32 %v2497_v24, %v2135_v36 }
 0x1ac   : > { %v2096_v61 = vpop.f32.mrf.mxu0  ;;  %v2502_v8 = vpop.f32.mrf.mxu1 }
 0x1ad   : > { %v2136_v56 = vadd.f32 %v2096_v61, %v11520_v11 }
 0x1ae   : > { %v2098_v38 = vpop.f32.mrf.mxu0  ;;  %v2504_v59 = vpop.f32.mrf.mxu1 }
 0x1af   : > { %v11596_v26 = vadd.f32 %v2502_v8, %v2136_v56 }
 0x1b0   : > { %v2099_v22 = vpop.f32.mrf.mxu0  ;;  %v2505_v19 = vpop.f32.mrf.mxu1 }
 0x1b1   : > { %v2137_v29 = vadd.f32 %v2099_v22, %v11527_v25 }
 0x1b2   : > { %v2101_v2 = vpop.f32.mrf.mxu0  ;;  %v2507_v49 = vpop.f32.mrf.mxu1 }
 0x1b3   : > { %v11599_v62 = vadd.f32 %v2505_v19, %v2137_v29 }
 0x1b4   : > { %v2104_v14 = vpop.f32.mrf.mxu0  ;;  %v2510_v50 = vpop.f32.mrf.mxu1 }
 0x1b5   : > { %v2138_v37 = vadd.f32 %v2104_v14, %v11531_v52 }
 0x1b6   : > { %v2106_v48 = vpop.f32.mrf.mxu0  ;;  %v2512_v11 = vpop.f32.mrf.mxu1 }
 0x1b7   : > { %v11602_v13 = vadd.f32 %v2510_v50, %v2138_v37 }
 0x1b8   : > { %v2107_v16 = vpop.f32.mrf.mxu0  ;;  %v2513_v7 = vpop.f32.mrf.mxu1 }
 0x1b9   : > { %v2139_v44 = vadd.f32 %v2107_v16, %v11538_v21 }
 0x1ba   : > { %v2109_v60 = vpop.f32.mrf.mxu0  ;;  %v2515_v25 = vpop.f32.mrf.mxu1 }
 0x1bb   : > { %v11605_v53 = vadd.f32 %v2513_v7, %v2139_v44 }
 0x1bc   : > { %v2112_v39 = vpop.f32.mrf.mxu0  ;;  %v2518_v0 = vpop.f32.mrf.mxu1 }
 0x1bd   : > { %v2140_v45 = vadd.f32 %v2112_v39, %v11542_v9 }
 0x1be   : > { %v2114_v42 = vpop.f32.mrf.mxu0  ;;  %v2520_v52 = vpop.f32.mrf.mxu1 }
 0x1bf   : > { %v11608_v18 = vadd.f32 %v2518_v0, %v2140_v45 }
 0x1c0   : > { %v2115_v33 = vpop.f32.mrf.mxu0  ;;  %v2521_v63 = vpop.f32.mrf.mxu1 }
 0x1c1   : > { %v2141_v23 = vadd.f32 %v2115_v33, %v11549_v17 }
 0x1c2   : > { %v2117_v12 = vpop.f32.mrf.mxu0  ;;  %v2523_v21 = vpop.f32.mrf.mxu1 }
 0x1c3   : > { %v11611_v35 = vadd.f32 %v2521_v63, %v2141_v23 }
 0x1c4   : > { %v2120_v55 = vpop.f32.mrf.mxu0  ;;  %v2526_v10 = vpop.f32.mrf.mxu1 }
 0x1c5   : > { %v2142_v4 = vadd.f32 %v2120_v55, %v11553_v41 }
 0x1c6   : > { %v2122_v32 = vpop.f32.mrf.mxu0  ;;  %v2528_v9 = vpop.f32.mrf.mxu1 }
 0x1c7   : > { %v11614_v40 = vadd.f32 %v2526_v10, %v2142_v4 }
 0x1c8   : > { %v2123_v34 = vpop.f32.mrf.mxu0  ;;  %v2529_v5 = vpop.f32.mrf.mxu1 }
 0x1ca   : > { %v2124_v27 = vpop.f32.mrf.mxu0  ;;  %v2530_v28 = vpop.f32.mrf.mxu1 }
 0x1cc   : > { %v2806_v47 = vpop.f32.mrf.mxu0  ;;  %v3212_v36 = vpop.f32.mrf.mxu1 }
 0x1cd   : > { %v2876_v17 = vadd.f32 %v2806_v47, %v11562_v57 }
 0x1ce   : > { %v2808_v24 = vpop.f32.mrf.mxu0  ;;  %v3214_v31 = vpop.f32.mrf.mxu1 }
 0x1cf   : > { %v11617_v3 = vadd.f32 %v3212_v36, %v2876_v17 }
 0x1d0   : > { %v2809_v61 = vpop.f32.mrf.mxu0  ;;  %v3215_v56 = vpop.f32.mrf.mxu1 }
 0x1d1   : > { %v2877_v41 = vadd.f32 %v2809_v61, %v11567_v58 }
 0x1d2   : > { %v2811_v8 = vpop.f32.mrf.mxu0  ;;  %v3217_v59 = vpop.f32.mrf.mxu1 }
 0x1d3   : > { %v11620_v38 = vadd.f32 %v3215_v56, %v2877_v41 }
 0x1d4   : > { %v2814_v22 = vpop.f32.mrf.mxu0  ;;  %v3220_v19 = vpop.f32.mrf.mxu1 }
 0x1d5   : > { %v2878_v29 = vadd.f32 %v2814_v22, %v11572_v6 }
 0x1d6   : > { %v2816_v2 = vpop.f32.mrf.mxu0  ;;  %v3222_v57 = vpop.f32.mrf.mxu1 }
 0x1d7   : > { %v11623_v49 = vadd.f32 %v3220_v19, %v2878_v29 }
 0x1d8   : > { %v2817_v14 = vpop.f32.mrf.mxu0  ;;  %v3223_v50 = vpop.f32.mrf.mxu1 }
 0x1d9   : > { %v2879_v37 = vadd.f32 %v2817_v14, %v11575_v15 }
 0x1da   : > { %v2819_v48 = vpop.f32.mrf.mxu0  ;;  %v3225_v58 = vpop.f32.mrf.mxu1 }
 0x1db   : > { %v11626_v11 = vadd.f32 %v3223_v50, %v2879_v37 }
 0x1dc   : > { %v2822_v16 = vpop.f32.mrf.mxu0  ;;  %v3228_v7 = vpop.f32.mrf.mxu1 }
 0x1dd   : > { %v2880_v44 = vadd.f32 %v2822_v16, %v11578_v20 }
 0x1de   : > { %v2824_v60 = vpop.f32.mrf.mxu0  ;;  %v3230_v6 = vpop.f32.mrf.mxu1 }
 0x1df   : > { %v11629_v25 = vadd.f32 %v3228_v7, %v2880_v44 }
 0x1e0   : > { %v2825_v39 = vpop.f32.mrf.mxu0  ;;  %v3231_v0 = vpop.f32.mrf.mxu1 }
 0x1e1   : > { %v2881_v45 = vadd.f32 %v2825_v39, %v11581_v30 }
 0x1e2   : > { %v2827_v42 = vpop.f32.mrf.mxu0  ;;  %v3233_v15 = vpop.f32.mrf.mxu1 }
 0x1e3   : > { %v11632_v52 = vadd.f32 %v3231_v0, %v2881_v45 }
 0x1e4   : > { %v2830_v33 = vpop.f32.mrf.mxu0  ;;  %v3236_v63 = vpop.f32.mrf.mxu1 }
 0x1e5   : > { %v2882_v23 = vadd.f32 %v2830_v33, %v11584_v43 }
 0x1e6   : > { %v2832_v12 = vpop.f32.mrf.mxu0  ;;  %v3238_v20 = vpop.f32.mrf.mxu1 }
 0x1e7   : > { %v11635_v21 = vadd.f32 %v3236_v63, %v2882_v23 }
 0x1e8   : > { %v2833_v55 = vpop.f32.mrf.mxu0  ;;  %v3239_v10 = vpop.f32.mrf.mxu1 }
 0x1e9   : > { %v2883_v4 = vadd.f32 %v2833_v55, %v11587_v46 }
 0x1ea   : > { %v2835_v32 = vpop.f32.mrf.mxu0  ;;  %v3241_v30 = vpop.f32.mrf.mxu1 }
 0x1eb   : > { %v11638_v9 = vadd.f32 %v3239_v10, %v2883_v4 }
 0x1ec   : > { %v2838_v34 = vpop.f32.mrf.mxu0  ;;  %v3244_v27 = vpop.f32.mrf.mxu1 }
 0x1ed   : > { %v2884_v5 = vadd.f32 %v2838_v34, %v11590_v51 }
 0x1ee   : > { %v2840_v28 = vpop.f32.mrf.mxu0  ;;  %v3246_v43 = vpop.f32.mrf.mxu1 }
 0x1ef   : > { %v11641_v47 = vadd.f32 %v3244_v27, %v2884_v5 }
 0x1f0   : > { %v2841_v17 = vpop.f32.mrf.mxu0  ;;  %v3247_v24 = vpop.f32.mrf.mxu1 }
 0x1f1   : > { %v2885_v36 = vadd.f32 %v2841_v17, %v11593_v54  ;;  %v9817_v54 = vld [vmem:[%s13299_s9 + $0x4] ss:$8 sps:$4 sm:$0xff]  }
 0x1f2   : > { %v2843_v31 = vpop.f32.mrf.mxu0  ;;  %v3249_v46 = vpop.f32.mrf.mxu1  ;;  %8837 = vmatprep.mubr.msk.bf16.mxu0 %vm3652_vm9, %v9817_v54 }
 0x1f3   : > { %v11644_v61 = vadd.f32 %v3247_v24, %v2885_v36  ;;  %v11679_v31 = vld [vmem:[%s13295_s5] ss:$0 sm:$0xff] }
 0x1f4   : > { %v2846_v41 = vpop.f32.mrf.mxu0  ;;  %v3252_v8 = vpop.f32.mrf.mxu1 }
 0x1f5   : > { %v2886_v56 = vadd.f32 %v2846_v41, %v11596_v26 }
 0x1f6   : > { %v2848_v59 = vpop.f32.mrf.mxu0  ;;  %v3254_v51 = vpop.f32.mrf.mxu1 }
 0x1f7   : > { %v11647_v22 = vadd.f32 %v3252_v8, %v2886_v56 }
 0x1f8   : > { %v2849_v29 = vpop.f32.mrf.mxu0  ;;  %v3255_v2 = vpop.f32.mrf.mxu1 }
 0x1f9   : > { %v2887_v19 = vadd.f32 %v2849_v29, %v11599_v62  ;;  %v9823_v62 = vld [vmem:[%s13299_s9 + $0x24] ss:$8 sps:$4 sm:$0xff]  }
 0x1fa   : > { %v2851_v57 = vpop.f32.mrf.mxu0  ;;  %v3257_v37 = vpop.f32.mrf.mxu1  ;;  %8839 = vmatprep.mubr.msk.bf16.mxu1 %vm3652_vm9, %v9823_v62 }
 0x1fb   : > { %v11653_v14 = vadd.f32 %v3255_v2, %v2887_v19 }
 0x1fc   : > { %v2854_v26 = vpop.f32.mrf.mxu0  ;;  %v3260_v48 = vpop.f32.mrf.mxu1 }
 0x1fd   : > { %v2888_v50 = vadd.f32 %v2854_v26, %v11602_v13 }
 0x1fe   : > { %v2856_v58 = vpop.f32.mrf.mxu0  ;;  %v3262_v44 = vpop.f32.mrf.mxu1 }
 0x1ff   : > { %v11660_v16 = vadd.f32 %v3260_v48, %v2888_v50 }
 0x200   : > { %v2857_v7 = vpop.f32.mrf.mxu0  ;;  %v3263_v6 = vpop.f32.mrf.mxu1 }
 0x201   : > { %v2889_v60 = vadd.f32 %v2857_v7, %v11605_v53 }
 0x202   : > { %v2859_v39 = vpop.f32.mrf.mxu0  ;;  %v3265_v0 = vpop.f32.mrf.mxu1 }
 0x203   : > { %v11664_v45 = vadd.f32 %v3263_v6, %v2889_v60 }
 0x204   : > { %v2862_v13 = vpop.f32.mrf.mxu0  ;;  %v3268_v15 = vpop.f32.mrf.mxu1 }
 0x205   : > { %v2890_v42 = vadd.f32 %v2862_v13, %v11608_v18 }
 0x206   : > { %v2864_v33 = vpop.f32.mrf.mxu0  ;;  %v3270_v63 = vpop.f32.mrf.mxu1 }
 0x207   : > { %v11667_v23 = vadd.f32 %v3268_v15, %v2890_v42 }
 0x208   : > { %v2865_v12 = vpop.f32.mrf.mxu0  ;;  %v3271_v55 = vpop.f32.mrf.mxu1 }
 0x209   : > { %v2891_v20 = vadd.f32 %v2865_v12, %v11611_v35 }
 0x20a   : > { %v2867_v4 = vpop.f32.mrf.mxu0  ;;  %v3273_v53 = vpop.f32.mrf.mxu1 }
 0x20b   : > { %v11670_v10 = vadd.f32 %v3271_v55, %v2891_v20 }
 0x20c   : > { %v2870_v32 = vpop.f32.mrf.mxu0  ;;  %v3276_v34 = vpop.f32.mrf.mxu1 }
 0x20d   : > { %v2892_v30 = vadd.f32 %v2870_v32, %v11614_v40 }
 0x20e   : > { %v2872_v5 = vpop.f32.mrf.mxu0  ;;  %v3278_v18 = vpop.f32.mrf.mxu1 }
 0x20f   : > { %v11673_v27 = vadd.f32 %v3276_v34, %v2892_v30 }
 0x210   : > { %v2873_v28 = vpop.f32.mrf.mxu0  ;;  %v3279_v43 = vpop.f32.mrf.mxu1 }
 0x212   : > { %v2874_v17 = vpop.f32.mrf.mxu0  ;;  %v3280_v36 = vpop.f32.mrf.mxu1 }
 0x214   : > { %v3460_v24 = vpop.f32.mrf.mxu0 }
 0x215   : > { %v3530_v35 = vadd.f32 %v3460_v24, %v11617_v3 }
 0x216   : > { %v3462_v46 = vpop.f32.mrf.mxu0 }
 0x217   : > { %v3554_v40 = vadd.f32 %v11679_v31, %v3530_v35 }
 0x218   : > { %v3463_v41 = vpop.f32.mrf.mxu0 }
 0x219   : > { %v3531_v56 = vadd.f32 %v3463_v41, %v11620_v38  ;;  %v3571_v29 = vmax.f32 %v3554_v40, 0.0 }
 0x21a   : > { %v3465_v8 = vpop.f32.mrf.mxu0 }
 0x21b   : > { %v3555_v59 = vadd.f32 %v11679_v31, %v3531_v56 }
 0x21c   : > { %v3468_v51 = vpop.f32.mrf.mxu0 }
 0x21d   : > { %v3572_v19 = vmax.f32 %v3555_v59, 0.0  ;;  %v3532_v2 = vadd.f32 %v3468_v51, %v11623_v49 }
 0x21e   : > { %v3470_v3 = vpop.f32.mrf.mxu0 }
 0x21f   : > { %v11685_v54 = vpack.c.bf16 %v3572_v19, %v3571_v29  ;;  %v3556_v37 = vadd.f32 %v11679_v31, %v3532_v2 }
 0x220   : > { %v3471_v57 = vpop.f32.mrf.mxu0 }
 0x221   : > { %v3533_v26 = vadd.f32 %v3471_v57, %v11626_v11  ;;  %v3573_v58 = vmax.f32 %v3556_v37, 0.0 }
 0x222   : > { %v3473_v50 = vpop.f32.mrf.mxu0 }
 0x223   : > { %v3557_v48 = vadd.f32 %v11679_v31, %v3533_v26 }
 0x224   : > { %v3476_v38 = vpop.f32.mrf.mxu0 }
 0x225   : > { %v3574_v62 = vmax.f32 %v3557_v48, 0.0  ;;  %v3534_v44 = vadd.f32 %v3476_v38, %v11629_v25 }
 0x226   : > { %v3478_v7 = vpop.f32.mrf.mxu0 }
 0x227   : > { %v11691_v60 = vpack.c.bf16 %v3574_v62, %v3573_v58  ;;  %v3558_v6 = vadd.f32 %v11679_v31, %v3534_v44 }
 0x228   : > { %v3479_v49 = vpop.f32.mrf.mxu0 }
 0x229   : > { %v3535_v39 = vadd.f32 %v3479_v49, %v11632_v52  ;;  %v3575_v42 = vmax.f32 %v3558_v6, 0.0 }
 0x22a   : > { %v3481_v0 = vpop.f32.mrf.mxu0 }
 0x22b   : > { %v3559_v13 = vadd.f32 %v11679_v31, %v3535_v39 }
 0x22c   : > { %v3484_v11 = vpop.f32.mrf.mxu0 }
 0x22d   : > { %v3576_v15 = vmax.f32 %v3559_v13, 0.0  ;;  %v3536_v33 = vadd.f32 %v3484_v11, %v11635_v21 }
 0x22e   : > { %v3486_v63 = vpop.f32.mrf.mxu0 }
 0x22f   : > { %v11697_v12 = vpack.c.bf16 %v3576_v15, %v3575_v42  ;;  %v3560_v20 = vadd.f32 %v11679_v31, %v3536_v33 }
 0x230   : > { %v3487_v25 = vpop.f32.mrf.mxu0 }
 0x231   : > { %v3537_v55 = vadd.f32 %v3487_v25, %v11638_v9  ;;  %v3577_v32 = vmax.f32 %v3560_v20, 0.0  ;;  %v9991_v25 = vmov 65535  }
 0x232   : > { %v3489_v4 = vpop.f32.mrf.mxu0  ;;  %v3669_v20 = vsel %vm3668_vm10, 4294967295, %v9991_v25 }
 0x233   : > { %v3561_v53 = vadd.f32 %v11679_v31, %v3537_v55  ;;  %v9821_v4 = vld [vmem:[%s13299_s9 + $0x20] ss:$8 sps:$4 sm:$0xff]  }
 0x234   : > { %v3492_v52 = vpop.f32.mrf.mxu0 }
 0x235   : > { %v3578_v30 = vmax.f32 %v3561_v53, 0.0  ;;  %v3538_v34 = vadd.f32 %v3492_v52, %v11641_v47  ;;  %v9818_v53 = vld [vmem:[%s13299_s9 + $0x14] ss:$8 sps:$4 sm:$0xff]   ;;  %v9820_v52 = vld [vmem:[%s13299_s9 + $0x10] ss:$8 sps:$4 sm:$0xff]  }
 0x236   : > { %v3494_v5 = vpop.f32.mrf.mxu0 }
 0x237   : > { %v11703_v18 = vpack.c.bf16 %v3578_v30, %v3577_v32  ;;  %v3562_v28 = vadd.f32 %v11679_v31, %v3538_v34  ;;  %v9826_v32 = vld [vmem:[%s13299_s9 + $0x30] ss:$8 sps:$4 sm:$0xff]   ;;  %v9827_v30 = vld [vmem:[%s13299_s9 + $0x44] ss:$8 sps:$4 sm:$0x3f]   ;;  %v9992_v5 = vmov 0.0  }
 0x238   : > { %v3495_v21 = vpop.f32.mrf.mxu0  ;;  %v9829_v34 = vld [vmem:[%s13299_s9 + $0x40] ss:$8 sps:$4 sm:$0x3f]  }
 0x239   : > { %v3539_v43 = vadd.f32 %v3495_v21, %v11644_v61  ;;  %v3579_v24 = vmax.f32 %v3562_v28, 0.0  ;;  %v9831_v21 = vld [vmem:[%s13292_s2 + $0x40] sm:$0xff]  }
 0x23a   : > { %v3497_v17 = vpop.f32.mrf.mxu0  ;;  %v9832_v28 = vld [vmem:[%s13292_s2 + $0x20] sm:$0xff]  }
 0x23b   : > { %v3563_v36 = vadd.f32 %v11679_v31, %v3539_v43  ;;  %v9833_v43 = vld [vmem:[%s13292_s2 + $0x38] sm:$0xff]  }
 0x23c   : > { %v3500_v9 = vpop.f32.mrf.mxu0  ;;  %v9834_v17 = vld [vmem:[%s13292_s2 + $0x18] sm:$0xff]  }
 0x23d   : > { %v3580_v35 = vmax.f32 %v3563_v36, 0.0  ;;  %v3540_v46 = vadd.f32 %v3500_v9, %v11647_v22  ;;  %v9835_v36 = vld [vmem:[%s13292_s2 + $0x30] sm:$0xff]  }
 0x23e   : > { %v3502_v41 = vpop.f32.mrf.mxu0 }
 0x23f   : > { %v3602_v40 = vpack.c.bf16 %v3580_v35, %v3579_v24  ;;  %v3564_v47 = vadd.f32 %v11679_v31, %v3540_v46 }
 0x240   : > { %v3503_v56 = vpop.f32.mrf.mxu0 }
 0x241   : > { %v3541_v8 = vadd.f32 %v3503_v56, %v11653_v14  ;;  %v3581_v61 = vmax.f32 %v3564_v47, 0.0 }
 0x242   : > { %v3505_v59 = vpop.f32.mrf.mxu0 }
 0x243   : > { %v3565_v51 = vadd.f32 %v11679_v31, %v3541_v8 }
 0x244   : > { %v3508_v29 = vpop.f32.mrf.mxu0 }
 0x245   : > { %v3582_v19 = vmax.f32 %v3565_v51, 0.0  ;;  %v3542_v2 = vadd.f32 %v3508_v29, %v11660_v16 }
 0x246   : > { %v3510_v3 = vpop.f32.mrf.mxu0 }
 0x247   : > { %v3603_v57 = vpack.c.bf16 %v3582_v19, %v3581_v61  ;;  %v3566_v22 = vadd.f32 %v11679_v31, %v3542_v2 }
 0x248   : > { %v3511_v37 = vpop.f32.mrf.mxu0 }
 0x249   : > { %v3543_v26 = vadd.f32 %v3511_v37, %v11664_v45  ;;  %v3583_v14 = vmax.f32 %v3566_v22, 0.0 }
 0x24a   : > { %v3513_v50 = vpop.f32.mrf.mxu0 }
 0x24b   : > { %v3567_v48 = vadd.f32 %v11679_v31, %v3543_v26 }
 0x24c   : > { %v3516_v38 = vpop.f32.mrf.mxu0 }
 0x24d   : > { %v3584_v58 = vmax.f32 %v3567_v48, 0.0  ;;  %v3544_v62 = vadd.f32 %v3516_v38, %v11667_v23 }
 0x24e   : > { %v3518_v44 = vpop.f32.mrf.mxu0 }
 0x24f   : > { %v3604_v7 = vpack.c.bf16 %v3584_v58, %v3583_v14  ;;  %v3568_v16 = vadd.f32 %v11679_v31, %v3544_v62  ;;  %v9836_v14 = vld [vmem:[%s13292_s2 + $0x10] sm:$0xff]  }
 0x250   : > { %v3519_v49 = vpop.f32.mrf.mxu0  ;;  %v9837_v58 = vld [vmem:[%s13292_s2 + $0x70] sm:$0xff]  }
 0x251   : > { %v3545_v6 = vadd.f32 %v3519_v49, %v11670_v10  ;;  %v3585_v45 = vmax.f32 %v3568_v16, 0.0  ;;  %v9838_v49 = vld [vmem:[%s13292_s2 + $0x8] sm:$0xff]  }
 0x252   : > { %v3521_v39 = vpop.f32.mrf.mxu0  ;;  %v9839_v16 = vld [vmem:[%s13292_s2 + $0x68] sm:$0xff]  }
 0x253   : > { %v3569_v0 = vadd.f32 %v11679_v31, %v3545_v6 }
 0x254   : > { %v3524_v13 = vpop.f32.mrf.mxu0 }
 0x255   : > { %v3586_v11 = vmax.f32 %v3569_v0, 0.0  ;;  %v3546_v10 = vadd.f32 %v3524_v13, %v11673_v27 }
 0x256   : > { %v3526_v42 = vpop.f32.mrf.mxu0 }
 0x257   : > { %v3605_v15 = vpack.c.bf16 %v3586_v11, %v3585_v45  ;;  %v3570_v63 = vadd.f32 %v11679_v31, %v3546_v10  ;;  %v9840_v42 = vld [vmem:[%s13292_s2] sm:$0xff]  }
 0x258   : > { %v3527_v33 = vpop.f32.mrf.mxu0 }
 0x259   : > { %3675 = vmatpush1.bf16.msra.mxu0 %v3605_v15  ;;  %9704 = vmatpush1.bf16.msra.mxu1 %v3605_v15  ;;  %v3587_v27 = vmax.f32 %v3570_v63, 0.0  ;;  %v9841_v15 = vld [vmem:[%s13292_s2 + $0x60] sm:$0xff]  }
 0x25a   : > { %3676 = vmatprep.subr.bf16.mxu0 %v9990_v1  ;;  %9696 = vmatprep.subr.bf16.mxu1 %v9990_v1  ;;  %v3528_v23 = vpop.f32.mrf.mxu0 }
 0x25b   : > { %v3606_v31 = vpack.c.bf16 %v3587_v27, %v3587_v27 }
 0x25d   : > { %3677 = vmatpush1.bf16.msra.mxu0 %v3604_v7  ;;  %9705 = vmatpush1.bf16.msra.mxu1 %v3604_v7 }
 0x25e   : > { %3678 = vmatprep.subr.bf16.mxu0 %v9990_v1  ;;  %9697 = vmatprep.subr.bf16.mxu1 %v9990_v1 }
 0x261   : > { %3679 = vmatpush1.bf16.msra.mxu0 %v3603_v57  ;;  %9706 = vmatpush1.bf16.msra.mxu1 %v3603_v57 }
 0x262   : > { %3680 = vmatprep.subr.bf16.mxu0 %v9990_v1  ;;  %9698 = vmatprep.subr.bf16.mxu1 %v9990_v1 }
 0x265   : > { %3681 = vmatpush1.bf16.msra.mxu0 %v3602_v40  ;;  %9707 = vmatpush1.bf16.msra.mxu1 %v3602_v40 }
 0x266   : > { %3682 = vmatprep.subr.bf16.mxu0 %v9990_v1  ;;  %9699 = vmatprep.subr.bf16.mxu1 %v9990_v1 }
 0x269   : > { %3683 = vmatpush1.bf16.msra.mxu0 %v11703_v18  ;;  %9708 = vmatpush1.bf16.msra.mxu1 %v11703_v18  ;;  %v9830_v18 = vld [vmem:[%s13292_s2 + $0x28] sm:$0xff]  }
 0x26a   : > { %3684 = vmatprep.subr.bf16.mxu0 %v9990_v1  ;;  %9700 = vmatprep.subr.bf16.mxu1 %v9990_v1 }
 0x26d   : > { %3685 = vmatpush1.bf16.msra.mxu0 %v11697_v12  ;;  %9709 = vmatpush1.bf16.msra.mxu1 %v11697_v12  ;;  %v3670_v12 = vsel %vm759_vm1, %v3669_v20, 0  ;;  %vm4863_vm1 = vcmask 124928  }
 0x26e   : > { %3686 = vmatprep.subr.bf16.mxu0 %v9990_v1  ;;  %9701 = vmatprep.subr.bf16.mxu1 %v9990_v1  ;;  %v3672_v55 = vand.u32 %v3670_v12, %v3606_v31 }
 0x271   : > { %3687 = vmatpush1.bf16.msra.mxu0 %v11691_v60  ;;  %9710 = vmatpush1.bf16.msra.mxu1 %v11691_v60  ;;  %v9815_v60 = vld [vmem:[%s13299_s9] ss:$8 sps:$4 sm:$0xff]  }
 0x272   : > { %3688 = vmatprep.subr.bf16.mxu0 %v9990_v1  ;;  %9702 = vmatprep.subr.bf16.mxu1 %v9990_v1 }
 0x275   : > { %3689 = vmatpush1.bf16.msra.mxu0 %v11685_v54  ;;  %9711 = vmatpush1.bf16.msra.mxu1 %v11685_v54  ;;  %v9824_v54 = vld [vmem:[%s13299_s9 + $0x34] ss:$8 sps:$4 sm:$0xff]  }
 0x276   : > { %3704 = vmatprep.subr.bf16.mxu0 %v9990_v1  ;;  %9703 = vmatprep.subr.bf16.mxu1 %v9990_v1 }
 0x279   : > { %3705 = vmatpush2.bf16.msra.mxu0 %v3672_v55  ;;  %9712 = vmatpush2.bf16.msra.mxu1 %v3672_v55 }
 0x27a   : > { %9347 = vmatprep.subr.bf16.mxu1 %v9992_v5  ;;  %9383 = vmatprep.subr.bf16.mxu0 %v9992_v5 }
 0x27c   : > { %3707 = vmatmul.mubr.bf16.vlgmr.msra.gmra.mxu0 %v9815_v60  ;;  %3723 = vmatmul.mubr.bf16.vlgmr.msra.gmra.mxu1 %v9821_v4 }
 0x27d   : > { %8838 = vmatprep.mubr.msk.bf16.mxu0 %vm3652_vm9, %v9818_v53  ;;  %8840 = vmatprep.mubr.msk.bf16.mxu1 %vm3652_vm9, %v9824_v54  ;;  %v9842_v54 = vld [vmem:[%s13292_s2 + $0x58] sm:$0xff]  }
 0x27e   : > { %9348 = vmatpush3.bf16.msra.mxu1 %v9830_v18  ;;  %9384 = vmatpush3.bf16.msra.mxu0 %v9831_v21 }
 0x27f   : > { %9349 = vmatprep.subr.bf16.mxu1 %v9992_v5  ;;  %9385 = vmatprep.subr.bf16.mxu0 %v9992_v5 }
 0x282   : > { %9350 = vmatpush3.bf16.msra.mxu1 %v9832_v28  ;;  %9386 = vmatpush3.bf16.msra.mxu0 %v9833_v43  ;;  %v9846_v28 = vld [vmem:[%s13292_s2 + $0x48] sm:$0xff]   ;;  %v9847_v43 = vld [vmem:[%s13292_s2 + $0x90] sm:$0xff]  }
 0x283   : > { %9351 = vmatprep.subr.bf16.mxu1 %v9992_v5  ;;  %9387 = vmatprep.subr.bf16.mxu0 %v9992_v5 }
 0x284   : > { %3715 = vmatmul.mubr.bf16.gmra.mxu0 %v9820_v52  ;;  %3731 = vmatmul.mubr.bf16.gmra.mxu1 %v9826_v32  ;;  %v9843_v52 = vld [vmem:[%s13292_s2 + $0xa0] sm:$0xff]   ;;  %v9844_v32 = vld [vmem:[%s13292_s2 + $0x50] sm:$0xff]  }
 0x285   : > { %8841 = vmatprep.mubr.msk.bf16.mxu1 %vm3652_vm9, %v9827_v30  ;;  %9389 = vmatprep.mubr.msk.bf16.mxu0 %vm9993_vm11, %v9992_v5  ;;  %v9845_v30 = vld [vmem:[%s13292_s2 + $0x98] sm:$0xff]  }
 0x286   : > { %9352 = vmatpush3.bf16.msra.mxu1 %v9834_v17  ;;  %9388 = vmatpush3.bf16.msra.mxu0 %v9835_v36 }
 0x287   : > { %9365 = vmatprep.subr.bf16.mxu1 %v9992_v5  ;;  %9419 = vmatprep.subr.bf16.mxu0 %v9992_v5 }
 0x28c   : > { %3739 = vmatmul.mubr.bf16.gmra.mxu1 %v9829_v34 }
 0x28d   : > { %9353 = vmatprep.mubr.msk.bf16.mxu1 %vm9993_vm11, %v9992_v5 }
 0x33c   : > { %v3708_v9 = vpop.f32.mrf.mxu0  ;;  %v3724_v24 = vpop.f32.mrf.mxu1 }
 0x33d   : > { %3748 = vst.msk [vmem:[#allocation2] sm:$0xff] %vm3747_vm12, %v3708_v9  ;;  %3752 = vst.msk [vmem:[#allocation2 + $0x20] sm:$0xff] %vm3747_vm12, %v3724_v24 }
 0x33e   : > { %v3710_v35 = vpop.f32.mrf.mxu0  ;;  %v3726_v46 = vpop.f32.mrf.mxu1 }
 0x340   : > { %v3711_v41 = vpop.f32.mrf.mxu0  ;;  %v3727_v40 = vpop.f32.mrf.mxu1 }
 0x341   : > { %3749 = vst.msk [vmem:[#allocation2 + $0x8] sm:$0xff] %vm3747_vm12, %v3711_v41  ;;  %3753 = vst.msk [vmem:[#allocation2 + $0x28] sm:$0xff] %vm3747_vm12, %v3727_v40 }
 0x342   : > { %v3713_v56 = vpop.f32.mrf.mxu0  ;;  %v3729_v47 = vpop.f32.mrf.mxu1 }
 0x344   : > { %v3716_v8 = vpop.f32.mrf.mxu0  ;;  %v3732_v59 = vpop.f32.mrf.mxu1  ;;  %v3759_v55 = vld [vmem:[#allocation2] sm:$0xff] }
 0x345   : > { %3750 = vst.msk [vmem:[#allocation2 + $0x10] sm:$0xff] %vm3747_vm12, %v3716_v8  ;;  %3754 = vst.msk [vmem:[#allocation2 + $0x30] sm:$0xff] %vm3747_vm12, %v3732_v59  ;;  %v4172_v34 = vld [vmem:[#allocation2 + $0x20] sm:$0xff]  ;;  %v9848_v59 = vld [vmem:[%s13292_s2 + $0x88] sm:$0xff]  }
 0x346   : > { %v3718_v51 = vpop.f32.mrf.mxu0  ;;  %v3734_v29 = vpop.f32.mrf.mxu1 }
 0x347   : > { %v9849_v51 = vld [vmem:[%s13292_s2 + $0xd0] sm:$0xff]  }
 0x348   : > { %v3719_v61 = vpop.f32.mrf.mxu0  ;;  %v3735_v19 = vpop.f32.mrf.mxu1  ;;  %v3774_v57 = vld [vmem:[#allocation2 + $0x1] sm:$0xff]  ;;  %v3779_v23 = vld [vmem:[#allocation2 + $0x29] sm:$0x7] }
 0x349   : > { %3751 = vst.msk [vmem:[#allocation2 + $0x18] sm:$0xff] %vm3747_vm12, %v3719_v61  ;;  %3755 = vst.msk [vmem:[#allocation2 + $0x38] sm:$0xff] %vm3747_vm12, %v3735_v19  ;;  %v3958_v22 = vld [vmem:[#allocation2 + $0x2] sm:$0xff]  ;;  %v3963_v63 = vld [vmem:[#allocation2 + $0x2a] sm:$0x7] }
 0x34a   : > { %v3721_v2 = vpop.f32.mrf.mxu0  ;;  %v3737_v3 = vpop.f32.mrf.mxu1  ;;  %v11851_v33 = vld [vmem:[#allocation2 + $0x21] sm:$0xff] }
 0x34b   : > { %v3962_v10 = vld [vmem:[#allocation2 + $0x22] sm:$0xff]  ;;  %v3782_v27 = vpack.c.bf16 %v3779_v23, %v11851_v33 }
 0x34c   : > { %v3775_v37 = vld [vmem:[#allocation2 + $0x9] sm:$0xff]  ;;  %v3740_v50 = vpop.f32.mrf.mxu1  ;;  %v3966_v20 = vpack.c.bf16 %v3963_v63, %v3962_v10  ;;  %v9850_v61 = vld [vmem:[%s13292_s2 + $0x80] sm:$0xff]  }
 0x34d   : > { %v3959_v26 = vld [vmem:[#allocation2 + $0xa] sm:$0xff]  ;;  %v3780_v48 = vpack.c.bf16 %v3775_v37, %v3774_v57  ;;  %3756 = vst.msk [vmem:[#allocation2 + $0x40] sm:$0xff] %vm3747_vm12, %v3740_v50  ;;  %v9853_v50 = vld [vmem:[%s13292_s2 + $0xc0] sm:$0xff]  }
 0x34e   : > { %v3964_v38 = vpack.c.bf16 %v3959_v26, %v3958_v22  ;;  %v3742_v62 = vpop.f32.mrf.mxu1  ;;  %v3760_v31 = vld [vmem:[#allocation2 + $0x8] sm:$0xff]  ;;  %v4170_v60 = vld [vmem:[#allocation2 + $0x10] sm:$0xff]  ;;  %v9852_v26 = vld [vmem:[%s13292_s2 + $0x78] sm:$0xff]  }
 0x34f   : > { %9354 = vmatmul.mubr.msk.bf16.vlgmr.msra.gmra.mxu1 %vm3747_vm12, %v3780_v48  ;;  %v3765_v4 = vpack.c.bf16 %v3760_v31, %v3759_v55  ;;  %v4173_v18 = vld [vmem:[#allocation2 + $0x28] sm:$0xff]  ;;  %v11899_v17 = vld [vmem:[#allocation2 + $0x30] sm:$0xff] }
 0x350   : > { %9390 = vmatmul.mubr.msk.bf16.vlgmr.msra.gmra.mxu0 %vm3747_vm12, %v3964_v38  ;;  %9357 = vmatprep.mubr.msk.bf16.mxu1 %vm9993_vm11, %v9992_v5  ;;  %v3743_v44 = vpop.f32.mrf.mxu1  ;;  %v3776_v7 = vld [vmem:[#allocation2 + $0x11] sm:$0xff]  ;;  %v3777_v6 = vld [vmem:[#allocation2 + $0x19] sm:$0xff]  ;;  %v11882_v21 = vpack.c.bf16 %v4173_v18, %v4172_v34  ;;  %v3764_v9 = vld [vmem:[#allocation2 + $0x28] sm:$0x7] }
 0x351   : > { %9393 = vmatprep.mubr.msk.bf16.mxu0 %vm9993_vm11, %v9992_v5  ;;  %9366 = vmatpush3.bf16.msra.mxu1 %v9836_v14  ;;  %3758 = vst.msk [vmem:[#allocation2 + $0x48] sm:$0x7] %vm3757_vm13, %v3743_v44  ;;  %v3960_v39 = vld [vmem:[#allocation2 + $0x12] sm:$0xff]  ;;  %v3961_v0 = vld [vmem:[#allocation2 + $0x1a] sm:$0xff]  ;;  %v11834_v45 = vpack.c.bf16 %v3777_v6, %v3776_v7  ;;  %v3767_v35 = vpack.c.bf16 %v3764_v9, %v4172_v34  ;;  %v4383_v40 = vld [vmem:[#allocation2 + $0x26] sm:$0xff] }
 0x352   : > { %9420 = vmatpush3.bf16.msra.mxu0 %v9837_v58  ;;  %9367 = vmatprep.subr.bf16.mxu1 %v9992_v5  ;;  %v3745_v13 = vpop.f32.mrf.mxu1  ;;  %v3965_v11 = vpack.c.bf16 %v3961_v0, %v3960_v39  ;;  %v4171_v12 = vld [vmem:[#allocation2 + $0x18] sm:$0xff]  ;;  %v4064_v56 = vld [vmem:[#allocation2 + $0xf] sm:$0xff]  ;;  %v4067_v29 = vld [vmem:[#allocation2 + $0x27] sm:$0xff] }
 0x353   : > { %9421 = vmatprep.subr.bf16.mxu0 %v9992_v5  ;;  %v4176_v53 = vpack.c.bf16 %v4171_v12, %v4170_v60  ;;  %v4175_v36 = vld [vmem:[#allocation2 + $0x38] sm:$0x7]  ;;  %v4382_v41 = vld [vmem:[#allocation2 + $0x1e] sm:$0xff]  ;;  %v9851_v19 = vld [vmem:[%s13292_s2 + $0xc8] sm:$0xff]  }
 0x354   : > { %v4178_v24 = vpack.c.bf16 %v4175_v36, %v11899_v17  ;;  %v4065_v46 = vld [vmem:[#allocation2 + $0x17] sm:$0xff]  ;;  %v4388_v8 = vpack.c.bf16 %v4383_v40, %v4382_v41  ;;  %v4066_v2 = vld [vmem:[#allocation2 + $0x1f] sm:$0xff]  ;;  %v4384_v3 = vld [vmem:[#allocation2 + $0x2e] sm:$0xff] }
 0x355   : > { %9368 = vmatpush3.bf16.msra.mxu1 %v9838_v49  ;;  %v4070_v47 = vpack.c.bf16 %v4065_v46, %v4064_v56  ;;  %v4385_v57 = vld [vmem:[#allocation2 + $0x36] sm:$0xff]  ;;  %v4071_v37 = vpack.c.bf16 %v4067_v29, %v4066_v2  ;;  %v4386_v14 = vld [vmem:[#allocation2 + $0x3e] sm:$0xff]  ;;  %v9856_v13 = vld [vmem:[%s13292_s2 + $0xa8] sm:$0xff]  }
 0x356   : > { %9422 = vmatpush3.bf16.msra.mxu0 %v9839_v16  ;;  %9369 = vmatprep.subr.bf16.mxu1 %v9992_v5  ;;  %v4389_v22 = vpack.c.bf16 %v4385_v57, %v4384_v3  ;;  %v4068_v48 = vld [vmem:[#allocation2 + $0x2f] sm:$0xff]  ;;  %v4069_v38 = vld [vmem:[#allocation2 + $0x37] sm:$0x7] }
 0x357   : > { %9423 = vmatprep.subr.bf16.mxu0 %v9992_v5  ;;  %9358 = vmatmul.mubr.msk.bf16.gmra.mxu1 %vm3747_vm12, %v11834_v45  ;;  %v4072_v62 = vpack.c.bf16 %v4069_v38, %v4068_v48  ;;  %v9854_v7 = vld [vmem:[%s13292_s2 + $0xb8] sm:$0xff]   ;;  %v9855_v49 = vld [vmem:[%s13292_s2 + $0xb0] sm:$0xff]  }
 0x358   : > { %9394 = vmatmul.mubr.msk.bf16.gmra.mxu0 %vm3747_vm12, %v3965_v11  ;;  %9361 = vmatprep.mubr.msk.bf16.mxu1 %vm9993_vm11, %v9992_v5  ;;  %v4387_v58 = vld [vmem:[#allocation2 + $0x46] sm:$0x7]  ;;  %v4279_v16 = vld [vmem:[#allocation2 + $0x29] sm:$0xff]  ;;  %v4597_v6 = vld [vmem:[#allocation2 + $0x38] sm:$0xff] }
 0x359   : > { %9397 = vmatprep.mubr.msk.bf16.mxu0 %vm9993_vm11, %v9992_v5  ;;  %9370 = vmatpush3.bf16.msra.mxu1 %v9840_v42  ;;  %v4390_v44 = vpack.c.bf16 %v4387_v58, %v4386_v14  ;;  %v4283_v39 = vpack.c.bf16 %v4279_v16, %v11851_v33  ;;  %v4601_v0 = vpack.c.bf16 %v4597_v6, %v11899_v17  ;;  %v4281_v11 = vld [vmem:[#allocation2 + $0x39] sm:$0x7]  ;;  %v4598_v42 = vld [vmem:[#allocation2 + $0x40] sm:$0xff] }
 0x35a   : > { %9424 = vmatpush3.bf16.msra.mxu0 %v9841_v15  ;;  %9401 = vmatprep.subr.bf16.mxu1 %v9992_v5  ;;  %v4599_v15 = vld [vmem:[#allocation2 + $0x48] sm:$0x7]  ;;  %v4491_v10 = vld [vmem:[#allocation2 + $0x37] sm:$0xff] }
 0x35b   : > { %9455 = vmatprep.subr.bf16.mxu0 %v9992_v5  ;;  %v4602_v23 = vpack.c.bf16 %v4599_v15, %v4598_v42  ;;  %v4495_v63 = vpack.c.bf16 %v4491_v10, %v4068_v48 }
 0x35f   : > { %9362 = vmatmul.mubr.msk.bf16.gmra.mxu1 %vm3747_vm12, %v3782_v27  ;;  %v4492_v27 = vld [vmem:[#allocation2 + $0x3f] sm:$0xff] }
 0x360   : > { %9398 = vmatmul.mubr.msk.bf16.gmra.mxu0 %vm3747_vm12, %v3966_v20  ;;  %9371 = vmatprep.mubr.msk.bf16.mxu1 %vm9993_vm11, %v9992_v5  ;;  %v4493_v20 = vld [vmem:[#allocation2 + $0x47] sm:$0x7] }
 0x361   : > { %9425 = vmatprep.mubr.msk.bf16.mxu0 %vm9993_vm11, %v9992_v5  ;;  %v4496_v31 = vpack.c.bf16 %v4493_v20, %v4492_v27 }
 0x367   : > { %9372 = vmatmul.mubr.msk.bf16.vlgmr.msra.gmra.mxu1 %vm3747_vm12, %v3765_v4 }
 0x368   : > { %9426 = vmatmul.mubr.msk.bf16.vlgmr.msra.gmra.mxu0 %vm3747_vm12, %v4176_v53  ;;  %9375 = vmatprep.mubr.msk.bf16.mxu1 %vm9993_vm11, %v9992_v5 }
 0x369   : > { %9429 = vmatprep.mubr.msk.bf16.mxu0 %vm9993_vm11, %v9992_v5  ;;  %9402 = vmatpush3.bf16.msra.mxu1 %v9842_v54 }
 0x36a   : > { %9456 = vmatpush3.bf16.msra.mxu0 %v9843_v52  ;;  %9403 = vmatprep.subr.bf16.mxu1 %v9992_v5 }
 0x36b   : > { %9457 = vmatprep.subr.bf16.mxu0 %v9992_v5 }
 0x36d   : > { %9404 = vmatpush3.bf16.msra.mxu1 %v9844_v32 }
 0x36e   : > { %9458 = vmatpush3.bf16.msra.mxu0 %v9845_v30  ;;  %9405 = vmatprep.subr.bf16.mxu1 %v9992_v5 }
 0x36f   : > { %9459 = vmatprep.subr.bf16.mxu0 %v9992_v5  ;;  %9376 = vmatmul.mubr.msk.bf16.gmra.mxu1 %vm3747_vm12, %v4176_v53 }
 0x370   : > { %9430 = vmatmul.mubr.msk.bf16.gmra.mxu0 %vm3747_vm12, %v11882_v21  ;;  %9379 = vmatprep.mubr.msk.bf16.mxu1 %vm9993_vm11, %v9992_v5 }
 0x371   : > { %9433 = vmatprep.mubr.msk.bf16.mxu0 %vm9993_vm11, %v9992_v5  ;;  %9406 = vmatpush3.bf16.msra.mxu1 %v9846_v28 }
 0x372   : > { %9460 = vmatpush3.bf16.msra.mxu0 %v9847_v43  ;;  %9437 = vmatprep.subr.bf16.mxu1 %v9992_v5 }
 0x373   : > { %9491 = vmatprep.subr.bf16.mxu0 %v9992_v5 }
 0x377   : > { %9380 = vmatmul.mubr.msk.bf16.gmra.mxu1 %vm3747_vm12, %v3767_v35 }
 0x378   : > { %9434 = vmatmul.mubr.msk.bf16.gmra.mxu0 %vm3747_vm12, %v4178_v24  ;;  %9407 = vmatprep.mubr.msk.bf16.mxu1 %vm9993_vm11, %v9992_v5 }
 0x379   : > { %9461 = vmatprep.mubr.msk.bf16.mxu0 %vm9993_vm11, %v9992_v5 }
 0x37f   : > { %9408 = vmatmul.mubr.msk.bf16.vlgmr.msra.gmra.mxu1 %vm3747_vm12, %v4070_v47 }
 0x380   : > { %9462 = vmatmul.mubr.msk.bf16.vlgmr.msra.gmra.mxu0 %vm3747_vm12, %v4388_v8  ;;  %9411 = vmatprep.mubr.msk.bf16.mxu1 %vm9993_vm11, %v9992_v5 }
 0x381   : > { %9465 = vmatprep.mubr.msk.bf16.mxu0 %vm9993_vm11, %v9992_v5  ;;  %9438 = vmatpush3.bf16.msra.mxu1 %v9848_v59 }
 0x382   : > { %9492 = vmatpush3.bf16.msra.mxu0 %v9849_v51  ;;  %9439 = vmatprep.subr.bf16.mxu1 %v9992_v5 }
 0x383   : > { %9493 = vmatprep.subr.bf16.mxu0 %v9992_v5 }
 0x385   : > { %9440 = vmatpush3.bf16.msra.mxu1 %v9850_v61 }
 0x386   : > { %9494 = vmatpush3.bf16.msra.mxu0 %v9851_v19  ;;  %9441 = vmatprep.subr.bf16.mxu1 %v9992_v5 }
 0x387   : > { %9495 = vmatprep.subr.bf16.mxu0 %v9992_v5  ;;  %9412 = vmatmul.mubr.msk.bf16.gmra.mxu1 %vm3747_vm12, %v4071_v37 }
 0x388   : > { %9466 = vmatmul.mubr.msk.bf16.gmra.mxu0 %vm3747_vm12, %v4389_v22  ;;  %9415 = vmatprep.mubr.msk.bf16.mxu1 %vm9993_vm11, %v9992_v5 }
 0x389   : > { %9469 = vmatprep.mubr.msk.bf16.mxu0 %vm9993_vm11, %v9992_v5  ;;  %9442 = vmatpush3.bf16.msra.mxu1 %v9852_v26 }
 0x38a   : > { %9496 = vmatpush3.bf16.msra.mxu0 %v9853_v50  ;;  %9473 = vmatprep.subr.bf16.mxu1 %v9992_v5 }
 0x38b   : > { %9535 = vmatprep.subr.bf16.mxu0 %v9992_v5 }
 0x38f   : > { %9416 = vmatmul.mubr.msk.bf16.gmra.mxu1 %vm3747_vm12, %v4072_v62 }
 0x390   : > { %9470 = vmatmul.mubr.msk.bf16.gmra.mxu0 %vm3747_vm12, %v4390_v44  ;;  %9443 = vmatprep.mubr.msk.bf16.mxu1 %vm9993_vm11, %v9992_v5 }
 0x391   : > { %9497 = vmatprep.mubr.msk.bf16.mxu0 %vm9993_vm11, %v9992_v5 }
 0x397   : > { %9444 = vmatmul.mubr.msk.bf16.vlgmr.msra.gmra.mxu1 %vm3747_vm12, %v11834_v45  ;;  %v4280_v45 = vld [vmem:[#allocation2 + $0x31] sm:$0xff] }
 0x398   : > { %9498 = vmatmul.mubr.msk.bf16.vlgmr.msra.gmra.mxu0 %vm3747_vm12, %v11882_v21  ;;  %9447 = vmatprep.mubr.msk.bf16.mxu1 %vm9993_vm11, %v9992_v5  ;;  %v4284_v33 = vpack.c.bf16 %v4281_v11, %v4280_v45 }
 0x399   : > { %9501 = vmatprep.mubr.msk.bf16.mxu0 %vm9993_vm11, %v9992_v5  ;;  %9474 = vmatpush3.bf16.msra.mxu1 %v9854_v7 }
 0x39a   : > { %9475 = vmatprep.subr.bf16.mxu1 %v9992_v5 }
 0x39d   : > { %9476 = vmatpush3.bf16.msra.mxu1 %v9855_v49 }
 0x39e   : > { %9477 = vmatprep.subr.bf16.mxu1 %v9992_v5 }
 0x39f   : > { %9448 = vmatmul.mubr.msk.bf16.gmra.mxu1 %vm3747_vm12, %v4283_v39 }
 0x3a0   : > { %9502 = vmatmul.mubr.msk.bf16.gmra.mxu0 %vm3747_vm12, %v4601_v0  ;;  %9451 = vmatprep.mubr.msk.bf16.mxu1 %vm9993_vm11, %v9992_v5 }
 0x3a1   : > { %9505 = vmatprep.mubr.msk.bf16.mxu0 %vm9993_vm11, %v9992_v5  ;;  %9478 = vmatpush3.bf16.msra.mxu1 %v9856_v13 }
 0x3a2   : > { %9509 = vmatprep.subr.bf16.mxu1 %v9992_v5 }
 0x3a7   : > { %9452 = vmatmul.mubr.msk.bf16.gmra.mxu1 %vm3747_vm12, %v4284_v33 }
 0x3a8   : > { %9506 = vmatmul.mubr.msk.bf16.gmra.mxu0 %vm3747_vm12, %v4602_v23  ;;  %9479 = vmatprep.mubr.msk.bf16.mxu1 %vm9993_vm11, %v9992_v5 }
 0x3a9   : > { %9537 = vmatprep.mubr.msk.bf16.mxu0 %vm9993_vm11, %v9992_v5 }
 0x3af   : > { %9480 = vmatmul.mubr.msk.bf16.vlgmr.msra.gmra.mxu1 %vm3747_vm12, %v4071_v37 }
 0x3b0   : > { %9483 = vmatprep.mubr.msk.bf16.mxu1 %vm9993_vm11, %v9992_v5 }
 0x3b7   : > { %9484 = vmatmul.mubr.msk.bf16.gmra.mxu1 %vm3747_vm12, %v4495_v63 }
 0x3b8   : > { %9487 = vmatprep.mubr.msk.bf16.mxu1 %vm9993_vm11, %v9992_v5 }
 0x3bf   : > { %9488 = vmatmul.mubr.msk.bf16.gmra.mxu1 %vm3747_vm12, %v4496_v31 }
 0x3c0   : > { %9515 = vmatprep.mubr.msk.bf16.mxu1 %vm9993_vm11, %v9992_v5 }
 0x40f   : > { %v3851_v12 = vpop.f32.mrf.mxu1 }
 0x410   : > { %v4035_v55 = vpop.f32.mrf.mxu0 }
 0x411   : > { %v9355_v60 = vpop.f32.mrf.mxu1 }
 0x412   : > { %v9391_v4 = vpop.f32.mrf.mxu0 }
 0x413   : > { %v3854_v53 = vpop.f32.mrf.mxu1 }
 0x414   : > { %v4038_v54 = vpop.f32.mrf.mxu0 }
 0x415   : > { %v9356_v52 = vpop.f32.mrf.mxu1 }
 0x416   : > { %v9392_v32 = vpop.f32.mrf.mxu0 }
 0x417   : > { %v3859_v30 = vpop.f32.mrf.mxu1 }
 0x418   : > { %v4043_v34 = vpop.f32.mrf.mxu0 }
 0x419   : > { %v9359_v18 = vpop.f32.mrf.mxu1 }
 0x41a   : > { %v9395_v21 = vpop.f32.mrf.mxu0 }
 0x41b   : > { %v3862_v28 = vpop.f32.mrf.mxu1 }
 0x41c   : > { %v4046_v43 = vpop.f32.mrf.mxu0 }
 0x41d   : > { %v9360_v17 = vpop.f32.mrf.mxu1 }
 0x41e   : > { %v9396_v36 = vpop.f32.mrf.mxu0 }
 0x41f   : > { %v3867_v9 = vpop.f32.mrf.mxu1 }
 0x420   : > { %v4051_v24 = vpop.f32.mrf.mxu0 }
 0x421   : > { %v9363_v35 = vpop.f32.mrf.mxu1 }
 0x422   : > { %v9399_v46 = vpop.f32.mrf.mxu0 }
 0x423   : > { %v3870_v41 = vpop.f32.mrf.mxu1 }
 0x424   : > { %v4054_v40 = vpop.f32.mrf.mxu0 }
 0x425   : > { %v9364_v56 = vpop.f32.mrf.mxu1 }
 0x426   : > { %v9400_v47 = vpop.f32.mrf.mxu0 }
 0x427   : > { %v3935_v8 = vpop.f32.mrf.mxu1 }
 0x428   : > { %v4247_v59 = vpop.f32.mrf.mxu0  ;;  %v3936_v51 = vadd.f32 %v3935_v8, %v3851_v12 }
 0x429   : > { %v9373_v29 = vpop.f32.mrf.mxu1 }
 0x42a   : > { %v9427_v61 = vpop.f32.mrf.mxu0  ;;  %v4058_v19 = vadd.f32 %v4035_v55, %v3936_v51 }
 0x42b   : > { %v3938_v2 = vpop.f32.mrf.mxu1 }
 0x42c   : > { %v4250_v3 = vpop.f32.mrf.mxu0  ;;  %v3939_v57 = vadd.f32 %v3938_v2, %v3854_v53 }
 0x42d   : > { %v9374_v37 = vpop.f32.mrf.mxu1 }
 0x42e   : > { %v9428_v22 = vpop.f32.mrf.mxu0  ;;  %v4059_v26 = vadd.f32 %v4038_v54, %v3939_v57 }
 0x42f   : > { %v3943_v50 = vpop.f32.mrf.mxu1 }
 0x430   : > { %v4255_v48 = vpop.f32.mrf.mxu0  ;;  %v3944_v38 = vadd.f32 %v3943_v50, %v3859_v30 }
 0x431   : > { %v9377_v14 = vpop.f32.mrf.mxu1 }
 0x432   : > { %v9431_v58 = vpop.f32.mrf.mxu0  ;;  %v4060_v62 = vadd.f32 %v4043_v34, %v3944_v38 }
 0x433   : > { %v3946_v44 = vpop.f32.mrf.mxu1 }
 0x434   : > { %v4258_v7 = vpop.f32.mrf.mxu0  ;;  %v3947_v49 = vadd.f32 %v3946_v44, %v3862_v28 }
 0x435   : > { %v9378_v16 = vpop.f32.mrf.mxu1 }
 0x436   : > { %v9432_v6 = vpop.f32.mrf.mxu0  ;;  %v4061_v39 = vadd.f32 %v4046_v43, %v3947_v49 }
 0x437   : > { %v3951_v0 = vpop.f32.mrf.mxu1 }
 0x438   : > { %v4263_v13 = vpop.f32.mrf.mxu0  ;;  %v3952_v45 = vadd.f32 %v3951_v0, %v3867_v9 }
 0x439   : > { %v9381_v11 = vpop.f32.mrf.mxu1 }
 0x43a   : > { %v9435_v42 = vpop.f32.mrf.mxu0  ;;  %v4062_v15 = vadd.f32 %v4051_v24, %v3952_v45 }
 0x43b   : > { %v3954_v33 = vpop.f32.mrf.mxu1 }
 0x43c   : > { %v4266_v23 = vpop.f32.mrf.mxu0  ;;  %v3955_v10 = vadd.f32 %v3954_v33, %v3870_v41 }
 0x43d   : > { %v9382_v63 = vpop.f32.mrf.mxu1 }
 0x43e   : > { %v9436_v27 = vpop.f32.mrf.mxu0  ;;  %v4063_v20 = vadd.f32 %v4054_v40, %v3955_v10 }
 0x43f   : > { %v4141_v31 = vpop.f32.mrf.mxu1 }
 0x440   : > { %v4459_v12 = vpop.f32.mrf.mxu0  ;;  %v4164_v55 = vadd.f32 %v4141_v31, %v4058_v19 }
 0x441   : > { %v9409_v60 = vpop.f32.mrf.mxu1 }
 0x442   : > { %v9463_v4 = vpop.f32.mrf.mxu0  ;;  %v4270_v53 = vadd.f32 %v4247_v59, %v4164_v55 }
 0x443   : > { %v4144_v54 = vpop.f32.mrf.mxu1 }
 0x444   : > { %v4462_v52 = vpop.f32.mrf.mxu0  ;;  %v4165_v32 = vadd.f32 %v4144_v54, %v4059_v26 }
 0x445   : > { %v9410_v30 = vpop.f32.mrf.mxu1 }
 0x446   : > { %v9464_v34 = vpop.f32.mrf.mxu0  ;;  %v4271_v18 = vadd.f32 %v4250_v3, %v4165_v32  ;;  %v8944_v30 = vld [vmem:[%s13296_s6] ss:$0 sm:$0xff] }
 0x447   : > { %v4149_v21 = vpop.f32.mrf.mxu1 }
 0x448   : > { %v4467_v28 = vpop.f32.mrf.mxu0  ;;  %v4166_v43 = vadd.f32 %v4149_v21, %v4060_v62 }
 0x449   : > { %v9413_v17 = vpop.f32.mrf.mxu1 }
 0x44a   : > { %v9467_v36 = vpop.f32.mrf.mxu0  ;;  %v4272_v9 = vadd.f32 %v4255_v48, %v4166_v43 }
 0x44b   : > { %v4152_v24 = vpop.f32.mrf.mxu1 }
 0x44c   : > { %v4470_v35 = vpop.f32.mrf.mxu0  ;;  %v4167_v46 = vadd.f32 %v4152_v24, %v4061_v39 }
 0x44d   : > { %v9414_v41 = vpop.f32.mrf.mxu1 }
 0x44e   : > { %v9468_v40 = vpop.f32.mrf.mxu0  ;;  %v4273_v56 = vadd.f32 %v4258_v7, %v4167_v46 }
 0x44f   : > { %v4157_v47 = vpop.f32.mrf.mxu1 }
 0x450   : > { %v11995_v8 = vpop.f32.mrf.mxu0  ;;  %v4168_v59 = vadd.f32 %v4157_v47, %v4062_v15 }
 0x451   : > { %v9417_v51 = vpop.f32.mrf.mxu1 }
 0x452   : > { %v9471_v29 = vpop.f32.mrf.mxu0  ;;  %v4274_v61 = vadd.f32 %v4263_v13, %v4168_v59 }
 0x453   : > { %v4160_v19 = vpop.f32.mrf.mxu1 }
 0x454   : > { %v11997_v2 = vpop.f32.mrf.mxu0  ;;  %v4169_v3 = vadd.f32 %v4160_v19, %v4063_v20 }
 0x455   : > { %v9418_v57 = vpop.f32.mrf.mxu1 }
 0x456   : > { %v9472_v37 = vpop.f32.mrf.mxu0  ;;  %v4275_v22 = vadd.f32 %v4266_v23, %v4169_v3 }
 0x457   : > { %v4353_v26 = vpop.f32.mrf.mxu1 }
 0x458   : > { %v4671_v50 = vpop.f32.mrf.mxu0  ;;  %v4376_v48 = vadd.f32 %v4353_v26, %v4270_v53 }
 0x459   : > { %v9445_v38 = vpop.f32.mrf.mxu1 }
 0x45a   : > { %v9499_v14 = vpop.f32.mrf.mxu0  ;;  %v4482_v58 = vadd.f32 %v4459_v12, %v4376_v48 }
 0x45b   : > { %v4356_v62 = vpop.f32.mrf.mxu1 }
 0x45c   : > { %v4674_v44 = vpop.f32.mrf.mxu0  ;;  %v4377_v7 = vadd.f32 %v4356_v62, %v4271_v18 }
 0x45d   : > { %v9446_v49 = vpop.f32.mrf.mxu1 }
 0x45e   : > { %v9500_v16 = vpop.f32.mrf.mxu0  ;;  %v4483_v6 = vadd.f32 %v4462_v52, %v4377_v7 }
 0x45f   : > { %v4361_v39 = vpop.f32.mrf.mxu1 }
 0x460   : > { %v4679_v0 = vpop.f32.mrf.mxu0  ;;  %v4378_v13 = vadd.f32 %v4361_v39, %v4272_v9 }
 0x461   : > { %v9449_v45 = vpop.f32.mrf.mxu1 }
 0x462   : > { %v9503_v11 = vpop.f32.mrf.mxu0  ;;  %v4484_v42 = vadd.f32 %v4467_v28, %v4378_v13  ;;  %v4775_v13 = vsel %vm2641_vm7, 4294967295, %v9991_v25  ;;  %v9858_v25 = vld [vmem:[%s13300_s10 + $0x8] sm:$0xff]  }
 0x463   : > { %v4364_v15 = vpop.f32.mrf.mxu1  ;;  %v12007_v11 = vsel %vm1891_vm5, %v4775_v13, 0 }
 0x464   : > { %v4682_v33 = vpop.f32.mrf.mxu0  ;;  %v4379_v21 = vadd.f32 %v4364_v15, %v4273_v56 }
 0x465   : > { %v9450_v23 = vpop.f32.mrf.mxu1 }
 0x466   : > { %v9504_v10 = vpop.f32.mrf.mxu0  ;;  %v4485_v41 = vadd.f32 %v4470_v35, %v4379_v21  ;;  %v9860_v23 = vld [vmem:[%s13300_s10 + $0x18] sm:$0xff]  }
 0x467   : > { %v4369_v63 = vpop.f32.mrf.mxu1  ;;  %v9861_v10 = vld [vmem:[%s13300_s10 + $0x20] sm:$0x3f]  }
 0x468   : > { %v4687_v27 = vpop.f32.mrf.mxu0  ;;  %v4380_v40 = vadd.f32 %v4369_v63, %v4274_v61  ;;  %v9862_v63 = vld [vmem:[%s13293_s3 + $0x8] sm:$0xff]  }
 0x469   : > { %v9453_v20 = vpop.f32.mrf.mxu1  ;;  %9536 = vmatpush3.bf16.msra.mxu0 %v9862_v63 }
 0x46a   : > { %v9507_v31 = vpop.f32.mrf.mxu0  ;;  %v4486_v56 = vadd.f32 %v11995_v8, %v4380_v40  ;;  %9549 = vmatprep.subr.bf16.mxu0 %v9992_v5 }
 0x46b   : > { %v4372_v12 = vpop.f32.mrf.mxu1 }
 0x46c   : > { %v4690_v55 = vpop.f32.mrf.mxu0  ;;  %v4381_v37 = vadd.f32 %v4372_v12, %v4275_v22 }
 0x46d   : > { %v9454_v60 = vpop.f32.mrf.mxu1 }
 0x46e   : > { %v9508_v4 = vpop.f32.mrf.mxu0  ;;  %v4487_v61 = vadd.f32 %v11997_v2, %v4381_v37  ;;  %v9857_v2 = vld [vmem:[%s13300_s10] sm:$0xff]  }
 0x46f   : > { %v4565_v53 = vpop.f32.mrf.mxu1 }
 0x470   : > { %v4588_v54 = vadd.f32 %v4565_v53, %v4482_v58 }
 0x471   : > { %v9481_v52 = vpop.f32.mrf.mxu1 }
 0x472   : > { %v4694_v32 = vadd.f32 %v4671_v50, %v4588_v54 }
 0x473   : > { %v4568_v34 = vpop.f32.mrf.mxu1 }
 0x474   : > { %v4589_v18 = vadd.f32 %v4568_v34, %v4483_v6  ;;  %v4707_v43 = vadd.f32 %v8944_v30, %v4694_v32 }
 0x475   : > { %v9482_v28 = vpop.f32.mrf.mxu1 }
 0x476   : > { %v4695_v17 = vadd.f32 %v4674_v44, %v4589_v18  ;;  %v4713_v47 = vmax.f32 %v4707_v43, 0.0  ;;  %v9864_v43 = vld [vmem:[%s13293_s3] sm:$0xff]  }
 0x477   : > { %v4573_v36 = vpop.f32.mrf.mxu1 }
 0x478   : > { %v4708_v9 = vadd.f32 %v8944_v30, %v4695_v17  ;;  %v4590_v24 = vadd.f32 %v4573_v36, %v4484_v42  ;;  %v9865_v17 = vld [vmem:[%s13293_s3 + $0x20] sm:$0xff]  }
 0x479   : > { %v9485_v46 = vpop.f32.mrf.mxu1 }
 0x47a   : > { %v4714_v59 = vmax.f32 %v4708_v9, 0.0  ;;  %v4696_v51 = vadd.f32 %v4679_v0, %v4590_v24 }
 0x47b   : > { %v4576_v29 = vpop.f32.mrf.mxu1 }
 0x47c   : > { %v4729_v19 = vpack.c.bf16 %v4714_v59, %v4713_v47  ;;  %v4591_v3 = vadd.f32 %v4576_v29, %v4485_v41  ;;  %v4709_v26 = vadd.f32 %v8944_v30, %v4696_v51 }
 0x47d   : > { %v9486_v57 = vpop.f32.mrf.mxu1 }
 0x47e   : > { %v4697_v50 = vadd.f32 %v4682_v33, %v4591_v3  ;;  %v4715_v62 = vmax.f32 %v4709_v26, 0.0  ;;  %v9859_v33 = vld [vmem:[%s13300_s10 + $0x10] sm:$0xff]  }
 0x47f   : > { %v4581_v48 = vpop.f32.mrf.mxu1 }
 0x480   : > { %v4710_v38 = vadd.f32 %v8944_v30, %v4697_v50  ;;  %v4592_v14 = vadd.f32 %v4581_v48, %v4486_v56 }
 0x481   : > { %v9489_v58 = vpop.f32.mrf.mxu1 }
 0x482   : > { %v4716_v44 = vmax.f32 %v4710_v38, 0.0  ;;  %v4698_v35 = vadd.f32 %v4687_v27, %v4592_v14  ;;  %v9863_v27 = vld [vmem:[%s13293_s3 + $0x10] sm:$0xff]  }
 0x483   : > { %v4584_v7 = vpop.f32.mrf.mxu1 }
 0x484   : > { %v4730_v49 = vpack.c.bf16 %v4716_v44, %v4715_v62  ;;  %v4593_v16 = vadd.f32 %v4584_v7, %v4487_v61  ;;  %v4711_v39 = vadd.f32 %v8944_v30, %v4698_v35 }
 0x485   : > { %v9490_v6 = vpop.f32.mrf.mxu1 }
 0x486   : > { %v4699_v0 = vadd.f32 %v4690_v55, %v4593_v16  ;;  %v4717_v8 = vmax.f32 %v4711_v39, 0.0  ;;  %v9866_v39 = vld [vmem:[%s13293_s3 + $0x18] sm:$0xff]  }
 0x488   : > { %v4712_v22 = vadd.f32 %v8944_v30, %v4699_v0  ;;  %v9867_v0 = vld [vmem:[%s13293_s3 + $0x30] sm:$0xff]  }
 0x48a   : > { %v4718_v45 = vmax.f32 %v4712_v22, 0.0 }
 0x48c   : > { %v4731_v42 = vpack.c.bf16 %v4718_v45, %v4717_v8 }
 0x48e   : > { %v4778_v15 = vand.u32 %v12007_v11, %v4731_v42 }
 0x490   : > { %9510 = vmatpush3.bf16.msra.mxu1 %v4778_v15 }
 0x491   : > { %9511 = vmatprep.subr.bf16.mxu1 %v9992_v5 }
 0x494   : > { %9512 = vmatpush3.bf16.msra.mxu1 %v4730_v49 }
 0x495   : > { %9513 = vmatprep.subr.bf16.mxu1 %v9992_v5 }
 0x498   : > { %9514 = vmatpush3.bf16.msra.mxu1 %v4729_v19 }
 0x499   : > { %9563 = vmatprep.subr.bf16.mxu1 %v9992_v5 }
 0x49b   : > { %9516 = vmatmul.mubr.msk.bf16.vlgmr.msra.gmra.mxu1 %vm4757_vm14, %v9857_v2 }
 0x49c   : > { %9519 = vmatprep.mubr.msk.bf16.mxu1 %vm9993_vm11, %v9992_v5  ;;  %9564 = vmatpush3.bf16.msra.mxu1 %v9863_v27 }
 0x49d   : > { %9591 = vmatprep.subr.bf16.mxu1 %v9992_v5 }
 0x4a3   : > { %9520 = vmatmul.mubr.msk.bf16.gmra.mxu1 %vm4757_vm14, %v9858_v25 }
 0x4a4   : > { %9523 = vmatprep.mubr.msk.bf16.mxu1 %vm9993_vm11, %v9992_v5 }
 0x4ab   : > { %9524 = vmatmul.mubr.msk.bf16.gmra.mxu1 %vm4757_vm14, %v9859_v33 }
 0x4ac   : > { %9527 = vmatprep.mubr.msk.bf16.mxu1 %vm9993_vm11, %v9992_v5 }
 0x4b3   : > { %9528 = vmatmul.mubr.msk.bf16.gmra.mxu1 %vm4757_vm14, %v9860_v23 }
 0x4b4   : > { %9531 = vmatprep.mubr.msk.bf16.mxu1 %vm9993_vm11, %v9992_v5 }
 0x4bb   : > { %9532 = vmatmul.mubr.msk.bf16.gmra.mxu1 %vm4757_vm14, %v9861_v10 }
 0x4bc   : > { %9565 = vmatprep.mubr.msk.bf16.mxu1 %vm9993_vm11, %v9992_v5 }
 0x55b   : > { %v4814_v20 = vpop.f32.mrf.mxu1 }
 0x55c   : > { %4854 = vst.msk [vmem:[#allocation3] sm:$0xff] %vm4853_vm15, %v4814_v20 }
 0x55d   : > { %v9517_v31 = vpop.f32.mrf.mxu1 }
 0x55e   : > { %v9868_v31 = vld [vmem:[%s13293_s3 + $0x28] sm:$0xff]  }
 0x55f   : > { %v4817_v12 = vpop.f32.mrf.mxu1 }
 0x560   : > { %4855 = vst.msk [vmem:[#allocation3 + $0x8] sm:$0xff] %vm4853_vm15, %v4817_v12  ;;  %v9869_v12 = vld [vmem:[%s13293_s3 + $0x40] sm:$0xff]  }
 0x561   : > { %v9518_v55 = vpop.f32.mrf.mxu1 }
 0x563   : > { %v4822_v60 = vpop.f32.mrf.mxu1  ;;  %v4865_v7 = vld [vmem:[#allocation3] sm:$0xff] }
 0x564   : > { %4856 = vst.msk [vmem:[#allocation3 + $0x10] sm:$0xff] %vm4853_vm15, %v4822_v60 }
 0x565   : > { %v9521_v4 = vpop.f32.mrf.mxu1 }
 0x567   : > { %v4825_v53 = vpop.f32.mrf.mxu1  ;;  %v4876_v52 = vld [vmem:[#allocation3 + $0x1] sm:$0xff] }
 0x568   : > { %4857 = vst.msk [vmem:[#allocation3 + $0x18] sm:$0xff] %vm4853_vm15, %v4825_v53  ;;  %v5032_v34 = vld [vmem:[#allocation3 + $0x2] sm:$0xff] }
 0x569   : > { %v9522_v54 = vpop.f32.mrf.mxu1  ;;  %v4866_v44 = vld [vmem:[#allocation3 + $0x8] sm:$0xff] }
 0x56a   : > { %v4871_v16 = vpack.c.bf16 %v4866_v44, %v4865_v7 }
 0x56b   : > { %v4830_v32 = vpop.f32.mrf.mxu1  ;;  %v4877_v30 = vld [vmem:[#allocation3 + $0x9] sm:$0xff] }
 0x56c   : > { %v5033_v18 = vld [vmem:[#allocation3 + $0xa] sm:$0xff]  ;;  %4858 = vst.msk [vmem:[#allocation3 + $0x20] sm:$0xff] %vm4853_vm15, %v4830_v32  ;;  %v4882_v21 = vpack.c.bf16 %v4877_v30, %v4876_v52 }
 0x56d   : > { %v5038_v28 = vpack.c.bf16 %v5033_v18, %v5032_v34  ;;  %v9525_v36 = vpop.f32.mrf.mxu1  ;;  %v5212_v49 = vld [vmem:[#allocation3 + $0x10] sm:$0xff] }
 0x56e   : > { %9538 = vmatmul.mubr.msk.bf16.vlgmr.msra.gmra.mxu0 %vm4853_vm15, %v4882_v21  ;;  %v5122_v10 = vld [vmem:[#allocation3 + $0xf] sm:$0xff] }
 0x56f   : > { %9566 = vmatmul.mubr.msk.bf16.vlgmr.msra.gmra.mxu1 %vm4853_vm15, %v5038_v28  ;;  %v4833_v9 = vpop.f32.mrf.mxu1  ;;  %9541 = vmatprep.mubr.msk.bf16.mxu0 %vm9993_vm11, %v9992_v5  ;;  %v4878_v46 = vld [vmem:[#allocation3 + $0x11] sm:$0xff] }
 0x570   : > { %9569 = vmatprep.mubr.msk.bf16.mxu1 %vm9993_vm11, %v9992_v5  ;;  %4859 = vst.msk [vmem:[#allocation3 + $0x28] sm:$0xff] %vm4853_vm15, %v4833_v9  ;;  %9550 = vmatpush3.bf16.msra.mxu0 %v9864_v43  ;;  %v5034_v40 = vld [vmem:[#allocation3 + $0x12] sm:$0xff]  ;;  %v9870_v43 = vld [vmem:[%s13293_s3 + $0x38] sm:$0xff]  }
 0x571   : > { %9592 = vmatpush3.bf16.msra.mxu1 %v9865_v17  ;;  %v9526_v24 = vpop.f32.mrf.mxu1  ;;  %9577 = vmatprep.subr.bf16.mxu0 %v9992_v5  ;;  %v5213_v35 = vld [vmem:[#allocation3 + $0x18] sm:$0xff] }
 0x572   : > { %9619 = vmatprep.subr.bf16.mxu1 %v9992_v5  ;;  %v5218_v6 = vpack.c.bf16 %v5213_v35, %v5212_v49  ;;  %v5123_v33 = vld [vmem:[#allocation3 + $0x17] sm:$0xff] }
 0x573   : > { %v4879_v41 = vld [vmem:[#allocation3 + $0x19] sm:$0xff]  ;;  %v4838_v59 = vpop.f32.mrf.mxu1  ;;  %v5128_v27 = vpack.c.bf16 %v5123_v33, %v5122_v10 }
 0x574   : > { %v5035_v47 = vld [vmem:[#allocation3 + $0x1a] sm:$0xff]  ;;  %v12071_v51 = vpack.c.bf16 %v4879_v41, %v4878_v46  ;;  %4860 = vst.msk [vmem:[#allocation3 + $0x30] sm:$0xff] %vm4853_vm15, %v4838_v59 }
 0x575   : > { %v5039_v29 = vpack.c.bf16 %v5035_v47, %v5034_v40  ;;  %v9529_v19 = vpop.f32.mrf.mxu1  ;;  %v5214_v13 = vld [vmem:[#allocation3 + $0x20] sm:$0xff] }
 0x576   : > { %9542 = vmatmul.mubr.msk.bf16.gmra.mxu0 %vm4853_vm15, %v12071_v51  ;;  %v5392_v63 = vld [vmem:[#allocation3 + $0x1e] sm:$0xff] }
 0x577   : > { %9570 = vmatmul.mubr.msk.bf16.gmra.mxu1 %vm4853_vm15, %v5039_v29  ;;  %9545 = vmatprep.mubr.msk.bf16.mxu0 %vm9993_vm11, %v9992_v5  ;;  %v4841_v3 = vpop.f32.mrf.mxu1  ;;  %v12081_v57 = vld [vmem:[#allocation3 + $0x21] sm:$0xff]  ;;  %v4881_v37 = vld [vmem:[#allocation3 + $0x29] sm:$0x7] }
 0x578   : > { %9573 = vmatprep.mubr.msk.bf16.mxu1 %vm9993_vm11, %v9992_v5  ;;  %4861 = vst.msk [vmem:[#allocation3 + $0x38] sm:$0xff] %vm4853_vm15, %v4841_v3  ;;  %v5036_v26 = vld [vmem:[#allocation3 + $0x22] sm:$0xff]  ;;  %v5037_v50 = vld [vmem:[#allocation3 + $0x2a] sm:$0x7]  ;;  %v4884_v38 = vpack.c.bf16 %v4881_v37, %v12081_v57 }
 0x579   : > { %v9530_v56 = vpop.f32.mrf.mxu1  ;;  %v5040_v14 = vpack.c.bf16 %v5037_v50, %v5036_v26  ;;  %v5215_v22 = vld [vmem:[#allocation3 + $0x28] sm:$0xff]  ;;  %v5124_v4 = vld [vmem:[#allocation3 + $0x1f] sm:$0xff] }
 0x57a   : > { %v5219_v8 = vpack.c.bf16 %v5215_v22, %v5214_v13  ;;  %v4870_v15 = vld [vmem:[#allocation3 + $0x28] sm:$0x7] }
 0x57b   : > { %v4846_v48 = vpop.f32.mrf.mxu1  ;;  %v5216_v45 = vld [vmem:[#allocation3 + $0x30] sm:$0xff]  ;;  %v4873_v25 = vpack.c.bf16 %v4870_v15, %v5214_v13  ;;  %v5393_v23 = vld [vmem:[#allocation3 + $0x26] sm:$0xff] }
 0x57c   : > { %4862 = vst.msk [vmem:[#allocation3 + $0x40] sm:$0xff] %vm4853_vm15, %v4846_v48  ;;  %v5398_v20 = vpack.c.bf16 %v5393_v23, %v5392_v63  ;;  %v5125_v55 = vld [vmem:[#allocation3 + $0x27] sm:$0xff]  ;;  %v5126_v18 = vld [vmem:[#allocation3 + $0x2f] sm:$0xff] }
 0x57d   : > { %v9533_v58 = vpop.f32.mrf.mxu1  ;;  %v5394_v53 = vld [vmem:[#allocation3 + $0x2e] sm:$0xff]  ;;  %v5129_v54 = vpack.c.bf16 %v5125_v55, %v5124_v4 }
 0x57e   : > { %9546 = vmatmul.mubr.msk.bf16.gmra.mxu0 %vm4853_vm15, %v4884_v38  ;;  %v5305_v17 = vld [vmem:[#allocation3 + $0x29] sm:$0xff] }
 0x57f   : > { %9574 = vmatmul.mubr.msk.bf16.gmra.mxu1 %vm4853_vm15, %v5040_v14  ;;  %9551 = vmatprep.mubr.msk.bf16.mxu0 %vm9993_vm11, %v9992_v5  ;;  %v4849_v62 = vpop.f32.mrf.mxu1  ;;  %v5217_v42 = vld [vmem:[#allocation3 + $0x38] sm:$0x7]  ;;  %v5309_v9 = vpack.c.bf16 %v5305_v17, %v12081_v57 }
 0x580   : > { %9593 = vmatprep.mubr.msk.bf16.mxu1 %vm9993_vm11, %v9992_v5  ;;  %4864 = vst.msk [vmem:[#allocation3 + $0x48] sm:$0x7] %vm4863_vm1, %v4849_v62  ;;  %v5220_v2 = vpack.c.bf16 %v5217_v42, %v5216_v45  ;;  %v5395_v60 = vld [vmem:[#allocation3 + $0x36] sm:$0xff] }
 0x581   : > { %v9534_v61 = vpop.f32.mrf.mxu1  ;;  %v5399_v52 = vpack.c.bf16 %v5395_v60, %v5394_v53  ;;  %v5127_v32 = vld [vmem:[#allocation3 + $0x37] sm:$0x7] }
 0x582   : > { %v5130_v21 = vpack.c.bf16 %v5127_v32, %v5126_v18  ;;  %v5575_v36 = vld [vmem:[#allocation3 + $0x38] sm:$0xff] }
 0x583   : > { %v5396_v30 = vld [vmem:[#allocation3 + $0x3e] sm:$0xff]  ;;  %v5579_v24 = vpack.c.bf16 %v5575_v36, %v5216_v45  ;;  %v5306_v46 = vld [vmem:[#allocation3 + $0x31] sm:$0xff]  ;;  %v5307_v41 = vld [vmem:[#allocation3 + $0x39] sm:$0x7] }
 0x584   : > { %v5576_v40 = vld [vmem:[#allocation3 + $0x40] sm:$0xff]  ;;  %v5310_v59 = vpack.c.bf16 %v5307_v41, %v5306_v46  ;;  %v5485_v29 = vld [vmem:[#allocation3 + $0x37] sm:$0xff] }
 0x585   : > { %v5489_v19 = vpack.c.bf16 %v5485_v29, %v5126_v18  ;;  %v5486_v3 = vld [vmem:[#allocation3 + $0x3f] sm:$0xff] }
 0x586   : > { %9552 = vmatmul.mubr.msk.bf16.vlgmr.msra.gmra.mxu0 %vm4853_vm15, %v4871_v16 }
 0x587   : > { %9594 = vmatmul.mubr.msk.bf16.vlgmr.msra.gmra.mxu1 %vm4853_vm15, %v5218_v6  ;;  %9555 = vmatprep.mubr.msk.bf16.mxu0 %vm9993_vm11, %v9992_v5  ;;  %v5397_v34 = vld [vmem:[#allocation3 + $0x46] sm:$0x7] }
 0x588   : > { %9597 = vmatprep.mubr.msk.bf16.mxu1 %vm9993_vm11, %v9992_v5  ;;  %9578 = vmatpush3.bf16.msra.mxu0 %v9866_v39  ;;  %v5400_v28 = vpack.c.bf16 %v5397_v34, %v5396_v30  ;;  %v5577_v47 = vld [vmem:[#allocation3 + $0x48] sm:$0x7] }
 0x589   : > { %9620 = vmatpush3.bf16.msra.mxu1 %v9867_v0  ;;  %9605 = vmatprep.subr.bf16.mxu0 %v9992_v5  ;;  %v5487_v57 = vld [vmem:[#allocation3 + $0x47] sm:$0x7] }
 0x58a   : > { %9647 = vmatprep.subr.bf16.mxu1 %v9992_v5  ;;  %v5490_v37 = vpack.c.bf16 %v5487_v57, %v5486_v3 }
 0x58e   : > { %9556 = vmatmul.mubr.msk.bf16.gmra.mxu0 %vm4853_vm15, %v5218_v6 }
 0x58f   : > { %9598 = vmatmul.mubr.msk.bf16.gmra.mxu1 %vm4853_vm15, %v5219_v8  ;;  %9559 = vmatprep.mubr.msk.bf16.mxu0 %vm9993_vm11, %v9992_v5 }
 0x590   : > { %9601 = vmatprep.mubr.msk.bf16.mxu1 %vm9993_vm11, %v9992_v5 }
 0x596   : > { %9560 = vmatmul.mubr.msk.bf16.gmra.mxu0 %vm4853_vm15, %v4873_v25 }
 0x597   : > { %9602 = vmatmul.mubr.msk.bf16.gmra.mxu1 %vm4853_vm15, %v5220_v2  ;;  %9579 = vmatprep.mubr.msk.bf16.mxu0 %vm9993_vm11, %v9992_v5 }
 0x598   : > { %9621 = vmatprep.mubr.msk.bf16.mxu1 %vm9993_vm11, %v9992_v5 }
 0x59e   : > { %9580 = vmatmul.mubr.msk.bf16.vlgmr.msra.gmra.mxu0 %vm4853_vm15, %v5128_v27 }
 0x59f   : > { %9622 = vmatmul.mubr.msk.bf16.vlgmr.msra.gmra.mxu1 %vm4853_vm15, %v5398_v20  ;;  %9583 = vmatprep.mubr.msk.bf16.mxu0 %vm9993_vm11, %v9992_v5 }
 0x5a0   : > { %9625 = vmatprep.mubr.msk.bf16.mxu1 %vm9993_vm11, %v9992_v5  ;;  %9606 = vmatpush3.bf16.msra.mxu0 %v9868_v31 }
 0x5a1   : > { %9648 = vmatpush3.bf16.msra.mxu1 %v9869_v12  ;;  %9633 = vmatprep.subr.bf16.mxu0 %v9992_v5 }
 0x5a6   : > { %9584 = vmatmul.mubr.msk.bf16.gmra.mxu0 %vm4853_vm15, %v5129_v54 }
 0x5a7   : > { %9626 = vmatmul.mubr.msk.bf16.gmra.mxu1 %vm4853_vm15, %v5399_v52  ;;  %9587 = vmatprep.mubr.msk.bf16.mxu0 %vm9993_vm11, %v9992_v5 }
 0x5a8   : > { %9629 = vmatprep.mubr.msk.bf16.mxu1 %vm9993_vm11, %v9992_v5 }
 0x5ae   : > { %9588 = vmatmul.mubr.msk.bf16.gmra.mxu0 %vm4853_vm15, %v5130_v21 }
 0x5af   : > { %9630 = vmatmul.mubr.msk.bf16.gmra.mxu1 %vm4853_vm15, %v5400_v28  ;;  %9607 = vmatprep.mubr.msk.bf16.mxu0 %vm9993_vm11, %v9992_v5 }
 0x5b0   : > { %9649 = vmatprep.mubr.msk.bf16.mxu1 %vm9993_vm11, %v9992_v5 }
 0x5b6   : > { %9608 = vmatmul.mubr.msk.bf16.vlgmr.msra.gmra.mxu0 %vm4853_vm15, %v12071_v51  ;;  %v5580_v51 = vpack.c.bf16 %v5577_v47, %v5576_v40 }
 0x5b7   : > { %9650 = vmatmul.mubr.msk.bf16.vlgmr.msra.gmra.mxu1 %vm4853_vm15, %v5219_v8  ;;  %9611 = vmatprep.mubr.msk.bf16.mxu0 %vm9993_vm11, %v9992_v5 }
 0x5b8   : > { %9653 = vmatprep.mubr.msk.bf16.mxu1 %vm9993_vm11, %v9992_v5  ;;  %9634 = vmatpush3.bf16.msra.mxu0 %v9870_v43 }
 0x5be   : > { %9612 = vmatmul.mubr.msk.bf16.gmra.mxu0 %vm4853_vm15, %v5309_v9 }
 0x5bf   : > { %9654 = vmatmul.mubr.msk.bf16.gmra.mxu1 %vm4853_vm15, %v5579_v24  ;;  %9615 = vmatprep.mubr.msk.bf16.mxu0 %vm9993_vm11, %v9992_v5 }
 0x5c0   : > { %9657 = vmatprep.mubr.msk.bf16.mxu1 %vm9993_vm11, %v9992_v5 }
 0x5c6   : > { %9616 = vmatmul.mubr.msk.bf16.gmra.mxu0 %vm4853_vm15, %v5310_v59 }
 0x5c7   : > { %9658 = vmatmul.mubr.msk.bf16.gmra.mxu1 %vm4853_vm15, %v5580_v51  ;;  %9635 = vmatprep.mubr.msk.bf16.mxu0 %vm9993_vm11, %v9992_v5 }
 0x5c8   : > { %6160 = vmatprep.mubr.bf16.mxu1 %v9990_v1 }
 0x5ce   : > { %9636 = vmatmul.mubr.msk.bf16.vlgmr.msra.gmra.mxu0 %vm4853_vm15, %v5129_v54 }
 0x5cf   : > { %9639 = vmatprep.mubr.msk.bf16.mxu0 %vm9993_vm11, %v9992_v5 }
 0x5d6   : > { %9640 = vmatmul.mubr.msk.bf16.gmra.mxu0 %vm4853_vm15, %v5489_v19 }
 0x5d7   : > { %9643 = vmatprep.mubr.msk.bf16.mxu0 %vm9993_vm11, %v9992_v5  ;;  %v9871_v5 = vld [vmem:[%s13301_s11] sm:$0xff]  }
 0x5de   : > { %9644 = vmatmul.mubr.msk.bf16.gmra.mxu0 %vm4853_vm15, %v5490_v37 }
 0x5df   : > { %9667 = vmatprep.mubr.msk.bf16.mxu0 %vm4757_vm14, %v9871_v5 }
 0x62e   : > { %v4937_v26 = vpop.f32.mrf.mxu0 }
 0x62f   : > { %v5093_v50 = vpop.f32.mrf.mxu1 }
 0x630   : > { %v9539_v56 = vpop.f32.mrf.mxu0 }
 0x631   : > { %v9567_v48 = vpop.f32.mrf.mxu1 }
 0x632   : > { %v4940_v38 = vpop.f32.mrf.mxu0 }
 0x633   : > { %v5096_v14 = vpop.f32.mrf.mxu1 }
 0x634   : > { %v9540_v58 = vpop.f32.mrf.mxu0 }
 0x635   : > { %v9568_v62 = vpop.f32.mrf.mxu1 }
 0x636   : > { %v4945_v44 = vpop.f32.mrf.mxu0 }
 0x637   : > { %v5101_v35 = vpop.f32.mrf.mxu1 }
 0x638   : > { %v9543_v61 = vpop.f32.mrf.mxu0 }
 0x639   : > { %v9571_v7 = vpop.f32.mrf.mxu1 }
 0x63a   : > { %v4948_v49 = vpop.f32.mrf.mxu0 }
 0x63b   : > { %v5104_v16 = vpop.f32.mrf.mxu1 }
 0x63c   : > { %v9544_v6 = vpop.f32.mrf.mxu0 }
 0x63d   : > { %v9572_v39 = vpop.f32.mrf.mxu1 }
 0x63e   : > { %v4953_v0 = vpop.f32.mrf.mxu0 }
 0x63f   : > { %v5109_v22 = vpop.f32.mrf.mxu1 }
 0x640   : > { %v9547_v13 = vpop.f32.mrf.mxu0 }
 0x641   : > { %v9575_v8 = vpop.f32.mrf.mxu1 }
 0x642   : > { %v4956_v45 = vpop.f32.mrf.mxu0 }
 0x643   : > { %v5112_v42 = vpop.f32.mrf.mxu1 }
 0x644   : > { %v9548_v15 = vpop.f32.mrf.mxu0 }
 0x645   : > { %v9576_v2 = vpop.f32.mrf.mxu1 }
 0x646   : > { %v5009_v25 = vpop.f32.mrf.mxu0 }
 0x647   : > { %v5273_v33 = vpop.f32.mrf.mxu1  ;;  %v5010_v23 = vadd.f32 %v5009_v25, %v4937_v26 }
 0x648   : > { %v9553_v10 = vpop.f32.mrf.mxu0 }
 0x649   : > { %v9595_v63 = vpop.f32.mrf.mxu1  ;;  %v5116_v27 = vadd.f32 %v5093_v50, %v5010_v23 }
 0x64a   : > { %v5012_v20 = vpop.f32.mrf.mxu0 }
 0x64b   : > { %v5276_v31 = vpop.f32.mrf.mxu1  ;;  %v5013_v12 = vadd.f32 %v5012_v20, %v4940_v38 }
 0x64c   : > { %v9554_v55 = vpop.f32.mrf.mxu0 }
 0x64d   : > { %v9596_v60 = vpop.f32.mrf.mxu1  ;;  %v5117_v4 = vadd.f32 %v5096_v14, %v5013_v12 }
 0x64e   : > { %v5017_v53 = vpop.f32.mrf.mxu0 }
 0x64f   : > { %v5281_v54 = vpop.f32.mrf.mxu1  ;;  %v5018_v52 = vadd.f32 %v5017_v53, %v4945_v44 }
 0x650   : > { %v9557_v32 = vpop.f32.mrf.mxu0 }
 0x651   : > { %v9599_v30 = vpop.f32.mrf.mxu1  ;;  %v5118_v34 = vadd.f32 %v5101_v35, %v5018_v52 }
 0x652   : > { %v5020_v18 = vpop.f32.mrf.mxu0 }
 0x653   : > { %v5284_v21 = vpop.f32.mrf.mxu1  ;;  %v5021_v28 = vadd.f32 %v5020_v18, %v4948_v49 }
 0x654   : > { %v9558_v43 = vpop.f32.mrf.mxu0 }
 0x655   : > { %v9600_v17 = vpop.f32.mrf.mxu1  ;;  %v5119_v36 = vadd.f32 %v5104_v16, %v5021_v28 }
 0x656   : > { %v5025_v9 = vpop.f32.mrf.mxu0 }
 0x657   : > { %v5289_v24 = vpop.f32.mrf.mxu1  ;;  %v5026_v46 = vadd.f32 %v5025_v9, %v4953_v0 }
 0x658   : > { %v9561_v41 = vpop.f32.mrf.mxu0 }
 0x659   : > { %v9603_v40 = vpop.f32.mrf.mxu1  ;;  %v5120_v47 = vadd.f32 %v5109_v22, %v5026_v46 }
 0x65a   : > { %v5028_v59 = vpop.f32.mrf.mxu0 }
 0x65b   : > { %v5292_v51 = vpop.f32.mrf.mxu1  ;;  %v5029_v29 = vadd.f32 %v5028_v59, %v4956_v45 }
 0x65c   : > { %v9562_v19 = vpop.f32.mrf.mxu0 }
 0x65d   : > { %v9604_v3 = vpop.f32.mrf.mxu1  ;;  %v5121_v57 = vadd.f32 %v5112_v42, %v5029_v29 }
 0x65e   : > { %v5183_v37 = vpop.f32.mrf.mxu0 }
 0x65f   : > { %v5453_v26 = vpop.f32.mrf.mxu1  ;;  %v5206_v50 = vadd.f32 %v5183_v37, %v5116_v27 }
 0x660   : > { %v9581_v56 = vpop.f32.mrf.mxu0 }
 0x661   : > { %v9623_v48 = vpop.f32.mrf.mxu1  ;;  %v5296_v38 = vadd.f32 %v5273_v33, %v5206_v50 }
 0x662   : > { %v5186_v14 = vpop.f32.mrf.mxu0 }
 0x663   : > { %v5456_v58 = vpop.f32.mrf.mxu1  ;;  %v5207_v62 = vadd.f32 %v5186_v14, %v5117_v4 }
 0x664   : > { %v9582_v44 = vpop.f32.mrf.mxu0 }
 0x665   : > { %v9624_v35 = vpop.f32.mrf.mxu1  ;;  %v5297_v61 = vadd.f32 %v5276_v31, %v5207_v62 }
 0x666   : > { %v5191_v7 = vpop.f32.mrf.mxu0 }
 0x667   : > { %v12176_v5 = vpop.f32.mrf.mxu1  ;;  %v5208_v49 = vadd.f32 %v5191_v7, %v5118_v34 }
 0x668   : > { %v9585_v16 = vpop.f32.mrf.mxu0 }
 0x669   : > { %v9627_v6 = vpop.f32.mrf.mxu1  ;;  %v5298_v39 = vadd.f32 %v5281_v54, %v5208_v49 }
 0x66a   : > { %v5194_v0 = vpop.f32.mrf.mxu0 }
 0x66b   : > { %v5464_v22 = vpop.f32.mrf.mxu1  ;;  %v5209_v13 = vadd.f32 %v5194_v0, %v5119_v36 }
 0x66c   : > { %v9586_v8 = vpop.f32.mrf.mxu0 }
 0x66d   : > { %v9628_v45 = vpop.f32.mrf.mxu1  ;;  %v5299_v42 = vadd.f32 %v5284_v21, %v5209_v13 }
 0x66e   : > { %v5199_v15 = vpop.f32.mrf.mxu0 }
 0x66f   : > { %v12178_v2 = vpop.f32.mrf.mxu1  ;;  %v5210_v25 = vadd.f32 %v5199_v15, %v5120_v47 }
 0x670   : > { %v9589_v33 = vpop.f32.mrf.mxu0 }
 0x671   : > { %v9631_v23 = vpop.f32.mrf.mxu1  ;;  %v5300_v10 = vadd.f32 %v5289_v24, %v5210_v25 }
 0x672   : > { %v5202_v63 = vpop.f32.mrf.mxu0 }
 0x673   : > { %v12180_v27 = vpop.f32.mrf.mxu1  ;;  %v5211_v20 = vadd.f32 %v5202_v63, %v5121_v57 }
 0x674   : > { %v9590_v31 = vpop.f32.mrf.mxu0 }
 0x675   : > { %v9632_v12 = vpop.f32.mrf.mxu1  ;;  %v5301_v55 = vadd.f32 %v5292_v51, %v5211_v20 }
 0x676   : > { %v5363_v60 = vpop.f32.mrf.mxu0 }
 0x677   : > { %v5633_v4 = vpop.f32.mrf.mxu1  ;;  %v5386_v53 = vadd.f32 %v5363_v60, %v5296_v38 }
 0x678   : > { %v9609_v54 = vpop.f32.mrf.mxu0 }
 0x679   : > { %v9651_v52 = vpop.f32.mrf.mxu1  ;;  %v5476_v32 = vadd.f32 %v5453_v26, %v5386_v53 }
 0x67a   : > { %v5366_v30 = vpop.f32.mrf.mxu0 }
 0x67b   : > { %v5636_v34 = vpop.f32.mrf.mxu1  ;;  %v5387_v18 = vadd.f32 %v5366_v30, %v5297_v61 }
 0x67c   : > { %v9610_v21 = vpop.f32.mrf.mxu0 }
 0x67d   : > { %v9652_v28 = vpop.f32.mrf.mxu1  ;;  %v5477_v43 = vadd.f32 %v5456_v58, %v5387_v18  ;;  %v9007_v58 = vld [vmem:[%s13297_s7] ss:$0 sm:$0xff] }
 0x67e   : > { %v5371_v17 = vpop.f32.mrf.mxu0 }
 0x67f   : > { %v5641_v36 = vpop.f32.mrf.mxu1  ;;  %v5388_v38 = vadd.f32 %v5371_v17, %v5298_v39 }
 0x680   : > { %v9613_v9 = vpop.f32.mrf.mxu0 }
 0x681   : > { %v9655_v24 = vpop.f32.mrf.mxu1  ;;  %v5478_v16 = vadd.f32 %v12176_v5, %v5388_v38  ;;  %v9893_v38 = vld [vmem:[%s13294_s4 + $0x44] ss:$8 sps:$4 sm:$0xff]  }
 0x682   : > { %v5374_v46 = vpop.f32.mrf.mxu0 }
 0x683   : > { %v5644_v41 = vpop.f32.mrf.mxu1  ;;  %v5389_v35 = vadd.f32 %v5374_v46, %v5299_v42  ;;  %v9873_v46 = vld [vmem:[%s13301_s11 + $0x10] sm:$0xff]  }
 0x684   : > { %v9614_v40 = vpop.f32.mrf.mxu0 }
 0x685   : > { %v9656_v47 = vpop.f32.mrf.mxu1  ;;  %v5479_v45 = vadd.f32 %v5464_v22, %v5389_v35  ;;  %v9876_v40 = vld [vmem:[%s13301_s11 + $0x28] sm:$0xff]  }
 0x686   : > { %v5379_v59 = vpop.f32.mrf.mxu0  ;;  %v9877_v47 = vld [vmem:[%s13301_s11 + $0x30] sm:$0xff]   ;;  %v9902_v35 = vld [vmem:[%s13294_s4 + $0x4] ss:$8 sps:$4 sm:$0xff]  }
 0x687   : > { %v5649_v51 = vpop.f32.mrf.mxu1  ;;  %v5390_v15 = vadd.f32 %v5379_v59, %v5300_v10  ;;  %v9878_v59 = vld [vmem:[%s13301_s11 + $0x38] sm:$0xff]  }
 0x688   : > { %v9617_v29 = vpop.f32.mrf.mxu0 }
 0x689   : > { %v9659_v19 = vpop.f32.mrf.mxu1  ;;  %v9880_v29 = vld [vmem:[%s13301_s11 + $0x48] sm:$0xff]  }
 0x68a   : > { %v5382_v3 = vpop.f32.mrf.mxu0  ;;  %v9881_v19 = vld [vmem:[%s13301_s11 + $0x50] sm:$0xff]  }
 0x68b   : > { %v5652_v57 = vpop.f32.mrf.mxu1  ;;  %v5391_v12 = vadd.f32 %v5382_v3, %v5301_v55  ;;  %v9882_v3 = vld [vmem:[%s13301_s11 + $0x58] sm:$0xff]  }
 0x68c   : > { %v9618_v37 = vpop.f32.mrf.mxu0 }
 0x68d   : > { %v9660_v26 = vpop.f32.mrf.mxu1  ;;  %v5481_v10 = vadd.f32 %v12180_v27, %v5391_v12  ;;  %v9872_v27 = vld [vmem:[%s13301_s11 + $0x8] sm:$0xff]  }
 0x68e   : > { %v5543_v50 = vpop.f32.mrf.mxu0  ;;  %v9884_v37 = vld [vmem:[%s13301_s11 + $0x68] ss:$0 sps:$4 sm:$0xff]   ;;  %v9885_v26 = vld [vmem:[%s13294_s4 + $0x50] ss:$8 sps:$4 sm:$0xff]  }
 0x68f   : > { %v5566_v56 = vadd.f32 %v5543_v50, %v5476_v32  ;;  %v9887_v50 = vld [vmem:[%s13294_s4 + $0x54] ss:$8 sps:$4 sm:$0xff]  }
 0x690   : > { %v9637_v48 = vpop.f32.mrf.mxu0  ;;  %6138 = vmatprep.subr.bf16.mxu1 %v9887_v50 }
 0x691   : > { %v5656_v14 = vadd.f32 %v5633_v4, %v5566_v56  ;;  %v5480_v4 = vadd.f32 %v12178_v2, %v5390_v15  ;;  %v9888_v56 = vld [vmem:[%s13294_s4 + $0x20] ss:$8 sps:$4 sm:$0xff]   ;;  %v9890_v48 = vld [vmem:[%s13294_s4 + $0x24] ss:$8 sps:$4 sm:$0xff]   ;;  %6139 = vmatpush1.bf16.msra.mxu1 %v9885_v26 }
 0x692   : > { %v5546_v62 = vpop.f32.mrf.mxu0  ;;  %6140 = vmatprep.subr.bf16.mxu1 %v9893_v38 }
 0x693   : > { %v5567_v44 = vadd.f32 %v5546_v62, %v5477_v43  ;;  %v5669_v7 = vadd.f32 %v9007_v58, %v5656_v14  ;;  %v9891_v14 = vld [vmem:[%s13294_s4 + $0x40] ss:$8 sps:$4 sm:$0xff]   ;;  %v9894_v62 = vld [vmem:[%s13294_s4 + $0x10] ss:$8 sps:$4 sm:$0xff]  }
 0x694   : > { %v9638_v61 = vpop.f32.mrf.mxu0 }
 0x695   : > { %v5657_v49 = vadd.f32 %v5636_v34, %v5567_v44  ;;  %v5675_v39 = vmax.f32 %v5669_v7, 0.0  ;;  %v9899_v44 = vld [vmem:[%s13294_s4 + $0x34] ss:$8 sps:$4 sm:$0xff]   ;;  %6141 = vmatpush1.bf16.msra.mxu1 %v9891_v14  ;;  %v9897_v61 = vld [vmem:[%s13294_s4 + $0x30] ss:$8 sps:$4 sm:$0xff]  }
 0x696   : > { %v5551_v6 = vpop.f32.mrf.mxu0  ;;  %6142 = vmatprep.subr.bf16.mxu1 %v9899_v44  ;;  %v9900_v7 = vld [vmem:[%s13294_s4] ss:$8 sps:$4 sm:$0xff]  }
 0x697   : > { %v5670_v0 = vadd.f32 %v9007_v58, %v5657_v49  ;;  %v5568_v13 = vadd.f32 %v5551_v6, %v5478_v16  ;;  %v9905_v49 = vld [vmem:[%s13294_s4 + $0x84] ss:$8 sps:$4 sm:$0xff]   ;;  %v9911_v16 = vld [vmem:[%s13294_s4 + $0xb4] ss:$8 sps:$4 sm:$0xff]  }
 0x698   : > { %v9641_v8 = vpop.f32.mrf.mxu0 }
 0x699   : > { %v5676_v25 = vmax.f32 %v5670_v0, 0.0  ;;  %v5658_v33 = vadd.f32 %v5641_v36, %v5568_v13  ;;  %6143 = vmatpush1.bf16.msra.mxu1 %v9897_v61 }
 0x69a   : > { %v5554_v23 = vpop.f32.mrf.mxu0  ;;  %6561 = vmatprep.subr.bf16.mxu1 %v9905_v49 }
 0x69b   : > { %v5569_v63 = vadd.f32 %v5554_v23, %v5479_v45  ;;  %v5708_v20 = vpack.c.bf16 %v5676_v25, %v5675_v39  ;;  %v5671_v42 = vadd.f32 %v9007_v58, %v5658_v33 }
 0x69c   : > { %v9642_v31 = vpop.f32.mrf.mxu0 }
 0x69d   : > { %v5659_v60 = vadd.f32 %v5644_v41, %v5569_v63  ;;  %v5677_v32 = vmax.f32 %v5671_v42, 0.0  ;;  %v9875_v41 = vld [vmem:[%s13301_s11 + $0x20] sm:$0xff]  }
 0x69e   : > { %v5559_v53 = vpop.f32.mrf.mxu0  ;;  %v9903_v42 = vld [vmem:[%s13294_s4 + $0x80] ss:$8 sps:$4 sm:$0xff]  }
 0x69f   : > { %v5672_v5 = vadd.f32 %v9007_v58, %v5659_v60  ;;  %v5570_v54 = vadd.f32 %v5559_v53, %v5480_v4  ;;  %v9909_v60 = vld [vmem:[%s13294_s4 + $0xb0] ss:$8 sps:$4 sm:$0xff]   ;;  %v9908_v53 = vld [vmem:[%s13294_s4 + $0x74] ss:$8 sps:$4 sm:$0xff]  }
 0x6a0   : > { %v9645_v52 = vpop.f32.mrf.mxu0 }
 0x6a1   : > { %v5678_v30 = vmax.f32 %v5672_v5, 0.0  ;;  %v5660_v22 = vadd.f32 %v5649_v51, %v5570_v54  ;;  %v9879_v51 = vld [vmem:[%s13301_s11 + $0x40] sm:$0xff]   ;;  %v9906_v52 = vld [vmem:[%s13294_s4 + $0x70] ss:$8 sps:$4 sm:$0xff]  }
 0x6a2   : > { %v5562_v34 = vpop.f32.mrf.mxu0  ;;  %v9914_v5 = vld [vmem:[%s13294_s4 + $0xa4] ss:$8 sps:$4 sm:$0xff]  }
 0x6a3   : > { %v5571_v18 = vadd.f32 %v5562_v34, %v5481_v10  ;;  %v5709_v21 = vpack.c.bf16 %v5678_v30, %v5677_v32  ;;  %v5673_v43 = vadd.f32 %v9007_v58, %v5660_v22  ;;  %v9912_v32 = vld [vmem:[%s13294_s4 + $0xa0] ss:$8 sps:$4 sm:$0xff]   ;;  %v9917_v30 = vld [vmem:[%s13294_s4 + $0x64] ss:$8 sps:$4 sm:$0xff]  }
 0x6a4   : > { %v9646_v28 = vpop.f32.mrf.mxu0 }
 0x6a5   : > { %v5661_v17 = vadd.f32 %v5652_v57, %v5571_v18  ;;  %v5679_v36 = vmax.f32 %v5673_v43, 0.0  ;;  %v9883_v57 = vld [vmem:[%s13301_s11 + $0x60] sm:$0xff]   ;;  %v9920_v18 = vld [vmem:[%s13294_s4 + $0x94] ss:$8 sps:$4 sm:$0xff]  }
 0x6a7   : > { %v5674_v55 = vadd.f32 %v9007_v58, %v5661_v17  ;;  %v9896_v58 = vld [vmem:[%s13294_s4 + $0x14] ss:$8 sps:$4 sm:$0xff]  }
 0x6a9   : > { %v5680_v9 = vmax.f32 %v5674_v55, 0.0 }
 0x6ab   : > { %v5710_v24 = vpack.c.bf16 %v5680_v9, %v5679_v36  ;;  %v9915_v36 = vld [vmem:[%s13294_s4 + $0x60] ss:$8 sps:$4 sm:$0xff]   ;;  %v9918_v9 = vld [vmem:[%s13294_s4 + $0x90] ss:$8 sps:$4 sm:$0xff]  }
 0x6ad   : > { %v5822_v2 = vand.u32 %v5710_v24, %v12007_v11  ;;  %v9874_v11 = vld [vmem:[%s13301_s11 + $0x18] sm:$0xff]  }
 0x6af   : > { %9661 = vmatprep.subr.bf16.mxu0 %v5822_v2 }
 0x6b0   : > { %9662 = vmatpush3.bf16.msra.mxu0 %v5822_v2  ;;  %v9923_v2 = vld [vmem:[%s13294_s4 + $0xe4] ss:$8 sps:$4 sm:$0xff]  }
 0x6b1   : > { %9663 = vmatprep.subr.bf16.mxu0 %v5709_v21 }
 0x6b4   : > { %9664 = vmatpush3.bf16.msra.mxu0 %v5709_v21 }
 0x6b5   : > { %9665 = vmatprep.subr.bf16.mxu0 %v5708_v20 }
 0x6b8   : > { %9666 = vmatpush3.bf16.msra.mxu0 %v5708_v20 }
 0x6b9   : > { %6331 = vmatprep.subr.bf16.mxu0 %v9890_v48 }
 0x6bb   : > { %9668 = vmatmul.mubr.msk.bf16.vlgmr.msra.gmra.mxu0 %vm4757_vm14, %v9872_v27 }
 0x6bc   : > { %9671 = vmatprep.mubr.msk.bf16.mxu0 %vm4757_vm14, %v9873_v46  ;;  %6332 = vmatpush1.bf16.msra.mxu0 %v9888_v56 }
 0x6bd   : > { %6333 = vmatprep.subr.bf16.mxu0 %v9896_v58 }
 0x6c0   : > { %6334 = vmatpush1.bf16.msra.mxu0 %v9894_v62 }
 0x6c1   : > { %6335 = vmatprep.subr.bf16.mxu0 %v9902_v35 }
 0x6c3   : > { %9672 = vmatmul.mubr.msk.bf16.gmra.mxu0 %vm4757_vm14, %v9874_v11 }
 0x6c4   : > { %9675 = vmatprep.mubr.msk.bf16.mxu0 %vm4757_vm14, %v9875_v41  ;;  %6336 = vmatpush1.bf16.msra.mxu0 %v9900_v7 }
 0x6c5   : > { %6831 = vmatprep.subr.bf16.mxu0 %v9911_v16 }
 0x6cb   : > { %9676 = vmatmul.mubr.msk.bf16.gmra.mxu0 %vm4757_vm14, %v9876_v40 }
 0x6cc   : > { %9679 = vmatprep.mubr.msk.bf16.mxu0 %vm4757_vm14, %v9877_v47 }
 0x6d3   : > { %9680 = vmatmul.mubr.msk.bf16.gmra.mxu0 %vm4757_vm14, %v9878_v59 }
 0x6d4   : > { %9683 = vmatprep.mubr.msk.bf16.mxu0 %vm4757_vm14, %v9879_v51 }
 0x6db   : > { %9684 = vmatmul.mubr.msk.bf16.gmra.mxu0 %vm4757_vm14, %v9880_v29 }
 0x6dc   : > { %9687 = vmatprep.mubr.msk.bf16.mxu0 %vm4757_vm14, %v9881_v19 }
 0x6e3   : > { %9688 = vmatmul.mubr.msk.bf16.gmra.mxu0 %vm4757_vm14, %v9882_v3  ;;  %v9929_v3 = vld [vmem:[%s13294_s4 + $0x114] ss:$8 sps:$4 sm:$0xff]  }
 0x6e4   : > { %9691 = vmatprep.mubr.msk.bf16.mxu0 %vm4757_vm14, %v9883_v57 }
 0x6eb   : > { %9692 = vmatmul.mubr.msk.bf16.gmra.mxu0 %vm4757_vm14, %v9884_v37 }
 0x6ec   : > { %6353 = vmatprep.mubr.bf16.mxu0 %v9990_v1 }
 0x77b   : > { %v9669_v6 = vpop.f32.mrf.mxu0 }
 0x77c   : > { %5970 = vst.msk [vmem:[#allocation4 + $0x10] sm:$0xff] %vm3747_vm12, %v9669_v6 }
 0x77d   : > { %v5858_v0 = vpop.f32.mrf.mxu0 }
 0x77e   : > { %5968 = vst.msk [vmem:[#allocation4] sm:$0xff] %vm3747_vm12, %v5858_v0 }
 0x77f   : > { %v9670_v13 = vpop.f32.mrf.mxu0 }
 0x780   : > { %5971 = vst.msk [vmem:[#allocation4 + $0x18] sm:$0xff] %vm3747_vm12, %v9670_v13 }
 0x781   : > { %v5861_v8 = vpop.f32.mrf.mxu0 }
 0x782   : > { %5969 = vst.msk [vmem:[#allocation4 + $0x8] sm:$0xff] %vm3747_vm12, %v5861_v8 }
 0x783   : > { %v9673_v45 = vpop.f32.mrf.mxu0  ;;  %v5997_v28 = vld [vmem:[#allocation4 + $0x10] sm:$0xff] }
 0x784   : > { %5974 = vst.msk [vmem:[#allocation4 + $0x30] sm:$0xff] %vm3747_vm12, %v9673_v45 }
 0x785   : > { %v5874_v15 = vpop.f32.mrf.mxu0  ;;  %v5995_v25 = vld [vmem:[#allocation4] sm:$0xff] }
 0x786   : > { %5972 = vst.msk [vmem:[#allocation4 + $0x20] sm:$0xff] %vm3747_vm12, %v5874_v15 }
 0x787   : > { %v9674_v39 = vpop.f32.mrf.mxu0  ;;  %v5998_v10 = vld [vmem:[#allocation4 + $0x18] sm:$0xff] }
 0x788   : > { %5975 = vst.msk [vmem:[#allocation4 + $0x38] sm:$0xff] %vm3747_vm12, %v9674_v39  ;;  %v6033_v21 = vld [vmem:[#allocation4 + $0x11] sm:$0xff]  ;;  %v6016_v55 = vpack.c.bf16 %v5998_v10, %v5997_v28 }
 0x789   : > { %v6031_v33 = vld [vmem:[#allocation4 + $0x1] sm:$0xff]  ;;  %v6032_v23 = vld [vmem:[#allocation4 + $0x9] sm:$0xff]  ;;  %v5877_v20 = vpop.f32.mrf.mxu0 }
 0x78a   : > { %v5996_v63 = vld [vmem:[#allocation4 + $0x8] sm:$0xff]  ;;  %v6051_v31 = vpack.c.bf16 %v6032_v23, %v6031_v33  ;;  %5973 = vst.msk [vmem:[#allocation4 + $0x28] sm:$0xff] %vm3747_vm12, %v5877_v20 }
 0x78b   : > { %v6015_v12 = vpack.c.bf16 %v5996_v63, %v5995_v25  ;;  %v9677_v4 = vpop.f32.mrf.mxu0  ;;  %v6001_v26 = vld [vmem:[#allocation4 + $0x30] sm:$0xff] }
 0x78c   : > { %9048 = vmatmul.mubr.msk.bf16.vlgmr.msra.gmra.mxu1 %vm3747_vm12, %v6051_v31  ;;  %5978 = vst.msk [vmem:[#allocation4 + $0x50] sm:$0xff] %vm3747_vm12, %v9677_v4 }
 0x78d   : > { %9064 = vmatmul.mubr.msk.bf16.vlgmr.msra.gmra.mxu0 %vm3747_vm12, %v6015_v12  ;;  %6170 = vmatprep.mubr.bf16.mxu1 %v9990_v1  ;;  %v5890_v54 = vpop.f32.mrf.mxu0  ;;  %v6034_v22 = vld [vmem:[#allocation4 + $0x19] sm:$0xff] }
 0x78e   : > { %6363 = vmatprep.mubr.bf16.mxu0 %v9990_v1  ;;  %5976 = vst.msk [vmem:[#allocation4 + $0x40] sm:$0xff] %vm3747_vm12, %v5890_v54  ;;  %6562 = vmatpush1.bf16.msra.mxu1 %v9903_v42  ;;  %v6052_v17 = vpack.c.bf16 %v6034_v22, %v6033_v21  ;;  %v5999_v47 = vld [vmem:[#allocation4 + $0x20] sm:$0xff] }
 0x78f   : > { %6832 = vmatpush1.bf16.msra.mxu0 %v9909_v60  ;;  %v9678_v34 = vpop.f32.mrf.mxu0  ;;  %6563 = vmatprep.subr.bf16.mxu1 %v9908_v53  ;;  %v6002_v50 = vld [vmem:[#allocation4 + $0x38] sm:$0xff] }
 0x790   : > { %6833 = vmatprep.subr.bf16.mxu0 %v9914_v5  ;;  %5979 = vst.msk [vmem:[#allocation4 + $0x58] sm:$0xff] %vm3747_vm12, %v9678_v34  ;;  %v6037_v48 = vld [vmem:[#allocation4 + $0x31] sm:$0xff]  ;;  %v6018_v58 = vpack.c.bf16 %v6002_v50, %v6001_v26  ;;  %v9930_v26 = vld [vmem:[%s13294_s4 + $0x100] ss:$8 sps:$4 sm:$0xff]  }
 0x791   : > { %v5893_v43 = vpop.f32.mrf.mxu0  ;;  %v6035_v46 = vld [vmem:[#allocation4 + $0x21] sm:$0xff]  ;;  %v6036_v11 = vld [vmem:[#allocation4 + $0x29] sm:$0xff] }
 0x792   : > { %5977 = vst.msk [vmem:[#allocation4 + $0x48] sm:$0xff] %vm3747_vm12, %v5893_v43  ;;  %6564 = vmatpush1.bf16.msra.mxu1 %v9906_v52  ;;  %v6000_v41 = vld [vmem:[#allocation4 + $0x28] sm:$0xff]  ;;  %v6053_v51 = vpack.c.bf16 %v6036_v11, %v6035_v46 }
 0x793   : > { %6834 = vmatpush1.bf16.msra.mxu0 %v9912_v32  ;;  %v9681_v24 = vpop.f32.mrf.mxu0  ;;  %6565 = vmatprep.subr.bf16.mxu1 %v9917_v30  ;;  %v6017_v29 = vpack.c.bf16 %v6000_v41, %v5999_v47  ;;  %v6005_v15 = vld [vmem:[#allocation4 + $0x50] sm:$0xff]  ;;  %v6454_v46 = vld [vmem:[#allocation4 + $0x2] sm:$0xff] }
 0x794   : > { %6835 = vmatprep.subr.bf16.mxu0 %v9920_v18  ;;  %9049 = vmatmul.mubr.msk.bf16.gmra.mxu1 %vm3747_vm12, %v6052_v17  ;;  %5982 = vst.msk [vmem:[#allocation4 + $0x70] sm:$0xff] %vm3747_vm12, %v9681_v24  ;;  %v6455_v11 = vld [vmem:[#allocation4 + $0xa] sm:$0xff] }
 0x795   : > { %9065 = vmatmul.mubr.msk.bf16.gmra.mxu0 %vm3747_vm12, %v6016_v55  ;;  %6180 = vmatprep.mubr.bf16.mxu1 %v9990_v1  ;;  %v5906_v27 = vpop.f32.mrf.mxu0  ;;  %v6038_v37 = vld [vmem:[#allocation4 + $0x39] sm:$0xff]  ;;  %v6725_v41 = vld [vmem:[#allocation4 + $0x23] sm:$0xff]  ;;  %v6474_v47 = vpack.c.bf16 %v6455_v11, %v6454_v46  ;;  %v6726_v50 = vld [vmem:[#allocation4 + $0x2b] sm:$0xff] }
 0x796   : > { %6373 = vmatprep.mubr.bf16.mxu0 %v9990_v1  ;;  %5980 = vst.msk [vmem:[#allocation4 + $0x60] sm:$0xff] %vm3747_vm12, %v5906_v27  ;;  %6566 = vmatpush1.bf16.msra.mxu1 %v9915_v36  ;;  %v6054_v14 = vpack.c.bf16 %v6038_v37, %v6037_v48  ;;  %v6003_v35 = vld [vmem:[#allocation4 + $0x40] sm:$0xff]  ;;  %v9924_v37 = vld [vmem:[%s13294_s4 + $0xd0] ss:$8 sps:$4 sm:$0xff]   ;;  %v9938_v48 = vld [vmem:[%s13294_s4 + $0xf4] ss:$8 sps:$4 sm:$0xff]  }
 0x797   : > { %6836 = vmatpush1.bf16.msra.mxu0 %v9918_v9  ;;  %v9682_v40 = vpop.f32.mrf.mxu0  ;;  %7101 = vmatprep.subr.bf16.mxu1 %v9923_v2  ;;  %v6041_v39 = vld [vmem:[#allocation4 + $0x51] sm:$0xff] }
 0x798   : > { %5983 = vst.msk [vmem:[#allocation4 + $0x78] sm:$0xff] %vm3747_vm12, %v9682_v40  ;;  %7371 = vmatprep.subr.bf16.mxu0 %v9929_v3  ;;  %v6006_v33 = vld [vmem:[#allocation4 + $0x58] sm:$0xff]  ;;  %v9932_v3 = vld [vmem:[%s13294_s4 + $0x104] ss:$8 sps:$4 sm:$0xff]  }
 0x799   : > { %v5909_v59 = vpop.f32.mrf.mxu0  ;;  %v6039_v61 = vld [vmem:[#allocation4 + $0x41] sm:$0xff]  ;;  %v6040_v7 = vld [vmem:[#allocation4 + $0x49] sm:$0xff]  ;;  %v6020_v20 = vpack.c.bf16 %v6006_v33, %v6005_v15  ;;  %v6731_v15 = vld [vmem:[#allocation4 + $0x53] sm:$0xff] }
 0x79a   : > { %5981 = vst.msk [vmem:[#allocation4 + $0x68] sm:$0xff] %vm3747_vm12, %v5909_v59  ;;  %v6004_v49 = vld [vmem:[#allocation4 + $0x48] sm:$0xff]  ;;  %v6055_v0 = vpack.c.bf16 %v6040_v7, %v6039_v61  ;;  %v6724_v40 = vld [vmem:[#allocation4 + $0x1b] sm:$0xff] }
 0x79b   : > { %v9685_v19 = vpop.f32.mrf.mxu0  ;;  %v6019_v13 = vpack.c.bf16 %v6004_v49, %v6003_v35  ;;  %v6009_v5 = vld [vmem:[#allocation4 + $0x70] sm:$0xff]  ;;  %v6744_v59 = vpack.c.bf16 %v6725_v41, %v6724_v40  ;;  %v9941_v61 = vld [vmem:[%s13294_s4 + $0x144] ss:$8 sps:$4 sm:$0xff]  }
 0x79c   : > { %9050 = vmatmul.mubr.msk.bf16.gmra.mxu1 %vm3747_vm12, %v6053_v51  ;;  %5986 = vst.msk [vmem:[#allocation4 + $0x90] sm:$0xff] %vm3747_vm12, %v9685_v19  ;;  %v9921_v51 = vld [vmem:[%s13294_s4 + $0xe0] ss:$8 sps:$4 sm:$0xff]   ;;  %v9926_v19 = vld [vmem:[%s13294_s4 + $0xd4] ss:$8 sps:$4 sm:$0xff]  }
 0x79d   : > { %9066 = vmatmul.mubr.msk.bf16.gmra.mxu0 %vm3747_vm12, %v6017_v29  ;;  %6190 = vmatprep.mubr.bf16.mxu1 %v9990_v1  ;;  %v5922_v57 = vpop.f32.mrf.mxu0  ;;  %v6042_v25 = vld [vmem:[#allocation4 + $0x59] sm:$0xff]  ;;  %v6458_v7 = vld [vmem:[#allocation4 + $0x22] sm:$0xff]  ;;  %v6459_v49 = vld [vmem:[#allocation4 + $0x2a] sm:$0xff] }
 0x79e   : > { %6383 = vmatprep.mubr.bf16.mxu0 %v9990_v1  ;;  %5984 = vst.msk [vmem:[#allocation4 + $0x80] sm:$0xff] %vm3747_vm12, %v5922_v57  ;;  %v6056_v63 = vpack.c.bf16 %v6042_v25, %v6041_v39  ;;  %v6007_v31 = vld [vmem:[#allocation4 + $0x60] sm:$0xff]  ;;  %v9927_v29 = vld [vmem:[%s13294_s4 + $0x110] ss:$8 sps:$4 sm:$0xff]   ;;  %v9947_v25 = vld [vmem:[%s13294_s4 + $0x174] ss:$8 sps:$4 sm:$0xff]  }
 0x79f   : > { %v9686_v56 = vpop.f32.mrf.mxu0  ;;  %v6045_v54 = vld [vmem:[#allocation4 + $0x71] sm:$0xff]  ;;  %v6457_v57 = vld [vmem:[#allocation4 + $0x1a] sm:$0xff] }
 0x7a0   : > { %5987 = vst.msk [vmem:[#allocation4 + $0x98] sm:$0xff] %vm3747_vm12, %v9686_v56  ;;  %v6010_v32 = vld [vmem:[#allocation4 + $0x78] sm:$0xff]  ;;  %v9935_v56 = vld [vmem:[%s13294_s4 + $0xc4] ss:$8 sps:$4 sm:$0xff]  }
 0x7a1   : > { %v5925_v38 = vpop.f32.mrf.mxu0  ;;  %v6043_v12 = vld [vmem:[#allocation4 + $0x61] sm:$0xff]  ;;  %v6044_v42 = vld [vmem:[#allocation4 + $0x69] sm:$0xff]  ;;  %v6022_v22 = vpack.c.bf16 %v6010_v32, %v6009_v5  ;;  %v6460_v39 = vld [vmem:[#allocation4 + $0x32] sm:$0xff] }
 0x7a2   : > { %5985 = vst.msk [vmem:[#allocation4 + $0x88] sm:$0xff] %vm3747_vm12, %v5925_v38  ;;  %v6008_v60 = vld [vmem:[#allocation4 + $0x68] sm:$0xff]  ;;  %v6057_v4 = vpack.c.bf16 %v6044_v42, %v6043_v12  ;;  %v6456_v38 = vld [vmem:[#allocation4 + $0x12] sm:$0xff]  ;;  %v6732_v12 = vld [vmem:[#allocation4 + $0x5b] sm:$0xff] }
 0x7a3   : > { %v9689_v62 = vpop.f32.mrf.mxu0  ;;  %v6021_v53 = vpack.c.bf16 %v6008_v60, %v6007_v31  ;;  %v6013_v55 = vld [vmem:[#allocation4 + $0x90] sm:$0xff]  ;;  %v6733_v31 = vld [vmem:[#allocation4 + $0x63] sm:$0xff] }
 0x7a4   : > { %9051 = vmatmul.mubr.msk.bf16.gmra.mxu1 %vm3747_vm12, %v6054_v14  ;;  %5990 = vst.msk [vmem:[#allocation4 + $0xb0] sm:$0xff] %vm3747_vm12, %v9689_v62  ;;  %v6727_v14 = vld [vmem:[#allocation4 + $0x33] sm:$0xff]  ;;  %v6748_v60 = vpack.c.bf16 %v6733_v31, %v6732_v12  ;;  %v6734_v5 = vld [vmem:[#allocation4 + $0x6b] sm:$0xff] }
 0x7a5   : > { %9067 = vmatmul.mubr.msk.bf16.gmra.mxu0 %vm3747_vm12, %v6018_v58  ;;  %6200 = vmatprep.mubr.bf16.mxu1 %v9990_v1  ;;  %v5938_v44 = vpop.f32.mrf.mxu0  ;;  %v6046_v52 = vld [vmem:[#allocation4 + $0x79] sm:$0xff]  ;;  %v6475_v58 = vpack.c.bf16 %v6457_v57, %v6456_v38  ;;  %v6745_v62 = vpack.c.bf16 %v6727_v14, %v6726_v50  ;;  %v7265_v57 = vld [vmem:[#allocation4 + $0x25] sm:$0xff] }
 0x7a6   : > { %6393 = vmatprep.mubr.bf16.mxu0 %v9990_v1  ;;  %5988 = vst.msk [vmem:[#allocation4 + $0xa0] sm:$0xff] %vm3747_vm12, %v5938_v44  ;;  %v6058_v30 = vpack.c.bf16 %v6046_v52, %v6045_v54  ;;  %v6011_v34 = vld [vmem:[#allocation4 + $0x80] sm:$0xff]  ;;  %v9936_v35 = vld [vmem:[%s13294_s4 + $0xf0] ss:$8 sps:$4 sm:$0xff]   ;;  %v9944_v14 = vld [vmem:[%s13294_s4 + $0x134] ss:$8 sps:$4 sm:$0xff]  }
 0x7a7   : > { %v9690_v16 = vpop.f32.mrf.mxu0  ;;  %v6049_v36 = vld [vmem:[#allocation4 + $0x91] sm:$0xff]  ;;  %v9933_v44 = vld [vmem:[%s13294_s4 + $0xc0] ss:$8 sps:$4 sm:$0xff]  }
 0x7a8   : > { %5991 = vst.msk [vmem:[#allocation4 + $0xb8] sm:$0xff] %vm3747_vm12, %v9690_v16  ;;  %v6014_v24 = vld [vmem:[#allocation4 + $0x98] sm:$0xff]  ;;  %v6729_v16 = vld [vmem:[#allocation4 + $0x43] sm:$0xff]  ;;  %v7000_v31 = vld [vmem:[#allocation4 + $0x4c] sm:$0xff] }
 0x7a9   : > { %v5941_v6 = vpop.f32.mrf.mxu0  ;;  %v6047_v18 = vld [vmem:[#allocation4 + $0x81] sm:$0xff]  ;;  %v6048_v21 = vld [vmem:[#allocation4 + $0x89] sm:$0xff]  ;;  %v6024_v27 = vpack.c.bf16 %v6014_v24, %v6013_v55  ;;  %v6735_v54 = vld [vmem:[#allocation4 + $0x73] sm:$0xff] }
 0x7aa   : > { %5989 = vst.msk [vmem:[#allocation4 + $0xa8] sm:$0xff] %vm3747_vm12, %v5941_v6  ;;  %v6012_v28 = vld [vmem:[#allocation4 + $0x88] sm:$0xff]  ;;  %v6059_v43 = vpack.c.bf16 %v6048_v21, %v6047_v18  ;;  %v6728_v6 = vld [vmem:[#allocation4 + $0x3b] sm:$0xff]  ;;  %v6749_v32 = vpack.c.bf16 %v6735_v54, %v6734_v5  ;;  %v6739_v55 = vld [vmem:[#allocation4 + $0x93] sm:$0xff] }
 0x7ab   : > { %v9693_v8 = vpop.f32.mrf.mxu0  ;;  %v6023_v17 = vpack.c.bf16 %v6012_v28, %v6011_v34  ;;  %v6737_v34 = vld [vmem:[#allocation4 + $0x83] sm:$0xff]  ;;  %v6468_v28 = vld [vmem:[#allocation4 + $0x72] sm:$0xff] }
 0x7ac   : > { %9052 = vmatmul.mubr.msk.bf16.gmra.mxu1 %vm3747_vm12, %v6055_v0  ;;  %5994 = vst.msk [vmem:[#allocation4 + $0xd0] sm:$0xff] %vm3747_vm12, %v9693_v8  ;;  %v6476_v0 = vpack.c.bf16 %v6459_v49, %v6458_v7  ;;  %v6461_v8 = vld [vmem:[#allocation4 + $0x3a] sm:$0xff]  ;;  %v6470_v24 = vld [vmem:[#allocation4 + $0x82] sm:$0xff]  ;;  %v6472_v40 = vld [vmem:[#allocation4 + $0x92] sm:$0xff] }
 0x7ad   : > { %9068 = vmatmul.mubr.msk.bf16.gmra.mxu0 %vm3747_vm12, %v6019_v13  ;;  %6210 = vmatprep.mubr.bf16.mxu1 %v9990_v1  ;;  %v5954_v45 = vpop.f32.mrf.mxu0  ;;  %v6050_v9 = vld [vmem:[#allocation4 + $0x99] sm:$0xff]  ;;  %v6746_v13 = vpack.c.bf16 %v6729_v16, %v6728_v6  ;;  %v6477_v33 = vpack.c.bf16 %v6461_v8, %v6460_v39  ;;  %v9953_v7 = vld [vmem:[%s13294_s4 + $0x124] ss:$8 sps:$4 sm:$0xff]  }
 0x7ae   : > { %6403 = vmatprep.mubr.bf16.mxu0 %v9990_v1  ;;  %5992 = vst.msk [vmem:[#allocation4 + $0xc0] sm:$0xff] %vm3747_vm12, %v5954_v45  ;;  %v6060_v2 = vpack.c.bf16 %v6050_v9, %v6049_v36  ;;  %v6730_v45 = vld [vmem:[#allocation4 + $0x4b] sm:$0xff]  ;;  %v9956_v49 = vld [vmem:[%s13294_s4 + $0x154] ss:$8 sps:$4 sm:$0xff]  }
 0x7af   : > { %v9694_v23 = vpop.f32.mrf.mxu0  ;;  %v9945_v38 = vld [vmem:[%s13294_s4 + $0x170] ss:$8 sps:$4 sm:$0xff]   ;;  %v9951_v8 = vld [vmem:[%s13294_s4 + $0x120] ss:$8 sps:$4 sm:$0xff]  }
 0x7b0   : > { %v6747_v23 = vpack.c.bf16 %v6731_v15, %v6730_v45  ;;  %v6997_v16 = vld [vmem:[#allocation4 + $0x34] sm:$0xff]  ;;  %v9959_v15 = vld [vmem:[%s13294_s4 + $0x1a4] ss:$8 sps:$4 sm:$0xff]  }
 0x7b1   : > { %v5957_v10 = vpop.f32.mrf.mxu0  ;;  %v6741_v46 = vld [vmem:[#allocation4 + $0xa3] sm:$0xff]  ;;  %v7267_v6 = vld [vmem:[#allocation4 + $0x35] sm:$0xff] }
 0x7b2   : > { %5993 = vst.msk [vmem:[#allocation4 + $0xc8] sm:$0xff] %vm3747_vm12, %v5957_v10  ;;  %v6736_v10 = vld [vmem:[#allocation4 + $0x7b] sm:$0xff]  ;;  %v6999_v39 = vld [vmem:[#allocation4 + $0x44] sm:$0xff] }
 0x7b3   : > { %v6750_v21 = vpack.c.bf16 %v6737_v34, %v6736_v10  ;;  %v9954_v45 = vld [vmem:[%s13294_s4 + $0x150] ss:$8 sps:$4 sm:$0xff]   ;;  %v7003_v5 = vld [vmem:[#allocation4 + $0x64] sm:$0xff] }
 0x7b4   : > { %9053 = vmatmul.mubr.msk.bf16.gmra.mxu1 %vm3747_vm12, %v6056_v63  ;;  %v6462_v63 = vld [vmem:[#allocation4 + $0x42] sm:$0xff]  ;;  %v7001_v12 = vld [vmem:[#allocation4 + $0x54] sm:$0xff] }
 0x7b5   : > { %9069 = vmatmul.mubr.msk.bf16.gmra.mxu0 %vm3747_vm12, %v6020_v20  ;;  %6220 = vmatprep.mubr.bf16.mxu1 %v9990_v1  ;;  %v6463_v20 = vld [vmem:[#allocation4 + $0x4a] sm:$0xff] }
 0x7b6   : > { %6413 = vmatprep.mubr.bf16.mxu0 %v9990_v1  ;;  %v6478_v42 = vpack.c.bf16 %v6463_v20, %v6462_v63  ;;  %v7273_v54 = vld [vmem:[#allocation4 + $0x65] sm:$0xff] }
 0x7bc   : > { %9054 = vmatmul.mubr.msk.bf16.gmra.mxu1 %vm3747_vm12, %v6057_v4  ;;  %v6464_v4 = vld [vmem:[#allocation4 + $0x52] sm:$0xff] }
 0x7bd   : > { %9070 = vmatmul.mubr.msk.bf16.gmra.mxu0 %vm3747_vm12, %v6021_v53  ;;  %6230 = vmatprep.mubr.bf16.mxu1 %v9990_v1  ;;  %v6465_v53 = vld [vmem:[#allocation4 + $0x5a] sm:$0xff] }
 0x7be   : > { %6423 = vmatprep.mubr.bf16.mxu0 %v9990_v1  ;;  %v6479_v52 = vpack.c.bf16 %v6465_v53, %v6464_v4  ;;  %v7017_v4 = vpack.c.bf16 %v7001_v12, %v7000_v31 }
 0x7c4   : > { %9055 = vmatmul.mubr.msk.bf16.gmra.mxu1 %vm3747_vm12, %v6058_v30  ;;  %v6466_v30 = vld [vmem:[#allocation4 + $0x62] sm:$0xff] }
 0x7c5   : > { %9071 = vmatmul.mubr.msk.bf16.gmra.mxu0 %vm3747_vm12, %v6022_v22  ;;  %6240 = vmatprep.mubr.bf16.mxu1 %v9990_v1  ;;  %v6467_v22 = vld [vmem:[#allocation4 + $0x6a] sm:$0xff] }
 0x7c6   : > { %6433 = vmatprep.mubr.bf16.mxu0 %v9990_v1  ;;  %v6480_v18 = vpack.c.bf16 %v6467_v22, %v6466_v30 }
 0x7cc   : > { %9056 = vmatmul.mubr.msk.bf16.gmra.mxu1 %vm3747_vm12, %v6059_v43  ;;  %v6469_v43 = vld [vmem:[#allocation4 + $0x7a] sm:$0xff] }
 0x7cd   : > { %9072 = vmatmul.mubr.msk.bf16.gmra.mxu0 %vm3747_vm12, %v6023_v17  ;;  %6250 = vmatprep.mubr.bf16.mxu1 %v9990_v1  ;;  %v6738_v17 = vld [vmem:[#allocation4 + $0x8b] sm:$0xff]  ;;  %v6481_v36 = vpack.c.bf16 %v6469_v43, %v6468_v28 }
 0x7ce   : > { %6443 = vmatprep.mubr.bf16.mxu0 %v9990_v1  ;;  %v6751_v9 = vpack.c.bf16 %v6739_v55, %v6738_v17  ;;  %v7004_v43 = vld [vmem:[#allocation4 + $0x6c] sm:$0xff]  ;;  %v7005_v55 = vld [vmem:[#allocation4 + $0x74] sm:$0xff] }
 0x7d4   : > { %9057 = vmatmul.mubr.msk.bf16.gmra.mxu1 %vm3747_vm12, %v6060_v2  ;;  %v6471_v2 = vld [vmem:[#allocation4 + $0x8a] sm:$0xff] }
 0x7d5   : > { %9073 = vmatmul.mubr.msk.bf16.gmra.mxu0 %vm3747_vm12, %v6024_v27  ;;  %6583 = vmatprep.mubr.bf16.mxu1 %v9990_v1  ;;  %v6740_v27 = vld [vmem:[#allocation4 + $0x9b] sm:$0xff]  ;;  %v6482_v11 = vpack.c.bf16 %v6471_v2, %v6470_v24 }
 0x7d6   : > { %6853 = vmatprep.mubr.bf16.mxu0 %v9990_v1  ;;  %v6752_v41 = vpack.c.bf16 %v6741_v46, %v6740_v27 }
 0x7dc   : > { %9086 = vmatmul.mubr.msk.bf16.vlgmr.msra.gmra.mxu1 %vm3747_vm12, %v6474_v47  ;;  %v6473_v47 = vld [vmem:[#allocation4 + $0x9a] sm:$0xff] }
 0x7dd   : > { %9108 = vmatmul.mubr.msk.bf16.vlgmr.msra.gmra.mxu0 %vm3747_vm12, %v6744_v59  ;;  %6593 = vmatprep.mubr.bf16.mxu1 %v9990_v1  ;;  %v6742_v59 = vld [vmem:[#allocation4 + $0xab] sm:$0xff] }
 0x7de   : > { %6863 = vmatprep.mubr.bf16.mxu0 %v9990_v1  ;;  %7102 = vmatpush1.bf16.msra.mxu1 %v9921_v51  ;;  %v6743_v51 = vld [vmem:[#allocation4 + $0xb3] sm:$0xff] }
 0x7df   : > { %7372 = vmatpush1.bf16.msra.mxu0 %v9927_v29  ;;  %7103 = vmatprep.subr.bf16.mxu1 %v9926_v19  ;;  %v6483_v29 = vpack.c.bf16 %v6473_v47, %v6472_v40  ;;  %v6753_v19 = vpack.c.bf16 %v6743_v51, %v6742_v59 }
 0x7e0   : > { %7373 = vmatprep.subr.bf16.mxu0 %v9932_v3  ;;  %v6995_v3 = vld [vmem:[#allocation4 + $0x24] sm:$0xff] }
 0x7e2   : > { %7104 = vmatpush1.bf16.msra.mxu1 %v9924_v37  ;;  %v6994_v37 = vld [vmem:[#allocation4 + $0x1c] sm:$0xff] }
 0x7e3   : > { %7374 = vmatpush1.bf16.msra.mxu0 %v9930_v26  ;;  %7105 = vmatprep.subr.bf16.mxu1 %v9935_v56  ;;  %v7264_v26 = vld [vmem:[#allocation4 + $0x1d] sm:$0xff]  ;;  %v7014_v50 = vpack.c.bf16 %v6995_v3, %v6994_v37 }
 0x7e4   : > { %7375 = vmatprep.subr.bf16.mxu0 %v9938_v48  ;;  %9087 = vmatmul.mubr.msk.bf16.gmra.mxu1 %vm3747_vm12, %v6475_v58  ;;  %v7284_v56 = vpack.c.bf16 %v7265_v57, %v7264_v26  ;;  %v9939_v48 = vld [vmem:[%s13294_s4 + $0x140] ss:$8 sps:$4 sm:$0xff]   ;;  %v9950_v58 = vld [vmem:[%s13294_s4 + $0x164] ss:$8 sps:$4 sm:$0xff]  }
 0x7e5   : > { %9109 = vmatmul.mubr.msk.bf16.gmra.mxu0 %vm3747_vm12, %v6745_v62  ;;  %6603 = vmatprep.mubr.bf16.mxu1 %v9990_v1  ;;  %v6996_v62 = vld [vmem:[#allocation4 + $0x2c] sm:$0xff]  ;;  %v7006_v57 = vld [vmem:[#allocation4 + $0x7c] sm:$0xff]  ;;  %v7007_v26 = vld [vmem:[#allocation4 + $0x84] sm:$0xff] }
 0x7e6   : > { %6873 = vmatprep.mubr.bf16.mxu0 %v9990_v1  ;;  %7106 = vmatpush1.bf16.msra.mxu1 %v9933_v44  ;;  %v9942_v44 = vld [vmem:[%s13294_s4 + $0x130] ss:$8 sps:$4 sm:$0xff]  }
 0x7e7   : > { %7376 = vmatpush1.bf16.msra.mxu0 %v9936_v35  ;;  %7641 = vmatprep.subr.bf16.mxu1 %v9941_v61  ;;  %v9948_v35 = vld [vmem:[%s13294_s4 + $0x160] ss:$8 sps:$4 sm:$0xff]   ;;  %v7266_v61 = vld [vmem:[#allocation4 + $0x2d] sm:$0xff] }
 0x7e8   : > { %7911 = vmatprep.subr.bf16.mxu0 %v9947_v25  ;;  %v7269_v25 = vld [vmem:[#allocation4 + $0x45] sm:$0xff] }
 0x7ec   : > { %9088 = vmatmul.mubr.msk.bf16.gmra.mxu1 %vm3747_vm12, %v6476_v0  ;;  %v7015_v0 = vpack.c.bf16 %v6997_v16, %v6996_v62 }
 0x7ed   : > { %9110 = vmatmul.mubr.msk.bf16.gmra.mxu0 %vm3747_vm12, %v6746_v13  ;;  %6613 = vmatprep.mubr.bf16.mxu1 %v9990_v1  ;;  %v7285_v13 = vpack.c.bf16 %v7267_v6, %v7266_v61 }
 0x7ee   : > { %6883 = vmatprep.mubr.bf16.mxu0 %v9990_v1 }
 0x7f4   : > { %9089 = vmatmul.mubr.msk.bf16.gmra.mxu1 %vm3747_vm12, %v6477_v33  ;;  %v6998_v33 = vld [vmem:[#allocation4 + $0x3c] sm:$0xff] }
 0x7f5   : > { %9111 = vmatmul.mubr.msk.bf16.gmra.mxu0 %vm3747_vm12, %v6747_v23  ;;  %6623 = vmatprep.mubr.bf16.mxu1 %v9990_v1  ;;  %v7268_v23 = vld [vmem:[#allocation4 + $0x3d] sm:$0xff]  ;;  %v7016_v63 = vpack.c.bf16 %v6999_v39, %v6998_v33  ;;  %v7279_v39 = vld [vmem:[#allocation4 + $0x95] sm:$0xff] }
 0x7f6   : > { %6893 = vmatprep.mubr.bf16.mxu0 %v9990_v1  ;;  %v7286_v20 = vpack.c.bf16 %v7269_v25, %v7268_v23 }
 0x7fc   : > { %9090 = vmatmul.mubr.msk.bf16.gmra.mxu1 %vm3747_vm12, %v6478_v42  ;;  %v7270_v42 = vld [vmem:[#allocation4 + $0x4d] sm:$0xff] }
 0x7fd   : > { %9112 = vmatmul.mubr.msk.bf16.gmra.mxu0 %vm3747_vm12, %v6748_v60  ;;  %6633 = vmatprep.mubr.bf16.mxu1 %v9990_v1  ;;  %v7271_v60 = vld [vmem:[#allocation4 + $0x55] sm:$0xff] }
 0x7fe   : > { %6903 = vmatprep.mubr.bf16.mxu0 %v9990_v1  ;;  %v7287_v53 = vpack.c.bf16 %v7271_v60, %v7270_v42 }
 0x804   : > { %9091 = vmatmul.mubr.msk.bf16.gmra.mxu1 %vm3747_vm12, %v6479_v52  ;;  %v7002_v52 = vld [vmem:[#allocation4 + $0x5c] sm:$0xff] }
 0x805   : > { %9113 = vmatmul.mubr.msk.bf16.gmra.mxu0 %vm3747_vm12, %v6749_v32  ;;  %6643 = vmatprep.mubr.bf16.mxu1 %v9990_v1  ;;  %v7272_v32 = vld [vmem:[#allocation4 + $0x5d] sm:$0xff]  ;;  %v7018_v30 = vpack.c.bf16 %v7003_v5, %v7002_v52 }
 0x806   : > { %6913 = vmatprep.mubr.bf16.mxu0 %v9990_v1  ;;  %v7288_v22 = vpack.c.bf16 %v7273_v54, %v7272_v32  ;;  %v7010_v52 = vld [vmem:[#allocation4 + $0x9c] sm:$0xff] }
 0x80c   : > { %9092 = vmatmul.mubr.msk.bf16.gmra.mxu1 %vm3747_vm12, %v6480_v18 }
 0x80d   : > { %9114 = vmatmul.mubr.msk.bf16.gmra.mxu0 %vm3747_vm12, %v6750_v21  ;;  %6653 = vmatprep.mubr.bf16.mxu1 %v9990_v1 }
 0x80e   : > { %6923 = vmatprep.mubr.bf16.mxu0 %v9990_v1 }
 0x814   : > { %9093 = vmatmul.mubr.msk.bf16.gmra.mxu1 %vm3747_vm12, %v6481_v36  ;;  %v7274_v36 = vld [vmem:[#allocation4 + $0x6d] sm:$0xff] }
 0x815   : > { %9115 = vmatmul.mubr.msk.bf16.gmra.mxu0 %vm3747_vm12, %v6751_v9  ;;  %6663 = vmatprep.mubr.bf16.mxu1 %v9990_v1  ;;  %v7275_v9 = vld [vmem:[#allocation4 + $0x75] sm:$0xff] }
 0x816   : > { %6933 = vmatprep.mubr.bf16.mxu0 %v9990_v1  ;;  %v7289_v40 = vpack.c.bf16 %v7275_v9, %v7274_v36 }
 0x81c   : > { %9094 = vmatmul.mubr.msk.bf16.gmra.mxu1 %vm3747_vm12, %v6482_v11 }
 0x81d   : > { %9116 = vmatmul.mubr.msk.bf16.gmra.mxu0 %vm3747_vm12, %v6752_v41  ;;  %6673 = vmatprep.mubr.bf16.mxu1 %v9990_v1  ;;  %v7019_v41 = vpack.c.bf16 %v7005_v55, %v7004_v43 }
 0x81e   : > { %6943 = vmatprep.mubr.bf16.mxu0 %v9990_v1 }
 0x824   : > { %9095 = vmatmul.mubr.msk.bf16.gmra.mxu1 %vm3747_vm12, %v6483_v29 }
 0x825   : > { %9117 = vmatmul.mubr.msk.bf16.gmra.mxu0 %vm3747_vm12, %v6753_v19  ;;  %7123 = vmatprep.mubr.bf16.mxu1 %v9990_v1 }
 0x826   : > { %7393 = vmatprep.mubr.bf16.mxu0 %v9990_v1 }
 0x82c   : > { %9130 = vmatmul.mubr.msk.bf16.vlgmr.msra.gmra.mxu1 %vm3747_vm12, %v7014_v50  ;;  %v7276_v50 = vld [vmem:[#allocation4 + $0x7d] sm:$0xff] }
 0x82d   : > { %9152 = vmatmul.mubr.msk.bf16.vlgmr.msra.gmra.mxu0 %vm3747_vm12, %v7284_v56  ;;  %7133 = vmatprep.mubr.bf16.mxu1 %v9990_v1  ;;  %v7277_v56 = vld [vmem:[#allocation4 + $0x85] sm:$0xff] }
 0x82e   : > { %7403 = vmatprep.mubr.bf16.mxu0 %v9990_v1  ;;  %7642 = vmatpush1.bf16.msra.mxu1 %v9939_v48 }
 0x82f   : > { %7912 = vmatpush1.bf16.msra.mxu0 %v9945_v38  ;;  %7643 = vmatprep.subr.bf16.mxu1 %v9944_v14 }
 0x830   : > { %7913 = vmatprep.subr.bf16.mxu0 %v9950_v58 }
 0x832   : > { %7644 = vmatpush1.bf16.msra.mxu1 %v9942_v44  ;;  %v7020_v44 = vpack.c.bf16 %v7007_v26, %v7006_v57  ;;  %v7283_v57 = vld [vmem:[#allocation4 + $0xb5] sm:$0xff] }
 0x833   : > { %7914 = vmatpush1.bf16.msra.mxu0 %v9948_v35  ;;  %7645 = vmatprep.subr.bf16.mxu1 %v9953_v7  ;;  %v7290_v35 = vpack.c.bf16 %v7277_v56, %v7276_v50 }
 0x834   : > { %7915 = vmatprep.subr.bf16.mxu0 %v9956_v49  ;;  %9131 = vmatmul.mubr.msk.bf16.gmra.mxu1 %vm3747_vm12, %v7015_v0 }
 0x835   : > { %9153 = vmatmul.mubr.msk.bf16.gmra.mxu0 %vm3747_vm12, %v7285_v13  ;;  %7143 = vmatprep.mubr.bf16.mxu1 %v9990_v1  ;;  %v7008_v13 = vld [vmem:[#allocation4 + $0x8c] sm:$0xff] }
 0x836   : > { %7413 = vmatprep.mubr.bf16.mxu0 %v9990_v1  ;;  %7646 = vmatpush1.bf16.msra.mxu1 %v9951_v8 }
 0x837   : > { %7916 = vmatpush1.bf16.msra.mxu0 %v9954_v45  ;;  %8181 = vmatprep.subr.bf16.mxu1 %v9959_v15  ;;  %v7009_v45 = vld [vmem:[#allocation4 + $0x94] sm:$0xff] }
 0x838   : > { %v7278_v15 = vld [vmem:[#allocation4 + $0x8d] sm:$0xff]  ;;  %v7021_v31 = vpack.c.bf16 %v7009_v45, %v7008_v13  ;;  %v7535_v45 = vld [vmem:[#allocation4 + $0x3e] sm:$0xff] }
 0x839   : > { %v7291_v12 = vpack.c.bf16 %v7279_v39, %v7278_v15  ;;  %v7805_v15 = vld [vmem:[#allocation4 + $0x3f] sm:$0xff] }
 0x83c   : > { %9132 = vmatmul.mubr.msk.bf16.gmra.mxu1 %vm3747_vm12, %v7016_v63 }
 0x83d   : > { %9154 = vmatmul.mubr.msk.bf16.gmra.mxu0 %vm3747_vm12, %v7286_v20  ;;  %7153 = vmatprep.mubr.bf16.mxu1 %v9990_v1 }
 0x83e   : > { %7423 = vmatprep.mubr.bf16.mxu0 %v9990_v1 }
 0x844   : > { %9133 = vmatmul.mubr.msk.bf16.gmra.mxu1 %vm3747_vm12, %v7017_v4 }
 0x845   : > { %9155 = vmatmul.mubr.msk.bf16.gmra.mxu0 %vm3747_vm12, %v7287_v53  ;;  %7163 = vmatprep.mubr.bf16.mxu1 %v9990_v1 }
 0x846   : > { %7433 = vmatprep.mubr.bf16.mxu0 %v9990_v1 }
 0x84c   : > { %v6162_v10 = vpop.f32.mrf.mxu1  ;;  %9134 = vmatmul.mubr.msk.bf16.gmra.mxu1 %vm3747_vm12, %v7018_v30  ;;  %v7011_v30 = vld [vmem:[#allocation4 + $0xa4] sm:$0xff] }
 0x84d   : > { %v6355_v34 = vpop.f32.mrf.mxu0  ;;  %9156 = vmatmul.mubr.msk.bf16.gmra.mxu0 %vm3747_vm12, %v7288_v22  ;;  %7173 = vmatprep.mubr.bf16.mxu1 %v9990_v1  ;;  %v7280_v22 = vld [vmem:[#allocation4 + $0x9d] sm:$0xff]  ;;  %v7022_v36 = vpack.c.bf16 %v7011_v30, %v7010_v52 }
 0x84e   : > { %v12514_v18 = vadd.f32 %v6355_v34, %v6162_v10  ;;  %7443 = vmatprep.mubr.bf16.mxu0 %v9990_v1  ;;  %v6164_v21 = vpop.f32.mrf.mxu1  ;;  %v7281_v10 = vld [vmem:[#allocation4 + $0xa5] sm:$0xff]  ;;  %v9962_v52 = vld [vmem:[%s13294_s4 + $0x194] ss:$8 sps:$4 sm:$0xff]  }
 0x84f   : > { %v6357_v28 = vpop.f32.mrf.mxu0  ;;  %v7292_v9 = vpack.c.bf16 %v7281_v10, %v7280_v22 }
 0x850   : > { %v12518_v17 = vadd.f32 %v6357_v28, %v6164_v21  ;;  %v6166_v24 = vpop.f32.mrf.mxu1 }
 0x851   : > { %v6359_v2 = vpop.f32.mrf.mxu0 }
 0x852   : > { %v12520_v27 = vadd.f32 %v6359_v2, %v6166_v24  ;;  %v6168_v46 = vpop.f32.mrf.mxu1 }
 0x853   : > { %v6361_v11 = vpop.f32.mrf.mxu0 }
 0x854   : > { %v12522_v47 = vadd.f32 %v6361_v11, %v6168_v46  ;;  %v6172_v59 = vpop.f32.mrf.mxu1  ;;  %9135 = vmatmul.mubr.msk.bf16.gmra.mxu1 %vm3747_vm12, %v7019_v41 }
 0x855   : > { %v6365_v51 = vpop.f32.mrf.mxu0  ;;  %9157 = vmatmul.mubr.msk.bf16.gmra.mxu0 %vm3747_vm12, %v7289_v40  ;;  %7183 = vmatprep.mubr.bf16.mxu1 %v9990_v1 }
 0x856   : > { %v12526_v29 = vadd.f32 %v6365_v51, %v6172_v59  ;;  %7453 = vmatprep.mubr.bf16.mxu0 %v9990_v1  ;;  %v6174_v19 = vpop.f32.mrf.mxu1  ;;  %v7012_v59 = vld [vmem:[#allocation4 + $0xac] sm:$0xff] }
 0x857   : > { %v6367_v3 = vpop.f32.mrf.mxu0 }
 0x858   : > { %v12530_v37 = vadd.f32 %v6367_v3, %v6174_v19  ;;  %v6176_v48 = vpop.f32.mrf.mxu1  ;;  %v7013_v19 = vld [vmem:[#allocation4 + $0xb4] sm:$0xff] }
 0x859   : > { %v6369_v38 = vpop.f32.mrf.mxu0  ;;  %v7282_v3 = vld [vmem:[#allocation4 + $0xad] sm:$0xff] }
 0x85a   : > { %v12532_v14 = vadd.f32 %v6369_v38, %v6176_v48  ;;  %v6178_v58 = vpop.f32.mrf.mxu1 }
 0x85b   : > { %v6371_v62 = vpop.f32.mrf.mxu0 }
 0x85c   : > { %v12534_v61 = vadd.f32 %v6371_v62, %v6178_v58  ;;  %v6182_v7 = vpop.f32.mrf.mxu1  ;;  %9136 = vmatmul.mubr.msk.bf16.gmra.mxu1 %vm3747_vm12, %v7020_v44  ;;  %v7023_v58 = vpack.c.bf16 %v7013_v19, %v7012_v59  ;;  %v7293_v62 = vpack.c.bf16 %v7283_v57, %v7282_v3 }
 0x85d   : > { %v6375_v49 = vpop.f32.mrf.mxu0  ;;  %9158 = vmatmul.mubr.msk.bf16.gmra.mxu0 %vm3747_vm12, %v7290_v35  ;;  %7193 = vmatprep.mubr.bf16.mxu1 %v9990_v1 }
 0x85e   : > { %v12538_v16 = vadd.f32 %v6375_v49, %v6182_v7  ;;  %7463 = vmatprep.mubr.bf16.mxu0 %v9990_v1  ;;  %v6184_v6 = vpop.f32.mrf.mxu1 }
 0x85f   : > { %v6377_v0 = vpop.f32.mrf.mxu0 }
 0x860   : > { %v12542_v8 = vadd.f32 %v6377_v0, %v6184_v6  ;;  %v6186_v25 = vpop.f32.mrf.mxu1 }
 0x861   : > { %v6379_v33 = vpop.f32.mrf.mxu0 }
 0x862   : > { %v12544_v23 = vadd.f32 %v6379_v33, %v6186_v25  ;;  %v6188_v63 = vpop.f32.mrf.mxu1 }
 0x863   : > { %v6381_v20 = vpop.f32.mrf.mxu0 }
 0x864   : > { %v12546_v42 = vadd.f32 %v6381_v20, %v6188_v63  ;;  %v6192_v60 = vpop.f32.mrf.mxu1  ;;  %9137 = vmatmul.mubr.msk.bf16.gmra.mxu1 %vm3747_vm12, %v7021_v31  ;;  %v7534_v63 = vld [vmem:[#allocation4 + $0x36] sm:$0xff] }
 0x865   : > { %v6385_v4 = vpop.f32.mrf.mxu0  ;;  %9159 = vmatmul.mubr.msk.bf16.gmra.mxu0 %vm3747_vm12, %v7291_v12  ;;  %7203 = vmatprep.mubr.bf16.mxu1 %v9990_v1  ;;  %v7804_v20 = vld [vmem:[#allocation4 + $0x37] sm:$0xff] }
 0x866   : > { %v12550_v53 = vadd.f32 %v6385_v4, %v6192_v60  ;;  %7473 = vmatprep.mubr.bf16.mxu0 %v9990_v1  ;;  %v6194_v5 = vpop.f32.mrf.mxu1  ;;  %v7554_v60 = vpack.c.bf16 %v7535_v45, %v7534_v63  ;;  %v7824_v4 = vpack.c.bf16 %v7805_v15, %v7804_v20  ;;  %v7539_v15 = vld [vmem:[#allocation4 + $0x5e] sm:$0xff] }
 0x867   : > { %v6387_v54 = vpop.f32.mrf.mxu0 }
 0x868   : > { %v12554_v32 = vadd.f32 %v6387_v54, %v6194_v5  ;;  %v6196_v34 = vpop.f32.mrf.mxu1  ;;  %v9957_v5 = vld [vmem:[%s13294_s4 + $0x1a0] ss:$8 sps:$4 sm:$0xff]  }
 0x869   : > { %v6389_v21 = vpop.f32.mrf.mxu0 }
 0x86a   : > { %v12556_v28 = vadd.f32 %v6389_v21, %v6196_v34  ;;  %v6198_v43 = vpop.f32.mrf.mxu1 }
 0x86b   : > { %v6391_v55 = vpop.f32.mrf.mxu0 }
 0x86c   : > { %v12558_v24 = vadd.f32 %v6391_v55, %v6198_v43  ;;  %v6202_v2 = vpop.f32.mrf.mxu1  ;;  %9138 = vmatmul.mubr.msk.bf16.gmra.mxu1 %vm3747_vm12, %v7022_v36  ;;  %v7536_v43 = vld [vmem:[#allocation4 + $0x46] sm:$0xff]  ;;  %v7537_v55 = vld [vmem:[#allocation4 + $0x4e] sm:$0xff] }
 0x86d   : > { %v6395_v46 = vpop.f32.mrf.mxu0  ;;  %9160 = vmatmul.mubr.msk.bf16.gmra.mxu0 %vm3747_vm12, %v7292_v9  ;;  %7213 = vmatprep.mubr.bf16.mxu1 %v9990_v1  ;;  %v9960_v36 = vld [vmem:[%s13294_s4 + $0x190] ss:$8 sps:$4 sm:$0xff]  }
 0x86e   : > { %v12562_v11 = vadd.f32 %v6395_v46, %v6202_v2  ;;  %7483 = vmatprep.mubr.bf16.mxu0 %v9990_v1  ;;  %v6204_v41 = vpop.f32.mrf.mxu1  ;;  %v7806_v2 = vld [vmem:[#allocation4 + $0x47] sm:$0xff]  ;;  %v7807_v46 = vld [vmem:[#allocation4 + $0x4f] sm:$0xff] }
 0x86f   : > { %v6397_v40 = vpop.f32.mrf.mxu0 }
 0x870   : > { %v12566_v51 = vadd.f32 %v6397_v40, %v6204_v41  ;;  %v6206_v26 = vpop.f32.mrf.mxu1  ;;  %v9965_v41 = vld [vmem:[%s13294_s4 + $0x184] ss:$8 sps:$4 sm:$0xff]  }
 0x871   : > { %v6399_v50 = vpop.f32.mrf.mxu0 }
 0x872   : > { %v12568_v56 = vadd.f32 %v6399_v50, %v6206_v26  ;;  %v6208_v48 = vpop.f32.mrf.mxu1  ;;  %v7555_v26 = vpack.c.bf16 %v7537_v55, %v7536_v43  ;;  %v7825_v50 = vpack.c.bf16 %v7807_v46, %v7806_v2  ;;  %v7540_v55 = vld [vmem:[#allocation4 + $0x66] sm:$0xff]  ;;  %v7541_v2 = vld [vmem:[#allocation4 + $0x6e] sm:$0xff] }
 0x873   : > { %v6401_v38 = vpop.f32.mrf.mxu0  ;;  %v7810_v46 = vld [vmem:[#allocation4 + $0x67] sm:$0xff] }
 0x874   : > { %v12570_v44 = vadd.f32 %v6401_v38, %v6208_v48  ;;  %v6212_v35 = vpop.f32.mrf.mxu1  ;;  %9139 = vmatmul.mubr.msk.bf16.gmra.mxu1 %vm3747_vm12, %v7023_v58  ;;  %v9963_v48 = vld [vmem:[%s13294_s4 + $0x180] ss:$8 sps:$4 sm:$0xff]  }
 0x875   : > { %v6405_v7 = vpop.f32.mrf.mxu0  ;;  %9161 = vmatmul.mubr.msk.bf16.gmra.mxu0 %vm3747_vm12, %v7293_v62  ;;  %7663 = vmatprep.mubr.bf16.mxu1 %v9990_v1 }
 0x876   : > { %v12574_v49 = vadd.f32 %v6405_v7, %v6212_v35  ;;  %7933 = vmatprep.mubr.bf16.mxu0 %v9990_v1  ;;  %v6214_v6 = vpop.f32.mrf.mxu1 }
 0x877   : > { %v6407_v0 = vpop.f32.mrf.mxu0 }
 0x878   : > { %v12578_v13 = vadd.f32 %v6407_v0, %v6214_v6  ;;  %v6216_v39 = vpop.f32.mrf.mxu1  ;;  %v7538_v0 = vld [vmem:[#allocation4 + $0x56] sm:$0xff] }
 0x879   : > { %v6409_v25 = vpop.f32.mrf.mxu0 }
 0x87a   : > { %v12580_v33 = vadd.f32 %v6409_v25, %v6216_v39  ;;  %v6218_v31 = vpop.f32.mrf.mxu1  ;;  %v7808_v39 = vld [vmem:[#allocation4 + $0x57] sm:$0xff]  ;;  %v7809_v25 = vld [vmem:[#allocation4 + $0x5f] sm:$0xff] }
 0x87b   : > { %v6411_v12 = vpop.f32.mrf.mxu0 }
 0x87c   : > { %v12585_v54 = vadd.f32 %v6411_v12, %v6218_v31  ;;  %v6222_v30 = vpop.f32.mrf.mxu1  ;;  %9174 = vmatmul.mubr.msk.bf16.vlgmr.msra.gmra.mxu1 %vm3747_vm12, %v7554_v60 }
 0x87d   : > { %v6415_v22 = vpop.f32.mrf.mxu0  ;;  %9196 = vmatmul.mubr.msk.bf16.vlgmr.msra.gmra.mxu0 %vm3747_vm12, %v7824_v4  ;;  %7673 = vmatprep.mubr.bf16.mxu1 %v9990_v1  ;;  %v7556_v4 = vpack.c.bf16 %v7539_v15, %v7538_v0 }
 0x87e   : > { %v12592_v10 = vadd.f32 %v6415_v22, %v6222_v30  ;;  %7943 = vmatprep.mubr.bf16.mxu0 %v9990_v1  ;;  %v6224_v34 = vpop.f32.mrf.mxu1  ;;  %8182 = vmatpush1.bf16.msra.mxu1 %v9957_v5  ;;  %v7826_v5 = vpack.c.bf16 %v7809_v25, %v7808_v39  ;;  %v7542_v39 = vld [vmem:[#allocation4 + $0x76] sm:$0xff] }
 0x87f   : > { %v6417_v21 = vpop.f32.mrf.mxu0  ;;  %8183 = vmatprep.subr.bf16.mxu1 %v9962_v52 }
 0x880   : > { %v12599_v9 = vadd.f32 %v6417_v21, %v6224_v34  ;;  %v6226_v40 = vpop.f32.mrf.mxu1 }
 0x881   : > { %v6419_v59 = vpop.f32.mrf.mxu0 }
 0x882   : > { %v12604_v19 = vadd.f32 %v6419_v59, %v6226_v40  ;;  %v6228_v3 = vpop.f32.mrf.mxu1  ;;  %8184 = vmatpush1.bf16.msra.mxu1 %v9960_v36 }
 0x883   : > { %v6421_v57 = vpop.f32.mrf.mxu0  ;;  %8185 = vmatprep.subr.bf16.mxu1 %v9965_v41  ;;  %v7811_v41 = vld [vmem:[#allocation4 + $0x6f] sm:$0xff] }
 0x884   : > { %v12609_v38 = vadd.f32 %v6421_v57, %v6228_v3  ;;  %v6232_v58 = vpop.f32.mrf.mxu1  ;;  %9175 = vmatmul.mubr.msk.bf16.gmra.mxu1 %vm3747_vm12, %v7555_v26 }
 0x885   : > { %v6425_v62 = vpop.f32.mrf.mxu0  ;;  %9197 = vmatmul.mubr.msk.bf16.gmra.mxu0 %vm3747_vm12, %v7825_v50  ;;  %7683 = vmatprep.mubr.bf16.mxu1 %v9990_v1  ;;  %v7557_v50 = vpack.c.bf16 %v7541_v2, %v7540_v55 }
 0x886   : > { %v12613_v35 = vadd.f32 %v6425_v62, %v6232_v58  ;;  %7953 = vmatprep.mubr.bf16.mxu0 %v9990_v1  ;;  %v6234_v7 = vpop.f32.mrf.mxu1  ;;  %8186 = vmatpush1.bf16.msra.mxu1 %v9963_v48  ;;  %v7827_v48 = vpack.c.bf16 %v7811_v41, %v7810_v46 }
 0x887   : > { %v6427_v6 = vpop.f32.mrf.mxu0 }
 0x888   : > { %v12617_v45 = vadd.f32 %v6427_v6, %v6234_v7  ;;  %v6236_v63 = vpop.f32.mrf.mxu1 }
 0x889   : > { %v6429_v20 = vpop.f32.mrf.mxu0 }
 0x88a   : > { %v12619_v31 = vadd.f32 %v6429_v20, %v6236_v63  ;;  %v6238_v12 = vpop.f32.mrf.mxu1  ;;  %v7543_v63 = vld [vmem:[#allocation4 + $0x7e] sm:$0xff] }
 0x88b   : > { %v6431_v60 = vpop.f32.mrf.mxu0  ;;  %v7812_v20 = vld [vmem:[#allocation4 + $0x77] sm:$0xff] }
 0x88c   : > { %v12621_v52 = vadd.f32 %v6431_v60, %v6238_v12  ;;  %v6242_v30 = vpop.f32.mrf.mxu1  ;;  %9176 = vmatmul.mubr.msk.bf16.gmra.mxu1 %vm3747_vm12, %v7556_v4  ;;  %v7813_v12 = vld [vmem:[#allocation4 + $0x7f] sm:$0xff] }
 0x88d   : > { %v6435_v22 = vpop.f32.mrf.mxu0  ;;  %9198 = vmatmul.mubr.msk.bf16.gmra.mxu0 %vm3747_vm12, %v7826_v5  ;;  %7693 = vmatprep.mubr.bf16.mxu1 %v9990_v1 }
 0x88e   : > { %v12625_v34 = vadd.f32 %v6435_v22, %v6242_v30  ;;  %7963 = vmatprep.mubr.bf16.mxu0 %v9990_v1  ;;  %v6244_v21 = vpop.f32.mrf.mxu1 }
 0x88f   : > { %v6437_v43 = vpop.f32.mrf.mxu0 }
 0x890   : > { %v12629_v36 = vadd.f32 %v6437_v43, %v6244_v21  ;;  %v6246_v40 = vpop.f32.mrf.mxu1  ;;  %v7558_v21 = vpack.c.bf16 %v7543_v63, %v7542_v39  ;;  %v7828_v43 = vpack.c.bf16 %v7813_v12, %v7812_v20 }
 0x891   : > { %v6439_v59 = vpop.f32.mrf.mxu0 }
 0x892   : > { %v12631_v3 = vadd.f32 %v6439_v59, %v6246_v40  ;;  %v6248_v57 = vpop.f32.mrf.mxu1 }
 0x893   : > { %v6441_v26 = vpop.f32.mrf.mxu0 }
 0x894   : > { %v12633_v58 = vadd.f32 %v6441_v26, %v6248_v57  ;;  %v6252_v62 = vpop.f32.mrf.mxu1  ;;  %9177 = vmatmul.mubr.msk.bf16.gmra.mxu1 %vm3747_vm12, %v7557_v50  ;;  %v7544_v57 = vld [vmem:[#allocation4 + $0x86] sm:$0xff] }
 0x895   : > { %v6445_v7 = vpop.f32.mrf.mxu0  ;;  %9199 = vmatmul.mubr.msk.bf16.gmra.mxu0 %vm3747_vm12, %v7827_v48  ;;  %7703 = vmatprep.mubr.bf16.mxu1 %v9990_v1  ;;  %v7545_v48 = vld [vmem:[#allocation4 + $0x8e] sm:$0xff] }
 0x896   : > { %v12637_v6 = vadd.f32 %v6445_v7, %v6252_v62  ;;  %7973 = vmatprep.mubr.bf16.mxu0 %v9990_v1  ;;  %v6254_v0 = vpop.f32.mrf.mxu1  ;;  %v7814_v62 = vld [vmem:[#allocation4 + $0x87] sm:$0xff]  ;;  %v7815_v7 = vld [vmem:[#allocation4 + $0x8f] sm:$0xff]  ;;  %v7559_v12 = vpack.c.bf16 %v7545_v48, %v7544_v57  ;;  %v7817_v57 = vld [vmem:[#allocation4 + $0x9f] sm:$0xff] }
 0x897   : > { %v6447_v15 = vpop.f32.mrf.mxu0 }
 0x898   : > { %v12641_v25 = vadd.f32 %v6447_v15, %v6254_v0  ;;  %v6256_v60 = vpop.f32.mrf.mxu1 }
 0x899   : > { %v6449_v4 = vpop.f32.mrf.mxu0 }
 0x89a   : > { %v12643_v5 = vadd.f32 %v6449_v4, %v6256_v60  ;;  %v6258_v30 = vpop.f32.mrf.mxu1  ;;  %v7829_v60 = vpack.c.bf16 %v7815_v7, %v7814_v62 }
 0x89b   : > { %v6451_v22 = vpop.f32.mrf.mxu0 }
 0x89c   : > { %v12645_v55 = vadd.f32 %v6451_v22, %v6258_v30  ;;  %v6585_v2 = vpop.f32.mrf.mxu1  ;;  %9178 = vmatmul.mubr.msk.bf16.gmra.mxu1 %vm3747_vm12, %v7558_v21 }
 0x89d   : > { %v6855_v46 = vpop.f32.mrf.mxu0  ;;  %9200 = vmatmul.mubr.msk.bf16.gmra.mxu0 %vm3747_vm12, %v7828_v43  ;;  %v6684_v41 = vadd.f32 %v6585_v2, %v12514_v18  ;;  %7713 = vmatprep.mubr.bf16.mxu1 %v9990_v1 }
 0x89e   : > { %7983 = vmatprep.mubr.bf16.mxu0 %v9990_v1  ;;  %v6587_v40 = vpop.f32.mrf.mxu1 }
 0x89f   : > { %v6857_v59 = vpop.f32.mrf.mxu0  ;;  %v12652_v26 = vadd.f32 %v6855_v46, %v6684_v41  ;;  %v6685_v50 = vadd.f32 %v6587_v40, %v12518_v17  ;;  %v7546_v46 = vld [vmem:[#allocation4 + $0x96] sm:$0xff]  ;;  %v7547_v40 = vld [vmem:[#allocation4 + $0x9e] sm:$0xff] }
 0x8a0   : > { %v6589_v0 = vpop.f32.mrf.mxu1 }
 0x8a1   : > { %v6859_v15 = vpop.f32.mrf.mxu0  ;;  %v12655_v39 = vadd.f32 %v6857_v59, %v6685_v50  ;;  %v6686_v18 = vadd.f32 %v6589_v0, %v12520_v27  ;;  %v7816_v59 = vld [vmem:[#allocation4 + $0x97] sm:$0xff] }
 0x8a2   : > { %v6591_v63 = vpop.f32.mrf.mxu1 }
 0x8a3   : > { %v6861_v20 = vpop.f32.mrf.mxu0  ;;  %v12658_v4 = vadd.f32 %v6859_v15, %v6686_v18  ;;  %v6687_v30 = vadd.f32 %v6591_v63, %v12522_v47  ;;  %v7560_v15 = vpack.c.bf16 %v7547_v40, %v7546_v46  ;;  %v7830_v18 = vpack.c.bf16 %v7817_v57, %v7816_v59  ;;  %v7819_v46 = vld [vmem:[#allocation4 + $0xaf] sm:$0xff] }
 0x8a4   : > { %v6595_v22 = vpop.f32.mrf.mxu1  ;;  %9179 = vmatmul.mubr.msk.bf16.gmra.mxu1 %vm3747_vm12, %v7559_v12 }
 0x8a5   : > { %v6865_v21 = vpop.f32.mrf.mxu0  ;;  %9201 = vmatmul.mubr.msk.bf16.gmra.mxu0 %vm3747_vm12, %v7829_v60  ;;  %v12663_v17 = vadd.f32 %v6861_v20, %v6687_v30  ;;  %v6688_v43 = vadd.f32 %v6595_v22, %v12526_v29  ;;  %7723 = vmatprep.mubr.bf16.mxu1 %v9990_v1 }
 0x8a6   : > { %7993 = vmatprep.mubr.bf16.mxu0 %v9990_v1  ;;  %v6597_v27 = vpop.f32.mrf.mxu1 }
 0x8a7   : > { %v6867_v2 = vpop.f32.mrf.mxu0  ;;  %v12668_v41 = vadd.f32 %v6865_v21, %v6688_v43  ;;  %v6689_v47 = vadd.f32 %v6597_v27, %v12530_v37  ;;  %v7548_v21 = vld [vmem:[#allocation4 + $0xa6] sm:$0xff]  ;;  %v7549_v27 = vld [vmem:[#allocation4 + $0xae] sm:$0xff] }
 0x8a8   : > { %v6599_v50 = vpop.f32.mrf.mxu1 }
 0x8a9   : > { %v6869_v48 = vpop.f32.mrf.mxu0  ;;  %v12671_v62 = vadd.f32 %v6867_v2, %v6689_v47  ;;  %v6690_v29 = vadd.f32 %v6599_v50, %v12532_v14  ;;  %v7818_v2 = vld [vmem:[#allocation4 + $0xa7] sm:$0xff] }
 0x8aa   : > { %v6601_v7 = vpop.f32.mrf.mxu1 }
 0x8ab   : > { %v6871_v0 = vpop.f32.mrf.mxu0  ;;  %v12674_v63 = vadd.f32 %v6869_v48, %v6690_v29  ;;  %v6691_v20 = vadd.f32 %v6601_v7, %v12534_v61  ;;  %v7561_v48 = vpack.c.bf16 %v7549_v27, %v7548_v21  ;;  %v7831_v29 = vpack.c.bf16 %v7819_v46, %v7818_v2  ;;  %v7821_v21 = vld [vmem:[#allocation4 + $0xbf] sm:$0xff] }
 0x8ac   : > { %v6605_v12 = vpop.f32.mrf.mxu1  ;;  %9180 = vmatmul.mubr.msk.bf16.gmra.mxu1 %vm3747_vm12, %v7560_v15 }
 0x8ad   : > { %v6875_v60 = vpop.f32.mrf.mxu0  ;;  %9202 = vmatmul.mubr.msk.bf16.gmra.mxu0 %vm3747_vm12, %v7830_v18  ;;  %v12679_v37 = vadd.f32 %v6871_v0, %v6691_v20  ;;  %v6692_v30 = vadd.f32 %v6605_v12, %v12538_v16  ;;  %7733 = vmatprep.mubr.bf16.mxu1 %v9990_v1 }
 0x8ae   : > { %8003 = vmatprep.mubr.bf16.mxu0 %v9990_v1  ;;  %v6607_v14 = vpop.f32.mrf.mxu1 }
 0x8af   : > { %v6877_v22 = vpop.f32.mrf.mxu0  ;;  %v12684_v43 = vadd.f32 %v6875_v60, %v6692_v30  ;;  %v6693_v61 = vadd.f32 %v6607_v14, %v12542_v8  ;;  %v7550_v60 = vld [vmem:[#allocation4 + $0xb6] sm:$0xff]  ;;  %v7551_v14 = vld [vmem:[#allocation4 + $0xbe] sm:$0xff] }
 0x8b0   : > { %v6609_v47 = vpop.f32.mrf.mxu1 }
 0x8b1   : > { %v6879_v40 = vpop.f32.mrf.mxu0  ;;  %v12687_v59 = vadd.f32 %v6877_v22, %v6693_v61  ;;  %v6694_v16 = vadd.f32 %v6609_v47, %v12544_v23  ;;  %v7820_v22 = vld [vmem:[#allocation4 + $0xb7] sm:$0xff] }
 0x8b2   : > { %v6611_v57 = vpop.f32.mrf.mxu1 }
 0x8b3   : > { %v6881_v50 = vpop.f32.mrf.mxu0  ;;  %v12690_v7 = vadd.f32 %v6879_v40, %v6694_v16  ;;  %v6695_v0 = vadd.f32 %v6611_v57, %v12546_v42  ;;  %v7562_v40 = vpack.c.bf16 %v7551_v14, %v7550_v60  ;;  %v7832_v16 = vpack.c.bf16 %v7821_v21, %v7820_v22  ;;  %v7823_v60 = vld [vmem:[#allocation4 + $0xcf] sm:$0xff] }
 0x8b4   : > { %v6615_v15 = vpop.f32.mrf.mxu1  ;;  %9181 = vmatmul.mubr.msk.bf16.gmra.mxu1 %vm3747_vm12, %v7561_v48 }
 0x8b5   : > { %v6885_v18 = vpop.f32.mrf.mxu0  ;;  %9203 = vmatmul.mubr.msk.bf16.gmra.mxu0 %vm3747_vm12, %v7831_v29  ;;  %v12695_v8 = vadd.f32 %v6881_v50, %v6695_v0  ;;  %v6696_v20 = vadd.f32 %v6615_v15, %v12550_v53  ;;  %7743 = vmatprep.mubr.bf16.mxu1 %v9990_v1 }
 0x8b6   : > { %8013 = vmatprep.mubr.bf16.mxu0 %v9990_v1  ;;  %v6617_v23 = vpop.f32.mrf.mxu1 }
 0x8b7   : > { %v6887_v12 = vpop.f32.mrf.mxu0  ;;  %v12700_v30 = vadd.f32 %v6885_v18, %v6696_v20  ;;  %v6697_v42 = vadd.f32 %v6617_v23, %v12554_v32  ;;  %v7552_v18 = vld [vmem:[#allocation4 + $0xc6] sm:$0xff]  ;;  %v7553_v23 = vld [vmem:[#allocation4 + $0xce] sm:$0xff] }
 0x8b8   : > { %v6619_v61 = vpop.f32.mrf.mxu1 }
 0x8b9   : > { %v6889_v27 = vpop.f32.mrf.mxu0  ;;  %v12703_v2 = vadd.f32 %v6887_v12, %v6697_v42  ;;  %v6698_v53 = vadd.f32 %v6619_v61, %v12556_v28  ;;  %v7822_v12 = vld [vmem:[#allocation4 + $0xc7] sm:$0xff] }
 0x8ba   : > { %v6621_v46 = vpop.f32.mrf.mxu1 }
 0x8bb   : > { %v6891_v47 = vpop.f32.mrf.mxu0  ;;  %v12706_v57 = vadd.f32 %v6889_v27, %v6698_v53  ;;  %v6699_v50 = vadd.f32 %v6621_v46, %v12558_v24  ;;  %v7563_v27 = vpack.c.bf16 %v7553_v23, %v7552_v18  ;;  %v7833_v53 = vpack.c.bf16 %v7823_v60, %v7822_v12  ;;  %v8074_v23 = vld [vmem:[#allocation4 + $0x38] sm:$0xff] }
 0x8bc   : > { %v6625_v48 = vpop.f32.mrf.mxu1  ;;  %9182 = vmatmul.mubr.msk.bf16.gmra.mxu1 %vm3747_vm12, %v7562_v40 }
 0x8bd   : > { %v6895_v29 = vpop.f32.mrf.mxu0  ;;  %9204 = vmatmul.mubr.msk.bf16.gmra.mxu0 %vm3747_vm12, %v7832_v16  ;;  %v12711_v32 = vadd.f32 %v6891_v47, %v6699_v50  ;;  %v6700_v0 = vadd.f32 %v6625_v48, %v12562_v11  ;;  %7753 = vmatprep.mubr.bf16.mxu1 %v9990_v1 }
 0x8be   : > { %8023 = vmatprep.mubr.bf16.mxu0 %v9990_v1  ;;  %v6627_v28 = vpop.f32.mrf.mxu1 }
 0x8bf   : > { %v6897_v15 = vpop.f32.mrf.mxu0  ;;  %v12716_v20 = vadd.f32 %v6895_v29, %v6700_v0  ;;  %v6701_v24 = vadd.f32 %v6627_v28, %v12566_v51  ;;  %v8075_v28 = vld [vmem:[#allocation4 + $0x40] sm:$0xff] }
 0x8c0   : > { %v6629_v42 = vpop.f32.mrf.mxu1 }
 0x8c1   : > { %v6899_v14 = vpop.f32.mrf.mxu0  ;;  %v12719_v22 = vadd.f32 %v6897_v15, %v6701_v24  ;;  %v6702_v11 = vadd.f32 %v6629_v42, %v12568_v56  ;;  %v8094_v42 = vpack.c.bf16 %v8075_v28, %v8074_v23 }
 0x8c2   : > { %v6631_v21 = vpop.f32.mrf.mxu1 }
 0x8c3   : > { %v6901_v61 = vpop.f32.mrf.mxu0  ;;  %v12722_v46 = vadd.f32 %v6899_v14, %v6702_v11  ;;  %v6703_v47 = vadd.f32 %v6631_v21, %v12570_v44 }
 0x8c4   : > { %v6635_v40 = vpop.f32.mrf.mxu1  ;;  %9183 = vmatmul.mubr.msk.bf16.gmra.mxu1 %vm3747_vm12, %v7563_v27 }
 0x8c5   : > { %v6905_v16 = vpop.f32.mrf.mxu0  ;;  %9205 = vmatmul.mubr.msk.bf16.gmra.mxu0 %vm3747_vm12, %v7833_v53  ;;  %v12727_v51 = vadd.f32 %v6901_v61, %v6703_v47  ;;  %v6704_v50 = vadd.f32 %v6635_v40, %v12574_v49  ;;  %8203 = vmatprep.mubr.bf16.mxu1 %v9990_v1  ;;  %v8076_v40 = vld [vmem:[#allocation4 + $0x48] sm:$0xff] }
 0x8c6   : > { %v6637_v56 = vpop.f32.mrf.mxu1 }
 0x8c7   : > { %v6907_v48 = vpop.f32.mrf.mxu0  ;;  %v12731_v29 = vadd.f32 %v6905_v16, %v6704_v50  ;;  %v6705_v0 = vadd.f32 %v6637_v56, %v12578_v13  ;;  %v8077_v16 = vld [vmem:[#allocation4 + $0x50] sm:$0xff] }
 0x8c8   : > { %v6639_v44 = vpop.f32.mrf.mxu1 }
 0x8c9   : > { %v6909_v15 = vpop.f32.mrf.mxu0  ;;  %v12734_v18 = vadd.f32 %v6907_v48, %v6705_v0  ;;  %v6706_v24 = vadd.f32 %v6639_v44, %v12580_v33  ;;  %v8095_v44 = vpack.c.bf16 %v8077_v16, %v8076_v40 }
 0x8ca   : > { %v6641_v12 = vpop.f32.mrf.mxu1 }
 0x8cb   : > { %v6911_v60 = vpop.f32.mrf.mxu0  ;;  %v12737_v49 = vadd.f32 %v6909_v15, %v6706_v24  ;;  %v6707_v14 = vadd.f32 %v6641_v12, %v12585_v54 }
 0x8cc   : > { %v6645_v11 = vpop.f32.mrf.mxu1  ;;  %9218 = vmatmul.mubr.msk.bf16.vlgmr.msra.gmra.mxu1 %vm3747_vm12, %v8094_v42 }
 0x8cd   : > { %v6915_v21 = vpop.f32.mrf.mxu0  ;;  %v12741_v13 = vadd.f32 %v6911_v60, %v6707_v14  ;;  %v6708_v61 = vadd.f32 %v6645_v11, %v12592_v10  ;;  %8213 = vmatprep.mubr.bf16.mxu1 %v9990_v1  ;;  %v8078_v11 = vld [vmem:[#allocation4 + $0x58] sm:$0xff] }
 0x8ce   : > { %v6647_v27 = vpop.f32.mrf.mxu1 }
 0x8cf   : > { %v6917_v33 = vpop.f32.mrf.mxu0  ;;  %v12745_v53 = vadd.f32 %v6915_v21, %v6708_v61  ;;  %v6709_v47 = vadd.f32 %v6647_v27, %v12599_v9  ;;  %v8079_v21 = vld [vmem:[#allocation4 + $0x60] sm:$0xff] }
 0x8d0   : > { %v6649_v50 = vpop.f32.mrf.mxu1  ;;  %v8096_v16 = vpack.c.bf16 %v8079_v21, %v8078_v11 }
 0x8d1   : > { %v6919_v54 = vpop.f32.mrf.mxu0  ;;  %v12748_v56 = vadd.f32 %v6917_v33, %v6709_v47  ;;  %v6710_v48 = vadd.f32 %v6649_v50, %v12604_v19 }
 0x8d2   : > { %v6651_v0 = vpop.f32.mrf.mxu1 }
 0x8d3   : > { %v6921_v28 = vpop.f32.mrf.mxu0  ;;  %v12751_v10 = vadd.f32 %v6919_v54, %v6710_v48  ;;  %v6711_v15 = vadd.f32 %v6651_v0, %v12609_v38 }
 0x8d4   : > { %v6655_v24 = vpop.f32.mrf.mxu1  ;;  %9219 = vmatmul.mubr.msk.bf16.gmra.mxu1 %vm3747_vm12, %v8095_v44 }
 0x8d5   : > { %v6925_v23 = vpop.f32.mrf.mxu0  ;;  %v12755_v9 = vadd.f32 %v6921_v28, %v6711_v15  ;;  %v6712_v12 = vadd.f32 %v6655_v24, %v12613_v35  ;;  %8223 = vmatprep.mubr.bf16.mxu1 %v9990_v1  ;;  %v8080_v24 = vld [vmem:[#allocation4 + $0x68] sm:$0xff] }
 0x8d6   : > { %v6657_v60 = vpop.f32.mrf.mxu1 }
 0x8d7   : > { %v6927_v42 = vpop.f32.mrf.mxu0  ;;  %v12759_v19 = vadd.f32 %v6925_v23, %v6712_v12  ;;  %v6713_v14 = vadd.f32 %v6657_v60, %v12617_v45  ;;  %v8081_v23 = vld [vmem:[#allocation4 + $0x70] sm:$0xff] }
 0x8d8   : > { %v6659_v61 = vpop.f32.mrf.mxu1  ;;  %v8097_v21 = vpack.c.bf16 %v8081_v23, %v8080_v24 }
 0x8d9   : > { %v6929_v38 = vpop.f32.mrf.mxu0  ;;  %v12762_v27 = vadd.f32 %v6927_v42, %v6713_v14  ;;  %v6714_v33 = vadd.f32 %v6659_v61, %v12619_v31 }
 0x8da   : > { %v6661_v47 = vpop.f32.mrf.mxu1 }
 0x8db   : > { %v6931_v40 = vpop.f32.mrf.mxu0  ;;  %v12765_v35 = vadd.f32 %v6929_v38, %v6714_v33  ;;  %v6715_v50 = vadd.f32 %v6661_v47, %v12621_v52 }
 0x8dc   : > { %v6665_v54 = vpop.f32.mrf.mxu1  ;;  %9220 = vmatmul.mubr.msk.bf16.gmra.mxu1 %vm3747_vm12, %v8096_v16 }
 0x8dd   : > { %v6935_v48 = vpop.f32.mrf.mxu0  ;;  %v12769_v45 = vadd.f32 %v6931_v40, %v6715_v50  ;;  %v6716_v0 = vadd.f32 %v6665_v54, %v12625_v34  ;;  %8233 = vmatprep.mubr.bf16.mxu1 %v9990_v1  ;;  %v8082_v54 = vld [vmem:[#allocation4 + $0x78] sm:$0xff] }
 0x8de   : > { %v6667_v28 = vpop.f32.mrf.mxu1 }
 0x8df   : > { %v6937_v44 = vpop.f32.mrf.mxu0  ;;  %v12773_v31 = vadd.f32 %v6935_v48, %v6716_v0  ;;  %v6717_v15 = vadd.f32 %v6667_v28, %v12629_v36  ;;  %v8083_v48 = vld [vmem:[#allocation4 + $0x80] sm:$0xff] }
 0x8e0   : > { %v6669_v12 = vpop.f32.mrf.mxu1  ;;  %v8098_v23 = vpack.c.bf16 %v8083_v48, %v8082_v54 }
 0x8e1   : > { %v6939_v52 = vpop.f32.mrf.mxu0  ;;  %v12776_v60 = vadd.f32 %v6937_v44, %v6717_v15  ;;  %v6718_v42 = vadd.f32 %v6669_v12, %v12631_v3 }
 0x8e2   : > { %v6671_v14 = vpop.f32.mrf.mxu1 }
 0x8e3   : > { %v6941_v11 = vpop.f32.mrf.mxu0  ;;  %v12779_v34 = vadd.f32 %v6939_v52, %v6718_v42  ;;  %v6719_v61 = vadd.f32 %v6671_v14, %v12633_v58 }
 0x8e4   : > { %v6675_v38 = vpop.f32.mrf.mxu1  ;;  %9221 = vmatmul.mubr.msk.bf16.gmra.mxu1 %vm3747_vm12, %v8097_v21 }
 0x8e5   : > { %v6945_v33 = vpop.f32.mrf.mxu0  ;;  %v12783_v36 = vadd.f32 %v6941_v11, %v6719_v61  ;;  %v6720_v47 = vadd.f32 %v6675_v38, %v12637_v6  ;;  %8243 = vmatprep.mubr.bf16.mxu1 %v9990_v1  ;;  %v8084_v38 = vld [vmem:[#allocation4 + $0x88] sm:$0xff] }
 0x8e6   : > { %v6677_v40 = vpop.f32.mrf.mxu1 }
 0x8e7   : > { %v6947_v16 = vpop.f32.mrf.mxu0  ;;  %v12787_v3 = vadd.f32 %v6945_v33, %v6720_v47  ;;  %v6721_v50 = vadd.f32 %v6677_v40, %v12641_v25  ;;  %v8085_v33 = vld [vmem:[#allocation4 + $0x90] sm:$0xff] }
 0x8e8   : > { %v6679_v0 = vpop.f32.mrf.mxu1  ;;  %v8099_v48 = vpack.c.bf16 %v8085_v33, %v8084_v38 }
 0x8e9   : > { %v6949_v58 = vpop.f32.mrf.mxu0  ;;  %v12790_v28 = vadd.f32 %v6947_v16, %v6721_v50  ;;  %v6722_v44 = vadd.f32 %v6679_v0, %v12643_v5 }
 0x8ea   : > { %v6681_v15 = vpop.f32.mrf.mxu1 }
 0x8eb   : > { %v6951_v24 = vpop.f32.mrf.mxu0  ;;  %v12793_v6 = vadd.f32 %v6949_v58, %v6722_v44  ;;  %v6723_v12 = vadd.f32 %v6681_v15, %v12645_v55 }
 0x8ec   : > { %v7125_v52 = vpop.f32.mrf.mxu1  ;;  %9222 = vmatmul.mubr.msk.bf16.gmra.mxu1 %vm3747_vm12, %v8098_v23 }
 0x8ed   : > { %v7395_v42 = vpop.f32.mrf.mxu0  ;;  %v12797_v25 = vadd.f32 %v6951_v24, %v6723_v12  ;;  %v7224_v14 = vadd.f32 %v7125_v52, %v12652_v26  ;;  %8253 = vmatprep.mubr.bf16.mxu1 %v9990_v1  ;;  %v8086_v52 = vld [vmem:[#allocation4 + $0x98] sm:$0xff] }
 0x8ee   : > { %v7127_v11 = vpop.f32.mrf.mxu1 }
 0x8ef   : > { %v7397_v21 = vpop.f32.mrf.mxu0  ;;  %v12801_v5 = vadd.f32 %v7395_v42, %v7224_v14  ;;  %v7225_v61 = vadd.f32 %v7127_v11, %v12655_v39  ;;  %v8087_v42 = vld [vmem:[#allocation4 + $0xa0] sm:$0xff] }
 0x8f0   : > { %v7129_v47 = vpop.f32.mrf.mxu1  ;;  %v8100_v33 = vpack.c.bf16 %v8087_v42, %v8086_v52 }
 0x8f1   : > { %v7399_v55 = vpop.f32.mrf.mxu0  ;;  %v12804_v40 = vadd.f32 %v7397_v21, %v7225_v61  ;;  %v7226_v16 = vadd.f32 %v7129_v47, %v12658_v4 }
 0x8f2   : > { %v7131_v50 = vpop.f32.mrf.mxu1 }
 0x8f3   : > { %v7401_v54 = vpop.f32.mrf.mxu0  ;;  %v12807_v26 = vadd.f32 %v7399_v55, %v7226_v16  ;;  %v7227_v0 = vadd.f32 %v7131_v50, %v12663_v17 }
 0x8f4   : > { %v7135_v58 = vpop.f32.mrf.mxu1  ;;  %9223 = vmatmul.mubr.msk.bf16.gmra.mxu1 %vm3747_vm12, %v8099_v48 }
 0x8f5   : > { %v7405_v44 = vpop.f32.mrf.mxu0  ;;  %v12811_v39 = vadd.f32 %v7401_v54, %v7227_v0  ;;  %v7228_v15 = vadd.f32 %v7135_v58, %v12668_v41  ;;  %8263 = vmatprep.mubr.bf16.mxu1 %v9990_v1  ;;  %v8088_v58 = vld [vmem:[#allocation4 + $0xa8] sm:$0xff] }
 0x8f6   : > { %v7137_v24 = vpop.f32.mrf.mxu1 }
 0x8f7   : > { %v7407_v23 = vpop.f32.mrf.mxu0  ;;  %v12815_v4 = vadd.f32 %v7405_v44, %v7228_v15  ;;  %v7229_v12 = vadd.f32 %v7137_v24, %v12671_v62  ;;  %v8089_v44 = vld [vmem:[#allocation4 + $0xb0] sm:$0xff] }
 0x8f8   : > { %v7139_v14 = vpop.f32.mrf.mxu1  ;;  %v8101_v42 = vpack.c.bf16 %v8089_v44, %v8088_v58 }
 0x8f9   : > { %v7409_v17 = vpop.f32.mrf.mxu0  ;;  %v12818_v11 = vadd.f32 %v7407_v23, %v7229_v12  ;;  %v7230_v21 = vadd.f32 %v7139_v14, %v12674_v63 }
 0x8fa   : > { %v7141_v61 = vpop.f32.mrf.mxu1 }
 0x8fb   : > { %v7411_v38 = vpop.f32.mrf.mxu0  ;;  %v12821_v41 = vadd.f32 %v7409_v17, %v7230_v21  ;;  %v7231_v47 = vadd.f32 %v7141_v61, %v12679_v37 }
 0x8fc   : > { %v7145_v55 = vpop.f32.mrf.mxu1  ;;  %9224 = vmatmul.mubr.msk.bf16.gmra.mxu1 %vm3747_vm12, %v8100_v33 }
 0x8fd   : > { %v7415_v16 = vpop.f32.mrf.mxu0  ;;  %v12825_v62 = vadd.f32 %v7411_v38, %v7231_v47  ;;  %v7232_v50 = vadd.f32 %v7145_v55, %v12684_v43  ;;  %8273 = vmatprep.mubr.bf16.mxu1 %v9990_v1  ;;  %v8090_v55 = vld [vmem:[#allocation4 + $0xb8] sm:$0xff] }
 0x8fe   : > { %v7147_v54 = vpop.f32.mrf.mxu1 }
 0x8ff   : > { %v7417_v48 = vpop.f32.mrf.mxu0  ;;  %v12829_v63 = vadd.f32 %v7415_v16, %v7232_v50  ;;  %v7233_v0 = vadd.f32 %v7147_v54, %v12687_v59  ;;  %v8091_v16 = vld [vmem:[#allocation4 + $0xc0] sm:$0xff] }
 0x900   : > { %v7149_v15 = vpop.f32.mrf.mxu1  ;;  %v8102_v44 = vpack.c.bf16 %v8091_v16, %v8090_v55 }
 0x901   : > { %v7419_v37 = vpop.f32.mrf.mxu0  ;;  %v12832_v24 = vadd.f32 %v7417_v48, %v7233_v0  ;;  %v7234_v23 = vadd.f32 %v7149_v15, %v12690_v7 }
 0x902   : > { %v7151_v12 = vpop.f32.mrf.mxu1 }
 0x903   : > { %v7421_v52 = vpop.f32.mrf.mxu0  ;;  %v12835_v43 = vadd.f32 %v7419_v37, %v7234_v23  ;;  %v7235_v14 = vadd.f32 %v7151_v12, %v12695_v8 }
 0x904   : > { %v7155_v17 = vpop.f32.mrf.mxu1  ;;  %9225 = vmatmul.mubr.msk.bf16.gmra.mxu1 %vm3747_vm12, %v8101_v42 }
 0x905   : > { %v7425_v21 = vpop.f32.mrf.mxu0  ;;  %v12839_v59 = vadd.f32 %v7421_v52, %v7235_v14  ;;  %v7236_v61 = vadd.f32 %v7155_v17, %v12700_v30  ;;  %8283 = vmatprep.mubr.bf16.mxu1 %v9990_v1  ;;  %v8092_v17 = vld [vmem:[#allocation4 + $0xc8] sm:$0xff] }
 0x906   : > { %v7157_v38 = vpop.f32.mrf.mxu1 }
 0x907   : > { %v7427_v33 = vpop.f32.mrf.mxu0  ;;  %v12843_v7 = vadd.f32 %v7425_v21, %v7236_v61  ;;  %v7237_v47 = vadd.f32 %v7157_v38, %v12703_v2  ;;  %v8093_v21 = vld [vmem:[#allocation4 + $0xd0] sm:$0xff] }
 0x908   : > { %v7159_v50 = vpop.f32.mrf.mxu1  ;;  %v8103_v16 = vpack.c.bf16 %v8093_v21, %v8092_v17 }
 0x909   : > { %v7429_v8 = vpop.f32.mrf.mxu0  ;;  %v12846_v54 = vadd.f32 %v7427_v33, %v7237_v47  ;;  %v7238_v48 = vadd.f32 %v7159_v50, %v12706_v57 }
 0x90a   : > { %v7161_v0 = vpop.f32.mrf.mxu1 }
 0x90b   : > { %v7431_v58 = vpop.f32.mrf.mxu0  ;;  %v12849_v30 = vadd.f32 %v7429_v8, %v7238_v48  ;;  %v7239_v15 = vadd.f32 %v7161_v0, %v12711_v32 }
 0x90c   : > { %v7165_v37 = vpop.f32.mrf.mxu1  ;;  %9226 = vmatmul.mubr.msk.bf16.gmra.mxu1 %vm3747_vm12, %v8102_v44 }
 0x90d   : > { %v7435_v23 = vpop.f32.mrf.mxu0  ;;  %v12853_v2 = vadd.f32 %v7431_v58, %v7239_v15  ;;  %v7240_v12 = vadd.f32 %v7165_v37, %v12716_v20  ;;  %8293 = vmatprep.mubr.bf16.mxu1 %v9990_v1 }
 0x90e   : > { %v7167_v52 = vpop.f32.mrf.mxu1 }
 0x90f   : > { %v7437_v42 = vpop.f32.mrf.mxu0  ;;  %v12857_v57 = vadd.f32 %v7435_v23, %v7240_v12  ;;  %v7241_v14 = vadd.f32 %v7167_v52, %v12719_v22 }
 0x910   : > { %v7169_v61 = vpop.f32.mrf.mxu1 }
 0x911   : > { %v7439_v32 = vpop.f32.mrf.mxu0  ;;  %v12860_v38 = vadd.f32 %v7437_v42, %v7241_v14  ;;  %v7242_v33 = vadd.f32 %v7169_v61, %v12722_v46 }
 0x912   : > { %v7171_v47 = vpop.f32.mrf.mxu1 }
 0x913   : > { %v7441_v55 = vpop.f32.mrf.mxu0  ;;  %v12863_v20 = vadd.f32 %v7439_v32, %v7242_v33  ;;  %v7243_v1 = vadd.f32 %v7171_v47, %v12727_v51 }
 0x914   : > { %v7175_v50 = vpop.f32.mrf.mxu1  ;;  %9227 = vmatmul.mubr.msk.bf16.gmra.mxu1 %vm3747_vm12, %v8103_v16 }
 0x915   : > { %v7445_v8 = vpop.f32.mrf.mxu0  ;;  %v12867_v22 = vadd.f32 %v7441_v55, %v7243_v1  ;;  %v7244_v48 = vadd.f32 %v7175_v50, %v12731_v29 }
 0x916   : > { %v7177_v0 = vpop.f32.mrf.mxu1 }
 0x917   : > { %v7447_v58 = vpop.f32.mrf.mxu0  ;;  %v12870_v44 = vadd.f32 %v7445_v8, %v7244_v48  ;;  %v7245_v46 = vadd.f32 %v7177_v0, %v12734_v18 }
 0x918   : > { %v7179_v15 = vpop.f32.mrf.mxu1 }
 0x919   : > { %v7449_v37 = vpop.f32.mrf.mxu0  ;;  %v12873_v23 = vadd.f32 %v7447_v58, %v7245_v46  ;;  %v7246_v51 = vadd.f32 %v7179_v15, %v12737_v49 }
 0x91a   : > { %v7181_v12 = vpop.f32.mrf.mxu1 }
 0x91b   : > { %v7451_v52 = vpop.f32.mrf.mxu0  ;;  %v12876_v42 = vadd.f32 %v7449_v37, %v7246_v51  ;;  %v7247_v14 = vadd.f32 %v7181_v12, %v12741_v13 }
 0x91c   : > { %v7185_v17 = vpop.f32.mrf.mxu1 }
 0x91d   : > { %v7455_v29 = vpop.f32.mrf.mxu0  ;;  %v12879_v21 = vadd.f32 %v7451_v52, %v7247_v14  ;;  %v7248_v61 = vadd.f32 %v7185_v17, %v12745_v53 }
 0x91e   : > { %v7187_v32 = vpop.f32.mrf.mxu1 }
 0x91f   : > { %v7457_v18 = vpop.f32.mrf.mxu0  ;;  %v12882_v33 = vadd.f32 %v7455_v29, %v7248_v61  ;;  %v7249_v47 = vadd.f32 %v7187_v32, %v12748_v56 }
 0x920   : > { %v7189_v55 = vpop.f32.mrf.mxu1 }
 0x921   : > { %v7459_v49 = vpop.f32.mrf.mxu0  ;;  %v12885_v16 = vadd.f32 %v7457_v18, %v7249_v47  ;;  %v7250_v1 = vadd.f32 %v7189_v55, %v12751_v10 }
 0x922   : > { %v7191_v50 = vpop.f32.mrf.mxu1 }
 0x923   : > { %v7461_v13 = vpop.f32.mrf.mxu0  ;;  %v12888_v8 = vadd.f32 %v7459_v49, %v7250_v1  ;;  %v7251_v48 = vadd.f32 %v7191_v50, %v12755_v9 }
 0x924   : > { %v7195_v0 = vpop.f32.mrf.mxu1 }
 0x925   : > { %v7465_v53 = vpop.f32.mrf.mxu0  ;;  %v12891_v58 = vadd.f32 %v7461_v13, %v7251_v48  ;;  %v7252_v46 = vadd.f32 %v7195_v0, %v12759_v19 }
 0x926   : > { %v7197_v15 = vpop.f32.mrf.mxu1 }
 0x927   : > { %v7467_v56 = vpop.f32.mrf.mxu0  ;;  %v12894_v37 = vadd.f32 %v7465_v53, %v7252_v46  ;;  %v7253_v51 = vadd.f32 %v7197_v15, %v12762_v27 }
 0x928   : > { %v7199_v12 = vpop.f32.mrf.mxu1 }
 0x929   : > { %v7469_v10 = vpop.f32.mrf.mxu0  ;;  %v12897_v52 = vadd.f32 %v7467_v56, %v7253_v51  ;;  %v7254_v14 = vadd.f32 %v7199_v12, %v12765_v35 }
 0x92a   : > { %v7201_v17 = vpop.f32.mrf.mxu1 }
 0x92b   : > { %v7471_v9 = vpop.f32.mrf.mxu0  ;;  %v12900_v29 = vadd.f32 %v7469_v10, %v7254_v14  ;;  %v7255_v61 = vadd.f32 %v7201_v17, %v12769_v45 }
 0x92c   : > { %v7205_v32 = vpop.f32.mrf.mxu1 }
 0x92d   : > { %v7475_v19 = vpop.f32.mrf.mxu0  ;;  %v12903_v18 = vadd.f32 %v7471_v9, %v7255_v61  ;;  %v7256_v47 = vadd.f32 %v7205_v32, %v12773_v31 }
 0x92e   : > { %v7207_v55 = vpop.f32.mrf.mxu1 }
 0x92f   : > { %v7477_v27 = vpop.f32.mrf.mxu0  ;;  %v12906_v49 = vadd.f32 %v7475_v19, %v7256_v47  ;;  %v7257_v1 = vadd.f32 %v7207_v55, %v12776_v60 }
 0x930   : > { %v7209_v50 = vpop.f32.mrf.mxu1 }
 0x931   : > { %v7479_v35 = vpop.f32.mrf.mxu0  ;;  %v12909_v13 = vadd.f32 %v7477_v27, %v7257_v1  ;;  %v7258_v48 = vadd.f32 %v7209_v50, %v12779_v34 }
 0x932   : > { %v7211_v0 = vpop.f32.mrf.mxu1 }
 0x933   : > { %v7481_v45 = vpop.f32.mrf.mxu0  ;;  %v12912_v53 = vadd.f32 %v7479_v35, %v7258_v48  ;;  %v7259_v46 = vadd.f32 %v7211_v0, %v12783_v36 }
 0x934   : > { %v7215_v15 = vpop.f32.mrf.mxu1 }
 0x935   : > { %v7485_v31 = vpop.f32.mrf.mxu0  ;;  %v12915_v56 = vadd.f32 %v7481_v45, %v7259_v46  ;;  %v7260_v51 = vadd.f32 %v7215_v15, %v12787_v3 }
 0x936   : > { %v7217_v12 = vpop.f32.mrf.mxu1 }
 0x937   : > { %v7487_v60 = vpop.f32.mrf.mxu0  ;;  %v12918_v10 = vadd.f32 %v7485_v31, %v7260_v51  ;;  %v7261_v14 = vadd.f32 %v7217_v12, %v12790_v28 }
 0x938   : > { %v7219_v17 = vpop.f32.mrf.mxu1 }
 0x939   : > { %v7489_v34 = vpop.f32.mrf.mxu0  ;;  %v12921_v9 = vadd.f32 %v7487_v60, %v7261_v14  ;;  %v7262_v61 = vadd.f32 %v7219_v17, %v12793_v6 }
 0x93a   : > { %v7221_v32 = vpop.f32.mrf.mxu1 }
 0x93b   : > { %v7491_v36 = vpop.f32.mrf.mxu0  ;;  %v12924_v19 = vadd.f32 %v7489_v34, %v7262_v61  ;;  %v7263_v47 = vadd.f32 %v7221_v32, %v12797_v25 }
 0x93c   : > { %v7665_v55 = vpop.f32.mrf.mxu1 }
 0x93d   : > { %v12927_v3 = vpop.f32.mrf.mxu0  ;;  %v12929_v27 = vadd.f32 %v7491_v36, %v7263_v47  ;;  %v12932_v1 = vadd.f32 %v7665_v55, %v12801_v5 }
 0x93e   : > { %v7667_v28 = vpop.f32.mrf.mxu1 }
 0x93f   : > { %v12935_v50 = vadd.f32 %v7667_v28, %v12804_v40  ;;  %v12937_v35 = vpop.f32.mrf.mxu0 }
 0x940   : > { %v7669_v6 = vpop.f32.mrf.mxu1 }
 0x941   : > { %v12940_v48 = vadd.f32 %v7669_v6, %v12807_v26  ;;  %v12945_v45 = vpop.f32.mrf.mxu0 }
 0x942   : > { %v7671_v0 = vpop.f32.mrf.mxu1 }
 0x943   : > { %v12943_v25 = vadd.f32 %v7671_v0, %v12811_v39  ;;  %v12953_v31 = vpop.f32.mrf.mxu0 }
 0x944   : > { %v7675_v46 = vpop.f32.mrf.mxu1 }
 0x945   : > { %v12948_v5 = vadd.f32 %v7675_v46, %v12815_v4  ;;  %v12961_v60 = vpop.f32.mrf.mxu0 }
 0x946   : > { %v7677_v15 = vpop.f32.mrf.mxu1 }
 0x947   : > { %v12951_v40 = vadd.f32 %v7677_v15, %v12818_v11  ;;  %v12969_v34 = vpop.f32.mrf.mxu0 }
 0x948   : > { %v7679_v51 = vpop.f32.mrf.mxu1 }
 0x949   : > { %v12956_v26 = vadd.f32 %v7679_v51, %v12821_v41  ;;  %v12977_v36 = vpop.f32.mrf.mxu0 }
 0x94a   : > { %v7681_v12 = vpop.f32.mrf.mxu1 }
 0x94b   : > { %v12959_v39 = vadd.f32 %v7681_v12, %v12825_v62  ;;  %v12985_v28 = vpop.f32.mrf.mxu0 }
 0x94c   : > { %v7685_v14 = vpop.f32.mrf.mxu1 }
 0x94d   : > { %v12964_v4 = vadd.f32 %v7685_v14, %v12829_v63  ;;  %v12993_v46 = vpop.f32.mrf.mxu0 }
 0x94e   : > { %v7687_v17 = vpop.f32.mrf.mxu1 }
 0x94f   : > { %v12967_v11 = vadd.f32 %v7687_v17, %v12832_v24  ;;  %v13001_v12 = vpop.f32.mrf.mxu0 }
 0x950   : > { %v7689_v61 = vpop.f32.mrf.mxu1 }
 0x951   : > { %v12972_v41 = vadd.f32 %v7689_v61, %v12835_v43  ;;  %v13009_v61 = vpop.f32.mrf.mxu0 }
 0x952   : > { %v7691_v32 = vpop.f32.mrf.mxu1 }
 0x953   : > { %v12975_v62 = vadd.f32 %v7691_v32, %v12839_v59 }
 0x954   : > { %v7695_v47 = vpop.f32.mrf.mxu1 }
 0x955   : > { %v12980_v63 = vadd.f32 %v7695_v47, %v12843_v7 }
 0x956   : > { %v7697_v55 = vpop.f32.mrf.mxu1 }
 0x957   : > { %v12983_v24 = vadd.f32 %v7697_v55, %v12846_v54  ;;  %v13017_v55 = vpop.f32.mrf.mxu0 }
 0x958   : > { %v7699_v6 = vpop.f32.mrf.mxu1 }
 0x959   : > { %v12988_v43 = vadd.f32 %v7699_v6, %v12849_v30 }
 0x95a   : > { %v7701_v0 = vpop.f32.mrf.mxu1 }
 0x95b   : > { %v12991_v59 = vadd.f32 %v7701_v0, %v12853_v2 }
 0x95c   : > { %v7705_v15 = vpop.f32.mrf.mxu1 }
 0x95d   : > { %v12996_v7 = vadd.f32 %v7705_v15, %v12857_v57  ;;  %v13025_v15 = vpop.f32.mrf.mxu0 }
 0x95e   : > { %v7707_v51 = vpop.f32.mrf.mxu1 }
 0x95f   : > { %v12999_v54 = vadd.f32 %v7707_v51, %v12860_v38 }
 0x960   : > { %v7709_v14 = vpop.f32.mrf.mxu1 }
 0x961   : > { %v13004_v30 = vadd.f32 %v7709_v14, %v12863_v20 }
 0x962   : > { %v7711_v17 = vpop.f32.mrf.mxu1 }
 0x963   : > { %v13007_v2 = vadd.f32 %v7711_v17, %v12867_v22  ;;  %v13033_v17 = vpop.f32.mrf.mxu0 }
 0x964   : > { %v7715_v32 = vpop.f32.mrf.mxu1 }
 0x965   : > { %v13012_v57 = vadd.f32 %v7715_v32, %v12870_v44 }
 0x966   : > { %v7717_v47 = vpop.f32.mrf.mxu1 }
 0x967   : > { %v13015_v38 = vadd.f32 %v7717_v47, %v12873_v23 }
 0x968   : > { %v7719_v6 = vpop.f32.mrf.mxu1 }
 0x969   : > { %v13020_v20 = vadd.f32 %v7719_v6, %v12876_v42  ;;  %v13041_v6 = vpop.f32.mrf.mxu0 }
 0x96a   : > { %v7721_v0 = vpop.f32.mrf.mxu1 }
 0x96b   : > { %v13023_v22 = vadd.f32 %v7721_v0, %v12879_v21 }
 0x96c   : > { %v7725_v51 = vpop.f32.mrf.mxu1 }
 0x96d   : > { %v13028_v44 = vadd.f32 %v7725_v51, %v12882_v33 }
 0x96e   : > { %v7727_v14 = vpop.f32.mrf.mxu1 }
 0x96f   : > { %v13031_v23 = vadd.f32 %v7727_v14, %v12885_v16  ;;  %v13049_v14 = vpop.f32.mrf.mxu0 }
 0x970   : > { %v7729_v32 = vpop.f32.mrf.mxu1 }
 0x971   : > { %13317 = vst [vmem:[#allocation5_spill] sm:$0xff] %v13031_v23  ;;  %v13036_v42 = vadd.f32 %v7729_v32, %v12888_v8 }
 0x972   : > { %v7731_v47 = vpop.f32.mrf.mxu1 }
 0x973   : > { %v13039_v21 = vadd.f32 %v7731_v47, %v12891_v58  ;;  %v13057_v47 = vpop.f32.mrf.mxu0 }
 0x974   : > { %v7735_v0 = vpop.f32.mrf.mxu1 }
 0x975   : > { %13318 = vst [vmem:[#allocation6_spill] sm:$0xff] %v13039_v21  ;;  %v13044_v33 = vadd.f32 %v7735_v0, %v12894_v37 }
 0x976   : > { %v7737_v51 = vpop.f32.mrf.mxu1 }
 0x977   : > { %v13047_v16 = vadd.f32 %v7737_v51, %v12897_v52  ;;  %v8346_v51 = vlaneseq }
 0x978   : > { %v7739_v23 = vpop.f32.mrf.mxu1 }
 0x979   : > { %13319 = vst [vmem:[#allocation7_spill] sm:$0xff] %v13047_v16  ;;  %v13052_v8 = vadd.f32 %v7739_v23, %v12900_v29  ;;  %v13067_v16 = vpop.f32.mrf.mxu0 }
 0x97a   : > { %v7741_v32 = vpop.f32.mrf.mxu1 }
 0x97b   : > { %v13055_v58 = vadd.f32 %v7741_v32, %v12903_v18 }
 0x97c   : > { %v7745_v21 = vpop.f32.mrf.mxu1 }
 0x97d   : > { %13320 = vst [vmem:[#allocation8_spill] sm:$0xff] %v13055_v58  ;;  %v13060_v37 = vadd.f32 %v7745_v21, %v12906_v49  ;;  %v8347_v49 = vshrl.u32 %v8346_v51, 7  ;;  %v13075_v21 = vpop.f32.mrf.mxu0 }
 0x97e   : > { %v7747_v0 = vpop.f32.mrf.mxu1 }
 0x97f   : > { %13321 = vst [vmem:[#allocation9_spill] sm:$0xff] %v13060_v37  ;;  %v13063_v52 = vadd.f32 %v7747_v0, %v12909_v13  ;;  %v8348_v58 = vsub.s32 0, %v8347_v49 }
 0x980   : > { %v7749_v29 = vpop.f32.mrf.mxu1 }
 0x981   : > { %13322 = vst [vmem:[#allocation10_spill] sm:$0xff] %v13063_v52  ;;  %v13070_v23 = vadd.f32 %v7749_v29, %v12912_v53  ;;  %v13083_v53 = vpop.f32.mrf.mxu0 }
 0x982   : > { %v7751_v18 = vpop.f32.mrf.mxu1 }
 0x983   : > { %13323 = vst [vmem:[#allocation11_spill] sm:$0xff] %v13070_v23  ;;  %v13073_v32 = vadd.f32 %v7751_v18, %v12915_v56  ;;  %v8344_v56 = vld [vmem:[%s13298_s8] sm:$0x3]  ;;  %v8352_v18 = vsub.s32 1, %v8347_v49 }
 0x984   : > { %v7755_v37 = vpop.f32.mrf.mxu1 }
 0x985   : > { %13324 = vst [vmem:[#allocation12_spill] sm:$0xff] %v13073_v32  ;;  %v13078_v13 = vadd.f32 %v7755_v37, %v12918_v10  ;;  %v8034_v10 = vadd.f32 %v12927_v3, %v12932_v1  ;;  %v13096_v37 = vrot.slane %v8344_v56, %v8348_v58 }
 0x986   : > { %v7757_v0 = vpop.f32.mrf.mxu1 }
 0x987   : > { %13325 = vst [vmem:[#allocation13_spill] sm:$0xff] %v13078_v13  ;;  %v13081_v52 = vadd.f32 %v7757_v0, %v12921_v9  ;;  %v13098_v0 = vpop.f32.mrf.mxu0  ;;  %v8035_v13 = vadd.f32 %v12937_v35, %v12935_v50  ;;  %v8037_v35 = vadd.f32 %v12953_v31, %v12943_v25  ;;  %v8039_v25 = vadd.f32 %v12969_v34, %v12951_v40 }
 0x988   : > { %v7759_v29 = vpop.f32.mrf.mxu1  ;;  %v8041_v40 = vadd.f32 %v12985_v28, %v12959_v39  ;;  %v8043_v39 = vadd.f32 %v13001_v12, %v12967_v11  ;;  %v8045_v11 = vadd.f32 %v13017_v55, %v12975_v62  ;;  %v8047_v62 = vadd.f32 %v13033_v17, %v12983_v24 }
 0x989   : > { %13326 = vst [vmem:[#allocation14_spill] sm:$0xff] %v13081_v52  ;;  %v13089_v51 = vadd.f32 %v7759_v29, %v12924_v19  ;;  %v13102_v19 = vrot.slane %v8344_v56, %v8352_v18  ;;  %v8038_v56 = vadd.f32 %v12961_v60, %v12948_v5  ;;  %v8040_v5 = vadd.f32 %v12977_v36, %v12956_v26 }
 0x98a   : > { %v7761_v32 = vpop.f32.mrf.mxu1  ;;  %v8042_v26 = vadd.f32 %v12993_v46, %v12964_v4  ;;  %v8044_v4 = vadd.f32 %v13009_v61, %v12972_v41  ;;  %v8046_v41 = vadd.f32 %v13025_v15, %v12980_v63  ;;  %v8048_v63 = vadd.f32 %v13041_v6, %v12988_v43 }
 0x98b   : > { %v13094_v9 = vadd.f32 %v7761_v32, %v12929_v27  ;;  %v8036_v27 = vadd.f32 %v12945_v45, %v12940_v48  ;;  %v13112_v32 = vpop.f32.mrf.mxu0  ;;  %v8049_v24 = vadd.f32 %v13049_v14, %v12991_v59  ;;  %v8050_v43 = vadd.f32 %v13057_v47, %v12996_v7 }
 0x98c   : > { %v8205_v52 = vpop.f32.mrf.mxu1  ;;  %v8051_v59 = vadd.f32 %v13067_v16, %v12999_v54  ;;  %v8052_v7 = vadd.f32 %v13075_v21, %v13004_v30  ;;  %v8053_v54 = vadd.f32 %v13083_v53, %v13007_v2  ;;  %v8054_v30 = vadd.f32 %v13098_v0, %v13012_v57 }
 0x98d   : > { %v8304_v23 = vadd.f32 %v8205_v52, %v8034_v10  ;;  %v8055_v2 = vadd.f32 %v13112_v32, %v13015_v38 }
 0x98e   : > { %v8207_v3 = vpop.f32.mrf.mxu1 }
 0x98f   : > { %v8356_v1 = vadd.f32 %v13096_v37, %v8304_v23  ;;  %v8305_v58 = vadd.f32 %v8207_v3, %v8035_v13  ;;  %v13123_v23 = vpop.f32.mrf.mxu0 }
 0x990   : > { %v8209_v50 = vpop.f32.mrf.mxu1  ;;  %v8056_v57 = vadd.f32 %v13123_v23, %v13020_v20 }
 0x991   : > { %8396 = vst [vmem:[%s13107_s17] sm:$0xff] %v8356_v1  ;;  %v8357_v52 = vadd.f32 %v13102_v19, %v8305_v58  ;;  %v8306_v49 = vadd.f32 %v8209_v50, %v8036_v27  ;;  %v13134_v27 = vpop.f32.mrf.mxu0 }
 0x992   : > { %v8211_v29 = vpop.f32.mrf.mxu1  ;;  %v8057_v38 = vadd.f32 %v13134_v27, %v13023_v22 }
 0x993   : > { %8397 = vst.msk [vmem:[%s13107_s17 + $0x8] sm:$0xff] %vm731_vm0, %v8357_v52  ;;  %v8358_v48 = vadd.f32 %v13096_v37, %v8306_v49  ;;  %v8307_v45 = vadd.f32 %v8211_v29, %v8037_v35  ;;  %v13145_v52 = vpop.f32.mrf.mxu0 }
 0x994   : > { %v8215_v13 = vpop.f32.mrf.mxu1  ;;  %v8058_v20 = vadd.f32 %v13145_v52, %v13028_v44 }
 0x995   : > { %8398 = vst [vmem:[%s13107_s17 + $0x10] sm:$0xff] %v8358_v48  ;;  %v8359_v31 = vadd.f32 %v13102_v19, %v8307_v45  ;;  %v8308_v18 = vadd.f32 %v8215_v13, %v8038_v56  ;;  %v13156_v45 = vpop.f32.mrf.mxu0 }
 0x996   : > { %v8217_v10 = vpop.f32.mrf.mxu1 }
 0x997   : > { %8399 = vst.msk [vmem:[%s13107_s17 + $0x18] sm:$0xff] %vm731_vm0, %v8359_v31  ;;  %v8360_v60 = vadd.f32 %v13096_v37, %v8308_v18  ;;  %v8309_v3 = vadd.f32 %v8217_v10, %v8039_v25  ;;  %v13167_v10 = vpop.f32.mrf.mxu0 }
 0x998   : > { %v8219_v1 = vpop.f32.mrf.mxu1  ;;  %v8060_v44 = vadd.f32 %v13167_v10, %v13036_v42 }
 0x999   : > { %8400 = vst [vmem:[%s13107_s17 + $0x20] sm:$0xff] %v8360_v60  ;;  %v8361_v34 = vadd.f32 %v13102_v19, %v8309_v3  ;;  %v8310_v58 = vadd.f32 %v8219_v1, %v8040_v5 }
 0x99a   : > { %v8221_v50 = vpop.f32.mrf.mxu1 }
 0x99b   : > { %8401 = vst.msk [vmem:[%s13107_s17 + $0x28] sm:$0xff] %vm731_vm0, %v8361_v34  ;;  %v8362_v36 = vadd.f32 %v13096_v37, %v8310_v58  ;;  %v8311_v35 = vadd.f32 %v8221_v50, %v8041_v40  ;;  %v13178_v40 = vpop.f32.mrf.mxu0 }
 0x99c   : > { %v8225_v49 = vpop.f32.mrf.mxu1 }
 0x99d   : > { %8402 = vst [vmem:[%s13107_s17 + $0x30] sm:$0xff] %v8362_v36  ;;  %v8363_v28 = vadd.f32 %v13102_v19, %v8311_v35  ;;  %v8312_v29 = vadd.f32 %v8225_v49, %v8042_v26  ;;  %v8005_v36 = vpop.f32.mrf.mxu0 }
 0x99e   : > { %v8227_v56 = vpop.f32.mrf.mxu1 }
 0x99f   : > { %8403 = vst.msk [vmem:[%s13107_s17 + $0x38] sm:$0xff] %vm731_vm0, %v8363_v28  ;;  %v8364_v46 = vadd.f32 %v13096_v37, %v8312_v29  ;;  %v8313_v48 = vadd.f32 %v8227_v56, %v8043_v39  ;;  %v8007_v29 = vpop.f32.mrf.mxu0 }
 0x9a0   : > { %v8229_v13 = vpop.f32.mrf.mxu1 }
 0x9a1   : > { %8404 = vst [vmem:[%s13107_s17 + $0x40] sm:$0xff] %v8364_v46  ;;  %v8365_v12 = vadd.f32 %v13102_v19, %v8313_v48  ;;  %v8314_v25 = vadd.f32 %v8229_v13, %v8044_v4  ;;  %v8009_v13 = vpop.f32.mrf.mxu0 }
 0x9a2   : > { %v8231_v31 = vpop.f32.mrf.mxu1 }
 0x9a3   : > { %8405 = vst.msk [vmem:[%s13107_s17 + $0x48] sm:$0xff] %vm731_vm0, %v8365_v12  ;;  %v8366_v61 = vadd.f32 %v13096_v37, %v8314_v25  ;;  %v8315_v18 = vadd.f32 %v8231_v31, %v8045_v11 }
 0x9a4   : > { %v8235_v5 = vpop.f32.mrf.mxu1 }
 0x9a5   : > { %8406 = vst [vmem:[%s13107_s17 + $0x50] sm:$0xff] %v8366_v61  ;;  %v8367_v55 = vadd.f32 %v13102_v19, %v8315_v18  ;;  %v8316_v60 = vadd.f32 %v8235_v5, %v8046_v41  ;;  %v8011_v41 = vpop.f32.mrf.mxu0 }
 0x9a6   : > { %v8237_v3 = vpop.f32.mrf.mxu1 }
 0x9a7   : > { %8407 = vst.msk [vmem:[%s13107_s17 + $0x58] sm:$0xff] %vm731_vm0, %v8367_v55  ;;  %v8368_v15 = vadd.f32 %v13096_v37, %v8316_v60  ;;  %v8317_v1 = vadd.f32 %v8237_v3, %v8047_v62  ;;  %v8015_v55 = vpop.f32.mrf.mxu0  ;;  %v13327_v3 = vld [vmem:[#allocation5_spill] sm:$0xff] }
 0x9a8   : > { %v8239_v34 = vpop.f32.mrf.mxu1  ;;  %v8059_v22 = vadd.f32 %v13156_v45, %v13327_v3 }
 0x9a9   : > { %8408 = vst [vmem:[%s13107_s17 + $0x60] sm:$0xff] %v8368_v15  ;;  %v8369_v17 = vadd.f32 %v13102_v19, %v8317_v1  ;;  %v8318_v58 = vadd.f32 %v8239_v34, %v8048_v63  ;;  %v8017_v34 = vpop.f32.mrf.mxu0 }
 0x9aa   : > { %v8241_v50 = vpop.f32.mrf.mxu1 }
 0x9ab   : > { %8409 = vst.msk [vmem:[%s13107_s17 + $0x68] sm:$0xff] %vm731_vm0, %v8369_v17  ;;  %v8370_v6 = vadd.f32 %v13096_v37, %v8318_v58  ;;  %v8319_v26 = vadd.f32 %v8241_v50, %v8049_v24  ;;  %v13328_v17 = vld [vmem:[#allocation6_spill] sm:$0xff] }
 0x9ac   : > { %v8245_v35 = vpop.f32.mrf.mxu1  ;;  %v8061_v45 = vadd.f32 %v13178_v40, %v13328_v17 }
 0x9ad   : > { %8410 = vst [vmem:[%s13107_s17 + $0x70] sm:$0xff] %v8370_v6  ;;  %v8371_v14 = vadd.f32 %v13102_v19, %v8319_v26  ;;  %v8320_v49 = vadd.f32 %v8245_v35, %v8050_v43  ;;  %v8062_v6 = vadd.f32 %v8005_v36, %v13044_v33  ;;  %v8019_v26 = vpop.f32.mrf.mxu0 }
 0x9ae   : > { %v8247_v39 = vpop.f32.mrf.mxu1 }
 0x9af   : > { %8411 = vst.msk [vmem:[%s13107_s17 + $0x78] sm:$0xff] %vm731_vm0, %v8371_v14  ;;  %v8372_v47 = vadd.f32 %v13096_v37, %v8320_v49  ;;  %v8321_v28 = vadd.f32 %v8247_v39, %v8051_v59  ;;  %v13329_v59 = vld [vmem:[#allocation7_spill] sm:$0xff] }
 0x9b0   : > { %v8249_v56 = vpop.f32.mrf.mxu1  ;;  %v8063_v14 = vadd.f32 %v8007_v29, %v13329_v59 }
 0x9b1   : > { %8412 = vst [vmem:[%s13107_s17 + $0x80] sm:$0xff] %v8372_v47  ;;  %v8373_v16 = vadd.f32 %v13102_v19, %v8321_v28  ;;  %v8322_v4 = vadd.f32 %v8249_v56, %v8052_v7  ;;  %v8064_v7 = vadd.f32 %v8009_v13, %v13052_v8  ;;  %v8021_v47 = vpop.f32.mrf.mxu0  ;;  %v13330_v56 = vld [vmem:[#allocation8_spill] sm:$0xff] }
 0x9b2   : > { %v8251_v46 = vpop.f32.mrf.mxu1 }
 0x9b3   : > { %8413 = vst.msk [vmem:[%s13107_s17 + $0x88] sm:$0xff] %vm731_vm0, %v8373_v16  ;;  %v8374_v21 = vadd.f32 %v13096_v37, %v8322_v4  ;;  %v8323_v48 = vadd.f32 %v8251_v46, %v8053_v54  ;;  %v8065_v54 = vadd.f32 %v8011_v41, %v13330_v56  ;;  %v13331_v46 = vld [vmem:[#allocation9_spill] sm:$0xff] }
 0x9b4   : > { %v8255_v11 = vpop.f32.mrf.mxu1 }
 0x9b5   : > { %8414 = vst [vmem:[%s13107_s17 + $0x90] sm:$0xff] %v8374_v21  ;;  %v8375_v53 = vadd.f32 %v13102_v19, %v8323_v48  ;;  %v8324_v12 = vadd.f32 %v8255_v11, %v8054_v30  ;;  %v8066_v30 = vadd.f32 %v8015_v55, %v13331_v46  ;;  %v8025_v48 = vpop.f32.mrf.mxu0  ;;  %v13332_v11 = vld [vmem:[#allocation10_spill] sm:$0xff] }
 0x9b6   : > { %v8257_v25 = vpop.f32.mrf.mxu1 }
 0x9b7   : > { %8415 = vst.msk [vmem:[%s13107_s17 + $0x98] sm:$0xff] %vm731_vm0, %v8375_v53  ;;  %v8376_v0 = vadd.f32 %v13096_v37, %v8324_v12  ;;  %v8325_v31 = vadd.f32 %v8257_v25, %v8055_v2  ;;  %v8067_v2 = vadd.f32 %v8017_v34, %v13332_v11 }
 0x9b8   : > { %v8259_v61 = vpop.f32.mrf.mxu1 }
 0x9b9   : > { %8416 = vst [vmem:[%s13107_s17 + $0xa0] sm:$0xff] %v8376_v0  ;;  %v8377_v32 = vadd.f32 %v13102_v19, %v8325_v31  ;;  %v8326_v18 = vadd.f32 %v8259_v61, %v8056_v57  ;;  %v13333_v57 = vld [vmem:[#allocation11_spill] sm:$0xff]  ;;  %v8027_v61 = vpop.f32.mrf.mxu0 }
 0x9ba   : > { %v8261_v5 = vpop.f32.mrf.mxu1  ;;  %v8068_v0 = vadd.f32 %v8019_v26, %v13333_v57 }
 0x9bb   : > { %8417 = vst.msk [vmem:[%s13107_s17 + $0xa8] sm:$0xff] %vm731_vm0, %v8377_v32  ;;  %v8378_v23 = vadd.f32 %v13096_v37, %v8326_v18  ;;  %v8327_v62 = vadd.f32 %v8261_v5, %v8057_v38  ;;  %v13334_v32 = vld [vmem:[#allocation12_spill] sm:$0xff] }
 0x9bc   : > { %v8265_v60 = vpop.f32.mrf.mxu1  ;;  %v8069_v18 = vadd.f32 %v8021_v47, %v13334_v32 }
 0x9bd   : > { %8418 = vst [vmem:[%s13107_s17 + $0xb0] sm:$0xff] %v8378_v23  ;;  %v8379_v27 = vadd.f32 %v13102_v19, %v8327_v62  ;;  %v8328_v63 = vadd.f32 %v8265_v60, %v8058_v20  ;;  %v13335_v62 = vld [vmem:[#allocation13_spill] sm:$0xff] }
 0x9be   : > { %v8267_v15 = vpop.f32.mrf.mxu1  ;;  %v8070_v55 = vadd.f32 %v8025_v48, %v13335_v62 }
 0x9bf   : > { %8419 = vst.msk [vmem:[%s13107_s17 + $0xb8] sm:$0xff] %vm731_vm0, %v8379_v27  ;;  %v8380_v52 = vadd.f32 %v13096_v37, %v8328_v63  ;;  %v8329_v1 = vadd.f32 %v8267_v15, %v8059_v22  ;;  %v8029_v22 = vpop.f32.mrf.mxu0  ;;  %v13336_v63 = vld [vmem:[#allocation14_spill] sm:$0xff] }
 0x9c0   : > { %v8269_v24 = vpop.f32.mrf.mxu1  ;;  %v8071_v15 = vadd.f32 %v8027_v61, %v13336_v63  ;;  %v8072_v34 = vadd.f32 %v8029_v22, %v13089_v51 }
 0x9c1   : > { %8420 = vst [vmem:[%s13107_s17 + $0xc0] sm:$0xff] %v8380_v52  ;;  %v8381_v58 = vadd.f32 %v13102_v19, %v8329_v1  ;;  %v8330_v50 = vadd.f32 %v8269_v24, %v8060_v44 }
 0x9c2   : > { %v8271_v43 = vpop.f32.mrf.mxu1 }
 0x9c3   : > { %8421 = vst.msk [vmem:[%s13107_s17 + $0xc8] sm:$0xff] %vm731_vm0, %v8381_v58  ;;  %v8382_v42 = vadd.f32 %v13096_v37, %v8330_v50  ;;  %v8331_v10 = vadd.f32 %v8271_v43, %v8061_v45  ;;  %v8031_v45 = vpop.f32.mrf.mxu0 }
 0x9c4   : > { %v8275_v35 = vpop.f32.mrf.mxu1  ;;  %v8073_v50 = vadd.f32 %v8031_v45, %v13094_v9 }
 0x9c5   : > { %8422 = vst [vmem:[%s13107_s17 + $0xd0] sm:$0xff] %v8382_v42  ;;  %v8383_v40 = vadd.f32 %v13102_v19, %v8331_v10  ;;  %v8332_v49 = vadd.f32 %v8275_v35, %v8062_v6 }
 0x9c6   : > { %v8277_v39 = vpop.f32.mrf.mxu1 }
 0x9c7   : > { %8423 = vst.msk [vmem:[%s13107_s17 + $0xd8] sm:$0xff] %vm731_vm0, %v8383_v40  ;;  %v8384_v33 = vadd.f32 %v13096_v37, %v8332_v49  ;;  %v8333_v36 = vadd.f32 %v8277_v39, %v8063_v14 }
 0x9c8   : > { %v8279_v28 = vpop.f32.mrf.mxu1 }
 0x9c9   : > { %8424 = vst [vmem:[%s13107_s17 + $0xe0] sm:$0xff] %v8384_v33  ;;  %v8385_v29 = vadd.f32 %v13102_v19, %v8333_v36  ;;  %v8334_v16 = vadd.f32 %v8279_v28, %v8064_v7 }
 0x9ca   : > { %v8281_v4 = vpop.f32.mrf.mxu1 }
 0x9cb   : > { %8425 = vst.msk [vmem:[%s13107_s17 + $0xe8] sm:$0xff] %vm731_vm0, %v8385_v29  ;;  %v8386_v8 = vadd.f32 %v13096_v37, %v8334_v16  ;;  %v8335_v21 = vadd.f32 %v8281_v4, %v8065_v54 }
 0x9cc   : > { %v8285_v13 = vpop.f32.mrf.mxu1 }
 0x9cd   : > { %8426 = vst [vmem:[%s13107_s17 + $0xf0] sm:$0xff] %v8386_v8  ;;  %v8387_v53 = vadd.f32 %v13102_v19, %v8335_v21  ;;  %v8336_v12 = vadd.f32 %v8285_v13, %v8066_v30 }
 0x9ce   : > { %v8287_v25 = vpop.f32.mrf.mxu1 }
 0x9cf   : > { %8427 = vst.msk [vmem:[%s13107_s17 + $0xf8] sm:$0xff] %vm731_vm0, %v8387_v53  ;;  %v8388_v31 = vadd.f32 %v13096_v37, %v8336_v12  ;;  %v8337_v41 = vadd.f32 %v8287_v25, %v8067_v2 }
 0x9d0   : > { %v8289_v38 = vpop.f32.mrf.mxu1 }
 0x9d1   : > { %8428 = vst [vmem:[%s13107_s17 + $0x100] sm:$0xff] %v8388_v31  ;;  %v8389_v5 = vadd.f32 %v13102_v19, %v8337_v41  ;;  %v8338_v20 = vadd.f32 %v8289_v38, %v8068_v0 }
 0x9d2   : > { %v8291_v23 = vpop.f32.mrf.mxu1 }
 0x9d3   : > { %8429 = vst.msk [vmem:[%s13107_s17 + $0x108] sm:$0xff] %vm731_vm0, %v8389_v5  ;;  %v8390_v60 = vadd.f32 %v13096_v37, %v8338_v20  ;;  %v8339_v3 = vadd.f32 %v8291_v23, %v8069_v18 }
 0x9d4   : > { %v8295_v27 = vpop.f32.mrf.mxu1 }
 0x9d5   : > { %8430 = vst [vmem:[%s13107_s17 + $0x110] sm:$0xff] %v8390_v60  ;;  %v8391_v44 = vadd.f32 %v13102_v19, %v8339_v3  ;;  %v8340_v52 = vadd.f32 %v8295_v27, %v8070_v55 }
 0x9d6   : > { %v8297_v1 = vpop.f32.mrf.mxu1 }
 0x9d7   : > { %8431 = vst.msk [vmem:[%s13107_s17 + $0x118] sm:$0xff] %vm731_vm0, %v8391_v44  ;;  %v8392_v24 = vadd.f32 %v13096_v37, %v8340_v52  ;;  %v8341_v17 = vadd.f32 %v8297_v1, %v8071_v15 }
 0x9d8   : > { %v8299_v58 = vpop.f32.mrf.mxu1 }
 0x9d9   : > { %8432 = vst [vmem:[%s13107_s17 + $0x120] sm:$0xff] %v8392_v24  ;;  %v8393_v43 = vadd.f32 %v13102_v19, %v8341_v17  ;;  %v8342_v6 = vadd.f32 %v8299_v58, %v8072_v34 }
 0x9da   : > { %v8301_v42 = vpop.f32.mrf.mxu1 }
 0x9db   : > { %8433 = vst.msk [vmem:[%s13107_s17 + $0x128] sm:$0xff] %vm731_vm0, %v8393_v43  ;;  %v8394_v10 = vadd.f32 %v13096_v37, %v8342_v6  ;;  %v8343_v51 = vadd.f32 %v8301_v42, %v8073_v50 }
 0x9dd   : > { %8434 = vst [vmem:[%s13107_s17 + $0x130] sm:$0xff] %v8394_v10  ;;  %v8395_v26 = vadd.f32 %v13102_v19, %v8343_v51 }
 0x9df   : > { %8435 = vst.msk [vmem:[%s13107_s17 + $0x138] sm:$0xff] %vm731_vm0, %v8395_v26 }
 0x9e0 PF: > { %s22_s21 = sadd.s32 1, %s9988_s21  }
 0x9e1   : > { %p19_p5 = scmp.ge.s32.totalorder %s22_s21, 4  }
 0x9e3   :  { %21 = sbr.rel (!%p19_p5) target bundleno = 1 (0x1), region = 130 }

</bundles_post_ra>
